<compile_context>
chip_gen: v7x
topology: tpu7x:2x2x1
jax: 0.10.0
libtpu: 0.0.40
codegen_flags: <defaults>
</compile_context>

<pallas_src>
import jax
import jax.numpy as jnp
from jax import lax
from jax.experimental import pallas as pl
from jax.experimental.pallas import tpu as pltpu


def _round_up(x, m):
    return ((x + m - 1) // m) * m


def _pick_block_b(n):
    """Largest B <= 4 dividing n that still leaves >= 2 grid steps (v7x)."""
    best = 1
    for b in range(1, min(4, n) + 1):
        if n % b == 0 and (n // b >= 2 or (n == 1 and b == 1)):
            best = b
    return best


# ----------------------------------------------------------------------------
# Fused kernel (built per static geometry)
# ----------------------------------------------------------------------------
def _make_kernel(Wp, M, c1):
    """Wp: padded row pitch; M: conv output rows per step; c1: real layer-1
    output channels (layer-2's dense K slab width)."""
    OFF = Wp + 1                                   # flat offset of pixel (1,1)
    taps = [kh * Wp + kw for kh in range(3) for kw in range(3)]

    def kernel(xf_ref, mask_ref, sel_ref,
               w1_ref, s1_ref, b1_ref,
               w2_ref, s2_ref, b2_ref,
               w3_ref, s3_ref, b3_ref,
               fcw_ref, fcb_ref,
               o_ref, a1_ref, a2_ref):
        mask = mask_ref[...]                        # (M, 1) f32: 1 on real px

        def conv(patches, w_ref, s_ref, b_ref):
            # One im2col matmul per layer: K accumulates inside the MXU,
            # f32 accumulation, folded-BN scale/shift + ReLU epilogue.
            acc = jnp.dot(patches, w_ref[...],
                          preferred_element_type=jnp.float32)
            return jnp.maximum(acc * s_ref[...] + b_ref[...], 0.0)

        def writeback(dst_ref, y):
            # Thin halo strips (top halo / bottom halo + alignment tail) are
            # the only rows not covered by the single contiguous masked store.
            z = jnp.zeros((OFF, dst_ref.shape[1]), dst_ref.dtype)
            dst_ref[0:OFF, :] = z
            dst_ref[OFF + M:OFF + M + OFF, :] = z
            dst_ref[OFF:OFF + M, :] = y.astype(dst_ref.dtype)

        # ---- Layer 1: Cin (densely packed to 8 lanes) -> 64 (padded to 128
        #      output columns so the a1 store is full-lane).  K = 9*8 = 72.
        p1 = jnp.concatenate([xf_ref[t:t + M, :] for t in taps], axis=-1)
        writeback(a1_ref, conv(p1, w1_ref, s1_ref, b1_ref) * mask)

        # ---- Layer 2: 64 -> 128.  Read only the 64 real lanes of a1 so the
        #      patch matrix / K is dense (K = 576, no zero K-groups).
        p2 = jnp.concatenate([a1_ref[t:t + M, 0:c1] for t in taps], axis=-1)
        writeback(a2_ref, conv(p2, w2_ref, s2_ref, b2_ref) * mask)

        # ---- Layer 3: 128 -> 256 (feeds the head directly, no writeback).
        p3 = jnp.concatenate([a2_ref[t:t + M, :] for t in taps], axis=-1)
        y3 = conv(p3, w3_ref, s3_ref, b3_ref)

        # ---- Head: masked mean pool (sel rows carry 1/(H*W) at real pixels
        # of each image, 0 on halo/junk rows) + Linear(256,1) + sigmoid.
        pooled = jnp.dot(sel_ref[...], y3,
                         preferred_element_type=jnp.float32)     # (B, 256)
        logit = jnp.sum(pooled * fcw_ref[...], axis=-1, keepdims=True) \
            + fcb_ref[...]                                        # (B, 1)
        # Numerically stable sigmoid on the EUP: sigmoid(x) = 0.5*(tanh(x/2)+1)
        o_ref[...] = (0.5 * (jnp.tanh(0.5 * logit) + 1.0)).astype(o_ref.dtype)

    return kernel


# ----------------------------------------------------------------------------
# Wrapper
# ----------------------------------------------------------------------------
@jax.jit
def adversary_forward(x_nchw, conv_params, fc_w, fc_b):
    """Pallas forward. x_nchw: (N, C, H, W) f32 -> (N, 1) f32."""
    (w1, s1, b1), (w2, s2, b2), (w3, s3, b3) = conv_params
    N, C, H, W = x_nchw.shape
    Hp, Wp = H + 2, W + 2
    c1, c2, c3 = w1.shape[-1], w2.shape[-1], w3.shape[-1]

    C8 = _round_up(max(C, 8), 8)        # layer-1 input channel lanes (dense K)
    c1p = _round_up(c1, 128)            # a1 lane width -> full-lane stores
    R = _round_up(Hp * Wp + 2, 8)       # per-image flat row stride
    B = _pick_block_b(N)                # images per grid step
    nblk = N // B
    A = B * R                           # flat rows per block
    M = A - 2 * (Wp + 1)                # conv output rows per block
    HW = H * W

    # ---- Input: cast to bf16 first, NHWC, zero halo + channel pad, flatten
    # each image to (Hp*Wp, C8) rows padded to stride R, stack the batch.
    x = jnp.transpose(x_nchw.astype(jnp.bfloat16), (0, 2, 3, 1))
    x = jnp.pad(x, ((0, 0), (1, 1), (1, 1), (0, C8 - C)))
    x = jnp.pad(x.reshape(N, Hp * Wp, C8), ((0, 0), (0, R - Hp * Wp), (0, 0)))
    xf = x.reshape(N * R, C8)

    # ---- Static masks: interior-pixel mask (zeroes halo/junk rows before the
    # inter-layer writeback) and per-image mean-pool selection matrix.
    loc = jnp.arange(M)
    r = loc % R
    yrow = r // Wp
    xcol = r % Wp
    interior = (yrow < H) & (xcol < W)
    mask = interior.astype(jnp.float32).reshape(M, 1)
    img = loc // R
    sel = jnp.where((img[None, :] == jnp.arange(B)[:, None]) & interior[None, :],
                    1.0 / HW, 0.0).astype(jnp.float32)            # (B, M)

    def pack_w(w, cin_pad, cout_pad):
        # (3,3,Cin,Cout) -> (9*cin_pad, cout_pad) bf16, tap-major rows.
        kh, kw, cin, cout = w.shape
        w = jnp.pad(w, ((0, 0), (0, 0), (0, cin_pad - cin), (0, cout_pad - cout)))
        return w.reshape(kh * kw * cin_pad, cout_pad).astype(jnp.bfloat16)

    def pack_v(v, cpad):
        return jnp.pad(v, (0, cpad - v.shape[0])).reshape(1, cpad) \
            .astype(jnp.float32)

    kernel = _make_kernel(Wp, M, c1)

    out = pl.pallas_call(
        kernel,
        out_shape=jax.ShapeDtypeStruct((nblk, B, 1), jnp.float32),
        grid=(nblk,),
        in_specs=[
            pl.BlockSpec((B * R, C8), lambda n: (n, 0)),     # input rows
            pl.BlockSpec((M, 1), lambda n: (0, 0)),          # interior mask
            pl.BlockSpec((B, M), lambda n: (0, 0)),          # pool selection
            pl.BlockSpec((9 * C8, c1p), lambda n: (0, 0)),   # w1 (72, 128)
            pl.BlockSpec((1, c1p), lambda n: (0, 0)),
            pl.BlockSpec((1, c1p), lambda n: (0, 0)),
            pl.BlockSpec((9 * c1, c2), lambda n: (0, 0)),    # w2 (576, 128)
            pl.BlockSpec((1, c2), lambda n: (0, 0)),
            pl.BlockSpec((1, c2), lambda n: (0, 0)),
            pl.BlockSpec((9 * c2, c3), lambda n: (0, 0)),    # w3 (1152, 256)
            pl.BlockSpec((1, c3), lambda n: (0, 0)),
            pl.BlockSpec((1, c3), lambda n: (0, 0)),
            pl.BlockSpec((1, c3), lambda n: (0, 0)),         # fc weight
            pl.BlockSpec((1, 1), lambda n: (0, 0)),          # fc bias
        ],
        out_specs=pl.BlockSpec((None, B, 1), lambda n: (n, 0, 0)),
        scratch_shapes=[
            pltpu.VMEM((A, c1p), jnp.bfloat16),   # layer-2 input (flat padded)
            pltpu.VMEM((A, c2), jnp.bfloat16),    # layer-3 input (flat padded)
        ],
        compiler_params=pltpu.CompilerParams(
            dimension_semantics=("parallel",)),
    )(xf, mask, sel,
      pack_w(w1, C8, c1p), pack_v(s1, c1p), pack_v(b1, c1p),
      pack_w(w2, c1, c2), pack_v(s2, c2), pack_v(b2, c2),
      pack_w(w3, c2, c3), pack_v(s3, c3), pack_v(b3, c3),
      fc_w.reshape(1, c3).astype(jnp.float32),
      fc_b.reshape(1, 1).astype(jnp.float32))
    return out.reshape(N, 1)


# ----------------------------------------------------------------------------
# Parameter init (deterministic, shapes from Adversary_Init.__init__)
# ----------------------------------------------------------------------------
def init_params(key, in_channels):
    eps = 1e-5
    chans = [in_channels, 64, 128, 256]
    conv_params = []
    for i in range(3):
        cin, cout = chans[i], chans[i + 1]
        key, k1, k2, k3, k4, k5, k6 = jax.random.split(key, 7)
        w = jax.random.normal(k1, (3, 3, cin, cout), jnp.float32) \
            * (1.0 / jnp.sqrt(9.0 * cin))
        conv_b = 0.05 * jax.random.normal(k2, (cout,), jnp.float32)
        gamma = 1.0 + 0.1 * jax.random.normal(k3, (cout,), jnp.float32)
        beta = 0.1 * jax.random.normal(k4, (cout,), jnp.float32)
        running_mean = 0.1 * jax.random.normal(k5, (cout,), jnp.float32)
        running_var = jnp.abs(1.0 + 0.1 * jax.random.normal(k6, (cout,),
                                                            jnp.float32))
        # Fold BN (inference) + conv bias into per-channel scale / shift.
        scale = gamma / jnp.sqrt(running_var + eps)
        shift = scale * (conv_b - running_mean) + beta
        conv_params.append((w, scale, shift))
    key, k7, k8 = jax.random.split(key, 3)
    fc_w = jax.random.normal(k7, (256, 1), jnp.float32) * (1.0 / 16.0)
    fc_b = 0.05 * jax.random.normal(k8, (1,), jnp.float32)
    return tuple(conv_params), fc_w, fc_b


# ----------------------------------------------------------------------------
# Pure-JAX reference (same bf16 MXU-operand quantization as the kernel)
# ----------------------------------------------------------------------------
def reference_forward(x_nchw, conv_params, fc_w, fc_b):
    x = jnp.transpose(x_nchw, (0, 2, 3, 1))
    for w, scale, shift in conv_params:
        y = lax.conv_general_dilated(
            x.astype(jnp.bfloat16), w.astype(jnp.bfloat16),
            window_strides=(1, 1), padding="SAME",
            dimension_numbers=("NHWC", "HWIO", "NHWC"),
            preferred_element_type=jnp.float32)
        x = jnp.maximum(y * scale + shift, 0.0)
    pooled = jnp.mean(x, axis=(1, 2))
    return jax.nn.sigmoid(pooled @ fc_w + fc_b)


if __name__ == "__main__":
    key = jax.random.PRNGKey(0)
    k_x, k_p = jax.random.split(key)

    N, C, H, W = 2, 4, 16, 16
    x = jax.random.normal(k_x, (N, C, H, W), jnp.float32)  # NCHW like PyTorch
    conv_params, fc_w, fc_b = init_params(k_p, in_channels=C)

    out = adversary_forward(x, conv_params, fc_w, fc_b)
    out = jax.block_until_ready(out)

    ref = reference_forward(x, conv_params, fc_w, fc_b)
    assert out.shape == (N, 1), out.shape
    assert jnp.allclose(out, ref, rtol=2e-2, atol=2e-2), (out, ref)

    print("KERNEL_OK")
</pallas_src>

<mosaic_0001>
module attributes {stable_mosaic.version = 11 : i64} {
  func.func @kernel(%arg0: i32, %arg1: memref<328x8xbf16, #tpu.memory_space<vmem>>, %arg2: memref<290x1xf32, #tpu.memory_space<vmem>>, %arg3: memref<1x290xf32, #tpu.memory_space<vmem>>, %arg4: memref<72x128xbf16, #tpu.memory_space<vmem>>, %arg5: memref<1x128xf32, #tpu.memory_space<vmem>>, %arg6: memref<1x128xf32, #tpu.memory_space<vmem>>, %arg7: memref<576x128xbf16, #tpu.memory_space<vmem>>, %arg8: memref<1x128xf32, #tpu.memory_space<vmem>>, %arg9: memref<1x128xf32, #tpu.memory_space<vmem>>, %arg10: memref<1152x256xbf16, #tpu.memory_space<vmem>>, %arg11: memref<1x256xf32, #tpu.memory_space<vmem>>, %arg12: memref<1x256xf32, #tpu.memory_space<vmem>>, %arg13: memref<1x256xf32, #tpu.memory_space<vmem>>, %arg14: memref<1x1xf32, #tpu.memory_space<vmem>>, %arg15: memref<1x1x1xf32, #tpu.memory_space<vmem>>, %arg16: memref<328x128xbf16, #tpu.memory_space<vmem>>, %arg17: memref<328x128xbf16, #tpu.memory_space<vmem>>) attributes {dimension_semantics = [#tpu.dimension_semantics<parallel>], iteration_bounds = array<i64: 2>, scalar_prefetch = 0 : i64, scratch_operands = 2 : i64, tpu.core_type = #tpu.core_type<tc>, window_params = [{transform_indices = @transform_0, window_bounds = array<i64: 328, 8>}, {pipeline_mode = #tpu.pipeline_mode<synchronous>, transform_indices = @transform_1, window_bounds = array<i64: 290, 1>}, {pipeline_mode = #tpu.pipeline_mode<synchronous>, transform_indices = @transform_2, window_bounds = array<i64: 1, 290>}, {pipeline_mode = #tpu.pipeline_mode<synchronous>, transform_indices = @transform_3, window_bounds = array<i64: 72, 128>}, {pipeline_mode = #tpu.pipeline_mode<synchronous>, transform_indices = @transform_4, window_bounds = array<i64: 1, 128>}, {pipeline_mode = #tpu.pipeline_mode<synchronous>, transform_indices = @transform_5, window_bounds = array<i64: 1, 128>}, {pipeline_mode = #tpu.pipeline_mode<synchronous>, transform_indices = @transform_6, window_bounds = array<i64: 576, 128>}, {pipeline_mode = #tpu.pipeline_mode<synchronous>, transform_indices = @transform_7, window_bounds = array<i64: 1, 128>}, {pipeline_mode = #tpu.pipeline_mode<synchronous>, transform_indices = @transform_8, window_bounds = array<i64: 1, 128>}, {pipeline_mode = #tpu.pipeline_mode<synchronous>, transform_indices = @transform_9, window_bounds = array<i64: 1152, 256>}, {pipeline_mode = #tpu.pipeline_mode<synchronous>, transform_indices = @transform_10, window_bounds = array<i64: 1, 256>}, {pipeline_mode = #tpu.pipeline_mode<synchronous>, transform_indices = @transform_11, window_bounds = array<i64: 1, 256>}, {pipeline_mode = #tpu.pipeline_mode<synchronous>, transform_indices = @transform_12, window_bounds = array<i64: 1, 256>}, {pipeline_mode = #tpu.pipeline_mode<synchronous>, transform_indices = @transform_13, window_bounds = array<i64: 1, 1>}, {transform_indices = @transform_14, window_bounds = array<i64: 1, 1, 1>}]} {
    %c0 = arith.constant 0 : index
    %c0_0 = arith.constant 0 : index
    %0 = vector.load %arg2[%c0, %c0_0] : memref<290x1xf32, #tpu.memory_space<vmem>>, vector<290x1xf32>
    %c0_1 = arith.constant 0 : index
    %c0_2 = arith.constant 0 : index
    %1 = vector.load %arg1[%c0_1, %c0_2] : memref<328x8xbf16, #tpu.memory_space<vmem>>, vector<290x8xbf16>
    %c1 = arith.constant 1 : index
    %c0_3 = arith.constant 0 : index
    %2 = vector.load %arg1[%c1, %c0_3] : memref<328x8xbf16, #tpu.memory_space<vmem>>, vector<290x8xbf16>
    %c2 = arith.constant 2 : index
    %c0_4 = arith.constant 0 : index
    %3 = vector.load %arg1[%c2, %c0_4] : memref<328x8xbf16, #tpu.memory_space<vmem>>, vector<290x8xbf16>
    %c18 = arith.constant 18 : index
    %c0_5 = arith.constant 0 : index
    %4 = vector.load %arg1[%c18, %c0_5] : memref<328x8xbf16, #tpu.memory_space<vmem>>, vector<290x8xbf16>
    %c19 = arith.constant 19 : index
    %c0_6 = arith.constant 0 : index
    %5 = vector.load %arg1[%c19, %c0_6] : memref<328x8xbf16, #tpu.memory_space<vmem>>, vector<290x8xbf16>
    %c20 = arith.constant 20 : index
    %c0_7 = arith.constant 0 : index
    %6 = vector.load %arg1[%c20, %c0_7] : memref<328x8xbf16, #tpu.memory_space<vmem>>, vector<290x8xbf16>
    %c36 = arith.constant 36 : index
    %c0_8 = arith.constant 0 : index
    %7 = vector.load %arg1[%c36, %c0_8] : memref<328x8xbf16, #tpu.memory_space<vmem>>, vector<290x8xbf16>
    %c37 = arith.constant 37 : index
    %c0_9 = arith.constant 0 : index
    %8 = vector.load %arg1[%c37, %c0_9] : memref<328x8xbf16, #tpu.memory_space<vmem>>, vector<290x8xbf16>
    %c38 = arith.constant 38 : index
    %c0_10 = arith.constant 0 : index
    %9 = vector.load %arg1[%c38, %c0_10] : memref<328x8xbf16, #tpu.memory_space<vmem>>, vector<290x8xbf16>
    %10 = tpu.concatenate %1, %2, %3, %4, %5, %6, %7, %8, %9 in 1 : vector<290x8xbf16>, vector<290x8xbf16>, vector<290x8xbf16>, vector<290x8xbf16>, vector<290x8xbf16>, vector<290x8xbf16>, vector<290x8xbf16>, vector<290x8xbf16>, vector<290x8xbf16> -> vector<290x72xbf16>
    %c0_11 = arith.constant 0 : index
    %c0_12 = arith.constant 0 : index
    %11 = vector.load %arg4[%c0_11, %c0_12] : memref<72x128xbf16, #tpu.memory_space<vmem>>, vector<72x128xbf16>
    %cst = arith.constant dense<0.000000e+00> : vector<290x128xf32>
    %12 = tpu.matmul %10, %11, %cst {dimension_numbers = #tpu.dot_dimension_numbers<[1], [0], [0], [1], [0, 0, 1, 1], [], []>} : vector<290x72xbf16>, vector<72x128xbf16>, vector<290x128xf32> -> vector<290x128xf32>
    %c0_13 = arith.constant 0 : index
    %c0_14 = arith.constant 0 : index
    %13 = vector.load %arg5[%c0_13, %c0_14] : memref<1x128xf32, #tpu.memory_space<vmem>>, vector<1x128xf32>
    %14 = vector.broadcast %13 : vector<1x128xf32> to vector<290x128xf32>
    %15 = arith.mulf %12, %14 : vector<290x128xf32>
    %c0_15 = arith.constant 0 : index
    %c0_16 = arith.constant 0 : index
    %16 = vector.load %arg6[%c0_15, %c0_16] : memref<1x128xf32, #tpu.memory_space<vmem>>, vector<1x128xf32>
    %17 = vector.broadcast %16 : vector<1x128xf32> to vector<290x128xf32>
    %18 = arith.addf %15, %17 : vector<290x128xf32>
    %cst_17 = arith.constant 0.000000e+00 : f32
    %19 = vector.broadcast %cst_17 : f32 to vector<290x128xf32>
    %20 = arith.maximumf %18, %19 : vector<290x128xf32>
    %21 = vector.broadcast %0 : vector<290x1xf32> to vector<290x128xf32>
    %22 = arith.mulf %20, %21 : vector<290x128xf32>
    %cst_18 = arith.constant 0.000000e+00 : bf16
    %23 = vector.broadcast %cst_18 : bf16 to vector<19x128xbf16>
    %c0_19 = arith.constant 0 : index
    %c0_20 = arith.constant 0 : index
    %24 = vector.load %arg16[%c0_19, %c0_20] : memref<328x128xbf16, #tpu.memory_space<vmem>>, vector<19x128xbf16>
    tpu.vector_store %arg16[%c0_19, %c0_20], %23 {strides = array<i32>} : memref<328x128xbf16, #tpu.memory_space<vmem>>, vector<19x128xbf16>,
    %c309 = arith.constant 309 : index
    %c0_21 = arith.constant 0 : index
    %25 = vector.load %arg16[%c309, %c0_21] : memref<328x128xbf16, #tpu.memory_space<vmem>>, vector<19x128xbf16>
    tpu.vector_store %arg16[%c309, %c0_21], %23 {strides = array<i32>} : memref<328x128xbf16, #tpu.memory_space<vmem>>, vector<19x128xbf16>,
    %26 = arith.truncf %22 : vector<290x128xf32> to vector<290x128xbf16>
    %c19_22 = arith.constant 19 : index
    %c0_23 = arith.constant 0 : index
    %27 = vector.load %arg16[%c19_22, %c0_23] : memref<328x128xbf16, #tpu.memory_space<vmem>>, vector<290x128xbf16>
    tpu.vector_store %arg16[%c19_22, %c0_23], %26 {strides = array<i32>} : memref<328x128xbf16, #tpu.memory_space<vmem>>, vector<290x128xbf16>,
    %c0_24 = arith.constant 0 : index
    %c0_25 = arith.constant 0 : index
    %28 = vector.load %arg16[%c0_24, %c0_25] : memref<328x128xbf16, #tpu.memory_space<vmem>>, vector<290x64xbf16>
    %c1_26 = arith.constant 1 : index
    %c0_27 = arith.constant 0 : index
    %29 = vector.load %arg16[%c1_26, %c0_27] : memref<328x128xbf16, #tpu.memory_space<vmem>>, vector<290x64xbf16>
    %c2_28 = arith.constant 2 : index
    %c0_29 = arith.constant 0 : index
    %30 = vector.load %arg16[%c2_28, %c0_29] : memref<328x128xbf16, #tpu.memory_space<vmem>>, vector<290x64xbf16>
    %c18_30 = arith.constant 18 : index
    %c0_31 = arith.constant 0 : index
    %31 = vector.load %arg16[%c18_30, %c0_31] : memref<328x128xbf16, #tpu.memory_space<vmem>>, vector<290x64xbf16>
    %c19_32 = arith.constant 19 : index
    %c0_33 = arith.constant 0 : index
    %32 = vector.load %arg16[%c19_32, %c0_33] : memref<328x128xbf16, #tpu.memory_space<vmem>>, vector<290x64xbf16>
    %c20_34 = arith.constant 20 : index
    %c0_35 = arith.constant 0 : index
    %33 = vector.load %arg16[%c20_34, %c0_35] : memref<328x128xbf16, #tpu.memory_space<vmem>>, vector<290x64xbf16>
    %c36_36 = arith.constant 36 : index
    %c0_37 = arith.constant 0 : index
    %34 = vector.load %arg16[%c36_36, %c0_37] : memref<328x128xbf16, #tpu.memory_space<vmem>>, vector<290x64xbf16>
    %c37_38 = arith.constant 37 : index
    %c0_39 = arith.constant 0 : index
    %35 = vector.load %arg16[%c37_38, %c0_39] : memref<328x128xbf16, #tpu.memory_space<vmem>>, vector<290x64xbf16>
    %c38_40 = arith.constant 38 : index
    %c0_41 = arith.constant 0 : index
    %36 = vector.load %arg16[%c38_40, %c0_41] : memref<328x128xbf16, #tpu.memory_space<vmem>>, vector<290x64xbf16>
    %37 = tpu.concatenate %28, %29, %30, %31, %32, %33, %34, %35, %36 in 1 : vector<290x64xbf16>, vector<290x64xbf16>, vector<290x64xbf16>, vector<290x64xbf16>, vector<290x64xbf16>, vector<290x64xbf16>, vector<290x64xbf16>, vector<290x64xbf16>, vector<290x64xbf16> -> vector<290x576xbf16>
    %c0_42 = arith.constant 0 : index
    %c0_43 = arith.constant 0 : index
    %38 = vector.load %arg7[%c0_42, %c0_43] : memref<576x128xbf16, #tpu.memory_space<vmem>>, vector<576x128xbf16>
    %cst_44 = arith.constant dense<0.000000e+00> : vector<290x128xf32>
    %39 = tpu.matmul %37, %38, %cst_44 {dimension_numbers = #tpu.dot_dimension_numbers<[1], [0], [0], [1], [0, 0, 1, 1], [], []>} : vector<290x576xbf16>, vector<576x128xbf16>, vector<290x128xf32> -> vector<290x128xf32>
    %c0_45 = arith.constant 0 : index
    %c0_46 = arith.constant 0 : index
    %40 = vector.load %arg8[%c0_45, %c0_46] : memref<1x128xf32, #tpu.memory_space<vmem>>, vector<1x128xf32>
    %41 = vector.broadcast %40 : vector<1x128xf32> to vector<290x128xf32>
    %42 = arith.mulf %39, %41 : vector<290x128xf32>
    %c0_47 = arith.constant 0 : index
    %c0_48 = arith.constant 0 : index
    %43 = vector.load %arg9[%c0_47, %c0_48] : memref<1x128xf32, #tpu.memory_space<vmem>>, vector<1x128xf32>
    %44 = vector.broadcast %43 : vector<1x128xf32> to vector<290x128xf32>
    %45 = arith.addf %42, %44 : vector<290x128xf32>
    %cst_49 = arith.constant 0.000000e+00 : f32
    %46 = vector.broadcast %cst_49 : f32 to vector<290x128xf32>
    %47 = arith.maximumf %45, %46 : vector<290x128xf32>
    %48 = vector.broadcast %0 : vector<290x1xf32> to vector<290x128xf32>
    %49 = arith.mulf %47, %48 : vector<290x128xf32>
    %cst_50 = arith.constant 0.000000e+00 : bf16
    %50 = vector.broadcast %cst_50 : bf16 to vector<19x128xbf16>
    %c0_51 = arith.constant 0 : index
    %c0_52 = arith.constant 0 : index
    %51 = vector.load %arg17[%c0_51, %c0_52] : memref<328x128xbf16, #tpu.memory_space<vmem>>, vector<19x128xbf16>
    tpu.vector_store %arg17[%c0_51, %c0_52], %50 {strides = array<i32>} : memref<328x128xbf16, #tpu.memory_space<vmem>>, vector<19x128xbf16>,
    %c309_53 = arith.constant 309 : index
    %c0_54 = arith.constant 0 : index
    %52 = vector.load %arg17[%c309_53, %c0_54] : memref<328x128xbf16, #tpu.memory_space<vmem>>, vector<19x128xbf16>
    tpu.vector_store %arg17[%c309_53, %c0_54], %50 {strides = array<i32>} : memref<328x128xbf16, #tpu.memory_space<vmem>>, vector<19x128xbf16>,
    %53 = arith.truncf %49 : vector<290x128xf32> to vector<290x128xbf16>
    %c19_55 = arith.constant 19 : index
    %c0_56 = arith.constant 0 : index
    %54 = vector.load %arg17[%c19_55, %c0_56] : memref<328x128xbf16, #tpu.memory_space<vmem>>, vector<290x128xbf16>
    tpu.vector_store %arg17[%c19_55, %c0_56], %53 {strides = array<i32>} : memref<328x128xbf16, #tpu.memory_space<vmem>>, vector<290x128xbf16>,
    %c0_57 = arith.constant 0 : index
    %c0_58 = arith.constant 0 : index
    %55 = vector.load %arg17[%c0_57, %c0_58] : memref<328x128xbf16, #tpu.memory_space<vmem>>, vector<290x128xbf16>
    %c1_59 = arith.constant 1 : index
    %c0_60 = arith.constant 0 : index
    %56 = vector.load %arg17[%c1_59, %c0_60] : memref<328x128xbf16, #tpu.memory_space<vmem>>, vector<290x128xbf16>
    %c2_61 = arith.constant 2 : index
    %c0_62 = arith.constant 0 : index
    %57 = vector.load %arg17[%c2_61, %c0_62] : memref<328x128xbf16, #tpu.memory_space<vmem>>, vector<290x128xbf16>
    %c18_63 = arith.constant 18 : index
    %c0_64 = arith.constant 0 : index
    %58 = vector.load %arg17[%c18_63, %c0_64] : memref<328x128xbf16, #tpu.memory_space<vmem>>, vector<290x128xbf16>
    %c19_65 = arith.constant 19 : index
    %c0_66 = arith.constant 0 : index
    %59 = vector.load %arg17[%c19_65, %c0_66] : memref<328x128xbf16, #tpu.memory_space<vmem>>, vector<290x128xbf16>
    %c20_67 = arith.constant 20 : index
    %c0_68 = arith.constant 0 : index
    %60 = vector.load %arg17[%c20_67, %c0_68] : memref<328x128xbf16, #tpu.memory_space<vmem>>, vector<290x128xbf16>
    %c36_69 = arith.constant 36 : index
    %c0_70 = arith.constant 0 : index
    %61 = vector.load %arg17[%c36_69, %c0_70] : memref<328x128xbf16, #tpu.memory_space<vmem>>, vector<290x128xbf16>
    %c37_71 = arith.constant 37 : index
    %c0_72 = arith.constant 0 : index
    %62 = vector.load %arg17[%c37_71, %c0_72] : memref<328x128xbf16, #tpu.memory_space<vmem>>, vector<290x128xbf16>
    %c38_73 = arith.constant 38 : index
    %c0_74 = arith.constant 0 : index
    %63 = vector.load %arg17[%c38_73, %c0_74] : memref<328x128xbf16, #tpu.memory_space<vmem>>, vector<290x128xbf16>
    %64 = tpu.concatenate %55, %56, %57, %58, %59, %60, %61, %62, %63 in 1 : vector<290x128xbf16>, vector<290x128xbf16>, vector<290x128xbf16>, vector<290x128xbf16>, vector<290x128xbf16>, vector<290x128xbf16>, vector<290x128xbf16>, vector<290x128xbf16>, vector<290x128xbf16> -> vector<290x1152xbf16>
    %c0_75 = arith.constant 0 : index
    %c0_76 = arith.constant 0 : index
    %65 = vector.load %arg10[%c0_75, %c0_76] : memref<1152x256xbf16, #tpu.memory_space<vmem>>, vector<1152x256xbf16>
    %cst_77 = arith.constant dense<0.000000e+00> : vector<290x256xf32>
    %66 = tpu.matmul %64, %65, %cst_77 {dimension_numbers = #tpu.dot_dimension_numbers<[1], [0], [0], [1], [0, 0, 1, 1], [], []>} : vector<290x1152xbf16>, vector<1152x256xbf16>, vector<290x256xf32> -> vector<290x256xf32>
    %c0_78 = arith.constant 0 : index
    %c0_79 = arith.constant 0 : index
    %67 = vector.load %arg11[%c0_78, %c0_79] : memref<1x256xf32, #tpu.memory_space<vmem>>, vector<1x256xf32>
    %68 = vector.broadcast %67 : vector<1x256xf32> to vector<290x256xf32>
    %69 = arith.mulf %66, %68 : vector<290x256xf32>
    %c0_80 = arith.constant 0 : index
    %c0_81 = arith.constant 0 : index
    %70 = vector.load %arg12[%c0_80, %c0_81] : memref<1x256xf32, #tpu.memory_space<vmem>>, vector<1x256xf32>
    %71 = vector.broadcast %70 : vector<1x256xf32> to vector<290x256xf32>
    %72 = arith.addf %69, %71 : vector<290x256xf32>
    %cst_82 = arith.constant 0.000000e+00 : f32
    %73 = vector.broadcast %cst_82 : f32 to vector<290x256xf32>
    %74 = arith.maximumf %72, %73 : vector<290x256xf32>
    %c0_83 = arith.constant 0 : index
    %c0_84 = arith.constant 0 : index
    %75 = vector.load %arg3[%c0_83, %c0_84] : memref<1x290xf32, #tpu.memory_space<vmem>>, vector<1x290xf32>
    %cst_85 = arith.constant dense<0.000000e+00> : vector<1x256xf32>
    %76 = tpu.matmul %75, %74, %cst_85 {dimension_numbers = #tpu.dot_dimension_numbers<[1], [0], [0], [1], [0, 0, 1, 1], [], []>} : vector<1x290xf32>, vector<290x256xf32>, vector<1x256xf32> -> vector<1x256xf32>
    %c0_86 = arith.constant 0 : index
    %c0_87 = arith.constant 0 : index
    %77 = vector.load %arg13[%c0_86, %c0_87] : memref<1x256xf32, #tpu.memory_space<vmem>>, vector<1x256xf32>
    %78 = arith.mulf %76, %77 : vector<1x256xf32>
    %cst_88 = arith.constant dense<0.000000e+00> : vector<1xf32>
    %79 = vector.multi_reduction <add>, %78, %cst_88 [1] : vector<1x256xf32> to vector<1xf32>
    %80 = vector.shape_cast %79 : vector<1xf32> to vector<1x1xf32>
    %c0_89 = arith.constant 0 : index
    %c0_90 = arith.constant 0 : index
    %81 = vector.load %arg14[%c0_89, %c0_90] : memref<1x1xf32, #tpu.memory_space<vmem>>, vector<1x1xf32>
    %82 = arith.addf %80, %81 : vector<1x1xf32>
    %cst_91 = arith.constant 5.000000e-01 : f32
    %83 = vector.broadcast %cst_91 : f32 to vector<1x1xf32>
    %84 = arith.mulf %83, %82 : vector<1x1xf32>
    %85 = math.tanh %84 : vector<1x1xf32>
    %cst_92 = arith.constant 1.000000e+00 : f32
    %86 = vector.broadcast %cst_92 : f32 to vector<1x1xf32>
    %87 = arith.addf %85, %86 : vector<1x1xf32>
    %cst_93 = arith.constant 5.000000e-01 : f32
    %88 = vector.broadcast %cst_93 : f32 to vector<1x1xf32>
    %89 = arith.mulf %88, %87 : vector<1x1xf32>
    %c0_94 = arith.constant 0 : index
    %c0_95 = arith.constant 0 : index
    %c0_96 = arith.constant 0 : index
    %90 = vector.load %arg15[%c0_94, %c0_95, %c0_96] : memref<1x1x1xf32, #tpu.memory_space<vmem>>, vector<1x1x1xf32>
    %91 = vector.shape_cast %90 : vector<1x1x1xf32> to vector<1x1xf32>
    %92 = vector.shape_cast %89 : vector<1x1xf32> to vector<1x1x1xf32>
    tpu.vector_store %arg15[%c0_94, %c0_95, %c0_96], %92 {strides = array<i32>} : memref<1x1x1xf32, #tpu.memory_space<vmem>>, vector<1x1x1xf32>,
    return
  }
  func.func @transform_0(%arg0: i32) -> (i32, i32) {
    %c0_i32 = arith.constant 0 : i32
    %c0_i32_0 = arith.constant 0 : i32
    return %arg0, %c0_i32 : i32, i32
  }
  func.func @transform_1(%arg0: i32) -> (i32, i32) {
    %c0_i32 = arith.constant 0 : i32
    %c0_i32_0 = arith.constant 0 : i32
    %c0_i32_1 = arith.constant 0 : i32
    return %c0_i32, %c0_i32_0 : i32, i32
  }
  func.func @transform_2(%arg0: i32) -> (i32, i32) {
    %c0_i32 = arith.constant 0 : i32
    %c0_i32_0 = arith.constant 0 : i32
    %c0_i32_1 = arith.constant 0 : i32
    return %c0_i32, %c0_i32_0 : i32, i32
  }
  func.func @transform_3(%arg0: i32) -> (i32, i32) {
    %c0_i32 = arith.constant 0 : i32
    %c0_i32_0 = arith.constant 0 : i32
    %c0_i32_1 = arith.constant 0 : i32
    return %c0_i32, %c0_i32_0 : i32, i32
  }
  func.func @transform_4(%arg0: i32) -> (i32, i32) {
    %c0_i32 = arith.constant 0 : i32
    %c0_i32_0 = arith.constant 0 : i32
    %c0_i32_1 = arith.constant 0 : i32
    return %c0_i32, %c0_i32_0 : i32, i32
  }
  func.func @transform_5(%arg0: i32) -> (i32, i32) {
    %c0_i32 = arith.constant 0 : i32
    %c0_i32_0 = arith.constant 0 : i32
    %c0_i32_1 = arith.constant 0 : i32
    return %c0_i32, %c0_i32_0 : i32, i32
  }
  func.func @transform_6(%arg0: i32) -> (i32, i32) {
    %c0_i32 = arith.constant 0 : i32
    %c0_i32_0 = arith.constant 0 : i32
    %c0_i32_1 = arith.constant 0 : i32
    return %c0_i32, %c0_i32_0 : i32, i32
  }
  func.func @transform_7(%arg0: i32) -> (i32, i32) {
    %c0_i32 = arith.constant 0 : i32
    %c0_i32_0 = arith.constant 0 : i32
    %c0_i32_1 = arith.constant 0 : i32
    return %c0_i32, %c0_i32_0 : i32, i32
  }
  func.func @transform_8(%arg0: i32) -> (i32, i32) {
    %c0_i32 = arith.constant 0 : i32
    %c0_i32_0 = arith.constant 0 : i32
    %c0_i32_1 = arith.constant 0 : i32
    return %c0_i32, %c0_i32_0 : i32, i32
  }
  func.func @transform_9(%arg0: i32) -> (i32, i32) {
    %c0_i32 = arith.constant 0 : i32
    %c0_i32_0 = arith.constant 0 : i32
    %c0_i32_1 = arith.constant 0 : i32
    return %c0_i32, %c0_i32_0 : i32, i32
  }
  func.func @transform_10(%arg0: i32) -> (i32, i32) {
    %c0_i32 = arith.constant 0 : i32
    %c0_i32_0 = arith.constant 0 : i32
    %c0_i32_1 = arith.constant 0 : i32
    return %c0_i32, %c0_i32_0 : i32, i32
  }
  func.func @transform_11(%arg0: i32) -> (i32, i32) {
    %c0_i32 = arith.constant 0 : i32
    %c0_i32_0 = arith.constant 0 : i32
    %c0_i32_1 = arith.constant 0 : i32
    return %c0_i32, %c0_i32_0 : i32, i32
  }
  func.func @transform_12(%arg0: i32) -> (i32, i32) {
    %c0_i32 = arith.constant 0 : i32
    %c0_i32_0 = arith.constant 0 : i32
    %c0_i32_1 = arith.constant 0 : i32
    return %c0_i32, %c0_i32_0 : i32, i32
  }
  func.func @transform_13(%arg0: i32) -> (i32, i32) {
    %c0_i32 = arith.constant 0 : i32
    %c0_i32_0 = arith.constant 0 : i32
    %c0_i32_1 = arith.constant 0 : i32
    return %c0_i32, %c0_i32_0 : i32, i32
  }
  func.func @transform_14(%arg0: i32) -> (i32, i32, i32) {
    %c0_i32 = arith.constant 0 : i32
    %c0_i32_0 = arith.constant 0 : i32
    %c0_i32_1 = arith.constant 0 : i32
    return %arg0, %c0_i32, %c0_i32_0 : i32, i32, i32
  }
}

</mosaic_0001>

<bundles_post_ra>
// kernel: adversary_forward.1
= control target key start
LH: loop header
LB: loop body
LE: loop exit
PB: predicated region body
PF: predicated region fallthrough
CT: control target
= control target key end

     0   :  { %s11179_s15 = smov 0   ;;  %s15665_s0 = inlined_call_operand.vmem [shape: bf16[656,8], index: 0, kind: input, shape index: {}]   ;;  %s15666_s1 = inlined_call_operand.vmem [shape: f32[290,1], index: 1, kind: input, shape index: {}]   ;;  %s15667_s2 = inlined_call_operand.vmem [shape: f32[1,290], index: 2, kind: input, shape index: {}]   ;;  %s15668_s3 = inlined_call_operand.vmem [shape: bf16[72,128], index: 3, kind: input, shape index: {}]   ;;  %s15669_s4 = inlined_call_operand.vmem [shape: f32[1,128], index: 4, kind: input, shape index: {}]   ;;  %s15670_s5 = inlined_call_operand.vmem [shape: f32[1,128], index: 5, kind: input, shape index: {}]   ;;  %s15671_s6 = inlined_call_operand.vmem [shape: bf16[576,128], index: 6, kind: input, shape index: {}]   ;;  %s15672_s7 = inlined_call_operand.vmem [shape: f32[1,128], index: 7, kind: input, shape index: {}]   ;;  %s15673_s8 = inlined_call_operand.vmem [shape: f32[1,128], index: 8, kind: input, shape index: {}]   ;;  %s15674_s9 = inlined_call_operand.vmem [shape: bf16[1152,256], index: 9, kind: input, shape index: {}]   ;;  %s15675_s10 = inlined_call_operand.vmem [shape: f32[1,256], index: 10, kind: input, shape index: {}]   ;;  %s15676_s11 = inlined_call_operand.vmem [shape: f32[1,256], index: 11, kind: input, shape index: {}]   ;;  %s15677_s12 = inlined_call_operand.vmem [shape: f32[1,256], index: 12, kind: input, shape index: {}]   ;;  %s15678_s13 = inlined_call_operand.<no memory space> [shape: f32[1,1], index: 13, kind: input, shape index: {}]   ;;  %s15679_s14 = inlined_call_operand.vmem [shape: f32[2,1,1], index: 14, kind: output, shape index: {}]  }
   0x1   :  { %v19_v0 = vstv %s15678_s13 }
   0x2   :  { %20 = vst [vmem:[#allocation4] sm:$0x1] %v19_v0 }
   0x3 LB: > { %s11185_s16 = sadd.s32 4294967295, %s11088_s15   ;;  %p9370_p0 = scmp.ge.s32.totalorder %s11088_s15, 1  ;;  %s11088_s15 = sphi %s11179_s15, %s26_s15  }
   0x4   : > { %p415_p1 = scmp.lt.s32.totalorder %s11088_s15, 3 }
   0x6   : > { %p416_p2 = pnand %p9370_p0, %p415_p1 }
   0x8   : > { %419 = sbr.rel (%p416_p2) target bundleno = 2446 (0x98e), region = 76 }
   0xf   : > { %s459_s17 = smul.u32 41, %s11185_s16  ;;  %v15690_v1 = vmov 0.0   ;;  %v10668_v2 = vld [vmem:[%s15668_s3] sm:$0xff]   ;;  %vm846_vm0 = vcmask 1046528   ;;  %vm1112_vm1 = vcmask 1045504   ;;  %vm15681_vm2 = vcmask 1044480  }
  0x10   : > { %9924 = vmatprep.subr.bf16.mxu0 %v15690_v1  ;;  %10166 = vmatprep.subr.bf16.mxu1 %v15690_v1  ;;  %v10670_v3 = vld [vmem:[%s15668_s3 + $0x8] sm:$0xff]   ;;  %vm653_vm3 = vsmask.f32 7424  ;;  %vm15680_vm4 = vsmask.f32 5376  ;;  %s11091_s25 = smov 24  }
  0x11   : > { %p460_p3 = scmp.lt.s32.totalorder %s459_s17, 81  ;;  %9925 = vmatpush3.bf16.msra.mxu0 %v10668_v2  ;;  %10171 = vmatpush3.bf16.msra.mxu1 %v10668_v2  ;;  %s11092_s26 = smov 16   ;;  %vm15682_vm5 = vsmask.f32 6400  ;;  %vm1842_vm6 = vcmask 1043456   ;;  %vm11099_vm7 = vmmov 0  }
  0x12   : > { %9926 = vmatprep.subr.bf16.mxu0 %v15690_v1  ;;  %10167 = vmatprep.subr.bf16.mxu1 %v15690_v1  ;;  %s11093_s27 = smov 48   ;;  %s11094_s28 = smov 40   ;;  %vm1454_vm8 = vcmask 64512   ;;  %vm1494_vm9 = vcmask 130048   ;;  %vm1533_vm10 = vcmask 195584   ;;  %vm1572_vm11 = vcmask 261120  }
  0x13   : > { %s16225_s17 = smov (!%p460_p3, %s459_s17), 81  ;;  %s11095_s29 = smov 64   ;;  %9934 = vmatprep.mubr.msk.bf16.mxu0 %vm11099_vm7, %v15690_v1  ;;  %9978 = vmatprep.mubr.msk.bf16.mxu1 %vm11099_vm7, %v15690_v1  ;;  %vm1611_vm12 = vcmask 326656   ;;  %vm1650_vm13 = vcmask 392192   ;;  %vm1689_vm14 = vcmask 457728   ;;  %vm1728_vm15 = vcmask 523264  }
  0x14   : > { %s9371_s19 = sshll.u32 %s16225_s17, 2  ;;  %s11096_s13 = smov 8  }
  0x15   : > { %s11198_s22 = scalar_lea.vmem %s15665_s0, %s9371_s19  ;;  %9927 = vmatpush3.bf16.msra.mxu0 %v10670_v3  ;;  %10172 = vmatpush3.bf16.msra.mxu1 %v10670_v3  ;;  %v10671_v3 = vld [vmem:[%s15668_s3 + $0x10] sm:$0xff]   ;;  %s11097_s20 = smov 56  }
  0x16   : > { %v509_v4 = vld [vmem:[%s11198_s22 + $0xc] sm:$0xf]  ;;  %v510_v5 = vld [vmem:[%s11198_s22 + $0x10] sm:$0xf]  ;;  %v511_v6 = vld [vmem:[%s11198_s22 + $0x14] sm:$0xf]  ;;  %9928 = vmatprep.subr.bf16.mxu0 %v15690_v1  ;;  %10168 = vmatprep.subr.bf16.mxu1 %v15690_v1 }
  0x17   : > { %v545_v7 = vld [vmem:[%s11198_s22 + $0x8] sm:$0xe]  ;;  %v11209_v8 = vcombine.low %v510_v5, %v511_v6  ;;  %v507_v9 = vld [vmem:[%s11198_s22 + $0x4] sm:$0xf]  ;;  %v544_v12 = vld [vmem:[%s11198_s22] sm:$0xe] }
  0x18   : > { %v508_v10 = vld [vmem:[%s11198_s22 + $0x8] sm:$0xf]  ;;  %v11213_v11 = vcombine.low %v545_v7, %v509_v4  ;;  %v506_v14 = vld [vmem:[%s11198_s22] sm:$0xf]  ;;  %v9392_v16 = vcombine.low %v544_v12, %v507_v9  ;;  %v551_v18 = vld [vmem:[%s11198_s22 + $0x10] sm:$0xc] }
  0x19   : > { %v11216_v13 = vcombine.low %v508_v10, %v509_v4  ;;  %v11220_v15 = vrot.slane %v11209_v8, 1  ;;  %v11222_v17 = vcombine.low %v506_v14, %v507_v9  ;;  %v11226_v19 = vld [vmem:[%s11198_s22 + $0x18] sm:$0xff]   ;;  %v9398_v22 = vcombine.low %v551_v18, %v511_v6  ;;  %v550_v23 = vld [vmem:[%s11198_s22 + $0x8] sm:$0xc]  ;;  %v556_v28 = vld [vmem:[%s11198_s22 + $0x10] sm:$0x8]  ;;  %9929 = vmatpush3.bf16.msra.mxu0 %v10671_v3  ;;  %10173 = vmatpush3.bf16.msra.mxu1 %v10671_v3 }
  0x1a   : > { %v933_v20 = vrot.slane %v11213_v11, 1  ;;  %v1114_v24 = vrot.slane %v11209_v8, 2  ;;  %v847_v25 = vrot.slane %v9392_v16, 1  ;;  %v11235_v26 = vrot.slane %v11226_v19, 2  ;;  %v11283_v9 = vld [vmem:[%s11198_s22 + $0x20] sm:$0xff]   ;;  %v10672_v14 = vld [vmem:[%s15668_s3 + $0x18] sm:$0xff]   ;;  %9930 = vmatprep.subr.bf16.mxu0 %v15690_v1  ;;  %10169 = vmatprep.subr.bf16.mxu1 %v15690_v1 }
  0x1b   : > { %v848_v21 = vrot.slane %v11216_v13, 1  ;;  %v9397_v27 = vcombine.low %v550_v23, %v509_v4  ;;  %v1380_v29 = vrot.slane %v11226_v19, 3  ;;  %v1199_v31 = vrot.slane %v9398_v22, 2  ;;  %s11098_s21 = smov 32   ;;  %p465_p4 = scmp.lt.s32.totalorder %s11185_s16, 1 }
  0x1c   : > { %v934_v30 = vsel %vm846_vm0, %v933_v20, %v11220_v15  ;;  %v9402_v32 = vcombine.low %v556_v28, %v511_v6  ;;  %v655_v33 = vshrl.u32 %v11222_v17, 16  ;;  %v657_v36 = vshll.u32 %v11222_v17, 16 }
  0x1d   : > { %939 = vrot.lane.b32.xlu1 %v934_v30, %s11091_s25  ;;  %v849_v34 = vsel %vm846_vm0, %v847_v25, %v848_v21  ;;  %v1113_v35 = vrot.slane %v9397_v27, 2  ;;  %v662_v37 = vshll.u32 %v11216_v13, 16  ;;  %v1200_v38 = vsel %vm1112_vm1, %v1199_v31, %v11235_v26  ;;  %9931 = vmatpush3.bf16.msra.mxu0 %v10672_v14  ;;  %s16227_s16 = smov (!%p465_p4, %s11185_s16), 1 }
  0x1e   : > { %884 = vrot.lane.b32.xlu0 %v849_v34, %s11092_s26  ;;  %v1379_v39 = vrot.slane %v9402_v32, 3  ;;  %v11250_v40 = vshll.u32 %v11226_v19, 16  ;;  %v659_v42 = vrot.slane %v657_v36, 1  ;;  %v11256_v44 = vshrl.u32 %v11226_v19, 16  ;;  %10174 = vmatpush3.bf16.msra.mxu1 %v10672_v14  ;;  %v11324_v36 = vld [vmem:[%s11198_s22 + $0x28] sm:$0xff]   ;;  %s467_s19 = scalar_lea.vmem %s15679_s14, %s16227_s16 }
  0x1f   : > { %v1115_v41 = vsel %vm1112_vm1, %v1113_v35, %v1114_v24  ;;  %v664_v43 = vrot.slane %v662_v37, 1  ;;  %v1248_v46 = vshrl.u32 %v9398_v22, 16  ;;  %v1251_v47 = vshll.u32 %v9398_v22, 16  ;;  %9932 = vmatprep.subr.bf16.mxu0 %v15690_v1  ;;  %10170 = vmatprep.subr.bf16.mxu1 %v15690_v1 }
  0x20   : > { %v1381_v45 = vsel %vm15681_vm2, %v1379_v39, %v1380_v29  ;;  %v1256_v48 = vrot.slane %v11250_v40, 3  ;;  %v660_v49 = vor.u32 %v659_v42, %v655_v33  ;;  %v1255_v50 = vrot.slane %v11256_v44, 2 }
  0x21   : > { %1205 = vrot.lane.b32.xlu1 %v1200_v38, %s11093_s27  ;;  %v670_v51 = vshll.u32 %v11209_v8, 16  ;;  %v674_v52 = vshrl.u32 %v11209_v8, 16  ;;  %v1250_v53 = vrot.slane %v1248_v46, 2  ;;  %v1253_v54 = vrot.slane %v1251_v47, 3 }
  0x22   : > { %1150 = vrot.lane.b32.xlu0 %v1115_v41, %s11094_s28  ;;  %v982_v55 = vshrl.u32 %v11213_v11, 16  ;;  %v985_v56 = vshll.u32 %v11213_v11, 16  ;;  %v665_v57 = vsel %vm653_vm3, %v660_v49, %v664_v43  ;;  %v1257_v58 = vor.u32 %v1256_v48, %v1255_v50 }
  0x23   : > { %v989_v59 = vrot.slane %v674_v52, 1  ;;  %v990_v60 = vrot.slane %v670_v51, 2  ;;  %v1254_v61 = vor.u32 %v1253_v54, %v1250_v53  ;;  %v666_v0 = vshrl.u32 %v11216_v13, 16 }
  0x24   : > { %v984_v62 = vrot.slane %v982_v55, 1  ;;  %v987_v63 = vrot.slane %v985_v56, 2  ;;  %v851_v2 = vsel %vm846_vm0, %v848_v21, %v11220_v15  ;;  %v993_v6 = vrot.slane %v11256_v44, 1 }
  0x25   : > { %1416 = vrot.lane.b32.xlu1 %v1381_v45, %s11095_s29  ;;  %v991_v5 = vor.u32 %v990_v60, %v989_v59  ;;  %v994_v7 = vrot.slane %v11250_v40, 2  ;;  %v1258_v10 = vsel %vm15680_vm4, %v1254_v61, %v1257_v58  ;;  %v668_v11 = vor.u32 %v666_v0, %v664_v43  ;;  %v10673_v59 = vld [vmem:[%s15668_s3 + $0x20] ss:$0 sps:$4 sm:$0xff]  }
  0x26   : > { %805 = vrot.lane.b32.xlu0 %v665_v57, %s11096_s13  ;;  %v988_v4 = vor.u32 %v987_v63, %v984_v62  ;;  %v672_v12 = vrot.slane %v670_v51, 1  ;;  %v852_v21 = vrot.slane %v11226_v19, 1  ;;  %v11297_v22 = vshll.u32 %v11283_v9, 16 }
  0x27   : > { %v995_v18 = vor.u32 %v994_v7, %v993_v6  ;;  %v11300_v23 = vshrl.u32 %v11283_v9, 16  ;;  %v1118_v27 = vrot.slane %v11283_v9, 2  ;;  %v1382_v32 = vrot.slane %v11283_v9, 3 }
  0x28   : > { %v992_v16 = vsel %vm15682_vm5, %v988_v4, %v991_v5  ;;  %v673_v20 = vsel %vm653_vm3, %v668_v11, %v672_v12  ;;  %v853_v28 = vsel %vm846_vm0, %v11220_v15, %v852_v21  ;;  %v1260_v31 = vrot.slane %v11297_v22, 3  ;;  %v11397_v11 = vld [vmem:[%s11198_s22 + $0x38] sm:$0xff]  }
  0x29   : > { %886 = vrot.lane.b32.xlu1 %v851_v2, %s11092_s26  ;;  %v996_v25 = vsel %vm15682_vm5, %v991_v5, %v995_v18  ;;  %v1259_v30 = vrot.slane %v11300_v23, 2  ;;  %v1119_v33 = vsel %vm1112_vm1, %v11235_v26, %v1118_v27  ;;  %v1117_v34 = vsel %vm1112_vm1, %v1114_v24, %v11235_v26 }
  0x2a   : > { %1337 = vrot.lane.b32.xlu0 %v1258_v10, %s11097_s20  ;;  %v680_v15 = vrot.slane %v11250_v40, 1  ;;  %v1383_v37 = vsel %vm15681_vm2, %v1380_v29, %v1382_v32  ;;  %v997_v38 = vrot.slane %v11300_v23, 1  ;;  %v998_v39 = vrot.slane %v11297_v22, 2 }
  0x2b   : > { %v1261_v35 = vor.u32 %v1260_v31, %v1259_v30  ;;  %v676_v24 = vor.u32 %v674_v52, %v672_v12  ;;  %v854_v40 = vrot.slane %v11283_v9, 1  ;;  %v11339_v19 = vshll.u32 %v11324_v36, 16  ;;  %v11357_v52 = vld [vmem:[%s11198_s22 + $0x30] sm:$0xff]  }
  0x2c   : > { %v999_v26 = vor.u32 %v998_v39, %v997_v38  ;;  %v11343_v42 = vshrl.u32 %v11324_v36, 16  ;;  %v1120_v45 = vrot.slane %v11324_v36, 2  ;;  %v1384_v50 = vrot.slane %v11324_v36, 3 }
  0x2d   : > { %1071 = vrot.lane.b32.xlu1 %v992_v16, %s11098_s21  ;;  %v1262_v41 = vsel %vm15680_vm4, %v1257_v58, %v1261_v35  ;;  %v681_v29 = vsel %vm653_vm3, %v676_v24, %v680_v15  ;;  %v855_v46 = vsel %vm846_vm0, %v852_v21, %v854_v40  ;;  %v1264_v48 = vrot.slane %v11339_v19, 3 }
  0x2e   : > { %807 = vrot.lane.b32.xlu0 %v673_v20, %s11096_s13  ;;  %v1000_v43 = vsel %vm15682_vm5, %v995_v18, %v999_v26  ;;  %v1263_v47 = vrot.slane %v11343_v42, 2  ;;  %v1121_v49 = vsel %vm1112_vm1, %v1118_v27, %v1120_v45  ;;  %v1001_v53 = vrot.slane %v11343_v42, 1 }
  0x2f   : > { %v1385_v54 = vsel %vm15681_vm2, %v1382_v32, %v1384_v50  ;;  %v1002_v55 = vrot.slane %v11339_v19, 2  ;;  %v684_v57 = vor.u32 %v11256_v44, %v680_v15  ;;  %v688_v58 = vrot.slane %v11297_v22, 1 }
  0x30   : > { %v1265_v51 = vor.u32 %v1264_v48, %v1263_v47  ;;  %v856_v60 = vrot.slane %v11324_v36, 1  ;;  %v11374_v62 = vshll.u32 %v11357_v52, 16  ;;  %v11378_v44 = vshrl.u32 %v11357_v52, 16 }
  0x31   : > { %1073 = vrot.lane.b32.xlu1 %v996_v25, %s11098_s21  ;;  %v1003_v61 = vor.u32 %v1002_v55, %v1001_v53  ;;  %v689_v63 = vsel %vm653_vm3, %v684_v57, %v688_v58  ;;  %v1844_v0 = vsel %vm1842_vm6, %v10673_v59, 0  ;;  %v1122_v3 = vrot.slane %v11357_v52, 2 }
  0x32   : > { %941 = vrot.lane.b32.xlu0 %v853_v28, %s11091_s25  ;;  %v1266_v56 = vsel %vm15680_vm4, %v1261_v35, %v1265_v51  ;;  %9933 = vmatpush3.bf16.msra.mxu0 %v1844_v0  ;;  %v857_v4 = vsel %vm846_vm0, %v854_v40, %v856_v60  ;;  %v1267_v5 = vrot.slane %v11378_v44, 2  ;;  %v1268_v6 = vrot.slane %v11374_v62, 3 }
  0x33   : > { %10175 = vmatpush3.bf16.msra.mxu1 %v1844_v0  ;;  %v1004_v2 = vsel %vm15682_vm5, %v999_v26, %v1003_v61  ;;  %v1123_v7 = vsel %vm1112_vm1, %v1120_v45, %v1122_v3  ;;  %v1386_v9 = vrot.slane %v11357_v52, 3  ;;  %v1005_v14 = vrot.slane %v11378_v44, 1 }
  0x34   : > { %v1269_v10 = vor.u32 %v1268_v6, %v1267_v5  ;;  %v1006_v16 = vrot.slane %v11374_v62, 2  ;;  %v692_v20 = vor.u32 %v11300_v23, %v688_v58  ;;  %v696_v21 = vrot.slane %v11339_v19, 1 }
  0x35   : > { %1207 = vrot.lane.b32.xlu1 %v1119_v33, %s11093_s27  ;;  %v1387_v12 = vsel %vm15681_vm2, %v1384_v50, %v1386_v9  ;;  %v11408_v22 = vshrl.u32 %v11397_v11, 16  ;;  %v858_v27 = vrot.slane %v11357_v52, 1  ;;  %v1124_v23 = vrot.slane %v11397_v11, 2 }
  0x36   : > { %1152 = vrot.lane.b32.xlu0 %v1117_v34, %s11094_s28  ;;  %v1270_v18 = vsel %vm15680_vm4, %v1265_v51, %v1269_v10  ;;  %v1007_v25 = vor.u32 %v1006_v16, %v1005_v14  ;;  %v697_v30 = vsel %vm653_vm3, %v692_v20, %v696_v21  ;;  %v1388_v15 = vrot.slane %v11397_v11, 3 }
  0x37   : > { %v1271_v31 = vrot.slane %v11408_v22, 2  ;;  %v1125_v35 = vsel %vm1112_vm1, %v1122_v3, %v1124_v23  ;;  %v1009_v39 = vrot.slane %v11408_v22, 1  ;;  %v700_v26 = vor.u32 %v11343_v42, %v696_v21  ;;  %v11500_v21 = vld [vmem:[%s11198_s22 + $0x50] sm:$0xff]  }
  0x38   : > { %v1008_v32 = vsel %vm15682_vm5, %v1003_v61, %v1007_v25  ;;  %v1389_v38 = vsel %vm15681_vm2, %v1386_v9, %v1388_v15  ;;  %v704_v40 = vrot.slane %v11374_v62, 1  ;;  %vm1803_vm6 = vcmask 588800  }
  0x39   : > { %1418 = vrot.lane.b32.xlu1 %v1383_v37, %s11095_s29  ;;  %v11429_v37 = vld [vmem:[%s11198_s22 + $0x40] sm:$0xff]  }
  0x3a   : > { %1339 = vrot.lane.b32.xlu0 %v1262_v41, %s11097_s20  ;;  %v11443_v45 = vshll.u32 %v11429_v37, 16  ;;  %v1126_v47 = vrot.slane %v11429_v37, 2  ;;  %v1390_v52 = vrot.slane %v11429_v37, 3  ;;  %v708_v59 = vor.u32 %v11378_v44, %v704_v40 }
  0x3c   : > { %v1276_v50 = vrot.slane %v11443_v45, 3  ;;  %v1127_v51 = vsel %vm1112_vm1, %v1124_v23, %v1126_v47  ;;  %v1391_v55 = vsel %vm15681_vm2, %v1388_v15, %v1390_v52  ;;  %v1014_v57 = vrot.slane %v11443_v45, 2 }
  0x3d   : > { %888 = vrot.lane.b32.xlu1 %v853_v28, %s11092_s26  ;;  %v11413_v28 = vshll.u32 %v11397_v11, 16  ;;  %v720_v20 = vrot.slane %v11443_v45, 1  ;;  %v11510_v23 = vshrl.u32 %v11500_v21, 16 }
  0x3e   : > { %809 = vrot.lane.b32.xlu0 %v681_v29, %s11096_s13  ;;  %v705_v29 = vsel %vm653_vm3, %v700_v26, %v704_v40 }
  0x3f   : > { %v1272_v34 = vrot.slane %v11413_v28, 3  ;;  %v1010_v41 = vrot.slane %v11413_v28, 2  ;;  %v1021_v26 = vrot.slane %v11510_v23, 1 }
  0x41   : > { %1075 = vrot.lane.b32.xlu1 %v1000_v43, %s11098_s21  ;;  %v1273_v36 = vor.u32 %v1272_v34, %v1271_v31  ;;  %v1011_v19 = vor.u32 %v1010_v41, %v1009_v39  ;;  %v860_v43 = vrot.slane %v11397_v11, 1  ;;  %v1130_v31 = vrot.slane %v11500_v21, 2 }
  0x42   : > { %943 = vrot.lane.b32.xlu0 %v855_v46, %s11091_s25  ;;  %v1283_v34 = vrot.slane %v11510_v23, 2 }
  0x43   : > { %v1274_v24 = vsel %vm15680_vm4, %v1269_v10, %v1273_v36  ;;  %v1012_v42 = vsel %vm15682_vm5, %v1007_v25, %v1011_v19  ;;  %v861_v48 = vsel %vm846_vm0, %v858_v27, %v860_v43 }
  0x45   : > { %1209 = vrot.lane.b32.xlu1 %v1121_v49, %s11093_s27 }
  0x46   : > { %1154 = vrot.lane.b32.xlu0 %v1119_v33, %s11094_s28  ;;  %v859_v33 = vsel %vm846_vm0, %v856_v60, %v858_v27  ;;  %v712_v60 = vrot.slane %v11413_v28, 1 }
  0x48   : > { %v713_v62 = vsel %vm653_vm3, %v708_v59, %v712_v60 }
  0x49   : > { %1420 = vrot.lane.b32.xlu1 %v1385_v54, %s11095_s29  ;;  %v11461_v54 = vld [vmem:[%s11198_s22 + $0x48] sm:$0xff]  }
  0x4a   : > { %1341 = vrot.lane.b32.xlu0 %v1266_v56, %s11097_s20  ;;  %v11475_v0 = vshll.u32 %v11461_v54, 16  ;;  %v1128_v3 = vrot.slane %v11461_v54, 2  ;;  %v1392_v9 = vrot.slane %v11461_v54, 3  ;;  %v864_v28 = vrot.slane %v11461_v54, 1 }
  0x4c   : > { %v1280_v6 = vrot.slane %v11475_v0, 3  ;;  %v1393_v11 = vsel %vm15681_vm2, %v1390_v52, %v1392_v9  ;;  %v1018_v14 = vrot.slane %v11475_v0, 2  ;;  %v728_v45 = vrot.slane %v11475_v0, 1 }
  0x4d   : > { %890 = vrot.lane.b32.xlu1 %v855_v46, %s11092_s26  ;;  %v11446_v46 = vshrl.u32 %v11429_v37, 16 }
  0x4e   : > { %811 = vrot.lane.b32.xlu0 %v689_v63, %s11096_s13  ;;  %v862_v63 = vrot.slane %v11429_v37, 1  ;;  %v1394_v37 = vrot.slane %v11500_v21, 3 }
  0x4f   : > { %v1013_v56 = vrot.slane %v11446_v46, 1 }
  0x51   : > { %1077 = vrot.lane.b32.xlu1 %v1004_v2, %s11098_s21  ;;  %v1015_v61 = vor.u32 %v1014_v57, %v1013_v56  ;;  %v11478_v2 = vshrl.u32 %v11461_v54, 16 }
  0x52   : > { %945 = vrot.lane.b32.xlu0 %v857_v4, %s11091_s25 }
  0x53   : > { %v1016_v44 = vsel %vm15682_vm5, %v1011_v19, %v1015_v61  ;;  %v1279_v5 = vrot.slane %v11478_v2, 2 }
  0x55   : > { %1211 = vrot.lane.b32.xlu1 %v1123_v7, %s11093_s27  ;;  %v1281_v10 = vor.u32 %v1280_v6, %v1279_v5 }
  0x56   : > { %1156 = vrot.lane.b32.xlu0 %v1121_v49, %s11094_s28  ;;  %v1275_v49 = vrot.slane %v11446_v46, 2 }
  0x58   : > { %v1277_v53 = vor.u32 %v1276_v50, %v1275_v49 }
  0x59   : > { %1422 = vrot.lane.b32.xlu1 %v1387_v12, %s11095_s29  ;;  %v1017_v12 = vrot.slane %v11478_v2, 1 }
  0x5a   : > { %1343 = vrot.lane.b32.xlu0 %v1270_v18, %s11097_s20  ;;  %v1278_v58 = vsel %vm15680_vm4, %v1273_v36, %v1277_v53  ;;  %v1282_v16 = vsel %vm15680_vm4, %v1277_v53, %v1281_v10  ;;  %v716_v18 = vor.u32 %v11408_v22, %v712_v60  ;;  %v11522_v36 = vsel %vm1112_vm1, %v1128_v3, %v1130_v31 }
  0x5b   : > { %v1019_v25 = vor.u32 %v1018_v14, %v1017_v12 }
  0x5c   : > { %v721_v27 = vsel %vm653_vm3, %v716_v18, %v720_v20 }
  0x5d   : > { %892 = vrot.lane.b32.xlu1 %v857_v4, %s11092_s26  ;;  %v863_v4 = vsel %vm846_vm0, %v860_v43, %v862_v63  ;;  %v1020_v22 = vsel %vm15682_vm5, %v1015_v61, %v1019_v25  ;;  %v724_v43 = vor.u32 %v11446_v46, %v720_v20  ;;  %v866_v46 = vrot.slane %v11500_v21, 1 }
  0x5e   : > { %813 = vrot.lane.b32.xlu0 %v697_v30, %s11096_s13  ;;  %v11507_v30 = vshll.u32 %v11500_v21, 16 }
  0x5f   : > { %v867_v59 = vsel %vm846_vm0, %v864_v28, %v866_v46 }
  0x60   : > { %v1022_v40 = vrot.slane %v11507_v30, 2 }
  0x61   : > { %1079 = vrot.lane.b32.xlu1 %v1008_v32, %s11098_s21 }
  0x62   : > { %947 = vrot.lane.b32.xlu0 %v859_v33, %s11091_s25  ;;  %v11546_v49 = vor.u32 %v1022_v40, %v1021_v26 }
  0x65   : > { %1213 = vrot.lane.b32.xlu1 %v1125_v35, %s11093_s27 }
  0x66   : > { %1158 = vrot.lane.b32.xlu0 %v1123_v7, %s11094_s28  ;;  %v1129_v7 = vsel %vm1112_vm1, %v1126_v47, %v1128_v3 }
  0x69   : > { %1424 = vrot.lane.b32.xlu1 %v1389_v38, %s11095_s29 }
  0x6a   : > { %1345 = vrot.lane.b32.xlu0 %v1274_v24, %s11097_s20  ;;  %v1395_v24 = vsel %vm15681_vm2, %v1392_v9, %v1394_v37 }
  0x6d   : > { %894 = vrot.lane.b32.xlu1 %v859_v33, %s11092_s26  ;;  %v865_v33 = vsel %vm846_vm0, %v862_v63, %v864_v28  ;;  %v736_v28 = vrot.slane %v11507_v30, 1 }
  0x6e   : > { %815 = vrot.lane.b32.xlu0 %v705_v29, %s11096_s13 }
  0x71   : > { %1081 = vrot.lane.b32.xlu1 %v1012_v42, %s11098_s21  ;;  %v11540_v42 = vld [vmem:[%s11198_s22 + $0x58] sm:$0xff]  }
  0x72   : > { %949 = vrot.lane.b32.xlu0 %v861_v48, %s11091_s25  ;;  %v11551_v52 = vshll.u32 %v11540_v42, 16  ;;  %v11554_v53 = vshrl.u32 %v11540_v42, 16  ;;  %v1132_v56 = vrot.slane %v11540_v42, 2  ;;  %v1396_v5 = vrot.slane %v11540_v42, 3 }
  0x74   : > { %v1287_v60 = vrot.slane %v11554_v53, 2  ;;  %v1288_v61 = vrot.slane %v11551_v52, 3  ;;  %v1397_v14 = vsel %vm15681_vm2, %v1394_v37, %v1396_v5  ;;  %v1026_v18 = vrot.slane %v11551_v52, 2 }
  0x75   : > { %1215 = vrot.lane.b32.xlu1 %v1127_v51, %s11093_s27 }
  0x76   : > { %1160 = vrot.lane.b32.xlu0 %v1125_v35, %s11094_s28  ;;  %v1284_v35 = vrot.slane %v11507_v30, 3  ;;  %v1289_v9 = vor.u32 %v1288_v61, %v1287_v60 }
  0x78   : > { %v11525_v39 = vor.u32 %v1284_v35, %v1283_v34 }
  0x79   : > { %1426 = vrot.lane.b32.xlu1 %v1391_v55, %s11095_s29  ;;  %v1024_v55 = vsel %vm15682_vm5, %v1019_v25, %v11546_v49 }
  0x7a   : > { %1347 = vrot.lane.b32.xlu0 %v1278_v58, %s11097_s20  ;;  %v1286_v29 = vsel %vm15680_vm4, %v1281_v10, %v11525_v39  ;;  %v1290_v25 = vsel %vm15680_vm4, %v11525_v39, %v1289_v9 }
  0x7d   : > { %896 = vrot.lane.b32.xlu1 %v861_v48, %s11092_s26 }
  0x7e   : > { %817 = vrot.lane.b32.xlu0 %v713_v62, %s11096_s13 }
  0x81   : > { %1083 = vrot.lane.b32.xlu1 %v1016_v44, %s11098_s21 }
  0x82   : > { %951 = vrot.lane.b32.xlu0 %v863_v4, %s11091_s25 }
  0x85   : > { %1217 = vrot.lane.b32.xlu1 %v1129_v7, %s11093_s27 }
  0x86   : > { %1162 = vrot.lane.b32.xlu0 %v1127_v51, %s11094_s28  ;;  %v729_v51 = vsel %vm653_vm3, %v724_v43, %v728_v45 }
  0x89   : > { %1428 = vrot.lane.b32.xlu1 %v1393_v11, %s11095_s29 }
  0x8a   : > { %1349 = vrot.lane.b32.xlu0 %v1282_v16, %s11097_s20  ;;  %v1025_v16 = vrot.slane %v11554_v53, 1 }
  0x8c   : > { %v1027_v34 = vor.u32 %v1026_v18, %v1025_v16  ;;  %v11037_v18 = vld [vmem:[%s11198_s22 + $0x18] sm:$0xff]  }
  0x8d   : > { %898 = vrot.lane.b32.xlu1 %v863_v4, %s11092_s26  ;;  %v1133_v4 = vsel %vm1112_vm1, %v1130_v31, %v1132_v56 }
  0x8e   : > { %819 = vrot.lane.b32.xlu0 %v721_v27, %s11096_s13  ;;  %v732_v27 = vor.u32 %v11478_v2, %v728_v45 }
  0x8f   : > { %v940_v32 = vpop.permute.xlu1 %939 }
  0x90   : > { %v885_v15 = vpop.permute.xlu0 %884 }
  0x91   : > { %1085 = vrot.lane.b32.xlu1 %v1020_v22, %s11098_s21  ;;  %v11599_v22 = vld [vmem:[%s11198_s22 + $0x60] sm:$0xff]  }
  0x92   : > { %953 = vrot.lane.b32.xlu0 %v865_v33, %s11091_s25  ;;  %v11608_v2 = vshll.u32 %v11599_v22, 16  ;;  %v11611_v30 = vshrl.u32 %v11599_v22, 16  ;;  %v1134_v26 = vrot.slane %v11599_v22, 2 }
  0x93   : > { %v1206_v38 = vpop.permute.xlu1 %1205 }
  0x94   : > { %v1151_v41 = vpop.permute.xlu0 %1150  ;;  %v1292_v43 = vrot.slane %v11608_v2, 3  ;;  %v1135_v21 = vsel %vm1112_vm1, %v1132_v56, %v1134_v26 }
  0x95   : > { %1219 = vrot.lane.b32.xlu1 %v11522_v36, %s11093_s27 }
  0x96   : > { %1164 = vrot.lane.b32.xlu0 %v1129_v7, %s11094_s28 }
  0x97   : > { %v1417_v19 = vpop.permute.xlu1 %1416 }
  0x98   : > { %v806_v47 = vpop.permute.xlu0 %805 }
  0x99   : > { %v1456_v48 = vsel %vm1454_vm8, %v11222_v17, %v806_v47  ;;  %1430 = vrot.lane.b32.xlu1 %v1395_v24, %s11095_s29  ;;  %v1028_v24 = vsel %vm15682_vm5, %v11546_v49, %v1027_v34 }
  0x9a   : > { %1351 = vrot.lane.b32.xlu0 %v1286_v29, %s11097_s20  ;;  %v1496_v54 = vsel %vm1494_vm9, %v1456_v48, %v885_v15  ;;  %v737_v15 = vsel %vm653_vm3, %v732_v27, %v736_v28  ;;  %v1291_v29 = vrot.slane %v11611_v30, 2  ;;  %v1398_v48 = vrot.slane %v11599_v22, 3 }
  0x9b   : > { %v887_v50 = vpop.permute.xlu1 %886  ;;  %v1535_v58 = vsel %vm1533_vm10, %v1496_v54, %v940_v32 }
  0x9c   : > { %v1338_v17 = vpop.permute.xlu0 %1337 }
  0x9d   : > { %900 = vrot.lane.b32.xlu1 %v865_v33, %s11092_s26 }
  0x9e   : > { %821 = vrot.lane.b32.xlu0 %v729_v51, %s11096_s13 }
  0x9f   : > { %v1072_v57 = vpop.permute.xlu1 %1071 }
  0xa0   : > { %v1574_v62 = vsel %vm1572_vm11, %v1535_v58, %v1072_v57  ;;  %v808_v63 = vpop.permute.xlu0 %807  ;;  %v740_v57 = vor.u32 %v11510_v23, %v736_v28  ;;  %v744_v58 = vrot.slane %v11551_v52, 1  ;;  %v870_v23 = vrot.slane %v11599_v22, 1 }
  0xa1   : > { %v1613_v0 = vsel %vm1611_vm12, %v1574_v62, %v1151_v41  ;;  %v1458_v44 = vsel %vm1454_vm8, %v11216_v13, %v808_v63  ;;  %1087 = vrot.lane.b32.xlu1 %v1024_v55, %s11098_s21 }
  0xa2   : > { %v1652_v3 = vsel %vm1650_vm13, %v1613_v0, %v1206_v38  ;;  %955 = vrot.lane.b32.xlu0 %v867_v59, %s11091_s25  ;;  %v1498_v13 = vsel %vm1494_vm9, %v1458_v44, %v887_v50  ;;  %v1293_v50 = vor.u32 %v1292_v43, %v1291_v29  ;;  %v745_v44 = vsel %vm653_vm3, %v740_v57, %v744_v58  ;;  %v11038_v57 = vld [vmem:[%s11198_s22 + $0x20] sm:$0xff]  }
  0xa3   : > { %v1074_v6 = vpop.permute.xlu1 %1073  ;;  %v1691_v7 = vsel %vm1689_vm14, %v1652_v3, %v1338_v17  ;;  %v1030_v17 = vrot.slane %v11608_v2, 2 }
  0xa4   : > { %v942_v10 = vpop.permute.xlu0 %941  ;;  %v1730_v11 = vsel %vm1728_vm15, %v1691_v7, %v1417_v19  ;;  %v1294_v56 = vsel %vm15680_vm4, %v1289_v9, %v1293_v50 }
  0xa5   : > { %v1537_v12 = vsel %vm1533_vm10, %v1498_v13, %v942_v10  ;;  %1221 = vrot.lane.b32.xlu1 %v1133_v4, %s11093_s27  ;;  %9935 = vmatmul.mubr.msk.bf16.vlgmr.msra.gmra.mrb[0].mxu0 %vm1803_vm6, %v1730_v11 }
  0xa6   : > { %1166 = vrot.lane.b32.xlu0 %v11522_v36, %s11094_s28  ;;  %9938 = vmatprep.mubr.msk.bf16.mxu0 %vm11099_vm7, %v15690_v1  ;;  %v1576_v31 = vsel %vm1572_vm11, %v1537_v12, %v1074_v6  ;;  %v868_v36 = vrot.slane %v11540_v42, 1  ;;  %v1029_v42 = vrot.slane %v11611_v30, 1 }
  0xa7   : > { %v1208_v20 = vpop.permute.xlu1 %1207 }
  0xa8   : > { %v1153_v32 = vpop.permute.xlu0 %1152  ;;  %v869_v19 = vsel %vm846_vm0, %v866_v46, %v868_v36  ;;  %v11654_v63 = vor.u32 %v1030_v17, %v1029_v42  ;;  %v871_v11 = vsel %vm846_vm0, %v868_v36, %v870_v23 }
  0xa9   : > { %v1615_v33 = vsel %vm1611_vm12, %v1576_v31, %v1153_v32  ;;  %1432 = vrot.lane.b32.xlu1 %v1397_v14, %s11095_s29 }
  0xaa   : > { %1353 = vrot.lane.b32.xlu0 %v1290_v25, %s11097_s20  ;;  %v1654_v37 = vsel %vm1650_vm13, %v1615_v33, %v1208_v20  ;;  %v1032_v9 = vsel %vm15682_vm5, %v1027_v34, %v11654_v63 }
  0xab   : > { %v1419_v35 = vpop.permute.xlu1 %1418 }
  0xac   : > { %v1340_v38 = vpop.permute.xlu0 %1339 }
  0xad   : > { %v1693_v39 = vsel %vm1689_vm14, %v1654_v37, %v1340_v38  ;;  %902 = vrot.lane.b32.xlu1 %v867_v59, %s11092_s26  ;;  %v11648_v59 = vld [vmem:[%s11198_s22 + $0x68] sm:$0xff]  }
  0xae   : > { %823 = vrot.lane.b32.xlu0 %v737_v15, %s11096_s13  ;;  %v1732_v41 = vsel %vm1728_vm15, %v1693_v39, %v1419_v35  ;;  %v11659_v52 = vshll.u32 %v11648_v59, 16  ;;  %v11662_v3 = vshrl.u32 %v11648_v59, 16  ;;  %v1136_v13 = vrot.slane %v11648_v59, 2 }
  0xaf   : > { %9939 = vmatmul.mubr.msk.bf16.gmra.mrb[4].mxu0 %vm1803_vm6, %v1732_v41  ;;  %v889_v40 = vpop.permute.xlu1 %888  ;;  %v1400_v27 = vrot.slane %v11648_v59, 3  ;;  %v748_v39 = vor.u32 %v11554_v53, %v744_v58  ;;  %v752_v41 = vrot.slane %v11608_v2, 1  ;;  %v872_v53 = vrot.slane %v11648_v59, 1 }
  0xb0   : > { %v810_v45 = vpop.permute.xlu0 %809  ;;  %9942 = vmatprep.mubr.msk.bf16.mxu0 %vm11099_vm7, %v15690_v1  ;;  %v1295_v12 = vrot.slane %v11662_v3, 2  ;;  %v1296_v14 = vrot.slane %v11659_v52, 3  ;;  %v11687_v25 = vsel %vm1112_vm1, %v1134_v26, %v1136_v13  ;;  %v1033_v15 = vrot.slane %v11662_v3, 1 }
  0xb1   : > { %v1460_v47 = vsel %vm1454_vm8, %v11209_v8, %v810_v45  ;;  %1089 = vrot.lane.b32.xlu1 %v1028_v24, %s11098_s21  ;;  %v1399_v8 = vsel %vm15681_vm2, %v1396_v5, %v1398_v48  ;;  %v1401_v35 = vsel %vm15681_vm2, %v1398_v48, %v1400_v27  ;;  %v1034_v36 = vrot.slane %v11659_v52, 2  ;;  %v11707_v24 = vld [vmem:[%s11198_s22 + $0x70] sm:$0xff]  }
  0xb2   : > { %957 = vrot.lane.b32.xlu0 %v869_v19, %s11091_s25  ;;  %v1500_v51 = vsel %vm1494_vm9, %v1460_v47, %v889_v40  ;;  %v11690_v31 = vor.u32 %v1296_v14, %v1295_v12  ;;  %v753_v45 = vsel %vm653_vm3, %v748_v39, %v752_v41  ;;  %v11718_v2 = vshll.u32 %v11707_v24, 16 }
  0xb3   : > { %v1076_v49 = vpop.permute.xlu1 %1075  ;;  %v11713_v29 = vor.u32 %v1034_v36, %v1033_v15  ;;  %v11721_v47 = vshrl.u32 %v11707_v24, 16  ;;  %v873_v42 = vsel %vm846_vm0, %v870_v23, %v872_v53 }
  0xb4   : > { %v944_v46 = vpop.permute.xlu0 %943  ;;  %v1298_v38 = vsel %vm15680_vm4, %v1293_v50, %v11690_v31  ;;  %v15692_v50 = vmov 0  }
  0xb5   : > { %v1539_v54 = vsel %vm1533_vm10, %v1500_v51, %v944_v46  ;;  %1223 = vrot.lane.b32.xlu1 %v1135_v21, %s11093_s27  ;;  %2377 = vst [vmem:[#allocation2] sm:$0xf] %v15692_v50  ;;  %2378 = vst [vmem:[#allocation2 + $0x4] sm:$0xf] %v15692_v50  ;;  %10651 = vset.pattern.permute.xlu0 %v15692_v50  ;;  %v1036_v46 = vsel %vm15682_vm5, %v11654_v63, %v11713_v29  ;;  %v1299_v17 = vrot.slane %v11721_v47, 2 }
  0xb6   : > { %1168 = vrot.lane.b32.xlu0 %v1133_v4, %s11094_s28  ;;  %v1578_v60 = vsel %vm1572_vm11, %v1539_v54, %v1076_v49  ;;  %2391 = vst [vmem:[#allocation2 + $0x9c] sm:$0xf] %v15692_v50  ;;  %2392 = vst [vmem:[#allocation2 + $0xa0] sm:$0xf] %v15692_v50  ;;  %v1138_v54 = vrot.slane %v11707_v24, 2  ;;  %10652 = vset.pattern.permute.xlu1 %v15692_v50 }
  0xb7   : > { %v1210_v55 = vpop.permute.xlu1 %1209  ;;  %5320 = vst [vmem:[#allocation3] sm:$0xf] %v15692_v50  ;;  %5321 = vst [vmem:[#allocation3 + $0x4] sm:$0xf] %v15692_v50  ;;  %4606 = vmatprep.subr.bf16.mxu1 %v15692_v50 }
  0xb8   : > { %v1155_v61 = vpop.permute.xlu0 %1154  ;;  %5328 = vst [vmem:[#allocation3 + $0x9c] sm:$0xf] %v15692_v50  ;;  %5329 = vst [vmem:[#allocation3 + $0xa0] sm:$0xf] %v15692_v50 }
  0xb9   : > { %v1617_v62 = vsel %vm1611_vm12, %v1578_v60, %v1155_v61  ;;  %1434 = vrot.lane.b32.xlu1 %v1399_v8, %s11095_s29  ;;  %v1139_v60 = vsel %vm1112_vm1, %v1136_v13, %v1138_v54  ;;  %v1402_v61 = vrot.slane %v11707_v24, 3  ;;  %v756_v13 = vor.u32 %v11611_v30, %v752_v41  ;;  %v11039_v41 = vld [vmem:[%s11198_s22 + $0x28] sm:$0xff]  }
  0xba   : > { %1355 = vrot.lane.b32.xlu0 %v1294_v56, %s11097_s20  ;;  %v1656_v4 = vsel %vm1650_vm13, %v1617_v62, %v1210_v55  ;;  %v1300_v55 = vrot.slane %v11718_v2, 3 }
  0xbb   : > { %v1421_v0 = vpop.permute.xlu1 %1420 }
  0xbc   : > { %v1342_v5 = vpop.permute.xlu0 %1341  ;;  %v1301_v63 = vor.u32 %v1300_v55, %v1299_v17  ;;  %v11823_v17 = vld [vmem:[%s11198_s22 + $0x80] sm:$0xff]  }
  0xbd   : > { %v1695_v6 = vsel %vm1689_vm14, %v1656_v4, %v1342_v5  ;;  %904 = vrot.lane.b32.xlu1 %v869_v19, %s11092_s26  ;;  %v1403_v4 = vsel %vm15681_vm2, %v1400_v27, %v1402_v61  ;;  %v1037_v5 = vrot.slane %v11721_v47, 1  ;;  %v874_v27 = vrot.slane %v11707_v24, 1 }
  0xbe   : > { %825 = vrot.lane.b32.xlu0 %v745_v44, %s11096_s13  ;;  %v1734_v7 = vsel %vm1728_vm15, %v1695_v6, %v1421_v0  ;;  %v1038_v6 = vrot.slane %v11718_v2, 2 }
  0xbf   : > { %9943 = vmatmul.mubr.msk.bf16.gmra.mrb[8].mxu0 %vm1803_vm6, %v1734_v7  ;;  %v891_v10 = vpop.permute.xlu1 %890  ;;  %v875_v36 = vsel %vm846_vm0, %v872_v53, %v874_v27 }
  0xc0   : > { %v812_v16 = vpop.permute.xlu0 %811  ;;  %9946 = vmatprep.mubr.msk.bf16.mxu0 %vm11099_vm7, %v15690_v1 }
  0xc1   : > { %v1462_v20 = vsel %vm1454_vm8, %v11037_v18, %v812_v16  ;;  %1091 = vrot.lane.b32.xlu1 %v1032_v9, %s11098_s21  ;;  %v1302_v9 = vsel %vm15680_vm4, %v11690_v31, %v1301_v63  ;;  %v1039_v18 = vor.u32 %v1038_v6, %v1037_v5  ;;  %v1142_v5 = vrot.slane %v11823_v17, 2 }
  0xc2   : > { %959 = vrot.lane.b32.xlu0 %v871_v11, %s11091_s25  ;;  %v1502_v32 = vsel %vm1494_vm9, %v1462_v20, %v891_v10  ;;  %v760_v10 = vrot.slane %v11659_v52, 1 }
  0xc3   : > { %v1078_v28 = vpop.permute.xlu1 %1077 }
  0xc4   : > { %v946_v33 = vpop.permute.xlu0 %945 }
  0xc5   : > { %v1541_v34 = vsel %vm1533_vm10, %v1502_v32, %v946_v33  ;;  %1225 = vrot.lane.b32.xlu1 %v11687_v25, %s11093_s27 }
  0xc6   : > { %1170 = vrot.lane.b32.xlu0 %v1135_v21, %s11094_s28  ;;  %v1580_v26 = vsel %vm1572_vm11, %v1541_v34, %v1078_v28  ;;  %v1040_v34 = vsel %vm15682_vm5, %v11713_v29, %v1039_v18 }
  0xc7   : > { %v1212_v37 = vpop.permute.xlu1 %1211 }
  0xc8   : > { %v1157_v40 = vpop.permute.xlu0 %1156 }
  0xc9   : > { %v1619_v19 = vsel %vm1611_vm12, %v1580_v26, %v1157_v40  ;;  %1436 = vrot.lane.b32.xlu1 %v1401_v35, %s11095_s29 }
  0xca   : > { %1357 = vrot.lane.b32.xlu0 %v1298_v38, %s11097_s20  ;;  %v1658_v21 = vsel %vm1650_vm13, %v1619_v19, %v1212_v37 }
  0xcb   : > { %v1423_v43 = vpop.permute.xlu1 %1422 }
  0xcc   : > { %v1344_v48 = vpop.permute.xlu0 %1343 }
  0xcd   : > { %v1697_v49 = vsel %vm1689_vm14, %v1658_v21, %v1344_v48  ;;  %906 = vrot.lane.b32.xlu1 %v871_v11, %s11092_s26  ;;  %v11776_v11 = vld [vmem:[%s11198_s22 + $0x78] sm:$0xff]  }
  0xce   : > { %827 = vrot.lane.b32.xlu0 %v753_v45, %s11096_s13  ;;  %v1736_v51 = vsel %vm1728_vm15, %v1697_v49, %v1423_v43  ;;  %v11785_v30 = vshll.u32 %v11776_v11, 16  ;;  %v11788_v52 = vshrl.u32 %v11776_v11, 16  ;;  %v1140_v35 = vrot.slane %v11776_v11, 2 }
  0xcf   : > { %9947 = vmatmul.mubr.msk.bf16.gmra.mrb[12].mxu0 %vm1803_vm6, %v1736_v51  ;;  %v893_v8 = vpop.permute.xlu1 %892  ;;  %v1404_v19 = vrot.slane %v11776_v11, 3 }
  0xd0   : > { %v814_v56 = vpop.permute.xlu0 %813  ;;  %9950 = vmatprep.mubr.msk.bf16.mxu0 %vm11099_vm7, %v15690_v1  ;;  %v1303_v37 = vrot.slane %v11788_v52, 2  ;;  %v1304_v38 = vrot.slane %v11785_v30, 3  ;;  %v1141_v40 = vsel %vm1112_vm1, %v1138_v54, %v1140_v35  ;;  %v1041_v49 = vrot.slane %v11788_v52, 1 }
  0xd1   : > { %v1464_v58 = vsel %vm1454_vm8, %v11038_v57, %v814_v56  ;;  %1093 = vrot.lane.b32.xlu1 %v1036_v46, %s11098_s21  ;;  %v1405_v48 = vsel %vm15681_vm2, %v1402_v61, %v1404_v19  ;;  %v1042_v51 = vrot.slane %v11785_v30, 2 }
  0xd2   : > { %961 = vrot.lane.b32.xlu0 %v873_v42, %s11091_s25  ;;  %v1504_v0 = vsel %vm1494_vm9, %v1464_v58, %v893_v8  ;;  %v1305_v43 = vor.u32 %v1304_v38, %v1303_v37  ;;  %v764_v8 = vor.u32 %v11662_v3, %v760_v10  ;;  %v11832_v3 = vshll.u32 %v11823_v17, 16  ;;  %v11867_v38 = vld [vmem:[%s11198_s22 + $0x88] sm:$0xff]  }
  0xd3   : > { %v1080_v62 = vpop.permute.xlu1 %1079  ;;  %v1043_v58 = vor.u32 %v1042_v51, %v1041_v49  ;;  %v776_v37 = vrot.slane %v11785_v30, 1  ;;  %v11879_v30 = vshrl.u32 %v11867_v38, 16  ;;  %v1144_v51 = vrot.slane %v11867_v38, 2 }
  0xd4   : > { %v948_v44 = vpop.permute.xlu0 %947  ;;  %v1306_v54 = vsel %vm15680_vm4, %v1301_v63, %v1305_v43 }
  0xd5   : > { %v1543_v23 = vsel %vm1533_vm10, %v1504_v0, %v948_v44  ;;  %1227 = vrot.lane.b32.xlu1 %v1139_v60, %s11093_s27 }
  0xd6   : > { %1172 = vrot.lane.b32.xlu0 %v11687_v25, %s11094_s28  ;;  %v1582_v12 = vsel %vm1572_vm11, %v1543_v23, %v1080_v62  ;;  %v761_v25 = vsel %vm653_vm3, %v756_v13, %v760_v10  ;;  %v876_v62 = vrot.slane %v11776_v11, 1  ;;  %v1308_v13 = vrot.slane %v11832_v3, 3 }
  0xd7   : > { %v1214_v7 = vpop.permute.xlu1 %1213 }
  0xd8   : > { %v1159_v14 = vpop.permute.xlu0 %1158 }
  0xd9   : > { %v1621_v16 = vsel %vm1611_vm12, %v1582_v12, %v1159_v14  ;;  %1438 = vrot.lane.b32.xlu1 %v1403_v4, %s11095_s29  ;;  %v1044_v4 = vsel %vm15682_vm5, %v1039_v18, %v1043_v58  ;;  %v11040_v12 = vld [vmem:[%s11198_s22 + $0x30] sm:$0xff]   ;;  %v1406_v18 = vrot.slane %v11823_v17, 3 }
  0xda   : > { %1359 = vrot.lane.b32.xlu0 %v1302_v9, %s11097_s20  ;;  %v1660_v28 = vsel %vm1650_vm13, %v1621_v16, %v1214_v7  ;;  %v877_v7 = vsel %vm846_vm0, %v874_v27, %v876_v62  ;;  %v1143_v16 = vsel %vm1112_vm1, %v1140_v35, %v1142_v5 }
  0xdb   : > { %v1425_v20 = vpop.permute.xlu1 %1424 }
  0xdc   : > { %v1346_v31 = vpop.permute.xlu0 %1345 }
  0xdd   : > { %v1699_v32 = vsel %vm1689_vm14, %v1660_v28, %v1346_v31  ;;  %908 = vrot.lane.b32.xlu1 %v873_v42, %s11092_s26  ;;  %v768_v42 = vrot.slane %v11718_v2, 1  ;;  %v11835_v2 = vshrl.u32 %v11823_v17, 16 }
  0xde   : > { %829 = vrot.lane.b32.xlu0 %v761_v25, %s11096_s13  ;;  %v1738_v33 = vsel %vm1728_vm15, %v1699_v32, %v1425_v20  ;;  %v1407_v32 = vsel %vm15681_vm2, %v1404_v19, %v1406_v18 }
  0xdf   : > { %9951 = vmatmul.mubr.msk.bf16.gmra.mrb[16].mxu0 %vm1803_vm6, %v1738_v33  ;;  %v895_v15 = vpop.permute.xlu1 %894  ;;  %v769_v61 = vsel %vm653_vm3, %v764_v8, %v768_v42  ;;  %v1307_v9 = vrot.slane %v11835_v2, 2  ;;  %v1045_v33 = vrot.slane %v11835_v2, 1  ;;  %v1311_v8 = vrot.slane %v11879_v30, 2 }
  0xe0   : > { %v816_v39 = vpop.permute.xlu0 %815  ;;  %9954 = vmatprep.mubr.msk.bf16.mxu0 %vm11099_vm7, %v15690_v1 }
  0xe1   : > { %v1466_v26 = vsel %vm1454_vm8, %v11039_v41, %v816_v39  ;;  %1095 = vrot.lane.b32.xlu1 %v1040_v34, %s11098_s21  ;;  %v1309_v25 = vor.u32 %v1308_v13, %v1307_v9  ;;  %v1046_v34 = vrot.slane %v11832_v3, 2  ;;  %v780_v9 = vor.u32 %v11788_v52, %v776_v37 }
  0xe2   : > { %963 = vrot.lane.b32.xlu0 %v875_v36, %s11091_s25  ;;  %v1506_v45 = vsel %vm1494_vm9, %v1466_v26, %v895_v15  ;;  %v784_v13 = vrot.slane %v11832_v3, 1 }
  0xe3   : > { %v1082_v29 = vpop.permute.xlu1 %1081  ;;  %v1310_v15 = vsel %vm15680_vm4, %v1305_v43, %v1309_v25  ;;  %v878_v43 = vrot.slane %v11823_v17, 1 }
  0xe4   : > { %v950_v53 = vpop.permute.xlu0 %949 }
  0xe5   : > { %v1545_v21 = vsel %vm1533_vm10, %v1506_v45, %v950_v53  ;;  %1229 = vrot.lane.b32.xlu1 %v1141_v40, %s11093_s27 }
  0xe6   : > { %1174 = vrot.lane.b32.xlu0 %v1139_v60, %s11094_s28  ;;  %v1584_v55 = vsel %vm1572_vm11, %v1545_v21, %v1082_v29 }
  0xe7   : > { %v1216_v46 = vpop.permute.xlu1 %1215 }
  0xe8   : > { %v1161_v56 = vpop.permute.xlu0 %1160 }
  0xe9   : > { %v1623_v57 = vsel %vm1611_vm12, %v1584_v55, %v1161_v56  ;;  %1440 = vrot.lane.b32.xlu1 %v1405_v48, %s11095_s29  ;;  %v11041_v56 = vld [vmem:[%s11198_s22 + $0x38] sm:$0xff]  }
  0xea   : > { %1361 = vrot.lane.b32.xlu0 %v1306_v54, %s11097_s20  ;;  %v1662_v63 = vsel %vm1650_vm13, %v1623_v57, %v1216_v46  ;;  %v879_v54 = vsel %vm846_vm0, %v876_v62, %v878_v43 }
  0xeb   : > { %v1427_v60 = vpop.permute.xlu1 %1426 }
  0xec   : > { %v1348_v0 = vpop.permute.xlu0 %1347 }
  0xed   : > { %v1701_v44 = vsel %vm1689_vm14, %v1662_v63, %v1348_v0  ;;  %910 = vrot.lane.b32.xlu1 %v875_v36, %s11092_s26  ;;  %v772_v36 = vor.u32 %v11721_v47, %v768_v42  ;;  %v11876_v47 = vshll.u32 %v11867_v38, 16 }
  0xee   : > { %831 = vrot.lane.b32.xlu0 %v769_v61, %s11096_s13  ;;  %v1740_v23 = vsel %vm1728_vm15, %v1701_v44, %v1427_v60  ;;  %v1408_v60 = vrot.slane %v11867_v38, 3 }
  0xef   : > { %9955 = vmatmul.mubr.msk.bf16.gmra.mrb[20].mxu0 %vm1803_vm6, %v1740_v23  ;;  %v897_v6 = vpop.permute.xlu1 %896  ;;  %v777_v29 = vsel %vm653_vm3, %v772_v36, %v776_v37  ;;  %v1312_v42 = vrot.slane %v11876_v47, 3 }
  0xf0   : > { %v818_v10 = vpop.permute.xlu0 %817  ;;  %9958 = vmatprep.mubr.msk.bf16.mxu0 %vm11099_vm7, %v15690_v1  ;;  %v1409_v23 = vsel %vm15681_vm2, %v1406_v18, %v1408_v60 }
  0xf1   : > { %v1468_v14 = vsel %vm1454_vm8, %v11040_v12, %v818_v10  ;;  %1097 = vrot.lane.b32.xlu1 %v1044_v4, %s11098_s21  ;;  %v1313_v62 = vor.u32 %v1312_v42, %v1311_v8  ;;  %v1049_v4 = vrot.slane %v11879_v30, 1  ;;  %v11911_v10 = vld [vmem:[%s11198_s22 + $0x90] sm:$0xff]   ;;  %v788_v42 = vor.u32 %v11835_v2, %v784_v13 }
  0xf2   : > { %965 = vrot.lane.b32.xlu0 %v877_v7, %s11091_s25  ;;  %v1508_v27 = vsel %vm1494_vm9, %v1468_v14, %v897_v6  ;;  %v1054_v52 = vshrl.u32 %v11911_v10, 16  ;;  %v1057_v3 = vshll.u32 %v11911_v10, 16  ;;  %v935_v2 = vrot.slane %v11911_v10, 1 }
  0xf3   : > { %v1084_v20 = vpop.permute.xlu1 %1083 }
  0xf4   : > { %v952_v28 = vpop.permute.xlu0 %951  ;;  %v1315_v37 = vrot.slane %v1054_v52, 2 }
  0xf5   : > { %v1547_v31 = vsel %vm1533_vm10, %v1508_v27, %v952_v28  ;;  %1231 = vrot.lane.b32.xlu1 %v1143_v16, %s11093_s27  ;;  %v785_v27 = vsel %vm653_vm3, %v780_v9, %v784_v13  ;;  %v11977_v9 = vld [vmem:[%s11198_s22 + $0x98] ss:$0 sps:$4 sm:$0x77]  }
  0xf6   : > { %1176 = vrot.lane.b32.xlu0 %v1141_v40, %s11094_s28  ;;  %v1586_v39 = vsel %vm1572_vm11, %v1547_v31, %v1084_v20  ;;  %v1047_v40 = vor.u32 %v1046_v34, %v1045_v33 }
  0xf7   : > { %v1218_v35 = vpop.permute.xlu1 %1217 }
  0xf8   : > { %v1163_v41 = vpop.permute.xlu0 %1162  ;;  %v1048_v49 = vsel %vm15682_vm5, %v1043_v58, %v1047_v40  ;;  %v1145_v58 = vsel %vm1112_vm1, %v1142_v5, %v1144_v51  ;;  %v1050_v5 = vrot.slane %v11876_v47, 2 }
  0xf9   : > { %v1625_v26 = vsel %vm1611_vm12, %v1586_v39, %v1163_v41  ;;  %1442 = vrot.lane.b32.xlu1 %v1407_v32, %s11095_s29  ;;  %v1316_v39 = vrot.slane %v1057_v3, 3 }
  0xfa   : > { %1363 = vrot.lane.b32.xlu0 %v1310_v15, %s11097_s20  ;;  %v1664_v45 = vsel %vm1650_vm13, %v1625_v26, %v1218_v35  ;;  %v1051_v18 = vor.u32 %v1050_v5, %v1049_v4  ;;  %v11930_v35 = vrot.slane %v11911_v10, 2  ;;  %v11042_v26 = vld [vmem:[%s11198_s22 + $0x40] sm:$0xff]  }
  0xfb   : > { %v1429_v19 = vpop.permute.xlu1 %1428 }
  0xfc   : > { %v1350_v53 = vpop.permute.xlu0 %1349  ;;  %v1052_v34 = vsel %vm15682_vm5, %v1047_v40, %v1051_v18  ;;  %v1147_v40 = vsel %vm1112_vm1, %v1144_v51, %v11930_v35 }
  0xfd   : > { %v1703_v21 = vsel %vm1689_vm14, %v1664_v45, %v1350_v53  ;;  %912 = vrot.lane.b32.xlu1 %v877_v7, %s11092_s26  ;;  %v1314_v7 = vsel %vm15680_vm4, %v1309_v25, %v1313_v62  ;;  %v11919_v25 = vrot.slane %v11867_v38, 1  ;;  %v11944_v45 = vor.u32 %v1316_v39, %v1315_v37 }
  0xfe   : > { %833 = vrot.lane.b32.xlu0 %v777_v29, %s11096_s13  ;;  %v1742_v48 = vsel %vm1728_vm15, %v1703_v21, %v1429_v19  ;;  %v1410_v29 = vrot.slane %v11911_v10, 3 }
  0xff   : > { %9959 = vmatmul.mubr.msk.bf16.gmra.mrb[24].mxu0 %vm1803_vm6, %v1742_v48  ;;  %v899_v46 = vpop.permute.xlu1 %898  ;;  %v881_v36 = vsel %vm846_vm0, %v878_v43, %v11919_v25  ;;  %v1318_v8 = vsel %vm15680_vm4, %v1313_v62, %v11944_v45 }
 0x100   : > { %v820_v55 = vpop.permute.xlu0 %819  ;;  %9962 = vmatprep.mubr.msk.bf16.mxu0 %vm11099_vm7, %v15690_v1 }
 0x101   : > { %v1470_v57 = vsel %vm1454_vm8, %v11041_v56, %v820_v55  ;;  %1099 = vrot.lane.b32.xlu1 %v1048_v49, %s11098_s21  ;;  %v1411_v49 = vsel %vm15681_vm2, %v1408_v60, %v1410_v29  ;;  %v792_v55 = vrot.slane %v11876_v47, 1  ;;  %v11956_v56 = vld [vmem:[%s11198_s22 + $0x98] sm:$0xff]  }
 0x102   : > { %967 = vrot.lane.b32.xlu0 %v879_v54, %s11091_s25  ;;  %v1510_v63 = vsel %vm1494_vm9, %v1470_v57, %v899_v46  ;;  %v1056_v46 = vrot.slane %v1054_v52, 1  ;;  %v1320_v47 = vshrl.u32 %v11956_v56, 16 }
 0x103   : > { %v1086_v61 = vpop.permute.xlu1 %1085  ;;  %v793_v62 = vsel %vm653_vm3, %v788_v42, %v792_v55 }
 0x104   : > { %v954_v0 = vpop.permute.xlu0 %953 }
 0x105   : > { %v1549_v44 = vsel %vm1533_vm10, %v1510_v63, %v954_v0  ;;  %1233 = vrot.lane.b32.xlu1 %v1145_v58, %s11093_s27  ;;  %v1323_v0 = vshll.u32 %v11956_v56, 16 }
 0x106   : > { %1178 = vrot.lane.b32.xlu0 %v1143_v16, %s11094_s28  ;;  %v1588_v12 = vsel %vm1572_vm11, %v1549_v44, %v1086_v61 }
 0x107   : > { %v1220_v6 = vpop.permute.xlu1 %1219 }
 0x108   : > { %v1165_v14 = vpop.permute.xlu0 %1164 }
 0x109   : > { %v1627_v16 = vsel %vm1611_vm12, %v1588_v12, %v1165_v14  ;;  %1444 = vrot.lane.b32.xlu1 %v1409_v23, %s11095_s29  ;;  %v936_v12 = vsel %vm846_vm0, %v11919_v25, %v935_v2  ;;  %v1322_v14 = vrot.slane %v1320_v47, 2 }
 0x10a   : > { %1365 = vrot.lane.b32.xlu0 %v1314_v7, %s11097_s20  ;;  %v1666_v28 = vsel %vm1650_vm13, %v1627_v16, %v1220_v6  ;;  %v1201_v7 = vrot.slane %v11956_v56, 2  ;;  %v1325_v16 = vrot.slane %v1323_v0, 3 }
 0x10b   : > { %v1431_v20 = vpop.permute.xlu1 %1430 }
 0x10c   : > { %v1352_v31 = vpop.permute.xlu0 %1351 }
 0x10d   : > { %v1705_v32 = vsel %vm1689_vm14, %v1666_v28, %v1352_v31  ;;  %914 = vrot.lane.b32.xlu1 %v879_v54, %s11092_s26  ;;  %v1059_v54 = vrot.slane %v1057_v3, 2  ;;  %v1202_v3 = vsel %vm1112_vm1, %v11930_v35, %v1201_v7  ;;  %v1412_v28 = vrot.slane %v11956_v56, 3 }
 0x10e   : > { %835 = vrot.lane.b32.xlu0 %v785_v27, %s11096_s13  ;;  %v1744_v33 = vsel %vm1728_vm15, %v1705_v32, %v1431_v20  ;;  %v11985_v20 = vld [vmem:[%s11198_s22 + $0x90] ss:$0 sps:$4 sm:$0x33]   ;;  %v1063_v31 = vshrl.u32 %v11977_v9, 16  ;;  %v1066_v32 = vshll.u32 %v11977_v9, 16 }
 0x10f   : > { %9963 = vmatmul.mubr.msk.bf16.gmra.mrb[28].mxu0 %vm1803_vm6, %v1744_v33  ;;  %v901_v15 = vpop.permute.xlu1 %900 }
 0x110   : > { %v822_v41 = vpop.permute.xlu0 %821  ;;  %9966 = vmatprep.mubr.msk.bf16.mxu0 %vm11099_vm7, %v15690_v1 }
 0x111   : > { %v1472_v19 = vsel %vm1454_vm8, %v11042_v26, %v822_v41  ;;  %1101 = vrot.lane.b32.xlu1 %v1052_v34, %s11098_s21  ;;  %v12000_v34 = vor.u32 %v1325_v16, %v1322_v14  ;;  %v1413_v41 = vsel %vm15681_vm2, %v1410_v29, %v1412_v28  ;;  %v882_v26 = vrot.slane %v11985_v20, 1  ;;  %v11044_v14 = vld [vmem:[%s11198_s22 + $0x50] sm:$0xff]  }
 0x112   : > { %969 = vrot.lane.b32.xlu0 %v881_v36, %s11091_s25  ;;  %v1512_v53 = vsel %vm1494_vm9, %v1472_v19, %v901_v15  ;;  %v798_v15 = vshll.u32 %v11985_v20, 16  ;;  %v1065_v19 = vrot.slane %v1063_v31, 1  ;;  %v802_v31 = vshrl.u32 %v11985_v20, 16 }
 0x113   : > { %v1088_v43 = vpop.permute.xlu1 %1087 }
 0x114   : > { %v956_v21 = vpop.permute.xlu0 %955 }
 0x115   : > { %v1551_v48 = vsel %vm1533_vm10, %v1512_v53, %v956_v21  ;;  %1235 = vrot.lane.b32.xlu1 %v1147_v40, %s11093_s27  ;;  %v1327_v21 = vsel %vm15680_vm4, %v11944_v45, %v12000_v34  ;;  %v883_v45 = vsel %vm846_vm0, %v11919_v25, %v882_v26 }
 0x116   : > { %1180 = vrot.lane.b32.xlu0 %v1145_v58, %s11094_s28  ;;  %v1590_v57 = vsel %vm1572_vm11, %v1551_v48, %v1088_v43  ;;  %v11962_v58 = vor.u32 %v1059_v54, %v1056_v46  ;;  %v1068_v43 = vrot.slane %v1066_v32, 2  ;;  %v796_v48 = vor.u32 %v11879_v30, %v792_v55  ;;  %v12016_v46 = vld [vmem:[%s11198_s22 + $0x98] ss:$0 sps:$4 sm:$0x33]  }
 0x117   : > { %v1222_v51 = vpop.permute.xlu1 %1221 }
 0x118   : > { %v1167_v61 = vpop.permute.xlu0 %1166  ;;  %v1061_v6 = vsel %vm15682_vm5, %v1051_v18, %v11962_v58  ;;  %v11043_v18 = vld [vmem:[%s11198_s22 + $0x48] sm:$0xff]   ;;  %v1069_v30 = vor.u32 %v1068_v43, %v1065_v19 }
 0x119   : > { %v1629_v63 = vsel %vm1611_vm12, %v1590_v57, %v1167_v61  ;;  %1446 = vrot.lane.b32.xlu1 %v1411_v49, %s11095_s29  ;;  %v800_v49 = vrot.slane %v798_v15, 1  ;;  %v937_v57 = vrot.slane %v12016_v46, 1 }
 0x11a   : > { %1367 = vrot.lane.b32.xlu0 %v1318_v8, %s11097_s20  ;;  %v1668_v44 = vsel %vm1650_vm13, %v1629_v63, %v1222_v51  ;;  %v12030_v8 = vld [vmem:[%s11198_s22 + $0xa0] ss:$0 sps:$4 sm:$0x77]   ;;  %v1070_v0 = vsel %vm15682_vm5, %v11962_v58, %v1069_v30 }
 0x11b   : > { %v1433_v60 = vpop.permute.xlu1 %1432  ;;  %v801_v55 = vsel %vm653_vm3, %v796_v48, %v800_v49 }
 0x11c   : > { %v1354_v23 = vpop.permute.xlu0 %1353 }
 0x11d   : > { %v1707_v4 = vsel %vm1689_vm14, %v1668_v44, %v1354_v23  ;;  %916 = vrot.lane.b32.xlu1 %v881_v36, %s11092_s26  ;;  %v1203_v44 = vrot.slane %v12030_v8, 2 }
 0x11e   : > { %837 = vrot.lane.b32.xlu0 %v793_v62, %s11096_s13  ;;  %v1746_v5 = vsel %vm1728_vm15, %v1707_v4, %v1433_v60  ;;  %v938_v4 = vsel %vm846_vm0, %v935_v2, %v937_v57 }
 0x11f   : > { %9967 = vmatmul.mubr.msk.bf16.gmra.mrb[32].mxu0 %vm1803_vm6, %v1746_v5  ;;  %v903_v13 = vpop.permute.xlu1 %902  ;;  %v1148_v5 = vrot.slane %v11977_v9, 2  ;;  %v1204_v10 = vsel %vm1112_vm1, %v1201_v7, %v1203_v44 }
 0x120   : > { %v824_v27 = vpop.permute.xlu0 %823  ;;  %9970 = vmatprep.mubr.msk.bf16.mxu0 %vm11099_vm7, %v15690_v1 }
 0x121   : > { %v1474_v52 = vsel %vm1454_vm8, %v11043_v18, %v824_v27  ;;  %1103 = vrot.lane.b32.xlu1 %v1061_v6, %s11098_s21  ;;  %v1149_v16 = vsel %vm1112_vm1, %v11930_v35, %v1148_v5 }
 0x122   : > { %971 = vrot.lane.b32.xlu0 %v936_v12, %s11091_s25  ;;  %v1514_v36 = vsel %vm1494_vm9, %v1474_v52, %v903_v13 }
 0x123   : > { %v1090_v33 = vpop.permute.xlu1 %1089 }
 0x124   : > { %v958_v37 = vpop.permute.xlu0 %957 }
 0x125   : > { %v1553_v39 = vsel %vm1533_vm10, %v1514_v36, %v958_v37  ;;  %1237 = vrot.lane.b32.xlu1 %v1202_v3, %s11093_s27  ;;  %v804_v37 = vor.u32 %v802_v31, %v800_v49 }
 0x126   : > { %1182 = vrot.lane.b32.xlu0 %v1147_v40, %s11094_s28  ;;  %v12019_v40 = vld [vmem:[%s11198_s22 + $0xa0] ss:$0 sps:$4 sm:$0xff]   ;;  %v1592_v54 = vsel %vm1572_vm11, %v1553_v39, %v1090_v33 }
 0x127   : > { %v1224_v53 = vpop.permute.xlu1 %1223  ;;  %v1329_v61 = vshrl.u32 %v12019_v40, 16  ;;  %v1332_v63 = vshll.u32 %v12019_v40, 16  ;;  %v1414_v2 = vrot.slane %v12019_v40, 3 }
 0x128   : > { %v1169_v29 = vpop.permute.xlu0 %1168 }
 0x129   : > { %v1631_v51 = vsel %vm1611_vm12, %v1592_v54, %v1169_v29  ;;  %1448 = vrot.lane.b32.xlu1 %v1413_v41, %s11095_s29  ;;  %v1331_v6 = vrot.slane %v1329_v61, 2  ;;  %v1334_v13 = vrot.slane %v1332_v63, 3  ;;  %v1415_v7 = vsel %vm15681_vm2, %v1412_v28, %v1414_v2  ;;  %v471_v61 = vld [vmem:[%s15666_s1 + $0x10] sm:$0xff] }
 0x12a   : > { %1369 = vrot.lane.b32.xlu0 %v1327_v21, %s11097_s20  ;;  %v1670_v60 = vsel %vm1650_vm13, %v1631_v51, %v1224_v53  ;;  %v11045_v53 = vld [vmem:[%s11198_s22 + $0x58] sm:$0xff]   ;;  %v470_v51 = vld [vmem:[%s15666_s1 + $0x8] sm:$0xff]  ;;  %vm2380_vm2 = vsmask.f32 1280  ;;  %v15782_v63 = vmov 0 }
 0x12b   : > { %v1435_v42 = vpop.permute.xlu1 %1434  ;;  %v1335_v27 = vor.u32 %v1334_v13, %v1331_v6 }
 0x12c   : > { %v1356_v62 = vpop.permute.xlu0 %1355 }
 0x12d   : > { %v1709_v47 = vsel %vm1689_vm14, %v1670_v60, %v1356_v62  ;;  %918 = vrot.lane.b32.xlu1 %v883_v45, %s11092_s26  ;;  %v1336_v35 = vsel %vm15680_vm4, %v12000_v34, %v1335_v27  ;;  %vm2379_vm4 = vcmask 1041408   ;;  %v2382_v60 = vld [vmem:[#allocation2 + $0x8] sm:$0x3] }
 0x12e   : > { %839 = vrot.lane.b32.xlu0 %v801_v55, %s11096_s13  ;;  %v1748_v25 = vsel %vm1728_vm15, %v1709_v47, %v1435_v42  ;;  %vm12109_vm5 = vmand %vm2379_vm4, %vm2380_vm2  ;;  %v472_v47 = vld [vmem:[%s15666_s1 + $0x18] sm:$0xff] }
 0x12f   : > { %9971 = vmatmul.mubr.msk.bf16.gmra.mrb[36].mxu0 %vm1803_vm6, %v1748_v25  ;;  %v905_v23 = vpop.permute.xlu1 %904  ;;  %v15783_v63 = vsel %vm12109_vm5, 4294967295, %v15782_v63  ;;  %v2383_v25 = vsel %vm12109_vm5, 0, %v2382_v60 }
 0x130   : > { %v826_v12 = vpop.permute.xlu0 %825  ;;  %9974 = vmatprep.mubr.msk.bf16.mxu0 %vm11099_vm7, %v15690_v1  ;;  %15784 = vst [vmem:[#allocation5_spill] sm:$0xff] %v15783_v63  ;;  %2384 = vst [vmem:[#allocation2 + $0x8] sm:$0x3] %v2383_v25 }
 0x131   : > { %v1476_v58 = vsel %vm1454_vm8, %v11044_v14, %v826_v12  ;;  %1105 = vrot.lane.b32.xlu1 %v1070_v0, %s11098_s21 }
 0x132   : > { %973 = vrot.lane.b32.xlu0 %v938_v4, %s11091_s25  ;;  %v1516_v18 = vsel %vm1494_vm9, %v1476_v58, %v905_v23  ;;  %v473_v23 = vld [vmem:[%s15666_s1 + $0x20] sm:$0xff]  ;;  %v476_v58 = vld [vmem:[%s15666_s1 + $0x38] sm:$0xff] }
 0x133   : > { %v1092_v9 = vpop.permute.xlu1 %1091 }
 0x134   : > { %v960_v52 = vpop.permute.xlu0 %959 }
 0x135   : > { %v1555_v3 = vsel %vm1533_vm10, %v1516_v18, %v960_v52  ;;  %1239 = vrot.lane.b32.xlu1 %v1204_v10, %s11093_s27  ;;  %v478_v18 = vld [vmem:[%s15666_s1 + $0x48] sm:$0xff] }
 0x136   : > { %1184 = vrot.lane.b32.xlu0 %v1149_v16, %s11094_s28  ;;  %v1594_v33 = vsel %vm1572_vm11, %v1555_v3, %v1092_v9  ;;  %v477_v16 = vld [vmem:[%s15666_s1 + $0x40] sm:$0xff] }
 0x137   : > { %v1226_v32 = vpop.permute.xlu1 %1225 }
 0x138   : > { %v1171_v15 = vpop.permute.xlu0 %1170 }
 0x139   : > { %v1633_v36 = vsel %vm1611_vm12, %v1594_v33, %v1171_v15  ;;  %1450 = vrot.lane.b32.xlu1 %v1415_v7, %s11095_s29  ;;  %v480_v33 = vld [vmem:[%s15666_s1 + $0x58] sm:$0xff] }
 0x13a   : > { %1371 = vrot.lane.b32.xlu0 %v1336_v35, %s11097_s20  ;;  %v1672_v28 = vsel %vm1650_vm13, %v1633_v36, %v1226_v32  ;;  %v479_v32 = vld [vmem:[%s15666_s1 + $0x50] sm:$0xff] }
 0x13b   : > { %v1437_v56 = vpop.permute.xlu1 %1436 }
 0x13c   : > { %v1358_v39 = vpop.permute.xlu0 %1357 }
 0x13d   : > { %v1711_v41 = vsel %vm1689_vm14, %v1672_v28, %v1358_v39  ;;  %920 = vrot.lane.b32.xlu1 %v882_v26, %s11092_s26  ;;  %v482_v28 = vld [vmem:[%s15666_s1 + $0x68] sm:$0xff] }
 0x13e   : > { %841 = vrot.lane.b32.xlu0 %v804_v37, %s11096_s13  ;;  %v1750_v34 = vsel %vm1728_vm15, %v1711_v41, %v1437_v56  ;;  %v481_v37 = vld [vmem:[%s15666_s1 + $0x60] sm:$0xff] }
 0x13f   : > { %9975 = vmatmul.mubr.msk.bf16.gmra.mrb[40].mxu0 %vm1803_vm6, %v1750_v34  ;;  %v907_v19 = vpop.permute.xlu1 %906 }
 0x140   : > { %v828_v43 = vpop.permute.xlu0 %827 }
 0x141   : > { %v1478_v21 = vsel %vm1454_vm8, %v11045_v53, %v828_v43  ;;  %1107 = vrot.lane.b32.xlu1 %v1069_v30, %s11098_s21  ;;  %v469_v30 = vld [vmem:[%s15666_s1] sm:$0xff]  ;;  %v484_v43 = vld [vmem:[%s15666_s1 + $0x78] sm:$0xff] }
 0x142   : > { %975 = vrot.lane.b32.xlu0 %v937_v57, %s11091_s25  ;;  %v1518_v49 = vsel %vm1494_vm9, %v1478_v21, %v907_v19 }
 0x143   : > { %v1094_v48 = vpop.permute.xlu1 %1093 }
 0x144   : > { %v962_v20 = vpop.permute.xlu0 %961 }
 0x145   : > { %v1557_v26 = vsel %vm1533_vm10, %v1518_v49, %v962_v20  ;;  %1241 = vrot.lane.b32.xlu1 %v1203_v44, %s11093_s27  ;;  %v485_v49 = vld [vmem:[%s15666_s1 + $0x80] sm:$0xff] }
 0x146   : > { %1186 = vrot.lane.b32.xlu0 %v1148_v5, %s11094_s28  ;;  %v1596_v40 = vsel %vm1572_vm11, %v1557_v26, %v1094_v48  ;;  %v474_v5 = vld [vmem:[%s15666_s1 + $0x28] sm:$0xff] }
 0x147   : > { %v1228_v46 = vpop.permute.xlu1 %1227  ;;  %v486_v26 = vld [vmem:[%s15666_s1 + $0x88] sm:$0xff] }
 0x148   : > { %v1173_v54 = vpop.permute.xlu0 %1172 }
 0x149   : > { %v1635_v29 = vsel %vm1611_vm12, %v1596_v40, %v1173_v54  ;;  %1452 = vrot.lane.b32.xlu1 %v1414_v2, %s11095_s29 }
 0x14a   : > { %1373 = vrot.lane.b32.xlu0 %v1335_v27, %s11097_s20  ;;  %v1674_v8 = vsel %vm1650_vm13, %v1635_v29, %v1228_v46 }
 0x14b   : > { %v1439_v45 = vpop.permute.xlu1 %1438 }
 0x14c   : > { %v1360_v42 = vpop.permute.xlu0 %1359 }
 0x14d   : > { %v1713_v55 = vsel %vm1689_vm14, %v1674_v8, %v1360_v42  ;;  %2162 = vperm.xlu1 %10652, %v470_v51   ;;  %v487_v51 = vld [vmem:[%s15666_s1 + $0x90] sm:$0xff] }
 0x14e   : > { %2157 = vperm.xlu0 %10651, %v469_v30   ;;  %v1752_v57 = vsel %vm1728_vm15, %v1713_v55, %v1439_v45  ;;  %v488_v30 = vld [vmem:[%s15666_s1 + $0x98] sm:$0xff]  ;;  %v489_v55 = vld [vmem:[%s15666_s1 + $0xa0] sm:$0xff] }
 0x14f   : > { %9979 = vmatmul.mubr.msk.bf16.vlgmr.msra.gmra.mrb[0].mxu1 %vm1803_vm6, %v1752_v57  ;;  %v909_v62 = vpop.permute.xlu1 %908 }
 0x150   : > { %v830_v0 = vpop.permute.xlu0 %829  ;;  %9982 = vmatprep.mubr.msk.bf16.mxu1 %vm11099_vm7, %v15690_v1 }
 0x151   : > { %v1480_v44 = vsel %vm1454_vm8, %v11599_v22, %v830_v0  ;;  %2167 = vperm.xlu1 %10652, %v471_v61   ;;  %v475_v22 = vld [vmem:[%s15666_s1 + $0x30] sm:$0xff]  ;;  %v490_v61 = vld [vmem:[%s15666_s1 + $0xa8] sm:$0xff]  ;;  %v492_v0 = vld [vmem:[%s15666_s1 + $0xb8] sm:$0xff] }
 0x152   : > { %2172 = vperm.xlu0 %10651, %v472_v47   ;;  %v1520_v6 = vsel %vm1494_vm9, %v1480_v44, %v909_v62 }
 0x153   : > { %v1096_v4 = vpop.permute.xlu1 %1095 }
 0x154   : > { %v964_v13 = vpop.permute.xlu0 %963 }
 0x155   : > { %v1559_v12 = vsel %vm1533_vm10, %v1520_v6, %v964_v13  ;;  %2177 = vperm.xlu1 %10652, %v473_v23  }
 0x156   : > { %2182 = vperm.xlu0 %10651, %v474_v5   ;;  %v1598_v10 = vsel %vm1572_vm11, %v1559_v12, %v1096_v4  ;;  %v493_v12 = vld [vmem:[%s15666_s1 + $0xc0] sm:$0xff] }
 0x157   : > { %v1230_v14 = vpop.permute.xlu1 %1229 }
 0x158   : > { %v1175_v2 = vpop.permute.xlu0 %1174 }
 0x159   : > { %v1637_v9 = vsel %vm1611_vm12, %v1598_v10, %v1175_v2  ;;  %2187 = vperm.xlu1 %10652, %v475_v22  }
 0x15a   : > { %2192 = vperm.xlu0 %10651, %v476_v58   ;;  %v1676_v52 = vsel %vm1650_vm13, %v1637_v9, %v1230_v14  ;;  %v494_v58 = vld [vmem:[%s15666_s1 + $0xc8] sm:$0xff] }
 0x15b   : > { %v1441_v27 = vpop.permute.xlu1 %1440 }
 0x15c   : > { %v1362_v3 = vpop.permute.xlu0 %1361 }
 0x15d   : > { %v1715_v7 = vsel %vm1689_vm14, %v1676_v52, %v1362_v3  ;;  %2197 = vperm.xlu1 %10652, %v477_v16  }
 0x15e   : > { %2202 = vperm.xlu0 %10651, %v478_v18   ;;  %v1754_v31 = vsel %vm1728_vm15, %v1715_v7, %v1441_v27 }
 0x15f   : > { %9983 = vmatmul.mubr.msk.bf16.gmra.mrb[4].mxu1 %vm1803_vm6, %v1754_v31  ;;  %v911_v35 = vpop.permute.xlu1 %910 }
 0x160   : > { %v832_v15 = vpop.permute.xlu0 %831  ;;  %9986 = vmatprep.mubr.msk.bf16.mxu1 %vm11099_vm7, %v15690_v1 }
 0x161   : > { %v1482_v36 = vsel %vm1454_vm8, %v11648_v59, %v832_v15  ;;  %2207 = vperm.xlu1 %10652, %v479_v32   ;;  %v483_v59 = vld [vmem:[%s15666_s1 + $0x70] sm:$0xff] }
 0x162   : > { %2212 = vperm.xlu0 %10651, %v480_v33   ;;  %v1522_v39 = vsel %vm1494_vm9, %v1482_v36, %v911_v35 }
 0x163   : > { %v1098_v56 = vpop.permute.xlu1 %1097 }
 0x164   : > { %v966_v41 = vpop.permute.xlu0 %965 }
 0x165   : > { %v1561_v34 = vsel %vm1533_vm10, %v1522_v39, %v966_v41  ;;  %2217 = vperm.xlu1 %10652, %v481_v37  }
 0x166   : > { %2222 = vperm.xlu0 %10651, %v482_v28   ;;  %v1600_v53 = vsel %vm1572_vm11, %v1561_v34, %v1098_v56 }
 0x167   : > { %v1232_v19 = vpop.permute.xlu1 %1231 }
 0x168   : > { %v1177_v21 = vpop.permute.xlu0 %1176 }
 0x169   : > { %v1639_v48 = vsel %vm1611_vm12, %v1600_v53, %v1177_v21  ;;  %2227 = vperm.xlu1 %10652, %v483_v59  }
 0x16a   : > { %2232 = vperm.xlu0 %10651, %v484_v43   ;;  %v1678_v46 = vsel %vm1650_vm13, %v1639_v48, %v1232_v19 }
 0x16b   : > { %v1443_v20 = vpop.permute.xlu1 %1442 }
 0x16c   : > { %v1364_v40 = vpop.permute.xlu0 %1363 }
 0x16d   : > { %v1717_v54 = vsel %vm1689_vm14, %v1678_v46, %v1364_v40  ;;  %2237 = vperm.xlu1 %10652, %v485_v49  }
 0x16e   : > { %2242 = vperm.xlu0 %10651, %v486_v26   ;;  %v1756_v29 = vsel %vm1728_vm15, %v1717_v54, %v1443_v20 }
 0x16f   : > { %9987 = vmatmul.mubr.msk.bf16.gmra.mrb[8].mxu1 %vm1803_vm6, %v1756_v29  ;;  %v913_v45 = vpop.permute.xlu1 %912 }
 0x170   : > { %v834_v8 = vpop.permute.xlu0 %833  ;;  %9990 = vmatprep.mubr.msk.bf16.mxu1 %vm11099_vm7, %v15690_v1 }
 0x171   : > { %v1484_v42 = vsel %vm1454_vm8, %v11707_v24, %v834_v8  ;;  %2247 = vperm.xlu1 %10652, %v487_v51   ;;  %v491_v24 = vld [vmem:[%s15666_s1 + $0xb0] sm:$0xff] }
 0x172   : > { %2252 = vperm.xlu0 %10651, %v488_v30   ;;  %v1524_v60 = vsel %vm1494_vm9, %v1484_v42, %v913_v45 }
 0x173   : > { %v1100_v57 = vpop.permute.xlu1 %1099 }
 0x174   : > { %v968_v62 = vpop.permute.xlu0 %967 }
 0x175   : > { %v1563_v47 = vsel %vm1533_vm10, %v1524_v60, %v968_v62  ;;  %2257 = vperm.xlu1 %10652, %v489_v55  }
 0x176   : > { %2262 = vperm.xlu0 %10651, %v490_v61   ;;  %v1602_v44 = vsel %vm1572_vm11, %v1563_v47, %v1100_v57 }
 0x177   : > { %v1234_v25 = vpop.permute.xlu1 %1233 }
 0x178   : > { %v1179_v23 = vpop.permute.xlu0 %1178  ;;  %v12210_v4 = vpop.f32.mrb[0].mxu0 }
 0x179   : > { %v1641_v5 = vsel %vm1611_vm12, %v1602_v44, %v1179_v23  ;;  %2267 = vperm.xlu1 %10652, %v491_v24   ;;  %v9936_v6 = vpop.f32.mrb[1].mxu0 }
 0x17a   : > { %2272 = vperm.xlu0 %10651, %v492_v0   ;;  %v12213_v13 = vpop.f32.mrb[2].mxu0  ;;  %v1680_v10 = vsel %vm1650_vm13, %v1641_v5, %v1234_v25 }
 0x17b   : > { %v1445_v22 = vpop.permute.xlu1 %1444  ;;  %v9937_v14 = vpop.f32.mrb[3].mxu0 }
 0x17c   : > { %v1366_v2 = vpop.permute.xlu0 %1365 }
 0x17d   : > { %v1719_v9 = vsel %vm1689_vm14, %v1680_v10, %v1366_v2  ;;  %2277 = vperm.xlu1 %10652, %v493_v12  }
 0x17e   : > { %2282 = vperm.xlu0 %10651, %v494_v58   ;;  %v1758_v16 = vsel %vm1728_vm15, %v1719_v9, %v1445_v22 }
 0x17f   : > { %9991 = vmatmul.mubr.msk.bf16.gmra.mrb[12].mxu1 %vm1803_vm6, %v1758_v16  ;;  %v915_v27 = vpop.permute.xlu1 %914 }
 0x180   : > { %v836_v18 = vpop.permute.xlu0 %835  ;;  %9994 = vmatprep.mubr.msk.bf16.mxu1 %vm11099_vm7, %v15690_v1 }
 0x181   : > { %v1486_v52 = vsel %vm1454_vm8, %v11776_v11, %v836_v18 }
 0x182   : > { %v12229_v3 = vpop.f32.mrb[4].mxu0  ;;  %v1526_v35 = vsel %vm1494_vm9, %v1486_v52, %v915_v27  ;;  %v10688_v27 = vld [vmem:[%s11198_s22 + $0x90] ss:$0 sps:$4 sm:$0x11]  }
 0x183   : > { %v9940_v7 = vpop.f32.mrb[5].mxu0  ;;  %v1102_v31 = vpop.permute.xlu1 %1101 }
 0x184   : > { %v12231_v32 = vpop.f32.mrb[6].mxu0  ;;  %v970_v33 = vpop.permute.xlu0 %969 }
 0x185   : > { %v1565_v15 = vsel %vm1533_vm10, %v1526_v35, %v970_v33  ;;  %v9941_v36 = vpop.f32.mrb[7].mxu0  ;;  %v10700_v33 = vld [vmem:[%s15671_s6] sm:$0xff]  }
 0x186   : > { %v1604_v56 = vsel %vm1572_vm11, %v1565_v15, %v1102_v31  ;;  %4607 = vmatpush1.bf16.msra.mxu1 %v10700_v33 }
 0x187   : > { %v1236_v37 = vpop.permute.xlu1 %1235  ;;  %4608 = vmatprep.subr.bf16.mxu1 %v15692_v50 }
 0x188   : > { %v1181_v28 = vpop.permute.xlu0 %1180 }
 0x189   : > { %v1643_v39 = vsel %vm1611_vm12, %v1604_v56, %v1181_v28 }
 0x18a   : > { %v1682_v11 = vsel %vm1650_vm13, %v1643_v39, %v1236_v37 }
 0x18b   : > { %v1447_v41 = vpop.permute.xlu1 %1446 }
 0x18c   : > { %v1368_v34 = vpop.permute.xlu0 %1367 }
 0x18d   : > { %v1721_v59 = vsel %vm1689_vm14, %v1682_v11, %v1368_v34  ;;  %v10702_v11 = vld [vmem:[%s15671_s6 + $0x8] sm:$0xff]  }
 0x18e   : > { %v1760_v19 = vsel %vm1728_vm15, %v1721_v59, %v1447_v41  ;;  %4609 = vmatpush1.bf16.msra.mxu1 %v10702_v11 }
 0x18f   : > { %9995 = vmatmul.mubr.msk.bf16.gmra.mrb[16].mxu1 %vm1803_vm6, %v1760_v19  ;;  %v917_v43 = vpop.permute.xlu1 %916  ;;  %4610 = vmatprep.subr.bf16.mxu1 %v15692_v50 }
 0x190   : > { %v838_v53 = vpop.permute.xlu0 %837  ;;  %9998 = vmatprep.mubr.msk.bf16.mxu1 %vm11099_vm7, %v15690_v1 }
 0x191   : > { %v1488_v21 = vsel %vm1454_vm8, %v11823_v17, %v838_v53 }
 0x192   : > { %v12245_v48 = vpop.f32.mrb[8].mxu0  ;;  %v1528_v46 = vsel %vm1494_vm9, %v1488_v21, %v917_v43  ;;  %v10703_v43 = vld [vmem:[%s15671_s6 + $0x10] sm:$0xff]  }
 0x193   : > { %v9944_v49 = vpop.f32.mrb[9].mxu0  ;;  %v1104_v20 = vpop.permute.xlu1 %1103  ;;  %4611 = vmatpush1.bf16.msra.mxu1 %v10703_v43 }
 0x194   : > { %v12247_v26 = vpop.f32.mrb[10].mxu0  ;;  %v972_v40 = vpop.permute.xlu0 %971  ;;  %4612 = vmatprep.subr.bf16.mxu1 %v15692_v50 }
 0x195   : > { %v1567_v54 = vsel %vm1533_vm10, %v1528_v46, %v972_v40  ;;  %v9945_v29 = vpop.f32.mrb[11].mxu0  ;;  %v10704_v46 = vld [vmem:[%s15671_s6 + $0x18] sm:$0xff]  }
 0x196   : > { %v1606_v45 = vsel %vm1572_vm11, %v1567_v54, %v1104_v20  ;;  %v2959_v29 = vld [vmem:[#allocation2] sm:$0xf] }
 0x197   : > { %v1238_v51 = vpop.permute.xlu1 %1237  ;;  %4613 = vmatpush1.bf16.msra.mxu1 %v10704_v46 }
 0x198   : > { %v1183_v30 = vpop.permute.xlu0 %1182  ;;  %4614 = vmatprep.subr.bf16.mxu1 %v15692_v50 }
 0x199   : > { %v1645_v8 = vsel %vm1611_vm12, %v1606_v45, %v1183_v30  ;;  %v12303_v45 = vld [vmem:[%s15669_s4] ss:$0 sm:$0xff] }
 0x19a   : > { %v1684_v17 = vsel %vm1650_vm13, %v1645_v8, %v1238_v51  ;;  %v2960_v51 = vld [vmem:[#allocation2 + $0x4] sm:$0xf] }
 0x19b   : > { %v1449_v42 = vpop.permute.xlu1 %1448  ;;  %v12305_v30 = vcombine.low %v2959_v29, %v2960_v51 }
 0x19c   : > { %v1370_v55 = vpop.permute.xlu0 %1369 }
 0x19d   : > { %v1723_v57 = vsel %vm1689_vm14, %v1684_v17, %v1370_v55  ;;  %v2038_v17 = vmul.f32 %v12303_v45, %v12213_v13  ;;  %v2040_v13 = vmul.f32 %v12303_v45, %v12231_v32 }
 0x19e   : > { %v1762_v61 = vsel %vm1728_vm15, %v1723_v57, %v1449_v42  ;;  %v10705_v42 = vld [vmem:[%s15671_s6 + $0x20] sm:$0xff]   ;;  %v2037_v57 = vmul.f32 %v12303_v45, %v12210_v4  ;;  %v10707_v4 = vld [vmem:[%s15671_s6 + $0x28] sm:$0xff]  }
 0x19f   : > { %9999 = vmatmul.mubr.msk.bf16.gmra.mrb[20].mxu1 %vm1803_vm6, %v1762_v61  ;;  %v919_v60 = vpop.permute.xlu1 %918 }
 0x1a0   : > { %v840_v62 = vpop.permute.xlu0 %839  ;;  %10002 = vmatprep.mubr.msk.bf16.mxu1 %vm11099_vm7, %v15690_v1  ;;  %4615 = vmatpush1.bf16.msra.mxu1 %v10705_v42 }
 0x1a1   : > { %v1490_v47 = vsel %vm1454_vm8, %v11867_v38, %v840_v62  ;;  %4616 = vmatprep.subr.bf16.mxu1 %v15692_v50 }
 0x1a2   : > { %v12261_v24 = vpop.f32.mrb[12].mxu0  ;;  %v1530_v23 = vsel %vm1494_vm9, %v1490_v47, %v919_v60  ;;  %v12318_v60 = vld [vmem:[%s15670_s5] ss:$0 sm:$0xff]  ;;  %v3142_v47 = vshll.u32 %v12305_v30, 16 }
 0x1a3   : > { %v9948_v25 = vpop.f32.mrb[13].mxu0  ;;  %v1106_v0 = vpop.permute.xlu1 %1105 }
 0x1a4   : > { %v12263_v44 = vpop.f32.mrb[14].mxu0  ;;  %v974_v5 = vpop.permute.xlu0 %973  ;;  %v2039_v25 = vmul.f32 %v12303_v45, %v12229_v3  ;;  %v2081_v3 = vadd.f32 %v12318_v60, %v2037_v57  ;;  %4617 = vmatpush1.bf16.msra.mxu1 %v10707_v4 }
 0x1a5   : > { %v1569_v6 = vsel %vm1533_vm10, %v1530_v23, %v974_v5  ;;  %v9949_v12 = vpop.f32.mrb[15].mxu0  ;;  %v2041_v23 = vmul.f32 %v12303_v45, %v12245_v48  ;;  %v2042_v5 = vmul.f32 %v12303_v45, %v12247_v26  ;;  %v2044_v32 = vmul.f32 %v12303_v45, %v12263_v44  ;;  %4618 = vmatprep.subr.bf16.mxu1 %v15692_v50 }
 0x1a6   : > { %v1608_v14 = vsel %vm1572_vm11, %v1569_v6, %v1106_v0  ;;  %v2082_v0 = vadd.f32 %v12318_v60, %v2038_v17  ;;  %v2043_v6 = vmul.f32 %v12303_v45, %v12261_v24  ;;  %v3144_v26 = vrot.slane %v3142_v47, 1 }
 0x1a7   : > { %v1240_v22 = vpop.permute.xlu1 %1239  ;;  %v2083_v24 = vadd.f32 %v12318_v60, %v2039_v25 }
 0x1a8   : > { %v1185_v58 = vpop.permute.xlu0 %1184 }
 0x1a9   : > { %v1647_v10 = vsel %vm1611_vm12, %v1608_v14, %v1185_v58  ;;  %v3140_v14 = vshrl.u32 %v12305_v30, 16  ;;  %v2084_v58 = vadd.f32 %v12318_v60, %v2040_v13 }
 0x1aa   : > { %v1686_v2 = vsel %vm1650_vm13, %v1647_v10, %v1240_v22  ;;  %v10708_v22 = vld [vmem:[%s15671_s6 + $0x30] sm:$0xff]   ;;  %v2119_v10 = vmax.f32 %v2082_v0, 0.0 }
 0x1ab   : > { %v1451_v38 = vpop.permute.xlu1 %1450  ;;  %4619 = vmatpush1.bf16.msra.mxu1 %v10708_v22  ;;  %v15790_v22 = vmov 0 }
 0x1ac   : > { %v1372_v9 = vpop.permute.xlu0 %1371  ;;  %4620 = vmatprep.subr.bf16.mxu1 %v15692_v50 }
 0x1ad   : > { %v1725_v16 = vsel %vm1689_vm14, %v1686_v2, %v1372_v9  ;;  %v12353_v2 = vadd.f32 %v12318_v60, %v2042_v5  ;;  %v12356_v9 = vadd.f32 %v12318_v60, %v2043_v6 }
 0x1ae   : > { %v1764_v18 = vsel %vm1728_vm15, %v1725_v16, %v1451_v38  ;;  %v12350_v38 = vadd.f32 %v12318_v60, %v2041_v23  ;;  %v2118_v16 = vmax.f32 %v2081_v3, 0.0 }
 0x1af   : > { %10003 = vmatmul.mubr.msk.bf16.gmra.mrb[24].mxu1 %vm1803_vm6, %v1764_v18  ;;  %v921_v52 = vpop.permute.xlu1 %920  ;;  %v2123_v11 = vmax.f32 %v12353_v2, 0.0 }
 0x1b0   : > { %v842_v7 = vpop.permute.xlu0 %841  ;;  %10006 = vmatprep.mubr.msk.bf16.mxu1 %vm11099_vm7, %v15690_v1 }
 0x1b1   : > { %v1493_v31 = vsel %vm1454_vm8, %v10688_v27, %v842_v7  ;;  %vm2912_vm8 = vcmask 1043457   ;;  %v12359_v27 = vadd.f32 %v12318_v60, %v2044_v32  ;;  %v10712_v32 = vld [vmem:[%s15671_s6 + $0x48] sm:$0xff]  }
 0x1b2   : > { %v1912_v35 = vpop.f32.mrb[16].mxu0  ;;  %v1532_v56 = vsel %vm1494_vm9, %v1493_v31, %v921_v52  ;;  %vm2913_vm9 = vsmask.f32 7942  ;;  %v10709_v31 = vld [vmem:[%s15671_s6 + $0x38] sm:$0xff]  }
 0x1b3   : > { %v9952_v15 = vpop.f32.mrb[17].mxu0  ;;  %v1108_v36 = vpop.permute.xlu1 %1107  ;;  %v2045_v12 = vmul.f32 %v12303_v45, %v1912_v35  ;;  %4621 = vmatpush1.bf16.msra.mxu1 %v10709_v31 }
 0x1b4   : > { %v1915_v37 = vpop.f32.mrb[18].mxu0  ;;  %v976_v28 = vpop.permute.xlu0 %975  ;;  %4622 = vmatprep.subr.bf16.mxu1 %v15692_v50 }
 0x1b5   : > { %v1571_v39 = vsel %vm1533_vm10, %v1532_v56, %v976_v28  ;;  %v9953_v41 = vpop.f32.mrb[19].mxu0  ;;  %v2046_v48 = vmul.f32 %v12303_v45, %v1915_v37  ;;  %v12362_v18 = vadd.f32 %v12318_v60, %v2045_v12  ;;  %vm2505_vm10 = vsmask.f32 5392 }
 0x1b6   : > { %v1610_v59 = vsel %vm1572_vm11, %v1571_v39, %v1108_v36  ;;  %v12376_v36 = vor.u32 %v3144_v26, %v3140_v14  ;;  %v2120_v37 = vmax.f32 %v2083_v24, 0.0  ;;  %v2121_v56 = vmax.f32 %v2084_v58, 0.0  ;;  %vm12412_vm11 = vmand %vm2912_vm8, %vm2913_vm9 }
 0x1b7   : > { %v1242_v34 = vpop.permute.xlu1 %1241  ;;  %v12371_v35 = vadd.f32 %v12318_v60, %v2046_v48  ;;  %v2122_v41 = vmax.f32 %v12350_v38, 0.0  ;;  %v2126_v43 = vmax.f32 %v12362_v18, 0.0  ;;  %v15791_v22 = vsel %vm12412_vm11, 4294967295, %v15790_v22  ;;  %v2915_v48 = vld [vmem:[#allocation2 + $0x8] sm:$0xe] }
 0x1b8   : > { %v1187_v19 = vpop.permute.xlu0 %1186  ;;  %15792 = vst [vmem:[#allocation11_spill] sm:$0xff] %v15791_v22 }
 0x1b9   : > { %v1649_v53 = vsel %vm1611_vm12, %v1610_v59, %v1187_v19  ;;  %v2125_v19 = vmax.f32 %v12359_v27, 0.0  ;;  %v2127_v46 = vmax.f32 %v12371_v35, 0.0  ;;  %vm12425_vm12 = vmor %vm2380_vm2, %vm2505_vm10  ;;  %v10714_v27 = vld [vmem:[%s15671_s6 + $0x58] sm:$0xff]   ;;  %vm2385_vm2 = vcmask 1043458  }
 0x1ba   : > { %v1688_v49 = vsel %vm1650_vm13, %v1649_v53, %v1242_v34  ;;  %v2124_v34 = vmax.f32 %v12356_v9, 0.0  ;;  %vm2386_vm13 = vsmask.f32 7946 }
 0x1bb   : > { %v1453_v21 = vpop.permute.xlu1 %1452 }
 0x1bc   : > { %v1374_v20 = vpop.permute.xlu0 %1373 }
 0x1bd   : > { %v1727_v40 = vsel %vm1689_vm14, %v1688_v49, %v1374_v20  ;;  %v10710_v20 = vld [vmem:[%s15671_s6 + $0x40] sm:$0xff]   ;;  %vm12791_vm14 = vmand %vm2385_vm2, %vm2386_vm13  ;;  %vm15860_vm13 = vcmask 1044480  }
 0x1be   : > { %v1766_v54 = vsel %vm1728_vm15, %v1727_v40, %v1453_v21  ;;  %4623 = vmatpush1.bf16.msra.mxu1 %v10710_v20 }
 0x1bf   : > { %10007 = vmatmul.mubr.msk.bf16.gmra.mrb[28].mxu1 %vm1803_vm6, %v1766_v54  ;;  %4624 = vmatprep.subr.bf16.mxu1 %v15692_v50  ;;  %vm15837_vm6 = vsmask.f32 6400 }
 0x1c0   : > { %vm15851_vm8 = vmmov %vm15837_vm6 }
 0x1c1   : > { %vm15854_vm9 = vmmov %vm15837_vm6 }
 0x1c2   : > { %v1920_v8 = vpop.f32.mrb[20].mxu0  ;;  %4625 = vmatpush1.bf16.msra.mxu1 %v10712_v32  ;;  %vm15856_vm10 = vmmov %vm15837_vm6 }
 0x1c3   : > { %v9956_v55 = vpop.f32.mrb[21].mxu0  ;;  %v2047_v44 = vmul.f32 %v12303_v45, %v1920_v8  ;;  %4626 = vmatprep.subr.bf16.mxu1 %v15692_v50  ;;  %vm15858_vm2 = vmmov %vm15837_vm6 }
 0x1c4   : > { %v1923_v61 = vpop.f32.mrb[22].mxu0 }
 0x1c5   : > { %v9957_v62 = vpop.f32.mrb[23].mxu0  ;;  %v2048_v52 = vmul.f32 %v12303_v45, %v1923_v61  ;;  %v12380_v28 = vadd.f32 %v12318_v60, %v2047_v44 }
 0x1c7   : > { %v12389_v53 = vadd.f32 %v12318_v60, %v2048_v52  ;;  %v2128_v8 = vmax.f32 %v12380_v28, 0.0  ;;  %v10717_v28 = vld [vmem:[%s15671_s6 + $0x68] sm:$0xff]  }
 0x1c9   : > { %v2129_v4 = vmax.f32 %v12389_v53, 0.0 }
 0x1cc   : > { %v12365_v7 = vpop.permute.xlu1 %2162 }
 0x1cd   : > { %15785 = vst [vmem:[#allocation6_spill] sm:$0xff] %v12365_v7  ;;  %v2341_v33 = vmul.f32 %v12365_v7, %v2119_v10  ;;  %v12374_v15 = vpop.permute.xlu0 %2157 }
 0x1ce   : > { %15786 = vst [vmem:[#allocation7_spill] sm:$0xff] %v12374_v15  ;;  %v2340_v39 = vmul.f32 %v12374_v15, %v2118_v16 }
 0x1cf   : > { %v9804_v59 = vpack.c.bf16 %v2341_v33, %v2341_v33 }
 0x1d0   : > { %v9803_v21 = vpack.c.bf16 %v2340_v39, %v2340_v39  ;;  %v12391_v49 = vpop.permute.xlu1 %2167 }
 0x1d1   : > { %15787 = vst [vmem:[#allocation8_spill] sm:$0xff] %v12391_v49  ;;  %v2517_v40 = vshrl.u32 %v9804_v59, 16  ;;  %v2520_v54 = vshll.u32 %v9804_v59, 16  ;;  %v2342_v29 = vmul.f32 %v12391_v49, %v2120_v37  ;;  %v12398_v51 = vpop.permute.xlu0 %2172  ;;  %v15794_v37 = vmov 0 }
 0x1d2   : > { %15788 = vst [vmem:[#allocation9_spill] sm:$0xff] %v12398_v51  ;;  %v2508_v42 = vshrl.u32 %v9803_v21, 16  ;;  %v2511_v17 = vshll.u32 %v9803_v21, 16  ;;  %v2343_v55 = vmul.f32 %v12398_v51, %v2121_v56  ;;  %v1928_v57 = vpop.f32.mrb[24].mxu0  ;;  %v15795_v37 = vsel %vm12425_vm12, 4294967295, %v15794_v37 }
 0x1d3   : > { %v2519_v61 = vrot.slane %v2517_v40, 6  ;;  %v2522_v62 = vrot.slane %v2520_v54, 7  ;;  %v9805_v47 = vpack.c.bf16 %v2342_v29, %v2342_v29  ;;  %v2049_v25 = vmul.f32 %v12303_v45, %v1928_v57  ;;  %v9960_v13 = vpop.f32.mrb[25].mxu0  ;;  %15796 = vst [vmem:[#allocation13_spill] sm:$0xff] %v15795_v37 }
 0x1d4   : > { %v2510_v0 = vrot.slane %v2508_v42, 6  ;;  %v2513_v23 = vrot.slane %v2511_v17, 7  ;;  %v9806_v5 = vpack.c.bf16 %v2343_v55, %v2343_v55  ;;  %v1931_v6 = vpop.f32.mrb[26].mxu0  ;;  %v12405_v3 = vpop.permute.xlu1 %2177  ;;  %v10713_v42 = vld [vmem:[%s15671_s6 + $0x50] sm:$0xff]  }
 0x1d5   : > { %15789 = vst [vmem:[#allocation10_spill] sm:$0xff] %v12405_v3  ;;  %v2523_v12 = vor.u32 %v2522_v62, %v2519_v61  ;;  %v2527_v14 = vshrl.u32 %v9805_v47, 16  ;;  %v2530_v26 = vshll.u32 %v9805_v47, 16  ;;  %v12417_v24 = vadd.f32 %v12318_v60, %v2049_v25  ;;  %v9961_v58 = vpop.f32.mrb[27].mxu0  ;;  %v12419_v44 = vpop.permute.xlu0 %2182  ;;  %4627 = vmatpush1.bf16.msra.mxu1 %v10713_v42 }
 0x1d6   : > { %15793 = vst [vmem:[#allocation12_spill] sm:$0xff] %v12419_v44  ;;  %v2514_v10 = vor.u32 %v2513_v23, %v2510_v0  ;;  %v2537_v16 = vshrl.u32 %v9806_v5, 16  ;;  %v2540_v52 = vshll.u32 %v9806_v5, 16  ;;  %v2050_v31 = vmul.f32 %v12303_v45, %v1931_v6  ;;  %4628 = vmatprep.subr.bf16.mxu1 %v15692_v50 }
 0x1d7   : > { %v2525_v33 = vrot.slane %v2523_v12, 4  ;;  %v2529_v56 = vrot.slane %v2527_v14, 6  ;;  %v2532_v39 = vrot.slane %v2530_v26, 7  ;;  %v2130_v59 = vmax.f32 %v12417_v24, 0.0 }
 0x1d8   : > { %v2515_v21 = vrot.slane %v2514_v10, 4  ;;  %v2916_v20 = vsel %vm12412_vm11, %v2514_v10, %v2915_v48  ;;  %v2539_v40 = vrot.slane %v2537_v16, 6  ;;  %v2542_v54 = vrot.slane %v2540_v52, 7  ;;  %v12432_v29 = vpop.permute.xlu1 %2187 }
 0x1d9   : > { %15797 = vst [vmem:[#allocation14_spill] sm:$0xff] %v12432_v29  ;;  %2917 = vst [vmem:[#allocation2 + $0x8] sm:$0xe] %v2916_v20  ;;  %v2533_v17 = vor.u32 %v2532_v39, %v2529_v56  ;;  %v12438_v55 = vadd.f32 %v12318_v60, %v2050_v31  ;;  %v2344_v57 = vmul.f32 %v12405_v3, %v2122_v41  ;;  %v12446_v62 = vpop.permute.xlu0 %2192  ;;  %4629 = vmatpush1.bf16.msra.mxu1 %v10714_v27 }
 0x1da   : > { %v2345_v61 = vmul.f32 %v12419_v44, %v2123_v11  ;;  %15798 = vst [vmem:[#allocation15_spill] sm:$0xff] %v12446_v62  ;;  %v2524_v47 = vsel %vm12425_vm12, %v2515_v21, %v2523_v12  ;;  %v2543_v25 = vor.u32 %v2542_v54, %v2539_v40  ;;  %v2346_v13 = vmul.f32 %v12432_v29, %v2124_v34 }
 0x1db   : > { %v2347_v38 = vmul.f32 %v12446_v62, %v2125_v19  ;;  %2918 = vst [vmem:[#allocation2 + $0xc] sm:$0xf] %v2524_v47  ;;  %v2534_v2 = vsel %vm12425_vm12, %v2525_v33, %v2533_v17  ;;  %v2535_v41 = vrot.slane %v2533_v17, 4  ;;  %v2131_v11 = vmax.f32 %v12438_v55, 0.0  ;;  %4630 = vmatprep.subr.bf16.mxu1 %v15692_v50 }
 0x1dc   : > { %v9807_v0 = vpack.c.bf16 %v2344_v57, %v2344_v57  ;;  %2919 = vst [vmem:[#allocation2 + $0x10] sm:$0xf] %v2534_v2  ;;  %v2545_v23 = vrot.slane %v2543_v25, 4  ;;  %v9808_v5 = vpack.c.bf16 %v2345_v61, %v2345_v61  ;;  %v9809_v6 = vpack.c.bf16 %v2346_v13, %v2346_v13  ;;  %v12460_v9 = vpop.permute.xlu1 %2197 }
 0x1dd   : > { %v9810_v32 = vpack.c.bf16 %v2347_v38, %v2347_v38  ;;  %15799 = vst [vmem:[#allocation16_spill] sm:$0xff] %v12460_v9  ;;  %v2544_v34 = vsel %vm12425_vm12, %v2535_v41, %v2543_v25  ;;  %v2348_v48 = vmul.f32 %v12460_v9, %v2126_v43  ;;  %v12470_v14 = vpop.permute.xlu0 %2202  ;;  %v10715_v43 = vld [vmem:[%s15671_s6 + $0x60] sm:$0xff]  }
 0x1de   : > { %v2547_v19 = vshrl.u32 %v9807_v0, 16  ;;  %v2550_v12 = vshll.u32 %v9807_v0, 16  ;;  %15800 = vst [vmem:[#allocation17_spill] sm:$0xff] %v12470_v14  ;;  %2920 = vst [vmem:[#allocation2 + $0x14] sm:$0xf] %v2544_v34  ;;  %v2557_v26 = vshrl.u32 %v9808_v5, 16  ;;  %v2349_v13 = vmul.f32 %v12470_v14, %v2127_v46  ;;  %4631 = vmatpush1.bf16.msra.mxu1 %v10715_v43 }
 0x1df   : > { %v2560_v58 = vshll.u32 %v9808_v5, 16  ;;  %v2567_v10 = vshrl.u32 %v9809_v6, 16  ;;  %v2570_v16 = vshll.u32 %v9809_v6, 16  ;;  %v2577_v33 = vshrl.u32 %v9810_v32, 16  ;;  %4632 = vmatprep.subr.bf16.mxu1 %v15692_v50 }
 0x1e0   : > { %v2549_v52 = vrot.slane %v2547_v19, 6  ;;  %v2552_v31 = vrot.slane %v2550_v12, 7  ;;  %v2580_v56 = vshll.u32 %v9810_v32, 16  ;;  %v2559_v39 = vrot.slane %v2557_v26, 6  ;;  %v12473_v18 = vpop.permute.xlu1 %2207 }
 0x1e1   : > { %v2562_v21 = vrot.slane %v2560_v58, 7  ;;  %v2569_v20 = vrot.slane %v2567_v10, 6  ;;  %v2572_v40 = vrot.slane %v2570_v16, 7  ;;  %15801 = vst [vmem:[#allocation18_spill] sm:$0xff] %v12473_v18  ;;  %v2579_v42 = vrot.slane %v2577_v33, 6  ;;  %v12478_v61 = vpop.permute.xlu0 %2212 }
 0x1e2   : > { %v2553_v54 = vor.u32 %v2552_v31, %v2549_v52  ;;  %v2582_v17 = vrot.slane %v2580_v56, 7  ;;  %v9811_v57 = vpack.c.bf16 %v2348_v48, %v2348_v48  ;;  %15802 = vst [vmem:[#allocation19_spill] sm:$0xff] %v12478_v61  ;;  %v2350_v38 = vmul.f32 %v12473_v18, %v2128_v8  ;;  %v1936_v2 = vpop.f32.mrb[28].mxu0  ;;  %4633 = vmatpush1.bf16.msra.mxu1 %v10717_v28 }
 0x1e3   : > { %v2563_v47 = vor.u32 %v2562_v21, %v2559_v39  ;;  %v2573_v25 = vor.u32 %v2572_v40, %v2569_v20  ;;  %v9964_v32 = vpop.f32.mrb[29].mxu0  ;;  %v9812_v12 = vpack.c.bf16 %v2349_v13, %v2349_v13  ;;  %v2351_v20 = vmul.f32 %v12478_v61, %v2129_v4  ;;  %4634 = vmatprep.subr.bf16.mxu1 %v15692_v50 }
 0x1e4   : > { %v2554_v41 = vsel %vm12425_vm12, %v2545_v23, %v2553_v54  ;;  %v2555_v0 = vrot.slane %v2553_v54, 4  ;;  %v2583_v5 = vor.u32 %v2582_v17, %v2579_v42  ;;  %v2587_v6 = vshrl.u32 %v9811_v57, 16  ;;  %v1939_v35 = vpop.f32.mrb[30].mxu0  ;;  %v12494_v26 = vpop.permute.xlu1 %2217  ;;  %v10718_v17 = vld [vmem:[%s15671_s6 + $0x70] sm:$0xff]  }
 0x1e5   : > { %2921 = vst [vmem:[#allocation2 + $0x18] sm:$0xf] %v2554_v41  ;;  %v2565_v27 = vrot.slane %v2563_v47, 4  ;;  %v2575_v34 = vrot.slane %v2573_v25, 4  ;;  %v2590_v19 = vshll.u32 %v9811_v57, 16  ;;  %v9813_v48 = vpack.c.bf16 %v2350_v38, %v2350_v38  ;;  %15803 = vst [vmem:[#allocation20_spill] sm:$0xff] %v12494_v26  ;;  %v12501_v33 = vpop.permute.xlu0 %2222 }
 0x1e6   : > { %v2564_v46 = vsel %vm12425_vm12, %v2555_v0, %v2563_v47  ;;  %v2585_v8 = vrot.slane %v2583_v5, 4  ;;  %v2589_v23 = vrot.slane %v2587_v6, 6  ;;  %v9965_v58 = vpop.f32.mrb[31].mxu0  ;;  %v2597_v31 = vshrl.u32 %v9812_v12, 16  ;;  %15804 = vst [vmem:[#allocation21_spill] sm:$0xff] %v12501_v33  ;;  %4635 = vmatpush1.bf16.msra.mxu1 %v10718_v17 }
 0x1e7   : > { %2922 = vst [vmem:[#allocation2 + $0x1c] sm:$0xf] %v2564_v46  ;;  %v2574_v10 = vsel %vm12425_vm12, %v2565_v27, %v2573_v25  ;;  %v2584_v16 = vsel %vm12425_vm12, %v2575_v34, %v2583_v5  ;;  %v2592_v52 = vrot.slane %v2590_v19, 7  ;;  %v2600_v56 = vshll.u32 %v9812_v12, 16  ;;  %v2962_v41 = vld [vmem:[#allocation2 + $0xc] sm:$0xf]  ;;  %4636 = vmatprep.subr.bf16.mxu1 %v15692_v50 }
 0x1e8   : > { %2923 = vst [vmem:[#allocation2 + $0x20] sm:$0xf] %v2574_v10  ;;  %2924 = vst [vmem:[#allocation2 + $0x24] sm:$0xf] %v2584_v16  ;;  %v2607_v39 = vshrl.u32 %v9813_v48, 16  ;;  %v2610_v21 = vshll.u32 %v9813_v48, 16  ;;  %v2051_v54 = vmul.f32 %v12303_v45, %v1936_v2  ;;  %v2052_v42 = vmul.f32 %v12303_v45, %v1939_v35  ;;  %v12516_v27 = vpop.permute.xlu1 %2227 }
 0x1e9   : > { %v2593_v40 = vor.u32 %v2592_v52, %v2589_v23  ;;  %v2599_v43 = vrot.slane %v2597_v31, 6  ;;  %v2602_v57 = vrot.slane %v2600_v56, 7  ;;  %v9814_v13 = vpack.c.bf16 %v2351_v20, %v2351_v20  ;;  %15805 = vst [vmem:[#allocation22_spill] sm:$0xff] %v12516_v27  ;;  %v12518_v34 = vld [vmem:[#allocation2 + $0x10] sm:$0xff]   ;;  %v12526_v46 = vpop.permute.xlu0 %2232  ;;  %v10719_v23 = vld [vmem:[%s15671_s6 + $0x78] sm:$0xff]  }
 0x1ea   : > { %v2609_v47 = vrot.slane %v2607_v39, 6  ;;  %v2612_v25 = vrot.slane %v2610_v21, 7  ;;  %v2095_v38 = vadd.f32 %v12318_v60, %v2051_v54  ;;  %v2096_v2 = vadd.f32 %v12318_v60, %v2052_v42  ;;  %15806 = vst [vmem:[#allocation23_spill] sm:$0xff] %v12526_v46  ;;  %4637 = vmatpush1.bf16.msra.mxu1 %v10719_v23 }
 0x1eb   : > { %v2594_v53 = vsel %vm12425_vm12, %v2585_v8, %v2593_v40  ;;  %v2595_v4 = vrot.slane %v2593_v40, 4  ;;  %v2603_v0 = vor.u32 %v2602_v57, %v2599_v43  ;;  %v2617_v6 = vshrl.u32 %v9814_v13, 16  ;;  %v2961_v8 = vld [vmem:[#allocation2 + $0x8] sm:$0xf]  ;;  %4790 = vmatprep.subr.bf16.mxu1 %v15692_v50 }
 0x1ec   : > { %2925 = vst [vmem:[#allocation2 + $0x28] sm:$0xf] %v2594_v53  ;;  %v2613_v5 = vor.u32 %v2612_v25, %v2609_v47  ;;  %v2620_v32 = vshll.u32 %v9814_v13, 16  ;;  %v2132_v19 = vmax.f32 %v2095_v38, 0.0  ;;  %v2133_v12 = vmax.f32 %v2096_v2, 0.0 }
 0x1ed   : > { %v2352_v35 = vmul.f32 %v12494_v26, %v2130_v59  ;;  %v2353_v28 = vmul.f32 %v12501_v33, %v2131_v11  ;;  %v2604_v48 = vsel %vm12425_vm12, %v2595_v4, %v2603_v0  ;;  %v2605_v58 = vrot.slane %v2603_v0, 4  ;;  %v2998_v4 = vld [vmem:[#allocation2 + $0x8] sm:$0xe] }
 0x1ee   : > { %v2615_v10 = vrot.slane %v2613_v5, 4  ;;  %v2619_v24 = vrot.slane %v2617_v6, 6  ;;  %2926 = vst [vmem:[#allocation2 + $0x2c] sm:$0xf] %v2604_v48  ;;  %v2622_v59 = vrot.slane %v2620_v32, 7  ;;  %v2354_v16 = vmul.f32 %v12516_v27, %v2132_v19 }
 0x1ef   : > { %v9815_v55 = vpack.c.bf16 %v2352_v35, %v2352_v35  ;;  %v9816_v11 = vpack.c.bf16 %v2353_v28, %v2353_v28  ;;  %v2614_v52 = vsel %vm12425_vm12, %v2605_v58, %v2613_v5  ;;  %v2355_v31 = vmul.f32 %v12526_v46, %v2133_v12 }
 0x1f0   : > { %v12538_v56 = vcombine.low %v2961_v8, %v2962_v41  ;;  %v12541_v39 = vrot.slane %v12518_v34, 1  ;;  %2927 = vst [vmem:[#allocation2 + $0x30] sm:$0xf] %v2614_v52  ;;  %v2623_v21 = vor.u32 %v2622_v59, %v2619_v24  ;;  %v9817_v42 = vpack.c.bf16 %v2354_v16, %v2354_v16 }
 0x1f1   : > { %v2627_v20 = vshrl.u32 %v9815_v55, 16  ;;  %v2630_v40 = vshll.u32 %v9815_v55, 16  ;;  %v2637_v43 = vshrl.u32 %v9816_v11, 16  ;;  %v2640_v54 = vshll.u32 %v9816_v11, 16 }
 0x1f2   : > { %v9818_v17 = vpack.c.bf16 %v2355_v31, %v2355_v31  ;;  %v3147_v57 = vshll.u32 %v12538_v56, 16  ;;  %v2624_v47 = vsel %vm12425_vm12, %v2615_v10, %v2623_v21  ;;  %v2625_v25 = vrot.slane %v2623_v21, 4  ;;  %v1944_v38 = vpop.f32.mrb[32].mxu0 }
 0x1f3   : > { %v2629_v13 = vrot.slane %v2627_v20, 6  ;;  %v2632_v53 = vrot.slane %v2630_v40, 7  ;;  %2928 = vst [vmem:[#allocation2 + $0x34] sm:$0xf] %v2624_v47  ;;  %v2639_v2 = vrot.slane %v2637_v43, 6  ;;  %v2642_v0 = vrot.slane %v2640_v54, 7 }
 0x1f4   : > { %v2647_v5 = vshrl.u32 %v9817_v42, 16  ;;  %v2650_v6 = vshll.u32 %v9817_v42, 16  ;;  %v9968_v32 = vpop.f32.mrb[33].mxu0  ;;  %v2657_v12 = vshrl.u32 %v9818_v17, 16  ;;  %v2660_v35 = vshll.u32 %v9818_v17, 16 }
 0x1f5   : > { %v2633_v19 = vor.u32 %v2632_v53, %v2629_v13  ;;  %v3149_v28 = vrot.slane %v3147_v57, 1  ;;  %v1947_v8 = vpop.f32.mrb[34].mxu0  ;;  %v2643_v23 = vor.u32 %v2642_v0, %v2639_v2  ;;  %v12547_v10 = vcombine.low %v2998_v4, %v2962_v41  ;;  %v496_v57 = vld [vmem:[%s15666_s1 + $0xd8] sm:$0xff]  ;;  %v12583_v32 = vpop.permute.xlu1 %2237 }
 0x1f6   : > { %v2649_v48 = vrot.slane %v2647_v5, 6  ;;  %v2652_v58 = vrot.slane %v2650_v6, 7  ;;  %v9969_v24 = vpop.f32.mrb[35].mxu0  ;;  %v2659_v11 = vrot.slane %v2657_v12, 6  ;;  %v2662_v16 = vrot.slane %v2660_v35, 7  ;;  %15807 = vst [vmem:[#allocation24_spill] sm:$0xff] %v12583_v32 }
 0x1f7   : > { %v2634_v59 = vsel %vm12425_vm12, %v2625_v25, %v2633_v19  ;;  %v2635_v55 = vrot.slane %v2633_v19, 4  ;;  %v2645_v52 = vrot.slane %v2643_v23, 4  ;;  %v3150_v21 = vsel %vm653_vm3, %v12376_v36, %v3149_v28  ;;  %v12569_v25 = vld [vmem:[#allocation2 + $0x18] sm:$0xff]   ;;  %v498_v24 = vld [vmem:[%s15666_s1 + $0xe8] sm:$0xff] }
 0x1f8   : > { %2929 = vst [vmem:[#allocation2 + $0x38] sm:$0xf] %v2634_v59  ;;  %v2653_v31 = vor.u32 %v2652_v58, %v2649_v48  ;;  %v3379_v20 = vrot.slane %v12547_v10, 1  ;;  %v12556_v41 = vor.u32 %v2662_v16, %v2659_v11  ;;  %3290 = vrot.lane.b32.xlu0 %v3150_v21, %s11095_s29  ;;  %v2053_v43 = vmul.f32 %v12303_v45, %v1944_v38  ;;  %v495_v38 = vld [vmem:[%s15666_s1 + $0xd0] sm:$0xff]  ;;  %v497_v11 = vld [vmem:[%s15666_s1 + $0xe0] sm:$0xff] }
 0x1f9   : > { %v2644_v40 = vsel %vm12425_vm12, %v2635_v55, %v2643_v23  ;;  %v3151_v54 = vshrl.u32 %v12538_v56, 16  ;;  %v15688_v47 = vshll.u32 %v12518_v34, 16  ;;  %v2054_v53 = vmul.f32 %v12303_v45, %v1947_v8  ;;  %v12587_v8 = vpop.permute.xlu0 %2242  ;;  %v12604_v16 = vld [vmem:[#allocation2 + $0x20] sm:$0xff]  }
 0x1fa   : > { %2930 = vst [vmem:[#allocation2 + $0x3c] sm:$0xf] %v2644_v40  ;;  %v2654_v42 = vsel %vm12425_vm12, %v2645_v52, %v2653_v31  ;;  %v2655_v17 = vrot.slane %v2653_v31, 4  ;;  %v3380_v36 = vsel %vm846_vm0, %v3379_v20, %v12541_v39  ;;  %v2097_v13 = vadd.f32 %v12318_v60, %v2053_v43  ;;  %15808 = vst [vmem:[#allocation25_spill] sm:$0xff] %v12587_v8 }
 0x1fb   : > { %2931 = vst [vmem:[#allocation2 + $0x40] sm:$0xf] %v2654_v42  ;;  %3385 = vrot.lane.b32.xlu1 %v3380_v36, %s11095_s29  ;;  %v3153_v2 = vor.u32 %v3151_v54, %v3149_v28  ;;  %v3157_v0 = vrot.slane %v15688_v47, 1  ;;  %v2098_v6 = vadd.f32 %v12318_v60, %v2054_v53  ;;  %v3336_v19 = vrot.slane %v12569_v25, 1 }
 0x1fc   : > { %v2664_v4 = vsel %vm12425_vm12, %v2655_v17, %v12556_v41  ;;  %2292 = vperm.xlu0 %10651, %v496_v57   ;;  %v2134_v5 = vmax.f32 %v2097_v13, 0.0  ;;  %v15686_v23 = vshll.u32 %v12569_v25, 16  ;;  %v2665_v59 = vrot.slane %v12556_v41, 4 }
 0x1fd   : > { %2932 = vst [vmem:[#allocation2 + $0x44] sm:$0xf] %v2664_v4  ;;  %v2135_v35 = vmax.f32 %v2098_v6, 0.0  ;;  %v3158_v28 = vsel %vm653_vm3, %v3153_v2, %v3157_v0  ;;  %v12599_v55 = vsel %vm846_vm0, %v12541_v39, %v3336_v19  ;;  %v15689_v20 = vshrl.u32 %v12518_v34, 16 }
 0x1fe   : > { %v2356_v12 = vmul.f32 %v12583_v32, %v2134_v5  ;;  %v3165_v41 = vrot.slane %v15686_v23, 1  ;;  %v3338_v4 = vrot.slane %v12604_v16, 1 }
 0x1ff   : > { %2287 = vperm.xlu1 %10652, %v495_v38   ;;  %v2357_v58 = vmul.f32 %v12587_v8, %v2135_v35  ;;  %v3161_v53 = vor.u32 %v15689_v20, %v3157_v0 }
 0x200   : > { %v9819_v48 = vpack.c.bf16 %v2356_v12, %v2356_v12  ;;  %3292 = vrot.lane.b32.xlu0 %v3158_v28, %s11095_s29  ;;  %v15684_v28 = vshll.u32 %v12604_v16, 16 }
 0x201   : > { %v9820_v21 = vpack.c.bf16 %v2357_v58, %v2357_v58 }
 0x202   : > { %v2667_v52 = vshrl.u32 %v9819_v48, 16  ;;  %v2670_v31 = vshll.u32 %v9819_v48, 16  ;;  %v1952_v40 = vpop.f32.mrb[36].mxu0  ;;  %v3166_v48 = vsel %vm653_vm3, %v3161_v53, %v3165_v41 }
 0x203   : > { %3387 = vrot.lane.b32.xlu1 %v12599_v55, %s11095_s29  ;;  %v2055_v43 = vmul.f32 %v12303_v45, %v1952_v40  ;;  %v9972_v54 = vpop.f32.mrb[37].mxu0  ;;  %v2677_v36 = vshrl.u32 %v9820_v21, 16  ;;  %v2680_v57 = vshll.u32 %v9820_v21, 16  ;;  %v12625_v40 = vld [vmem:[#allocation2 + $0x28] sm:$0xff]  }
 0x204   : > { %v2669_v42 = vrot.slane %v2667_v52, 6  ;;  %v2672_v17 = vrot.slane %v2670_v31, 7  ;;  %2302 = vperm.xlu0 %10651, %v498_v24   ;;  %v1955_v13 = vpop.f32.mrb[38].mxu0  ;;  %v12620_v52 = vpop.permute.xlu1 %2247  ;;  %15810 = vst [vmem:[#allocation27_spill] sm:$0xff] %v12625_v40 }
 0x205   : > { %v2099_v38 = vadd.f32 %v12318_v60, %v2055_v43  ;;  %v2056_v2 = vmul.f32 %v12303_v45, %v1955_v13  ;;  %v9973_v5 = vpop.f32.mrb[39].mxu0  ;;  %v2679_v12 = vrot.slane %v2677_v36, 6  ;;  %v2682_v35 = vrot.slane %v2680_v57, 7  ;;  %15809 = vst [vmem:[#allocation26_spill] sm:$0xff] %v12620_v52  ;;  %v500_v43 = vld [vmem:[%s15666_s1 + $0xf8] sm:$0xff]  ;;  %v499_v57 = vld [vmem:[%s15666_s1 + $0xf0] sm:$0xff] }
 0x206   : > { %v2673_v6 = vor.u32 %v2672_v17, %v2669_v42  ;;  %v12634_v17 = vpop.permute.xlu0 %2252  ;;  %v15687_v36 = vshrl.u32 %v12569_v25, 16 }
 0x207   : > { %2297 = vperm.xlu1 %10652, %v497_v11   ;;  %v2136_v58 = vmax.f32 %v2099_v38, 0.0  ;;  %v2100_v24 = vadd.f32 %v12318_v60, %v2056_v2  ;;  %v2683_v21 = vor.u32 %v2682_v35, %v2679_v12  ;;  %v12628_v11 = vsel %vm846_vm0, %v3336_v19, %v3338_v4  ;;  %15811 = vst [vmem:[#allocation28_spill] sm:$0xff] %v12634_v17 }
 0x208   : > { %v2674_v0 = vsel %vm12425_vm12, %v2665_v59, %v2673_v6  ;;  %v2675_v31 = vrot.slane %v2673_v6, 4  ;;  %3294 = vrot.lane.b32.xlu0 %v3166_v48, %s11095_s29  ;;  %v3173_v19 = vrot.slane %v15684_v28, 1  ;;  %v3169_v38 = vor.u32 %v15687_v36, %v3165_v41  ;;  %v12656_v41 = vld [vmem:[#allocation2 + $0x30] sm:$0xff]  }
 0x209   : > { %2933 = vst [vmem:[#allocation2 + $0x48] sm:$0xf] %v2674_v0  ;;  %v2358_v54 = vmul.f32 %v12620_v52, %v2136_v58  ;;  %v2137_v42 = vmax.f32 %v2100_v24, 0.0  ;;  %v3340_v2 = vrot.slane %v12625_v40, 1  ;;  %v15683_v48 = vshll.u32 %v12625_v40, 16 }
 0x20a   : > { %v2684_v59 = vsel %vm12425_vm12, %v2675_v31, %v2683_v21  ;;  %v3174_v35 = vsel %vm653_vm3, %v3169_v38, %v3173_v19 }
 0x20b   : > { %3389 = vrot.lane.b32.xlu1 %v12628_v11, %s11095_s29  ;;  %2934 = vst [vmem:[#allocation2 + $0x4c] sm:$0xf] %v2684_v59  ;;  %v9821_v13 = vpack.c.bf16 %v2358_v54, %v2358_v54  ;;  %v2359_v53 = vmul.f32 %v12634_v17, %v2137_v42  ;;  %v2685_v54 = vrot.slane %v2683_v21, 4  ;;  %v3181_v38 = vrot.slane %v15683_v48, 1  ;;  %v12682_v48 = vpop.permute.xlu1 %2257 }
 0x20c   : > { %2312 = vperm.xlu0 %10651, %v500_v43   ;;  %v12654_v43 = vsel %vm846_vm0, %v3338_v4, %v3340_v2  ;;  %15812 = vst [vmem:[#allocation29_spill] sm:$0xff] %v12682_v48 }
 0x20d   : > { %v2687_v5 = vshrl.u32 %v9821_v13, 16  ;;  %v2690_v6 = vshll.u32 %v9821_v13, 16  ;;  %v9822_v12 = vpack.c.bf16 %v2359_v53, %v2359_v53  ;;  %v15685_v53 = vshrl.u32 %v12604_v16, 16 }
 0x20f   : > { %2307 = vperm.xlu1 %10652, %v499_v57   ;;  %v2689_v58 = vrot.slane %v2687_v5, 6  ;;  %v2692_v24 = vrot.slane %v2690_v6, 7  ;;  %v2697_v0 = vshrl.u32 %v9822_v12, 16  ;;  %v2700_v31 = vshll.u32 %v9822_v12, 16  ;;  %v502_v57 = vld [vmem:[%s15666_s1 + $0x108] sm:$0xff]  ;;  %v501_v12 = vld [vmem:[%s15666_s1 + $0x100] sm:$0xff] }
 0x210   : > { %3296 = vrot.lane.b32.xlu0 %v3174_v35, %s11095_s29 }
 0x211   : > { %v2693_v42 = vor.u32 %v2692_v24, %v2689_v58  ;;  %v2699_v59 = vrot.slane %v2697_v0, 6  ;;  %v2702_v13 = vrot.slane %v2700_v31, 7  ;;  %v3342_v24 = vrot.slane %v12656_v41, 1 }
 0x212   : > { %v1960_v4 = vpop.f32.mrb[40].mxu0  ;;  %v12712_v20 = vld [vmem:[#allocation2 + $0x48] sm:$0xff]  }
 0x213   : > { %3391 = vrot.lane.b32.xlu1 %v12654_v43, %s11095_s29  ;;  %v2694_v5 = vsel %vm12425_vm12, %v2685_v54, %v2693_v42  ;;  %v2695_v21 = vrot.slane %v2693_v42, 4  ;;  %v2703_v6 = vor.u32 %v2702_v13, %v2699_v59  ;;  %v2057_v35 = vmul.f32 %v12303_v45, %v1960_v4  ;;  %v9976_v58 = vpop.f32.mrb[41].mxu0 }
 0x214   : > { %2935 = vst [vmem:[#allocation2 + $0x50] sm:$0xf] %v2694_v5  ;;  %2322 = vperm.xlu0 %10651, %v502_v57   ;;  %v1963_v0 = vpop.f32.mrb[42].mxu0  ;;  %v3177_v54 = vor.u32 %v15685_v53, %v3173_v19  ;;  %v15695_v4 = vshll.u32 %v12656_v41, 16  ;;  %v12688_v19 = vsel %vm846_vm0, %v3340_v2, %v3342_v24  ;;  %v503_v2 = vld [vmem:[%s15666_s1 + $0x110] sm:$0xff] }
 0x215   : > { %v2704_v31 = vsel %vm12425_vm12, %v2695_v21, %v2703_v6  ;;  %v2101_v42 = vadd.f32 %v12318_v60, %v2057_v35  ;;  %v2058_v59 = vmul.f32 %v12303_v45, %v1963_v0  ;;  %v9977_v13 = vpop.f32.mrb[43].mxu0  ;;  %v12685_v21 = vld [vmem:[#allocation2 + $0x38] sm:$0xff]  }
 0x216   : > { %2936 = vst [vmem:[#allocation2 + $0x54] sm:$0xf] %v2704_v31  ;;  %v3182_v57 = vsel %vm653_vm3, %v3177_v54, %v3181_v38  ;;  %v12694_v31 = vpop.permute.xlu0 %2262  ;;  %v15694_v54 = vshrl.u32 %v12625_v40, 16  ;;  %v15831_v18 = vshrl.u32 %v12685_v21, 16  ;;  %v15833_v44 = vshll.u32 %v12685_v21, 16 }
 0x217   : > { %2317 = vperm.xlu1 %10652, %v501_v12   ;;  %v2138_v5 = vmax.f32 %v2101_v42, 0.0  ;;  %v2102_v58 = vadd.f32 %v12318_v60, %v2058_v59  ;;  %v504_v12 = vld [vmem:[%s15666_s1 + $0x118] sm:$0xff]  ;;  %15813 = vst [vmem:[#allocation30_spill] sm:$0xff] %v12694_v31  ;;  %v3189_v42 = vrot.slane %v15695_v4, 1  ;;  %v12701_v59 = vld [vmem:[#allocation2 + $0x40] sm:$0xff]  }
 0x218   : > { %3298 = vrot.lane.b32.xlu0 %v3182_v57, %s11095_s29  ;;  %15814 = vst [vmem:[#allocation31_spill] sm:$0xff] %v12701_v59  ;;  %v3346_v47 = vrot.slane %v12701_v59, 1 }
 0x219   : > { %v2360_v35 = vmul.f32 %v12682_v48, %v2138_v5  ;;  %v2139_v0 = vmax.f32 %v2102_v58, 0.0  ;;  %v3185_v5 = vor.u32 %v15694_v54, %v3181_v38  ;;  %v3344_v58 = vrot.slane %v12685_v21, 1 }
 0x21a   : > { %v15818_v48 = vshll.u32 %v12712_v20, 16 }
 0x21b   : > { %3393 = vrot.lane.b32.xlu1 %v12688_v19, %s11095_s29  ;;  %v9823_v13 = vpack.c.bf16 %v2360_v35, %v2360_v35  ;;  %v2361_v57 = vmul.f32 %v12694_v31, %v2139_v0  ;;  %v3190_v36 = vsel %vm653_vm3, %v3185_v5, %v3189_v42  ;;  %v12716_v38 = vsel %vm846_vm0, %v3342_v24, %v3344_v58 }
 0x21c   : > { %2332 = vperm.xlu0 %10651, %v504_v12   ;;  %v15696_v12 = vshll.u32 %v12685_v21, 16  ;;  %v15703_v31 = vshrl.u32 %v12701_v59, 16 }
 0x21d   : > { %v2707_v28 = vshrl.u32 %v9823_v13, 16  ;;  %v2710_v53 = vshll.u32 %v9823_v13, 16  ;;  %v9824_v23 = vpack.c.bf16 %v2361_v57, %v2361_v57  ;;  %v2705_v13 = vrot.slane %v2703_v6, 4  ;;  %v12719_v5 = vld [vmem:[#allocation2 + $0x50] sm:$0xff]  }
 0x21e   : > { %v15709_v46 = vshrl.u32 %v12719_v5, 16  ;;  %v12900_v14 = vld [vmem:[#allocation2 + $0x50] sm:$0xff]  }
 0x21f   : > { %2327 = vperm.xlu1 %10652, %v503_v2   ;;  %v2709_v1 = vrot.slane %v2707_v28, 6  ;;  %v2712_v35 = vrot.slane %v2710_v53, 7  ;;  %v2717_v50 = vshrl.u32 %v9824_v23, 16  ;;  %v2720_v0 = vshll.u32 %v9824_v23, 16 }
 0x220   : > { %3300 = vrot.lane.b32.xlu0 %v3190_v36, %s11095_s29  ;;  %v12724_v28 = vsel %vm846_vm0, %v3344_v58, %v3346_v47  ;;  %v3348_v23 = vrot.slane %v12712_v20, 1  ;;  %v15697_v58 = vshrl.u32 %v12656_v41, 16  ;;  %v3702_v22 = vrot.slane %v12900_v14, 2 }
 0x221   : > { %v2713_v57 = vor.u32 %v2712_v35, %v2709_v1  ;;  %v2719_v2 = vrot.slane %v2717_v50, 6  ;;  %v2722_v54 = vrot.slane %v2720_v0, 7  ;;  %v505_v1 = vld [vmem:[%s15666_s1 + $0x120] sm:$0x3]  ;;  %v3197_v35 = vrot.slane %v15696_v12, 1 }
 0x222   : > { %v1968_v36 = vpop.f32.mrb[0].mxu1  ;;  %v12754_v12 = vsel %vm846_vm0, %v3346_v47, %v3348_v23  ;;  %v15816_v47 = vshll.u32 %v12701_v59, 16 }
 0x223   : > { %3395 = vrot.lane.b32.xlu1 %v12716_v38, %s11095_s29  ;;  %v2714_v53 = vsel %vm12425_vm12, %v2705_v13, %v2713_v57  ;;  %v2715_v24 = vrot.slane %v2713_v57, 4  ;;  %v12729_v4 = vor.u32 %v2722_v54, %v2719_v2  ;;  %v2059_v50 = vmul.f32 %v12303_v45, %v1968_v36  ;;  %v9980_v6 = vpop.f32.mrb[1].mxu1  ;;  %v12749_v2 = vld [vmem:[%s15669_s4] ss:$0 sm:$0xff] }
 0x224   : > { %2937 = vst [vmem:[#allocation2 + $0x58] sm:$0xf] %v2714_v53  ;;  %3397 = vrot.lane.b32.xlu0 %v12724_v28, %s11095_s29  ;;  %v1971_v54 = vpop.f32.mrb[2].mxu1  ;;  %v3350_v45 = vrot.slane %v12719_v5, 1  ;;  %v12776_v6 = vpop.permute.xlu0 %2272 }
 0x225   : > { %v2724_v13 = vsel %vm12425_vm12, %v2715_v24, %v12729_v4  ;;  %v2103_v57 = vadd.f32 %v12318_v60, %v2059_v50  ;;  %v2060_v36 = vmul.f32 %v12749_v2, %v1971_v54  ;;  %v9981_v53 = vpop.f32.mrb[3].mxu1  ;;  %v3193_v60 = vor.u32 %v15697_v58, %v3189_v42  ;;  %v12761_v50 = vld [vmem:[%s15670_s5] ss:$0 sm:$0xff]  ;;  %v12764_v54 = vpop.permute.xlu1 %2267  ;;  %15817 = vst [vmem:[#allocation33_spill] sm:$0xff] %v12776_v6 }
 0x226   : > { %2938 = vst [vmem:[#allocation2 + $0x5c] sm:$0xf] %v2724_v13  ;;  %15815 = vst [vmem:[#allocation32_spill] sm:$0xff] %v12764_v54  ;;  %v3205_v13 = vrot.slane %v15816_v47, 1  ;;  %v12774_v53 = vsel %vm846_vm0, %v3348_v23, %v3350_v45  ;;  %v3213_v47 = vrot.slane %v15818_v48, 1 }
 0x227   : > { %2337 = vperm.xlu1 %10652, %v505_v1   ;;  %v2140_v24 = vmax.f32 %v2103_v57, 0.0  ;;  %v2104_v0 = vadd.f32 %v12761_v50, %v2060_v36  ;;  %v15701_v1 = vshrl.u32 %v12685_v21, 16  ;;  %v3198_v42 = vsel %vm653_vm3, %v3193_v60, %v3197_v35  ;;  %v2388_v48 = vld [vmem:[#allocation2 + $0x98] sm:$0xc] }
 0x228   : > { %3399 = vrot.lane.b32.xlu0 %v12754_v12, %s11095_s29 }
 0x229   : > { %v2362_v57 = vmul.f32 %v12764_v54, %v2140_v24  ;;  %v2141_v58 = vmax.f32 %v2104_v0, 0.0  ;;  %v3201_v36 = vor.u32 %v15701_v1, %v3197_v35  ;;  %v3209_v0 = vor.u32 %v15703_v31, %v3205_v13  ;;  %v5325_v31 = vld [vmem:[#allocation3 + $0x98] sm:$0xc] }
 0x22b   : > { %3302 = vrot.lane.b32.xlu1 %v3198_v42, %s11095_s29  ;;  %v9825_v17 = vpack.c.bf16 %v2362_v57, %v2362_v57  ;;  %v2363_v60 = vmul.f32 %v12776_v6, %v2141_v58  ;;  %v3206_v23 = vsel %vm653_vm3, %v3201_v36, %v3205_v13  ;;  %v2389_v36 = vsel %vm12791_vm14, 0, %v2388_v48 }
 0x22c   : > { %3401 = vrot.lane.b32.xlu0 %v12774_v53, %s11095_s29  ;;  %v3214_v6 = vsel %vm653_vm3, %v3209_v0, %v3213_v47  ;;  %2390 = vst [vmem:[#allocation2 + $0x98] sm:$0xc] %v2389_v36  ;;  %v2725_v0 = vrot.slane %v12729_v4, 4 }
 0x22d   : > { %v2727_v42 = vshrl.u32 %v9825_v17, 16  ;;  %v2730_v57 = vshll.u32 %v9825_v17, 16  ;;  %v9826_v58 = vpack.c.bf16 %v2363_v60, %v2363_v60  ;;  %v12795_v1 = vld [vmem:[#allocation2 + $0x58] sm:$0xff]   ;;  %v15821_v17 = vshll.u32 %v12719_v5, 16 }
 0x22e   : > { %v3352_v32 = vrot.slane %v12795_v1, 1  ;;  %v15823_v24 = vshll.u32 %v12795_v1, 16  ;;  %v10743_v51 = vld [vmem:[#allocation2 + $0x58] sm:$0xff]  }
 0x22f   : > { %3304 = vrot.lane.b32.xlu1 %v3206_v23, %s11095_s29  ;;  %v2729_v35 = vrot.slane %v2727_v42, 6  ;;  %v2732_v54 = vrot.slane %v2730_v57, 7  ;;  %v2737_v52 = vshrl.u32 %v9826_v58, 16  ;;  %v2740_v8 = vshll.u32 %v9826_v58, 16 }
 0x230   : > { %v3221_v60 = vrot.slane %v15821_v17, 1  ;;  %v5326_v23 = vsel %vm12791_vm14, 0, %v5325_v31  ;;  %v15822_v42 = vshrl.u32 %v12712_v20, 16  ;;  %v12813_v17 = vsel %vm846_vm0, %v3350_v45, %v3352_v32  ;;  %vm15862_vm14 = vmmov %vm15860_vm13 }
 0x231   : > { %v2733_v48 = vor.u32 %v2732_v54, %v2729_v35  ;;  %v2739_v13 = vrot.slane %v2737_v52, 6  ;;  %v2742_v36 = vrot.slane %v2740_v8, 7  ;;  %5327 = vst [vmem:[#allocation3 + $0x98] sm:$0xc] %v5326_v23  ;;  %v3229_v31 = vrot.slane %v15823_v24, 1  ;;  %3403 = vrot.lane.b32.xlu0 %v12813_v17, %s11095_s29 }
 0x232   : > { %v3217_v57 = vor.u32 %v15822_v42, %v3213_v47  ;;  %v1976_v58 = vpop.f32.mrb[4].mxu1  ;;  %v3704_v7 = vrot.slane %v10743_v51, 2 }
 0x233   : > { %3306 = vrot.lane.b32.xlu1 %v3214_v6, %s11095_s29  ;;  %v2734_v4 = vsel %vm12425_vm12, %v2725_v0, %v2733_v48  ;;  %v2735_v52 = vrot.slane %v2733_v48, 4  ;;  %v2743_v8 = vor.u32 %v2742_v36, %v2739_v13  ;;  %v2061_v54 = vmul.f32 %v12749_v2, %v1976_v58  ;;  %v9984_v6 = vpop.f32.mrb[5].mxu1  ;;  %v12833_v58 = vpop.permute.xlu1 %2277 }
 0x234   : > { %2939 = vst [vmem:[#allocation2 + $0x60] sm:$0xf] %v2734_v4  ;;  %v3222_v45 = vsel %vm653_vm3, %v3217_v57, %v3221_v60  ;;  %v1979_v47 = vpop.f32.mrb[6].mxu1  ;;  %v3225_v13 = vor.u32 %v15709_v46, %v3221_v60  ;;  %15824 = vst [vmem:[#allocation34_spill] sm:$0xff] %v12833_v58 }
 0x235   : > { %v2744_v35 = vsel %vm12425_vm12, %v2735_v52, %v2743_v8  ;;  %v2105_v23 = vadd.f32 %v12761_v50, %v2061_v54  ;;  %v2062_v42 = vmul.f32 %v12749_v2, %v1979_v47  ;;  %v9985_v0 = vpop.f32.mrb[7].mxu1  ;;  %v12836_v52 = vpop.permute.xlu0 %2282 }
 0x236   : > { %2940 = vst [vmem:[#allocation2 + $0x64] sm:$0xf] %v2744_v35  ;;  %v3230_v57 = vsel %vm653_vm3, %v3225_v13, %v3229_v31  ;;  %15825 = vst [vmem:[#allocation35_spill] sm:$0xff] %v12836_v52 }
 0x237   : > { %3308 = vrot.lane.b32.xlu1 %v3222_v45, %s11095_s29  ;;  %v2142_v48 = vmax.f32 %v2105_v23, 0.0  ;;  %v2106_v36 = vadd.f32 %v12761_v50, %v2062_v42 }
 0x239   : > { %v2364_v24 = vmul.f32 %v12833_v58, %v2142_v48  ;;  %v2143_v4 = vmax.f32 %v2106_v36, 0.0  ;;  %v15714_v48 = vshrl.u32 %v12795_v1, 16  ;;  %v2745_v58 = vrot.slane %v2743_v8, 4 }
 0x23b   : > { %3310 = vrot.lane.b32.xlu1 %v3230_v57, %s11095_s29  ;;  %v9827_v54 = vpack.c.bf16 %v2364_v24, %v2364_v24  ;;  %v2365_v60 = vmul.f32 %v12836_v52, %v2143_v4 }
 0x23d   : > { %v2747_v6 = vshrl.u32 %v9827_v54, 16  ;;  %v2750_v47 = vshll.u32 %v9827_v54, 16  ;;  %v9828_v45 = vpack.c.bf16 %v2365_v60, %v2365_v60  ;;  %v12840_v35 = vld [vmem:[#allocation2 + $0x60] sm:$0xff]   ;;  %v3233_v60 = vor.u32 %v15714_v48, %v3229_v31 }
 0x23e   : > { %v3354_v46 = vrot.slane %v12840_v35, 1  ;;  %v15713_v36 = vshll.u32 %v12840_v35, 16 }
 0x23f   : > { %v2749_v23 = vrot.slane %v2747_v6, 6  ;;  %v2752_v42 = vrot.slane %v2750_v47, 7  ;;  %v2757_v0 = vshrl.u32 %v9828_v45, 16  ;;  %v2760_v13 = vshll.u32 %v9828_v45, 16 }
 0x240   : > { %v12848_v54 = vsel %vm846_vm0, %v3352_v32, %v3354_v46  ;;  %v3237_v6 = vrot.slane %v15713_v36, 1  ;;  %v15829_v36 = vshrl.u32 %v12656_v41, 16 }
 0x241   : > { %v2753_v57 = vor.u32 %v2752_v42, %v2749_v23  ;;  %v2759_v24 = vrot.slane %v2757_v0, 6  ;;  %v2762_v27 = vrot.slane %v2760_v13, 7  ;;  %3405 = vrot.lane.b32.xlu0 %v12848_v54, %s11095_s29  ;;  %v12871_v0 = vld [vmem:[#allocation2 + $0x38] sm:$0xff]   ;;  %v12873_v13 = vld [vmem:[#allocation2 + $0x40] sm:$0xff]  }
 0x242   : > { %v12845_v4 = vpop.f32.mrb[8].mxu1  ;;  %v3238_v32 = vsel %vm653_vm3, %v3233_v60, %v3237_v6  ;;  %v3696_v60 = vrot.slane %v12871_v0, 2  ;;  %v3450_v48 = vrot.slane %v15829_v36, 1 }
 0x243   : > { %v2754_v47 = vsel %vm12425_vm12, %v2745_v58, %v2753_v57  ;;  %v2755_v45 = vrot.slane %v2753_v57, 4  ;;  %v12856_v52 = vor.u32 %v2762_v27, %v2759_v24  ;;  %v9988_v8 = vpop.f32.mrb[9].mxu1  ;;  %3312 = vrot.lane.b32.xlu1 %v3238_v32, %s11095_s29  ;;  %v12867_v58 = vld [vmem:[#allocation2 + $0x28] sm:$0xff]   ;;  %v12869_v27 = vld [vmem:[#allocation2 + $0x30] sm:$0xff]   ;;  %v3698_v32 = vrot.slane %v12873_v13, 2 }
 0x244   : > { %2941 = vst [vmem:[#allocation2 + $0x68] sm:$0xf] %v2754_v47  ;;  %v12860_v23 = vpop.f32.mrb[10].mxu1  ;;  %15826 = vst [vmem:[#allocation36_spill] sm:$0xff] %v12867_v58  ;;  %v15717_v57 = vrot.slane %v12867_v58, 2  ;;  %v3694_v24 = vrot.slane %v12869_v27, 2 }
 0x245   : > { %v2764_v31 = vsel %vm12425_vm12, %v2755_v45, %v12856_v52  ;;  %v9989_v42 = vpop.f32.mrb[11].mxu1  ;;  %v12903_v9 = vsel %vm1112_vm1, %v3696_v60, %v3698_v32 }
 0x246   : > { %2942 = vst [vmem:[#allocation2 + $0x6c] sm:$0xf] %v2764_v31  ;;  %v12881_v47 = vsel %vm1112_vm1, %v15717_v57, %v3694_v24  ;;  %v12886_v8 = vsel %vm1112_vm1, %v3694_v24, %v3696_v60  ;;  %v3239_v31 = vshrl.u32 %v12840_v35, 16  ;;  %v12890_v42 = vld [vmem:[#allocation2 + $0x48] sm:$0xff]   ;;  %v15830_v57 = vshll.u32 %v12656_v41, 16  ;;  %15832 = vst [vmem:[#allocation39_spill] sm:$0xff] %v12903_v9 }
 0x247   : > { %15827 = vst [vmem:[#allocation37_spill] sm:$0xff] %v12881_v47  ;;  %15828 = vst [vmem:[#allocation38_spill] sm:$0xff] %v12886_v8  ;;  %v3454_v24 = vrot.slane %v15831_v18, 1  ;;  %v3455_v41 = vrot.slane %v15833_v44, 2  ;;  %v3700_v18 = vrot.slane %v12890_v42, 2  ;;  %v10744_v44 = vld [vmem:[#allocation2 + $0x60] sm:$0xff]  }
 0x248   : > { %v3451_v61 = vrot.slane %v15830_v57, 2  ;;  %v3241_v36 = vor.u32 %v3239_v31, %v3237_v6 }
 0x249   : > { %v12923_v6 = vor.u32 %v3455_v41, %v3454_v24  ;;  %v12929_v21 = vsel %vm1112_vm1, %v3698_v32, %v3700_v18  ;;  %v12942_v41 = vsel %vm1112_vm1, %v3700_v18, %v3702_v22  ;;  %v15846_v18 = vshrl.u32 %v12795_v1, 16 }
 0x24a   : > { %15836 = vst [vmem:[#allocation42_spill] sm:$0xff] %v12929_v21  ;;  %15840 = vst [vmem:[#allocation44_spill] sm:$0xff] %v12942_v41 }
 0x24b   : > { %15835 = vst [vmem:[#allocation41_spill] sm:$0xff] %v12923_v6  ;;  %v3470_v41 = vrot.slane %v15846_v18, 1 }
 0x24d   : > { %v12883_v45 = vld [vmem:[#allocation2 + $0x68] sm:$0xff]  }
 0x24e   : > { %v15727_v33 = vrot.slane %v12883_v45, 1  ;;  %v3243_v26 = vshll.u32 %v12883_v45, 16  ;;  %v12939_v24 = vld [vmem:[#allocation2 + $0x68] sm:$0xff]  }
 0x24f   : > { %v15899_v47 = vrot.slane %v12939_v24, 2 }
 0x250   : > { %v12908_v62 = vsel %vm846_vm0, %v3354_v46, %v15727_v33  ;;  %v12910_v29 = vrot.slane %v3243_v26, 1  ;;  %v12921_v46 = vor.u32 %v3451_v61, %v3450_v48  ;;  %v15839_v61 = vshrl.u32 %v12712_v20, 16 }
 0x251   : > { %3407 = vrot.lane.b32.xlu0 %v12908_v62, %s11095_s29 }
 0x252   : > { %v12914_v57 = vpop.f32.mrb[12].mxu1  ;;  %v3246_v3 = vsel %vm653_vm3, %v3241_v36, %v12910_v29  ;;  %15834 = vst [vmem:[#allocation40_spill] sm:$0xff] %v12921_v46  ;;  %v12935_v36 = vsel %vm15837_vm6, %v12921_v46, %v12923_v6  ;;  %v3462_v48 = vrot.slane %v15839_v61, 1  ;;  %v15844_v6 = vshll.u32 %v12719_v5, 16  ;;  %vm15864_vm6 = vmmov %vm15860_vm13 }
 0x253   : > { %v9992_v60 = vpop.f32.mrb[13].mxu1  ;;  %3314 = vrot.lane.b32.xlu1 %v3246_v3, %s11095_s29  ;;  %15838 = vst [vmem:[#allocation43_spill] sm:$0xff] %v12935_v36  ;;  %v15841_v3 = vshll.u32 %v12712_v20, 16  ;;  %v3706_v61 = vrot.slane %v10744_v44, 2  ;;  %v12954_v36 = vsel %vm1112_vm1, %v3702_v22, %v3704_v7  ;;  %v15847_v20 = vshll.u32 %v12795_v1, 16 }
 0x254   : > { %v12925_v33 = vpop.f32.mrb[14].mxu1  ;;  %v3467_v21 = vrot.slane %v15844_v6, 2  ;;  %15845 = vst [vmem:[#allocation46_spill] sm:$0xff] %v12954_v36  ;;  %v15850_v22 = vshrl.u32 %v12883_v45, 16 }
 0x255   : > { %v9993_v49 = vpop.f32.mrb[15].mxu1  ;;  %v3463_v32 = vrot.slane %v15841_v3, 2  ;;  %v3471_v3 = vrot.slane %v15847_v20, 2  ;;  %v12961_v59 = vsel %vm1112_vm1, %v3704_v7, %v3706_v61  ;;  %v3479_v7 = vrot.slane %v3243_v26, 2 }
 0x256   : > { %v15842_v49 = vshrl.u32 %v12719_v5, 16  ;;  %15848 = vst [vmem:[#allocation47_spill] sm:$0xff] %v12961_v59  ;;  %v15849_v5 = vshll.u32 %v12840_v35, 16  ;;  %v3478_v36 = vrot.slane %v15850_v22, 1  ;;  %v3945_v20 = vrot.slane %v12869_v27, 3 }
 0x257   : > { %v12949_v63 = vor.u32 %v3463_v32, %v3462_v48  ;;  %v15736_v48 = vrot.slane %v12939_v24, 2  ;;  %v3472_v32 = vor.u32 %v3471_v3, %v3470_v41  ;;  %v15737_v41 = vrot.slane %v12867_v58, 3  ;;  %v2997_v3 = vld [vmem:[#allocation2] sm:$0xe] }
 0x258   : > { %v3466_v15 = vrot.slane %v15842_v49, 1  ;;  %v3474_v49 = vrot.slane %v3239_v31, 1  ;;  %v3475_v6 = vrot.slane %v15849_v5, 2  ;;  %v3957_v22 = vrot.slane %v10744_v44, 3 }
 0x259   : > { %15843 = vst [vmem:[#allocation45_spill] sm:$0xff] %v12949_v63  ;;  %v12994_v26 = vsel %vm15860_vm13, %v15737_v41, %v3945_v20  ;;  %v15738_v44 = vrot.slane %v12939_v24, 3 }
 0x25a   : > { %v3468_v60 = vor.u32 %v3467_v21, %v3466_v15  ;;  %v12975_v15 = vsel %vm1112_vm1, %v3706_v61, %v15736_v48  ;;  %v3476_v31 = vor.u32 %v3475_v6, %v3474_v49  ;;  %v12980_v21 = vor.u32 %v3479_v7, %v3478_v36  ;;  %15861 = vst [vmem:[#allocation53_spill] sm:$0xff] %v12994_v26  ;;  %v11048_v7 = vld [vmem:[#allocation2 + $0x4] sm:$0xf] }
 0x25b   : > { %15853 = vst [vmem:[#allocation49_spill] sm:$0xff] %v12975_v15  ;;  %v3947_v36 = vrot.slane %v12871_v0, 3  ;;  %v3951_v61 = vrot.slane %v12890_v42, 3  ;;  %v3953_v49 = vrot.slane %v12900_v14, 3  ;;  %v3955_v6 = vrot.slane %v10743_v51, 3 }
 0x25c   : > { %v12970_v18 = vsel %vm15851_vm8, %v12949_v63, %v3468_v60  ;;  %v12978_v1 = vsel %vm15854_vm9, %v3468_v60, %v3472_v32  ;;  %v12983_v35 = vsel %vm15856_vm10, %v3472_v32, %v3476_v31  ;;  %v12989_v5 = vsel %vm15858_vm2, %v3476_v31, %v12980_v21  ;;  %vm15866_vm8 = vmmov %vm15864_vm6 }
 0x25d   : > { %15852 = vst [vmem:[#allocation48_spill] sm:$0xff] %v12970_v18  ;;  %15855 = vst [vmem:[#allocation50_spill] sm:$0xff] %v12978_v1  ;;  %v3949_v60 = vrot.slane %v12873_v13, 3  ;;  %v9486_v31 = vcombine.low %v2997_v3, %v11048_v7  ;;  %v3757_v63 = vshll.u32 %v12867_v58, 16 }
 0x25e   : > { %15857 = vst [vmem:[#allocation51_spill] sm:$0xff] %v12983_v35  ;;  %15859 = vst [vmem:[#allocation52_spill] sm:$0xff] %v12989_v5  ;;  %v13003_v5 = vsel %vm15862_vm14, %v3945_v20, %v3947_v36  ;;  %vm2953_vm14 = vcmask 1042432  }
 0x25f   : > { %15863 = vst [vmem:[#allocation54_spill] sm:$0xff] %v13003_v5  ;;  %v13006_v41 = vsel %vm15864_vm6, %v3947_v36, %v3949_v60  ;;  %v13009_v26 = vsel %vm15866_vm8, %v3949_v60, %v3951_v61  ;;  %vm15868_vm9 = vmmov %vm15864_vm6  ;;  %v3331_v3 = vrot.slane %v9486_v31, 1  ;;  %v3332_v36 = vrot.slane %v12538_v56, 1 }
 0x260   : > { %15865 = vst [vmem:[#allocation55_spill] sm:$0xff] %v13006_v41  ;;  %15867 = vst [vmem:[#allocation56_spill] sm:$0xff] %v13009_v26  ;;  %v13012_v42 = vsel %vm15868_vm9, %v3951_v61, %v3953_v49  ;;  %v15876_v31 = vmov 0   ;;  %v3759_v8 = vrot.slane %v3757_v63, 3  ;;  %vm15902_vm9 = vsmask.f32 5376 }
 0x261   : > { %15869 = vst [vmem:[#allocation57_spill] sm:$0xff] %v13012_v42  ;;  %vm15870_vm10 = vmmov %vm15864_vm6  ;;  %v3333_v7 = vsel %vm846_vm0, %v3331_v3, %v3332_v36  ;;  %v2064_v3 = vmul.f32 %v12749_v2, %v12860_v23 }
 0x262   : > { %v12999_v32 = vpop.f32.mrb[16].mxu1  ;;  %v13015_v14 = vsel %vm15870_vm10, %v3953_v49, %v3955_v6  ;;  %vm15872_vm2 = vmmov %vm15864_vm6  ;;  %v10729_v49 = vld [vmem:[%s15671_s6 + $0x80] sm:$0xff]   ;;  %vm2954_vm6 = vsmask.f32 2304 }
 0x263   : > { %v9996_v48 = vpop.f32.mrb[17].mxu1  ;;  %15871 = vst [vmem:[#allocation58_spill] sm:$0xff] %v13015_v14  ;;  %v13018_v51 = vsel %vm15872_vm2, %v3955_v6, %v3957_v22  ;;  %vm15874_vm13 = vmmov %vm15872_vm2  ;;  %vm15908_vm2 = vsmask.f32 6400 }
 0x264   : > { %v2003_v13 = vpop.f32.mrb[18].mxu1  ;;  %15873 = vst [vmem:[#allocation59_spill] sm:$0xff] %v13018_v51  ;;  %v13024_v20 = vsel %vm15874_vm13, %v3957_v22, %v15738_v44  ;;  %v10732_v22 = vld [vmem:[%s15671_s6 + $0x88] sm:$0xff]   ;;  %vm13277_vm8 = vmand %vm2953_vm14, %vm2954_vm6 }
 0x265   : > { %v9997_v48 = vpop.f32.mrb[19].mxu1  ;;  %15875 = vst [vmem:[#allocation60_spill] sm:$0xff] %v13024_v20  ;;  %vm15904_vm10 = vmmov %vm15902_vm9 }
 0x266   : > { %vm15914_vm13 = vmmov %vm15908_vm2 }
 0x267   : > { %vm15915_vm14 = vmmov %vm15908_vm2 }
 0x268   : > { %vm15918_vm6 = vmmov %vm15908_vm2 }
 0x26a   : > { %v3291_v60 = vpop.permute.xlu0 %3290 }
 0x26b   : > { %v3976_v48 = vsel %vm1728_vm15, %v12305_v30, %v3291_v60  ;;  %v10735_v30 = vld [vmem:[%s15671_s6 + $0x90] sm:$0xff]  }
 0x26d   : > { %v3386_v61 = vpop.permute.xlu1 %3385 }
 0x26e   : > { %v4035_v6 = vsel %vm1728_vm15, %v3333_v7, %v3386_v61  ;;  %v2063_v61 = vmul.f32 %v12749_v2, %v12845_v4 }
 0x26f   : > { %4638 = vmatprep.mubr.bf16.mxu1 %v4035_v6  ;;  %v2065_v6 = vmul.f32 %v12749_v2, %v12914_v57 }
 0x270   : > { %4639 = vmatmul.mubr.bf16.vlgmr.msra.gmra.mrb[32].mxu1 %v3976_v48  ;;  %v2107_v23 = vadd.f32 %v12761_v50, %v2063_v61  ;;  %v2066_v48 = vmul.f32 %v12749_v2, %v12925_v33  ;;  %v10742_v61 = vld [vmem:[%s15671_s6 + $0xa0] sm:$0xff]  }
 0x271   : > { %4791 = vmatpush1.bf16.msra.mxu1 %v10729_v49  ;;  %v2108_v49 = vadd.f32 %v12761_v50, %v2064_v3 }
 0x272   : > { %4792 = vmatprep.subr.bf16.mxu1 %v15876_v31  ;;  %v13040_v44 = vpop.f32.mrb[20].mxu1  ;;  %v2110_v57 = vadd.f32 %v12761_v50, %v2066_v48 }
 0x273   : > { %v10000_v20 = vpop.f32.mrb[21].mxu1  ;;  %v2145_v4 = vmax.f32 %v2108_v49, 0.0  ;;  %v2109_v49 = vadd.f32 %v12761_v50, %v2065_v6  ;;  %v3335_v6 = vsel %vm846_vm0, %v3332_v36, %v12541_v39 }
 0x274   : > { %v13044_v7 = vpop.f32.mrb[22].mxu1  ;;  %v10739_v20 = vld [vmem:[%s15671_s6 + $0x98] sm:$0xff]  }
 0x275   : > { %4793 = vmatpush1.bf16.msra.mxu1 %v10732_v22  ;;  %v10001_v60 = vpop.f32.mrb[23].mxu1  ;;  %v2146_v48 = vmax.f32 %v2109_v49, 0.0 }
 0x276   : > { %4794 = vmatprep.subr.bf16.mxu1 %v15876_v31  ;;  %v2144_v60 = vmax.f32 %v2107_v23, 0.0 }
 0x279   : > { %4795 = vmatpush1.bf16.msra.mxu1 %v10735_v30 }
 0x27a   : > { %4796 = vmatprep.subr.bf16.mxu1 %v15876_v31 }
 0x27b   : > { %v13060_v22 = vpop.permute.xlu0 %2292 }
 0x27c   : > { %15877 = vst [vmem:[#allocation61_spill] sm:$0xff] %v13060_v22  ;;  %v2367_v3 = vmul.f32 %v13060_v22, %v2145_v4  ;;  %v2068_v22 = vmul.f32 %v12749_v2, %v2003_v13 }
 0x27d   : > { %4797 = vmatpush1.bf16.msra.mxu1 %v10739_v20  ;;  %v10746_v20 = vld [vmem:[%s15671_s6 + $0xa8] sm:$0xff]  }
 0x27e   : > { %v13066_v30 = vpop.permute.xlu1 %2287  ;;  %4798 = vmatprep.subr.bf16.mxu1 %v15876_v31  ;;  %v9830_v51 = vpack.c.bf16 %v2367_v3, %v2367_v3  ;;  %v2147_v3 = vmax.f32 %v2110_v57, 0.0 }
 0x27f   : > { %15878 = vst [vmem:[#allocation62_spill] sm:$0xff] %v13066_v30  ;;  %v2366_v33 = vmul.f32 %v13066_v30, %v2144_v60  ;;  %v3293_v14 = vpop.permute.xlu0 %3292 }
 0x280   : > { %v2777_v23 = vshrl.u32 %v9830_v51, 16  ;;  %v2780_v42 = vshll.u32 %v9830_v51, 16  ;;  %v2067_v51 = vmul.f32 %v12749_v2, %v12999_v32  ;;  %v3979_v13 = vsel %vm1728_vm15, %v12538_v56, %v3293_v14  ;;  %v10749_v32 = vld [vmem:[%s15671_s6 + $0xb0] sm:$0xff]  }
 0x281   : > { %v9829_v4 = vpack.c.bf16 %v2366_v33, %v2366_v33  ;;  %4799 = vmatpush1.bf16.msra.mxu1 %v10742_v61 }
 0x282   : > { %v3388_v26 = vpop.permute.xlu1 %3387  ;;  %4800 = vmatprep.subr.bf16.mxu1 %v15876_v31  ;;  %v13079_v41 = vpop.f32.mrb[24].mxu1  ;;  %v2779_v61 = vrot.slane %v2777_v23, 6  ;;  %v2782_v36 = vrot.slane %v2780_v42, 7  ;;  %v2765_v42 = vrot.slane %v12856_v52, 4 }
 0x283   : > { %v2767_v60 = vshrl.u32 %v9829_v4, 16  ;;  %v2770_v30 = vshll.u32 %v9829_v4, 16  ;;  %v4039_v33 = vsel %vm1728_vm15, %v3335_v6, %v3388_v26  ;;  %v13084_v5 = vpop.permute.xlu0 %2302  ;;  %v10004_v39 = vpop.f32.mrb[25].mxu1  ;;  %v2112_v26 = vadd.f32 %v12761_v50, %v2068_v22 }
 0x284   : > { %15879 = vst [vmem:[#allocation63_spill] sm:$0xff] %v13084_v5  ;;  %4646 = vmatprep.mubr.bf16.mxu1 %v4039_v33  ;;  %v2369_v57 = vmul.f32 %v13084_v5, %v2147_v3  ;;  %v13089_v4 = vpop.f32.mrb[26].mxu1 }
 0x285   : > { %v2769_v35 = vrot.slane %v2767_v60, 6  ;;  %v2772_v49 = vrot.slane %v2770_v30, 7  ;;  %4801 = vmatpush1.bf16.msra.mxu1 %v10746_v20  ;;  %v10005_v56 = vpop.f32.mrb[27].mxu1  ;;  %v2111_v20 = vadd.f32 %v12761_v50, %v2067_v51  ;;  %v2783_v60 = vor.u32 %v2782_v36, %v2779_v61 }
 0x286   : > { %4647 = vmatmul.mubr.bf16.gmra.mrb[36].mxu1 %v3979_v13  ;;  %v13095_v23 = vpop.permute.xlu1 %2297  ;;  %4802 = vmatprep.subr.bf16.mxu1 %v15876_v31  ;;  %v9832_v30 = vpack.c.bf16 %v2369_v57, %v2369_v57  ;;  %v10752_v13 = vld [vmem:[%s15671_s6 + $0xb8] sm:$0xff]   ;;  %v2149_v39 = vmax.f32 %v2112_v26, 0.0  ;;  %v2069_v51 = vmul.f32 %v12749_v2, %v13040_v44  ;;  %v2070_v61 = vmul.f32 %v12749_v2, %v13044_v7 }
 0x287   : > { %15880 = vst [vmem:[#allocation64_spill] sm:$0xff] %v13095_v23  ;;  %v2773_v14 = vor.u32 %v2772_v49, %v2769_v35  ;;  %v2368_v6 = vmul.f32 %v13095_v23, %v2146_v48  ;;  %v3295_v3 = vpop.permute.xlu0 %3294 }
 0x288   : > { %v2797_v52 = vshrl.u32 %v9832_v30, 16  ;;  %v2800_v35 = vshll.u32 %v9832_v30, 16  ;;  %v13118_v30 = vld [vmem:[#allocation2 + $0x10] sm:$0xff]  }
 0x289   : > { %v2774_v33 = vsel %vm12425_vm12, %v2765_v42, %v2773_v14  ;;  %v2775_v22 = vrot.slane %v2773_v14, 4  ;;  %4803 = vmatpush1.bf16.msra.mxu1 %v10749_v32  ;;  %v9831_v49 = vpack.c.bf16 %v2368_v6, %v2368_v6  ;;  %v2148_v42 = vmax.f32 %v2111_v20, 0.0  ;;  %v10757_v20 = vld [vmem:[%s15671_s6 + $0xc0] sm:$0xff]  }
 0x28a   : > { %2943 = vst [vmem:[#allocation2 + $0x70] sm:$0xf] %v2774_v33  ;;  %v3390_v57 = vpop.permute.xlu1 %3389  ;;  %4804 = vmatprep.subr.bf16.mxu1 %v15876_v31  ;;  %v3982_v44 = vsel %vm1728_vm15, %v13118_v30, %v3295_v3  ;;  %v2799_v6 = vrot.slane %v2797_v52, 6  ;;  %v2802_v7 = vrot.slane %v2800_v35, 7 }
 0x28b   : > { %v2784_v48 = vsel %vm12425_vm12, %v2775_v22, %v2783_v60  ;;  %v4043_v36 = vsel %vm1728_vm15, %v12599_v55, %v3390_v57  ;;  %v2787_v32 = vshrl.u32 %v9831_v49, 16  ;;  %v2790_v26 = vshll.u32 %v9831_v49, 16  ;;  %v13115_v56 = vpop.permute.xlu0 %2312 }
 0x28c   : > { %2944 = vst [vmem:[#allocation2 + $0x74] sm:$0xf] %v2784_v48  ;;  %4654 = vmatprep.mubr.bf16.mxu1 %v4043_v36  ;;  %15881 = vst [vmem:[#allocation65_spill] sm:$0xff] %v13115_v56  ;;  %v2371_v14 = vmul.f32 %v13115_v56, %v2149_v39  ;;  %v2113_v39 = vadd.f32 %v12761_v50, %v2069_v51  ;;  %v2114_v49 = vadd.f32 %v12761_v50, %v2070_v61 }
 0x28d   : > { %4805 = vmatpush1.bf16.msra.mxu1 %v10752_v13  ;;  %v2789_v33 = vrot.slane %v2787_v32, 6  ;;  %v2792_v22 = vrot.slane %v2790_v26, 7  ;;  %v2785_v13 = vrot.slane %v2783_v60, 4  ;;  %v2071_v26 = vmul.f32 %v12749_v2, %v13079_v41 }
 0x28e   : > { %4655 = vmatmul.mubr.bf16.gmra.mrb[40].mxu1 %v3982_v44  ;;  %v13122_v55 = vpop.permute.xlu1 %2307  ;;  %4806 = vmatprep.subr.bf16.mxu1 %v15876_v31  ;;  %v9834_v57 = vpack.c.bf16 %v2371_v14, %v2371_v14  ;;  %v2803_v44 = vor.u32 %v2802_v7, %v2799_v6  ;;  %v2072_v61 = vmul.f32 %v12749_v2, %v13089_v4  ;;  %v2150_v60 = vmax.f32 %v2113_v39, 0.0 }
 0x28f   : > { %15882 = vst [vmem:[#allocation66_spill] sm:$0xff] %v13122_v55  ;;  %v2370_v3 = vmul.f32 %v13122_v55, %v2148_v42  ;;  %v2793_v52 = vor.u32 %v2792_v22, %v2789_v33  ;;  %v3297_v35 = vpop.permute.xlu0 %3296  ;;  %v2151_v42 = vmax.f32 %v2114_v49, 0.0  ;;  %v13147_v49 = vld [vmem:[#allocation2 + $0x18] sm:$0xff]  }
 0x290   : > { %v2817_v48 = vshrl.u32 %v9834_v57, 16  ;;  %v2820_v36 = vshll.u32 %v9834_v57, 16 }
 0x291   : > { %v9833_v32 = vpack.c.bf16 %v2370_v3, %v2370_v3  ;;  %4807 = vmatpush1.bf16.msra.mxu1 %v10757_v20  ;;  %v2794_v56 = vsel %vm12425_vm12, %v2785_v13, %v2793_v52  ;;  %v2795_v51 = vrot.slane %v2793_v52, 4  ;;  %v3985_v13 = vsel %vm1728_vm15, %v13147_v49, %v3297_v35 }
 0x292   : > { %v3392_v5 = vpop.permute.xlu1 %3391  ;;  %4808 = vmatprep.subr.bf16.mxu1 %v15876_v31  ;;  %2945 = vst [vmem:[#allocation2 + $0x78] sm:$0xf] %v2794_v56  ;;  %v2819_v22 = vrot.slane %v2817_v48, 6  ;;  %v2822_v6 = vrot.slane %v2820_v36, 7  ;;  %v2024_v4 = vpop.f32.mrb[28].mxu1  ;;  %v2115_v48 = vadd.f32 %v12761_v50, %v2071_v26 }
 0x293   : > { %v2807_v14 = vshrl.u32 %v9833_v32, 16  ;;  %v2810_v33 = vshll.u32 %v9833_v32, 16  ;;  %v2804_v41 = vsel %vm12425_vm12, %v2795_v51, %v2803_v44  ;;  %v4047_v7 = vsel %vm1728_vm15, %v12628_v11, %v3392_v5  ;;  %v13142_v20 = vpop.permute.xlu0 %2322  ;;  %v13144_v57 = vld [vmem:[#allocation2 + $0x70] sm:$0xff]   ;;  %v10008_v52 = vpop.f32.mrb[29].mxu1 }
 0x294   : > { %15883 = vst [vmem:[#allocation67_spill] sm:$0xff] %v13142_v20  ;;  %2946 = vst [vmem:[#allocation2 + $0x7c] sm:$0xf] %v2804_v41  ;;  %4662 = vmatprep.mubr.bf16.mxu1 %v4047_v7  ;;  %v2373_v56 = vmul.f32 %v13142_v20, %v2151_v42  ;;  %v2116_v11 = vadd.f32 %v12761_v50, %v2072_v61  ;;  %v3358_v36 = vrot.slane %v13144_v57, 1  ;;  %v2027_v51 = vpop.f32.mrb[30].mxu1  ;;  %v10758_v42 = vld [vmem:[%s15671_s6 + $0xc8] sm:$0xff]  }
 0x295   : > { %v2809_v3 = vrot.slane %v2807_v14, 6  ;;  %v2812_v39 = vrot.slane %v2810_v33, 7  ;;  %v2805_v14 = vrot.slane %v2803_v44, 4  ;;  %v10009_v26 = vpop.f32.mrb[31].mxu1  ;;  %v2823_v7 = vor.u32 %v2822_v6, %v2819_v22  ;;  %4809 = vmatpush1.bf16.msra.mxu1 %v10758_v42  ;;  %v13314_v59 = vld [vmem:[#allocation2 + $0x70] sm:$0xff]  }
 0x296   : > { %4663 = vmatmul.mubr.bf16.gmra.mrb[44].mxu1 %v3985_v13  ;;  %v13153_v5 = vpop.permute.xlu1 %2317  ;;  %v9836_v35 = vpack.c.bf16 %v2373_v56, %v2373_v56  ;;  %v15885_v13 = vrot.slane %v12883_v45, 1  ;;  %v15886_v51 = vshrl.u32 %v12883_v45, 16  ;;  %v15887_v20 = vshll.u32 %v13144_v57, 16  ;;  %4810 = vmatprep.subr.bf16.mxu1 %v15876_v31 }
 0x297   : > { %15884 = vst [vmem:[#allocation68_spill] sm:$0xff] %v13153_v5  ;;  %v2813_v33 = vor.u32 %v2812_v39, %v2809_v3  ;;  %v2372_v41 = vmul.f32 %v13153_v5, %v2150_v60  ;;  %v3299_v61 = vpop.permute.xlu0 %3298  ;;  %v2152_v6 = vmax.f32 %v2115_v48, 0.0  ;;  %v2153_v56 = vmax.f32 %v2116_v11, 0.0 }
 0x298   : > { %v13164_v52 = vsel %vm846_vm0, %v15885_v13, %v3358_v36  ;;  %v3249_v32 = vor.u32 %v15886_v51, %v12910_v29  ;;  %v3253_v55 = vrot.slane %v15887_v20, 1  ;;  %v2837_v3 = vshrl.u32 %v9836_v35, 16  ;;  %v13189_v51 = vld [vmem:[#allocation2 + $0x20] sm:$0xff]  }
 0x299   : > { %v2814_v44 = vsel %vm12425_vm12, %v2805_v14, %v2813_v33  ;;  %v2815_v60 = vrot.slane %v2813_v33, 4  ;;  %v2840_v22 = vshll.u32 %v9836_v35, 16  ;;  %3409 = vrot.lane.b32.xlu0 %v13164_v52, %s11095_s29  ;;  %v9835_v39 = vpack.c.bf16 %v2372_v41, %v2372_v41 }
 0x29a   : > { %2947 = vst [vmem:[#allocation2 + $0x80] sm:$0xf] %v2814_v44  ;;  %v3394_v45 = vpop.permute.xlu1 %3393  ;;  %v3254_v29 = vsel %vm653_vm3, %v3249_v32, %v3253_v55  ;;  %v2073_v14 = vmul.f32 %v12749_v2, %v2024_v4  ;;  %v15747_v32 = vshrl.u32 %v13144_v57, 16  ;;  %v2839_v26 = vrot.slane %v2837_v3, 6  ;;  %v10759_v3 = vld [vmem:[%s15671_s6 + $0xd0] sm:$0xff]  }
 0x29b   : > { %v2824_v20 = vsel %vm12425_vm12, %v2815_v60, %v2823_v7  ;;  %3316 = vrot.lane.b32.xlu1 %v3254_v29, %s11095_s29  ;;  %v4051_v42 = vsel %vm1728_vm15, %v12654_v43, %v3394_v45  ;;  %v2827_v33 = vshrl.u32 %v9835_v39, 16  ;;  %v2830_v35 = vshll.u32 %v9835_v39, 16  ;;  %v13183_v48 = vpop.permute.xlu0 %2332  ;;  %v13185_v41 = vld [vmem:[#allocation2 + $0x78] sm:$0xff]   ;;  %4811 = vmatpush1.bf16.msra.mxu1 %v10759_v3 }
 0x29c   : > { %2948 = vst [vmem:[#allocation2 + $0x84] sm:$0xf] %v2824_v20  ;;  %4670 = vmatprep.mubr.bf16.mxu1 %v4051_v42  ;;  %15888 = vst [vmem:[#allocation69_spill] sm:$0xff] %v13183_v48  ;;  %v2842_v13 = vrot.slane %v2840_v22, 7  ;;  %v2375_v11 = vmul.f32 %v13183_v48, %v2153_v56  ;;  %v3988_v43 = vsel %vm1728_vm15, %v13189_v51, %v3299_v61  ;;  %v3360_v60 = vrot.slane %v13185_v41, 1  ;;  %v13316_v18 = vld [vmem:[#allocation2 + $0x78] sm:$0xff]  }
 0x29d   : > { %v2829_v2 = vrot.slane %v2827_v33, 6  ;;  %v2832_v4 = vrot.slane %v2830_v35, 7  ;;  %v15746_v39 = vshll.u32 %v13185_v41, 16  ;;  %v2825_v22 = vrot.slane %v2823_v7, 4  ;;  %4812 = vmatprep.subr.bf16.mxu1 %v15876_v31 }
 0x29e   : > { %4671 = vmatmul.mubr.bf16.gmra.mrb[48].mxu1 %v3988_v43  ;;  %v13193_v44 = vpop.permute.xlu1 %2327  ;;  %v9838_v45 = vpack.c.bf16 %v2375_v11, %v2375_v11  ;;  %v2117_v20 = vadd.f32 %v12761_v50, %v2073_v14  ;;  %v13203_v42 = vsel %vm846_vm0, %v3358_v36, %v3360_v60  ;;  %v3257_v33 = vor.u32 %v15747_v32, %v3253_v55  ;;  %v3003_v43 = vld [vmem:[#allocation2 + $0x8] sm:$0xc]  ;;  %v11052_v50 = vld [vmem:[#allocation2 + $0xc] sm:$0xf] }
 0x29f   : > { %15889 = vst [vmem:[#allocation70_spill] sm:$0xff] %v13193_v44  ;;  %v2374_v29 = vmul.f32 %v13193_v44, %v2152_v6  ;;  %v2833_v61 = vor.u32 %v2832_v4, %v2829_v2  ;;  %v3301_v56 = vpop.permute.xlu0 %3300  ;;  %v3261_v35 = vrot.slane %v15746_v39, 1  ;;  %3411 = vrot.lane.b32.xlu0 %v13203_v42, %s11095_s29  ;;  %v9491_v6 = vcombine.low %v3003_v43, %v11052_v50  ;;  %v13220_v50 = vld [vmem:[#allocation2 + $0x28] sm:$0xff]  }
 0x2a0   : > { %v2857_v48 = vshrl.u32 %v9838_v45, 16  ;;  %v2860_v7 = vshll.u32 %v9838_v45, 16  ;;  %v2843_v36 = vor.u32 %v2842_v13, %v2839_v26  ;;  %v2154_v45 = vmax.f32 %v2117_v20, 0.0 }
 0x2a1   : > { %v9837_v11 = vpack.c.bf16 %v2374_v29, %v2374_v29  ;;  %v2834_v14 = vsel %vm12425_vm12, %v2825_v22, %v2833_v61  ;;  %v2835_v55 = vrot.slane %v2833_v61, 4  ;;  %v3262_v4 = vsel %vm653_vm3, %v3257_v33, %v3261_v35 }
 0x2a2   : > { %v3396_v2 = vpop.permute.xlu1 %3395  ;;  %2949 = vst [vmem:[#allocation2 + $0x88] sm:$0xf] %v2834_v14  ;;  %3318 = vrot.lane.b32.xlu1 %v3262_v4, %s11095_s29  ;;  %v2859_v43 = vrot.slane %v2857_v48, 6  ;;  %v3991_v22 = vsel %vm1728_vm15, %v13220_v50, %v3301_v56  ;;  %v2862_v33 = vrot.slane %v2860_v7, 7  ;;  %v3005_v48 = vld [vmem:[#allocation2 + $0x14] sm:$0xf] }
 0x2a3   : > { %v2847_v3 = vshrl.u32 %v9837_v11, 16  ;;  %v2850_v39 = vshll.u32 %v9837_v11, 16  ;;  %v2844_v29 = vsel %vm12425_vm12, %v2835_v55, %v2843_v36  ;;  %v4055_v26 = vsel %vm1728_vm15, %v12688_v19, %v3396_v2  ;;  %v3398_v13 = vpop.permute.xlu0 %3397  ;;  %v13224_v61 = vld [vmem:[#allocation2 + $0x80] sm:$0xff]  }
 0x2a4   : > { %2950 = vst [vmem:[#allocation2 + $0x8c] sm:$0xf] %v2844_v29  ;;  %4678 = vmatprep.mubr.bf16.mxu1 %v4055_v26  ;;  %v4059_v14 = vsel %vm1728_vm15, %v12716_v38, %v3398_v13  ;;  %v3362_v19 = vrot.slane %v13224_v61, 1  ;;  %v15749_v2 = vshrl.u32 %v13185_v41, 16  ;;  %v15748_v56 = vshll.u32 %v13224_v61, 16 }
 0x2a5   : > { %v2849_v20 = vrot.slane %v2847_v3, 6  ;;  %v2852_v11 = vrot.slane %v2850_v39, 7  ;;  %v13233_v4 = vrot.slane %v9491_v6, 2  ;;  %v10760_v39 = vld [vmem:[%s15671_s6 + $0xd8] sm:$0xff]   ;;  %v2845_v7 = vrot.slane %v2843_v36, 4 }
 0x2a6   : > { %4679 = vmatmul.mubr.bf16.gmra.mrb[52].mxu1 %v3991_v22  ;;  %v13228_v55 = vpop.permute.xlu1 %2337  ;;  %v3004_v26 = vld [vmem:[#allocation2 + $0x10] sm:$0xc]  ;;  %v13241_v13 = vsel %vm846_vm0, %v3360_v60, %v3362_v19  ;;  %v3265_v22 = vor.u32 %v15749_v2, %v3261_v35  ;;  %v3269_v6 = vrot.slane %v15748_v56, 1  ;;  %v2863_v36 = vor.u32 %v2862_v33, %v2859_v43  ;;  %v13253_v60 = vld [vmem:[#allocation2 + $0x18] sm:$0xff]  }
 0x2a7   : > { %15890 = vst [vmem:[#allocation71_spill] sm:$0xff] %v13228_v55  ;;  %v2853_v3 = vor.u32 %v2852_v11, %v2849_v20  ;;  %v2376_v38 = vmul.f32 %v13228_v55, %v2154_v45  ;;  %4686 = vmatprep.mubr.bf16.mxu1 %v4059_v14  ;;  %v13247_v32 = vcombine.low %v3004_v26, %v3005_v48  ;;  %v15891_v29 = vmov 0 }
 0x2a8   : > { %4813 = vmatpush1.bf16.msra.mxu1 %v10760_v39  ;;  %3413 = vrot.lane.b32.xlu0 %v13241_v13, %s11095_s29  ;;  %v3270_v14 = vsel %vm653_vm3, %v3265_v22, %v3269_v6  ;;  %v2865_v48 = vrot.slane %v2863_v36, 4  ;;  %v15892_v29 = vsel %vm13277_vm8, 4294967295, %v15891_v29  ;;  %v3739_v55 = vshll.u32 %v13253_v60, 16 }
 0x2a9   : > { %v2854_v45 = vsel %vm12425_vm12, %v2845_v7, %v2853_v3  ;;  %v2855_v20 = vrot.slane %v2853_v3, 4  ;;  %v9839_v11 = vpack.c.bf16 %v2376_v38, %v2376_v38  ;;  %4814 = vmatprep.subr.bf16.mxu1 %v15876_v31  ;;  %v3400_v3 = vpop.permute.xlu0 %3399  ;;  %3320 = vrot.lane.b32.xlu1 %v3270_v14, %s11095_s29  ;;  %v13262_v38 = vld [vmem:[#allocation2 + $0x30] sm:$0xff]   ;;  %15893 = vst [vmem:[#allocation72_spill] sm:$0xff] %v15892_v29  ;;  %v15903_v63 = vshll.u32 %v13144_v57, 16 }
 0x2aa   : > { %2951 = vst [vmem:[#allocation2 + $0x90] sm:$0xf] %v2854_v45  ;;  %v3303_v35 = vpop.permute.xlu1 %3302  ;;  %v13266_v45 = vld [vmem:[#allocation2 + $0x20] sm:$0xff]   ;;  %v4063_v14 = vsel %vm1728_vm15, %v12724_v28, %v3400_v3  ;;  %v3741_v37 = vrot.slane %v3739_v55, 3 }
 0x2ab   : > { %v2864_v33 = vsel %vm12425_vm12, %v2855_v20, %v2863_v36  ;;  %v2867_v39 = vshrl.u32 %v9839_v11, 16  ;;  %v2870_v7 = vshll.u32 %v9839_v11, 16  ;;  %v3994_v26 = vsel %vm1728_vm15, %v13262_v38, %v3303_v35  ;;  %v13268_v22 = vld [vmem:[#allocation2 + $0x88] sm:$0xff]  }
 0x2ac   : > { %2952 = vst [vmem:[#allocation2 + $0x94] sm:$0xf] %v2864_v33  ;;  %v3728_v20 = vshrl.u32 %v13247_v32, 16  ;;  %v3736_v11 = vshrl.u32 %v13253_v60, 16  ;;  %v3364_v43 = vrot.slane %v13268_v22, 1  ;;  %v15754_v35 = vshrl.u32 %v13224_v61, 16 }
 0x2ad   : > { %v2869_v56 = vrot.slane %v2867_v39, 6  ;;  %v2872_v2 = vrot.slane %v2870_v7, 7  ;;  %v15753_v33 = vshll.u32 %v13268_v22, 16  ;;  %v2956_v39 = vld [vmem:[#allocation2 + $0x98] sm:$0x7]  ;;  %v3748_v44 = vshll.u32 %v13266_v45, 16 }
 0x2ae   : > { %4687 = vmatmul.mubr.bf16.gmra.mrb[56].mxu1 %v3994_v26  ;;  %v3745_v26 = vshrl.u32 %v13266_v45, 16  ;;  %v13284_v28 = vsel %vm846_vm0, %v3362_v19, %v3364_v43  ;;  %v3273_v3 = vor.u32 %v15754_v35, %v3269_v6  ;;  %v15759_v35 = vshrl.u32 %v13268_v22, 16 }
 0x2af   : > { %v2873_v7 = vor.u32 %v2872_v2, %v2869_v56  ;;  %4694 = vmatprep.mubr.bf16.mxu1 %v4063_v14  ;;  %v3277_v36 = vrot.slane %v15753_v33, 1  ;;  %3415 = vrot.lane.b32.xlu0 %v13284_v28, %s11095_s29  ;;  %v3731_v56 = vshll.u32 %v13247_v32, 16  ;;  %v3305_v14 = vpop.permute.xlu1 %3304  ;;  %v3402_v33 = vpop.permute.xlu0 %3401  ;;  %v3738_v23 = vrot.slane %v3736_v11, 2 }
 0x2b0   : > { %v3747_v15 = vrot.slane %v3745_v26, 2  ;;  %v3750_v1 = vrot.slane %v3748_v44, 3  ;;  %v10761_v44 = vld [vmem:[%s15671_s6 + $0xe0] sm:$0xff]   ;;  %v4067_v55 = vsel %vm1728_vm15, %v12754_v12, %v3402_v33  ;;  %v3730_v11 = vrot.slane %v3728_v20, 2 }
 0x2b1   : > { %v2874_v5 = vsel %vm12425_vm12, %v2865_v48, %v2873_v7  ;;  %v13295_v2 = vld [vmem:[#allocation2 + $0x90] ss:$0 sps:$4 sm:$0x33]   ;;  %v3278_v6 = vsel %vm653_vm3, %v3273_v3, %v3277_v36  ;;  %v3281_v3 = vor.u32 %v15759_v35, %v3277_v36  ;;  %v3733_v26 = vrot.slane %v3731_v56, 3  ;;  %4815 = vmatpush1.bf16.msra.mxu1 %v10761_v44 }
 0x2b2   : > { %v2957_v19 = vsel %vm13277_vm8, %v2874_v5, %v2956_v39  ;;  %3322 = vrot.lane.b32.xlu1 %v3278_v6, %s11095_s29  ;;  %v3283_v48 = vshll.u32 %v13295_v2, 16  ;;  %v15761_v29 = vrot.slane %v13295_v2, 1  ;;  %v13307_v5 = vld [vmem:[#allocation2 + $0x38] sm:$0xff]   ;;  %v3754_v35 = vshrl.u32 %v12867_v58, 16  ;;  %4816 = vmatprep.subr.bf16.mxu1 %v15876_v31 }
 0x2b3   : > { %2958 = vst [vmem:[#allocation2 + $0x98] sm:$0x7] %v2957_v19  ;;  %v13304_v7 = vld [vmem:[#allocation2 + $0x90] sm:$0xff]   ;;  %v3997_v39 = vsel %vm1728_vm15, %v13307_v5, %v3305_v14  ;;  %v3287_v12 = vshrl.u32 %v13295_v2, 16  ;;  %v15894_v20 = vrot.slane %v13118_v30, 2  ;;  %v3742_v56 = vor.u32 %v3741_v37, %v3738_v23  ;;  %v3307_v23 = vpop.permute.xlu1 %3306  ;;  %v3404_v9 = vpop.permute.xlu0 %3403 }
 0x2b4   : > { %v3285_v19 = vrot.slane %v3283_v48, 1  ;;  %v3381_v6 = vrot.slane %v13304_v7, 1  ;;  %v13326_v36 = vsel %vm846_vm0, %v3364_v43, %v15761_v29  ;;  %v3710_v29 = vrot.slane %v13314_v59, 2 }
 0x2b5   : > { %v3521_v33 = vsel %vm1112_vm1, %v13233_v4, %v15894_v20  ;;  %v3712_v37 = vrot.slane %v13316_v18, 2  ;;  %v15897_v30 = vrot.slane %v13189_v51, 2  ;;  %v15898_v44 = vshrl.u32 %v13144_v57, 16 }
 0x2b6   : > { %4695 = vmatmul.mubr.bf16.gmra.mrb[60].mxu1 %v3997_v39  ;;  %v3286_v14 = vsel %vm653_vm3, %v3281_v3, %v3285_v19  ;;  %v3382_v48 = vsel %vm846_vm0, %v3364_v43, %v3381_v6  ;;  %v15895_v39 = vrot.slane %v13147_v49, 2  ;;  %v15896_v43 = vmov %v15894_v20 }
 0x2b7   : > { %4702 = vmatprep.mubr.bf16.mxu1 %v4067_v55  ;;  %3324 = vrot.lane.b32.xlu1 %v3286_v14, %s11095_s29  ;;  %v13346_v55 = vor.u32 %v3750_v1, %v3747_v15  ;;  %v13348_v14 = vld [vmem:[#allocation2 + $0x80] sm:$0xff]   ;;  %v3289_v4 = vor.u32 %v3287_v12, %v3285_v19  ;;  %v3734_v1 = vor.u32 %v3733_v26, %v3730_v11  ;;  %v3756_v46 = vrot.slane %v3754_v35, 2 }
 0x2b8   : > { %3417 = vrot.lane.b32.xlu0 %v3382_v48, %s11095_s29  ;;  %v13344_v3 = vsel %vm1112_vm1, %v15896_v43, %v15895_v39  ;;  %v10762_v48 = vld [vmem:[%s15671_s6 + $0xe8] sm:$0xff]   ;;  %v13360_v15 = vsel %vm1112_vm1, %v15895_v39, %v15897_v30  ;;  %v3482_v43 = vrot.slane %v15898_v44, 1  ;;  %v13368_v19 = vsel %vm1112_vm1, %v15899_v47, %v3710_v29  ;;  %v13382_v39 = vld [vmem:[#allocation2 + $0x40] sm:$0xff]  }
 0x2b9   : > { %15900 = vst [vmem:[#allocation73_spill] sm:$0xff] %v13368_v19  ;;  %v13371_v12 = vsel %vm1112_vm1, %v3710_v29, %v3712_v37  ;;  %v13375_v11 = vsel %vm15902_vm9, %v3734_v1, %v3742_v56  ;;  %v13378_v30 = vld [vmem:[#allocation2 + $0x88] sm:$0xff]   ;;  %v3483_v35 = vrot.slane %v15903_v63, 2  ;;  %v4000_v47 = vsel %vm1728_vm15, %v13382_v39, %v3307_v23  ;;  %4817 = vmatpush1.bf16.msra.mxu1 %v10762_v48 }
 0x2ba   : > { %v10728_v20 = vld [vmem:[#allocation2 + $0x98] ss:$0 sps:$4 sm:$0x33]   ;;  %15901 = vst [vmem:[#allocation74_spill] sm:$0xff] %v13371_v12  ;;  %v13388_v29 = vsel %vm15904_vm10, %v3742_v56, %v13346_v55  ;;  %v15905_v1 = vshrl.u32 %v13185_v41, 16  ;;  %v4071_v63 = vsel %vm1728_vm15, %v12774_v53, %v3404_v9  ;;  %v3763_v23 = vshrl.u32 %v12869_v27, 16  ;;  %4818 = vmatprep.subr.bf16.mxu1 %v15876_v31  ;;  %v3406_v12 = vpop.permute.xlu0 %3405 }
 0x2bb   : > { %3326 = vrot.lane.b32.xlu1 %v3289_v4, %s11095_s29  ;;  %v3383_v49 = vrot.slane %v10728_v20, 1  ;;  %v13390_v4 = vld [vmem:[#allocation2 + $0x90] sm:$0xff]   ;;  %v3714_v20 = vrot.slane %v13348_v14, 2  ;;  %v3484_v48 = vor.u32 %v3483_v35, %v3482_v43  ;;  %v13407_v9 = vld [vmem:[#allocation2 + $0x98] sm:$0xff]   ;;  %v4075_v40 = vsel %vm1728_vm15, %v12813_v17, %v3406_v12 }
 0x2bc   : > { %v3486_v44 = vrot.slane %v15905_v1, 1  ;;  %v10764_v56 = vld [vmem:[%s15671_s6 + $0xf0] sm:$0xff]   ;;  %v13404_v1 = vor.u32 %v3759_v8, %v3756_v46  ;;  %v13416_v35 = vld [vmem:[#allocation2 + $0x98] ss:$0 sps:$4 sm:$0x77]   ;;  %v15910_v46 = vshrl.u32 %v13224_v61, 16 }
 0x2bd   : > { %v3384_v26 = vsel %vm846_vm0, %v3381_v6, %v3383_v49  ;;  %v13410_v53 = vsel %vm1112_vm1, %v3712_v37, %v3714_v20  ;;  %v15907_v6 = vshll.u32 %v13185_v41, 16  ;;  %v13420_v8 = vsel %vm15908_vm2, %v12980_v21, %v3484_v48  ;;  %4819 = vmatpush1.bf16.msra.mxu1 %v10764_v56  ;;  %v10765_v37 = vld [vmem:[%s15671_s6 + $0xf8] sm:$0xff]  }
 0x2be   : > { %4703 = vmatmul.mubr.bf16.gmra.mrb[64].mxu1 %v4000_v47  ;;  %3419 = vrot.lane.b32.xlu0 %v3384_v26, %s11095_s29  ;;  %v3766_v47 = vshll.u32 %v12869_v27, 16  ;;  %15906 = vst [vmem:[#allocation75_spill] sm:$0xff] %v13410_v53  ;;  %15909 = vst [vmem:[#allocation76_spill] sm:$0xff] %v13420_v8  ;;  %v3716_v27 = vrot.slane %v13378_v30, 2  ;;  %v3490_v26 = vrot.slane %v15910_v46, 1  ;;  %v3718_v43 = vrot.slane %v13390_v4, 2  ;;  %v3309_v8 = vpop.permute.xlu1 %3308 }
 0x2bf   : > { %4710 = vmatprep.mubr.bf16.mxu1 %v4071_v63  ;;  %v3487_v19 = vrot.slane %v15907_v6, 2  ;;  %3556 = vrot.lane.b32.xlu1 %v3521_v33, %s11095_s29  ;;  %v15911_v33 = vshll.u32 %v13224_v61, 16  ;;  %v15912_v53 = vshrl.u32 %v13268_v22, 16  ;;  %v13435_v58 = vrot.slane %v3763_v23, 2 }
 0x2c0   : > { %4820 = vmatprep.subr.bf16.mxu1 %v15876_v31  ;;  %v13439_v56 = vsel %vm1112_vm1, %v3714_v20, %v3716_v27  ;;  %v15768_v17 = vrot.slane %v13407_v9, 2  ;;  %v3499_v20 = vshrl.u32 %v13304_v7, 16  ;;  %v3502_v23 = vshll.u32 %v13304_v7, 16 }
 0x2c1   : > { %v3488_v63 = vor.u32 %v3487_v19, %v3486_v44  ;;  %v3491_v6 = vrot.slane %v15911_v33, 2  ;;  %v3494_v21 = vrot.slane %v15912_v53, 1  ;;  %v15913_v19 = vshll.u32 %v13268_v22, 16  ;;  %4821 = vmatpush1.bf16.msra.mxu1 %v10765_v37 }
 0x2c2   : > { %3421 = vrot.lane.b32.xlu0 %v3383_v49, %s11095_s29  ;;  %v13448_v33 = vsel %vm1112_vm1, %v3716_v27, %v3718_v43  ;;  %v13456_v49 = vld [vmem:[#allocation2 + $0x48] sm:$0xff]   ;;  %v3501_v31 = vrot.slane %v3499_v20, 1  ;;  %v3967_v20 = vrot.slane %v13378_v30, 3  ;;  %vm15921_vm9 = vcmask 1044480  }
 0x2c3   : > { %v3495_v44 = vrot.slane %v15913_v19, 2  ;;  %v13445_v46 = vsel %vm15914_vm13, %v3484_v48, %v3488_v63  ;;  %v3492_v53 = vor.u32 %v3491_v6, %v3490_v26  ;;  %3558 = vrot.lane.b32.xlu1 %v13344_v3, %s11095_s29  ;;  %v3508_v19 = vshrl.u32 %v13416_v35, 16  ;;  %vm15922_vm10 = vmmov %vm15921_vm9 }
 0x2c4   : > { %v4003_v48 = vsel %vm1728_vm15, %v13456_v49, %v3309_v8  ;;  %v13466_v3 = vsel %vm1112_vm1, %v3718_v43, %v15768_v17  ;;  %v3511_v26 = vshll.u32 %v13416_v35, 16  ;;  %v3768_v6 = vrot.slane %v3766_v47, 3  ;;  %v11058_v47 = vld [vmem:[#allocation2 + $0x38] sm:$0xff]   ;;  %vm15923_vm13 = vmmov %vm15921_vm9 }
 0x2c5   : > { %v3496_v12 = vor.u32 %v3495_v44, %v3494_v21  ;;  %v13461_v27 = vsel %vm15915_vm14, %v3488_v63, %v3492_v53  ;;  %15916 = vst [vmem:[#allocation77_spill] sm:$0xff] %v13466_v3  ;;  %v15917_v21 = vmov 0.0   ;;  %v3504_v8 = vrot.slane %v3502_v23, 2  ;;  %vm15924_vm14 = vmmov %vm15921_vm9 }
 0x2c6   : > { %4711 = vmatmul.mubr.bf16.gmra.mrb[68].mxu1 %v4003_v48  ;;  %10010 = vmatprep.subr.bf16.mxu1 %v15917_v21  ;;  %v3510_v37 = vrot.slane %v3508_v19, 1  ;;  %v3513_v63 = vrot.slane %v3511_v26, 2  ;;  %v3961_v43 = vrot.slane %v13314_v59, 3  ;;  %v3963_v17 = vrot.slane %v13316_v18, 3 }
 0x2c7   : > { %v13471_v44 = vsel %vm15918_vm6, %v3492_v53, %v3496_v12  ;;  %4718 = vmatprep.mubr.bf16.mxu1 %v4075_v40  ;;  %3897 = vrot.lane.b32.xlu0 %v13375_v11, %s11095_s29  ;;  %v3775_v48 = vshll.u32 %v11058_v47, 16  ;;  %v3505_v3 = vor.u32 %v3504_v8, %v3501_v31  ;;  %v3965_v53 = vrot.slane %v13348_v14, 3  ;;  %v3408_v40 = vpop.permute.xlu0 %3407  ;;  %vm15927_vm6 = vmmov %vm15908_vm2 }
 0x2c8   : > { %15919 = vst [vmem:[#allocation78_spill] sm:$0xff] %v13471_v44  ;;  %3560 = vrot.lane.b32.xlu1 %v13360_v15, %s11095_s29  ;;  %v13481_v23 = vor.u32 %v3513_v63, %v3510_v37  ;;  %v15920_v11 = vrot.slane %v12939_v24, 3  ;;  %v13489_v26 = vsel %vm15922_vm10, %v3961_v43, %v3963_v17  ;;  %v3969_v15 = vrot.slane %v13390_v4, 3  ;;  %v3311_v44 = vpop.permute.xlu1 %3310  ;;  %vm15930_vm10 = vmmov %vm15921_vm9 }
 0x2c9   : > { %v13493_v31 = vsel %vm15908_vm2, %v3496_v12, %v3505_v3  ;;  %v13496_v8 = vsel %vm15923_vm13, %v3963_v17, %v3965_v53  ;;  %v13499_v37 = vsel %vm15924_vm14, %v3965_v53, %v3967_v20  ;;  %v15769_v24 = vrot.slane %v13407_v9, 3 }
 0x2ca   : > { %v13486_v19 = vsel %vm15921_vm9, %v15920_v11, %v3961_v43  ;;  %v15925_v63 = vrot.slane %v13220_v50, 2  ;;  %v15926_v47 = vrot.slane %v13189_v51, 2  ;;  %v3528_v12 = vrot.slane %v13262_v38, 2  ;;  %v13527_v38 = vld [vmem:[#allocation2 + $0x50] sm:$0xff]  }
 0x2cb   : > { %3899 = vrot.lane.b32.xlu0 %v13388_v29, %s11095_s29  ;;  %v13512_v17 = vsel %vm15927_vm6, %v3505_v3, %v13481_v23  ;;  %v13515_v53 = vsel %vm15921_vm9, %v3967_v20, %v3969_v15  ;;  %v4079_v11 = vsel %vm1728_vm15, %v12848_v54, %v3408_v40  ;;  %v15929_v51 = vshrl.u32 %v12871_v0, 16 }
 0x2cc   : > { %v3527_v43 = vsel %vm1112_vm1, %v15926_v47, %v15925_v63  ;;  %15928 = vst [vmem:[#allocation79_spill] sm:$0xff] %v13515_v53  ;;  %v13525_v29 = vsel %vm15930_vm10, %v3969_v15, %v15769_v24  ;;  %v4006_v3 = vsel %vm1728_vm15, %v13527_v38, %v3311_v44  ;;  %v3777_v20 = vrot.slane %v3775_v48, 3  ;;  %v11060_v47 = vld [vmem:[#allocation2 + $0x40] sm:$0xff]   ;;  %v11061_v24 = vld [vmem:[#allocation2 + $0x48] sm:$0xff]  }
 0x2cd   : > { %3562 = vrot.lane.b32.xlu1 %v3527_v43, %s11095_s29  ;;  %v3774_v63 = vrot.slane %v15929_v51, 2  ;;  %v3781_v53 = vshrl.u32 %v11060_v47, 16  ;;  %v3784_v43 = vshll.u32 %v11060_v47, 16  ;;  %vm15931_vm2 = vsmask.f32 5376  ;;  %v3313_v47 = vpop.permute.xlu1 %3312 }
 0x2ce   : > { %4719 = vmatmul.mubr.bf16.gmra.mrb[72].mxu1 %v4006_v3  ;;  %v3761_v54 = vsel %vm15931_vm2, %v13346_v55, %v13404_v1  ;;  %v3769_v0 = vor.u32 %v3768_v6, %v13435_v58  ;;  %v15932_v40 = vrot.slane %v13220_v50, 2  ;;  %v3530_v51 = vrot.slane %v13307_v5, 2  ;;  %vm15933_vm13 = vmmov %vm15931_vm2  ;;  %v11062_v5 = vld [vmem:[#allocation2 + $0x58] sm:$0xff]  }
 0x2cf   : > { %3901 = vrot.lane.b32.xlu0 %v3761_v54, %s11095_s29  ;;  %4726 = vmatprep.mubr.bf16.mxu1 %v4079_v11  ;;  %v3778_v44 = vor.u32 %v3777_v20, %v3774_v63  ;;  %v3783_v48 = vrot.slane %v3781_v53, 2  ;;  %v3786_v3 = vrot.slane %v3784_v43, 3  ;;  %v3790_v58 = vshrl.u32 %v11061_v24, 16  ;;  %vm15934_vm14 = vmmov %vm15931_vm2  ;;  %v11063_v43 = vld [vmem:[#allocation2 + $0x50] sm:$0xff]  }
 0x2d0   : > { %v3529_v15 = vsel %vm1112_vm1, %v15932_v40, %v3528_v12  ;;  %v3770_v55 = vsel %vm15933_vm13, %v13404_v1, %v3769_v0  ;;  %v3793_v6 = vshll.u32 %v11061_v24, 16  ;;  %v3531_v50 = vsel %vm1112_vm1, %v3528_v12, %v3530_v51  ;;  %vm15935_vm6 = vmmov %vm15931_vm2 }
 0x2d1   : > { %3564 = vrot.lane.b32.xlu1 %v3529_v15, %s11095_s29  ;;  %v3532_v54 = vrot.slane %v13382_v39, 2  ;;  %v4009_v11 = vsel %vm1728_vm15, %v11062_v5, %v3313_v47  ;;  %v3779_v53 = vsel %vm15934_vm14, %v3769_v0, %v3778_v44  ;;  %v3787_v63 = vor.u32 %v3786_v3, %v3783_v48  ;;  %v11064_v47 = vld [vmem:[#allocation2 + $0x58] sm:$0xff]   ;;  %vm15936_vm9 = vmmov %vm15931_vm2 }
 0x2d2   : > { %v3792_v20 = vrot.slane %v3790_v58, 2  ;;  %v3795_v1 = vrot.slane %v3793_v6, 3  ;;  %v3799_v40 = vshrl.u32 %v11063_v43, 16  ;;  %v3802_v24 = vshll.u32 %v11063_v43, 16  ;;  %vm15937_vm10 = vmmov %vm15931_vm2 }
 0x2d3   : > { %3903 = vrot.lane.b32.xlu0 %v3770_v55, %s11095_s29  ;;  %v3533_v12 = vsel %vm1112_vm1, %v3530_v51, %v3532_v54  ;;  %v3534_v39 = vrot.slane %v13456_v49, 2  ;;  %v3788_v15 = vsel %vm15935_vm6, %v3778_v44, %v3787_v63  ;;  %v3808_v55 = vshrl.u32 %v11064_v47, 16  ;;  %vm15938_vm13 = vmmov %vm15931_vm2 }
 0x2d4   : > { %v3796_v0 = vor.u32 %v3795_v1, %v3792_v20  ;;  %v3801_v48 = vrot.slane %v3799_v40, 2  ;;  %v3804_v3 = vrot.slane %v3802_v24, 3  ;;  %v3811_v58 = vshll.u32 %v11064_v47, 16  ;;  %vm15939_vm14 = vmmov %vm15931_vm2 }
 0x2d5   : > { %3566 = vrot.lane.b32.xlu1 %v3531_v50, %s11095_s29  ;;  %v3535_v6 = vsel %vm1112_vm1, %v3532_v54, %v3534_v39  ;;  %v3536_v51 = vrot.slane %v13527_v38, 2  ;;  %v11065_v50 = vld [vmem:[#allocation2 + $0x60] sm:$0xff]   ;;  %v3810_v43 = vrot.slane %v3808_v55, 2  ;;  %v3538_v1 = vrot.slane %v11062_v5, 2  ;;  %v11066_v38 = vld [vmem:[#allocation2 + $0x68] sm:$0xff]   ;;  %vm15940_vm6 = vmmov %vm15931_vm2 }
 0x2d6   : > { %4727 = vmatmul.mubr.bf16.gmra.mrb[76].mxu1 %v4009_v11  ;;  %v3817_v49 = vshrl.u32 %v11065_v50, 16  ;;  %v3820_v11 = vshll.u32 %v11065_v50, 16  ;;  %v3805_v44 = vor.u32 %v3804_v3, %v3801_v48  ;;  %v3826_v24 = vshrl.u32 %v11066_v38, 16  ;;  %v13565_v55 = vld [vmem:[#allocation2 + $0x60] sm:$0xff]  }
 0x2d7   : > { %3905 = vrot.lane.b32.xlu0 %v3779_v53, %s11095_s29  ;;  %v3797_v53 = vsel %vm15936_vm9, %v3787_v63, %v3796_v0  ;;  %v3537_v20 = vsel %vm1112_vm1, %v3534_v39, %v3536_v51  ;;  %v3539_v63 = vsel %vm1112_vm1, %v3536_v51, %v3538_v1  ;;  %v3540_v39 = vrot.slane %v13565_v55, 2  ;;  %v13574_v51 = vld [vmem:[#allocation2 + $0x68] sm:$0xff]   ;;  %vm15941_vm9 = vmmov %vm15931_vm2 }
 0x2d8   : > { %v3819_v54 = vrot.slane %v3817_v49, 2  ;;  %v3822_v40 = vrot.slane %v3820_v11, 3  ;;  %v3806_v47 = vsel %vm15937_vm10, %v3796_v0, %v3805_v44  ;;  %v3828_v48 = vrot.slane %v3826_v24, 2  ;;  %vm15942_vm10 = vmmov %vm15931_vm2 }
 0x2d9   : > { %3568 = vrot.lane.b32.xlu1 %v3533_v12, %s11095_s29  ;;  %v3813_v12 = vrot.slane %v3811_v58, 3  ;;  %v3835_v50 = vshrl.u32 %v13314_v59, 16  ;;  %v3838_v0 = vshll.u32 %v13314_v59, 16  ;;  %v3541_v49 = vsel %vm1112_vm1, %v3538_v1, %v3540_v39 }
 0x2da   : > { %v3823_v5 = vor.u32 %v3822_v40, %v3819_v54  ;;  %v3542_v11 = vrot.slane %v13574_v51, 2  ;;  %v3847_v54 = vshll.u32 %v13316_v18, 16  ;;  %v3544_v1 = vrot.slane %v13144_v57, 2 }
 0x2db   : > { %3907 = vrot.lane.b32.xlu0 %v3788_v15, %s11095_s29  ;;  %v3829_v15 = vshll.u32 %v11066_v38, 16  ;;  %v3853_v40 = vshrl.u32 %v13348_v14, 16  ;;  %v3856_v38 = vshll.u32 %v13348_v14, 16 }
 0x2dc   : > { %v3543_v59 = vsel %vm1112_vm1, %v3540_v39, %v3542_v11 }
 0x2dd   : > { %3570 = vrot.lane.b32.xlu1 %v3535_v6, %s11095_s29  ;;  %v3814_v6 = vor.u32 %v3813_v12, %v3810_v43  ;;  %v3831_v3 = vrot.slane %v3829_v15, 3  ;;  %v3837_v12 = vrot.slane %v3835_v50, 2  ;;  %v3855_v39 = vrot.slane %v3853_v40, 2 }
 0x2df   : > { %3909 = vrot.lane.b32.xlu0 %v3797_v53, %s11095_s29  ;;  %v3815_v58 = vsel %vm15931_vm2, %v3805_v44, %v3814_v6  ;;  %v3824_v53 = vsel %vm15938_vm13, %v3814_v6, %v3823_v5  ;;  %v3832_v43 = vor.u32 %v3831_v3, %v3828_v48  ;;  %v3844_v44 = vshrl.u32 %v13316_v18, 16  ;;  %vm15943_vm13 = vmmov %vm15931_vm2 }
 0x2e0   : > { %v3849_v6 = vrot.slane %v3847_v54, 3  ;;  %v3546_v18 = vrot.slane %v13185_v41, 2  ;;  %v3858_v48 = vrot.slane %v3856_v38, 3  ;;  %v3862_v3 = vshrl.u32 %v13378_v30, 16 }
 0x2e1   : > { %3572 = vrot.lane.b32.xlu1 %v3537_v20, %s11095_s29  ;;  %v3840_v20 = vrot.slane %v3838_v0, 3  ;;  %v3833_v24 = vsel %vm15939_vm14, %v3823_v5, %v3832_v43  ;;  %v3548_v0 = vrot.slane %v13224_v61, 2  ;;  %vm15944_vm14 = vmmov %vm15931_vm2 }
 0x2e2   : > { %v3547_v50 = vsel %vm1112_vm1, %v3544_v1, %v3546_v18 }
 0x2e3   : > { %3911 = vrot.lane.b32.xlu0 %v3806_v47, %s11095_s29  ;;  %v3841_v15 = vor.u32 %v3840_v20, %v3837_v12  ;;  %v3846_v47 = vrot.slane %v3844_v44, 2  ;;  %v3871_v20 = vshrl.u32 %v13390_v4, 16  ;;  %v3550_v44 = vrot.slane %v13268_v22, 2 }
 0x2e5   : > { %3574 = vrot.lane.b32.xlu1 %v3539_v63, %s11095_s29  ;;  %v3545_v63 = vsel %vm1112_vm1, %v3542_v11, %v3544_v1  ;;  %v3842_v14 = vsel %vm15940_vm6, %v3832_v43, %v3841_v15  ;;  %v3850_v5 = vor.u32 %v3849_v6, %v3846_v47  ;;  %v3864_v11 = vrot.slane %v3862_v3, 2  ;;  %v13607_v1 = vld [vmem:[#allocation2 + $0xa0] ss:$0 sps:$4 sm:$0xff]   ;;  %vm15945_vm6 = vmmov %vm15931_vm2 }
 0x2e6   : > { %v3549_v43 = vsel %vm1112_vm1, %v3546_v18, %v3548_v0  ;;  %v3873_v40 = vrot.slane %v3871_v20, 2  ;;  %v3552_v47 = vrot.slane %v13304_v7, 2  ;;  %v3889_v6 = vshrl.u32 %v13607_v1, 16 }
 0x2e7   : > { %3913 = vrot.lane.b32.xlu0 %v3815_v58, %s11095_s29  ;;  %v3865_v58 = vshll.u32 %v13378_v30, 16  ;;  %v3851_v12 = vsel %vm15941_vm9, %v3841_v15, %v3850_v5  ;;  %v3874_v30 = vshll.u32 %v13390_v4, 16  ;;  %v3883_v15 = vshll.u32 %v13407_v9, 16 }
 0x2e8   : > { %v3551_v4 = vsel %vm1112_vm1, %v3548_v0, %v3550_v44  ;;  %vm15949_vm9 = vsmask.f32 6400 }
 0x2e9   : > { %3576 = vrot.lane.b32.xlu1 %v3541_v49, %s11095_s29  ;;  %v3859_v49 = vor.u32 %v3858_v48, %v3855_v39  ;;  %v3876_v38 = vrot.slane %v3874_v30, 3  ;;  %v3885_v3 = vrot.slane %v3883_v15, 3 }
 0x2eb   : > { %3915 = vrot.lane.b32.xlu0 %v3824_v53, %s11095_s29  ;;  %v3867_v53 = vrot.slane %v3865_v58, 3  ;;  %v3860_v54 = vsel %vm15942_vm10, %v3850_v5, %v3859_v49  ;;  %v3877_v39 = vor.u32 %v3876_v38, %v3873_v40  ;;  %v3553_v58 = vsel %vm1112_vm1, %v3550_v44, %v3552_v47  ;;  %vm15952_vm10 = vmmov %vm15949_vm9 }
 0x2ed   : > { %3578 = vrot.lane.b32.xlu1 %v3543_v59, %s11095_s29  ;;  %v3868_v59 = vor.u32 %v3867_v53, %v3864_v11 }
 0x2ef   : > { %3917 = vrot.lane.b32.xlu0 %v3833_v24, %s11095_s29  ;;  %v3880_v24 = vshrl.u32 %v13407_v9, 16  ;;  %v3869_v18 = vsel %vm15931_vm2, %v3859_v49, %v3868_v59  ;;  %v3878_v7 = vsel %vm15943_vm13, %v3868_v59, %v3877_v39  ;;  %vm15957_vm2 = vmmov %vm15949_vm9 }
 0x2f0   : > { %vm15962_vm13 = vmmov %vm15957_vm2 }
 0x2f1   : > { %3580 = vrot.lane.b32.xlu1 %v3545_v63, %s11095_s29  ;;  %v3892_v63 = vshll.u32 %v13607_v1, 16  ;;  %v3882_v48 = vrot.slane %v3880_v24, 2 }
 0x2f3   : > { %3919 = vrot.lane.b32.xlu0 %v3842_v14, %s11095_s29  ;;  %v3554_v14 = vrot.slane %v13416_v35, 2  ;;  %v3886_v5 = vor.u32 %v3885_v3, %v3882_v48  ;;  %v3894_v0 = vrot.slane %v3892_v63, 3  ;;  %v3315_v35 = vpop.permute.xlu1 %3314  ;;  %v15946_v48 = vrot.slane %v13295_v2, 1 }
 0x2f4   : > { %v3688_v3 = vrot.slane %v13253_v60, 2 }
 0x2f5   : > { %3582 = vrot.lane.b32.xlu1 %v3547_v50, %s11095_s29  ;;  %v3891_v50 = vrot.slane %v3889_v6, 2  ;;  %v3555_v11 = vsel %vm1112_vm1, %v3552_v47, %v3554_v14  ;;  %v3887_v49 = vsel %vm15944_vm14, %v3877_v39, %v3886_v5  ;;  %vm15965_vm14 = vmmov %vm15957_vm2 }
 0x2f7   : > { %3921 = vrot.lane.b32.xlu0 %v3851_v12, %s11095_s29  ;;  %v3895_v53 = vor.u32 %v3894_v0, %v3891_v50  ;;  %v15948_v0 = vshll.u32 %v12518_v34, 16 }
 0x2f9   : > { %3584 = vrot.lane.b32.xlu1 %v3549_v43, %s11095_s29  ;;  %v3896_v12 = vsel %vm15945_vm6, %v3886_v5, %v3895_v53  ;;  %v4012_v43 = vsel %vm1728_vm15, %v13565_v55, %v3315_v35  ;;  %v3687_v5 = vrot.slane %v13247_v32, 2  ;;  %v3435_v2 = vrot.slane %v15948_v0, 2  ;;  %vm15973_vm6 = vmmov %vm15957_vm2 }
 0x2fb   : > { %3923 = vrot.lane.b32.xlu0 %v3860_v54, %s11095_s29 }
 0x2fd   : > { %3586 = vrot.lane.b32.xlu1 %v3551_v4, %s11095_s29 }
 0x2ff   : > { %3925 = vrot.lane.b32.xlu0 %v3869_v18, %s11095_s29 }
 0x301   : > { %3588 = vrot.lane.b32.xlu1 %v3553_v58, %s11095_s29  ;;  %v3427_v58 = vshrl.u32 %v12547_v10, 16 }
 0x303   : > { %3927 = vrot.lane.b32.xlu0 %v3878_v7, %s11095_s29  ;;  %v3429_v60 = vrot.slane %v3427_v58, 1 }
 0x305   : > { %3590 = vrot.lane.b32.xlu1 %v3555_v11, %s11095_s29 }
 0x307   : > { %3929 = vrot.lane.b32.xlu0 %v3887_v49, %s11095_s29  ;;  %v3689_v49 = vsel %vm1112_vm1, %v3687_v5, %v3688_v3 }
 0x309   : > { %3592 = vrot.lane.b32.xlu1 %v3554_v14, %s11095_s29  ;;  %v3430_v14 = vshll.u32 %v12547_v10, 16 }
 0x30b   : > { %v3410_v20 = vpop.permute.xlu0 %3409  ;;  %3931 = vrot.lane.b32.xlu0 %v3896_v12, %s11095_s29  ;;  %v3690_v12 = vrot.slane %v13266_v45, 2 }
 0x30c   : > { %v4083_v30 = vsel %vm1728_vm15, %v12908_v62, %v3410_v20 }
 0x30d   : > { %4734 = vmatprep.mubr.bf16.mxu1 %v4083_v30  ;;  %v3317_v44 = vpop.permute.xlu1 %3316 }
 0x30e   : > { %4735 = vmatmul.mubr.bf16.gmra.mrb[80].mxu1 %v4012_v43  ;;  %v4015_v40 = vsel %vm1728_vm15, %v13574_v51, %v3317_v44  ;;  %v15950_v44 = vshrl.u32 %v12569_v25, 16 }
 0x30f   : > { %3933 = vrot.lane.b32.xlu0 %v3895_v53, %s11095_s29  ;;  %v3432_v53 = vrot.slane %v3430_v14, 2 }
 0x311   : > { %v3412_v54 = vpop.permute.xlu0 %3411  ;;  %v3433_v32 = vor.u32 %v3432_v53, %v3429_v60  ;;  %v15963_v53 = vld [vmem:[#allocation38_spill] sm:$0xff] }
 0x312   : > { %v4087_v59 = vsel %vm1728_vm15, %v13164_v52, %v3412_v54  ;;  %v3438_v54 = vrot.slane %v15950_v44, 1 }
 0x313   : > { %4742 = vmatprep.mubr.bf16.mxu1 %v4087_v59  ;;  %v15951_v59 = vshll.u32 %v12569_v25, 16  ;;  %v10768_v25 = vld [vmem:[%s15671_s6 + $0x110] sm:$0xff]  }
 0x314   : > { %v3319_v38 = vpop.permute.xlu1 %3318 }
 0x315   : > { %v4018_v55 = vsel %vm1728_vm15, %v13144_v57, %v3319_v38 }
 0x316   : > { %4743 = vmatmul.mubr.bf16.gmra.mrb[84].mxu1 %v4015_v40  ;;  %v3439_v40 = vrot.slane %v15951_v59, 2  ;;  %v15967_v59 = vld [vmem:[#allocation31_spill] sm:$0xff] }
 0x31a   : > { %v3414_v24 = vpop.permute.xlu0 %3413 }
 0x31b   : > { %v4091_v62 = vsel %vm1728_vm15, %v13203_v42, %v3414_v24  ;;  %v3321_v15 = vpop.permute.xlu1 %3320  ;;  %v3691_v24 = vsel %vm1112_vm1, %v3688_v3, %v3690_v12 }
 0x31c   : > { %4750 = vmatprep.mubr.bf16.mxu1 %v4091_v62  ;;  %v4021_v51 = vsel %vm1728_vm15, %v13185_v41, %v3321_v15  ;;  %v10767_v62 = vld [vmem:[%s15671_s6 + $0x108] sm:$0xff]  }
 0x31e   : > { %4751 = vmatmul.mubr.bf16.gmra.mrb[88].mxu1 %v4018_v55  ;;  %v3440_v55 = vor.u32 %v3439_v40, %v3438_v54  ;;  %v15968_v40 = vshrl.u32 %v15967_v59, 16 }
 0x321   : > { %v3416_v4 = vpop.permute.xlu0 %3415 }
 0x322   : > { %v4095_v52 = vsel %vm1728_vm15, %v13241_v13, %v3416_v4 }
 0x323   : > { %4758 = vmatprep.mubr.bf16.mxu1 %v4095_v52 }
 0x324   : > { %v3323_v47 = vpop.permute.xlu1 %3322 }
 0x325   : > { %v4024_v57 = vsel %vm1728_vm15, %v13224_v61, %v3323_v47 }
 0x326   : > { %4759 = vmatmul.mubr.bf16.gmra.mrb[92].mxu1 %v4021_v51  ;;  %v15953_v51 = vshrl.u32 %v12604_v16, 16 }
 0x328   : > { %v3442_v47 = vrot.slane %v15953_v51, 1 }
 0x329   : > { %v3325_v18 = vpop.permute.xlu1 %3324 }
 0x32a   : > { %v3418_v6 = vpop.permute.xlu0 %3417  ;;  %v4027_v41 = vsel %vm1728_vm15, %v13268_v22, %v3325_v18  ;;  %v15947_v22 = vshrl.u32 %v12518_v34, 16  ;;  %v10766_v34 = vld [vmem:[%s15671_s6 + $0x100] sm:$0xff]  }
 0x32b   : > { %v4099_v42 = vsel %vm1728_vm15, %v13284_v28, %v3418_v6  ;;  %v15954_v6 = vshll.u32 %v12604_v16, 16 }
 0x32c   : > { %4766 = vmatprep.mubr.bf16.mxu1 %v4099_v42  ;;  %v3434_v50 = vrot.slane %v15947_v22, 1  ;;  %v15961_v22 = vld [vmem:[#allocation37_spill] sm:$0xff] }
 0x32d   : > { %v3327_v61 = vpop.permute.xlu1 %3326  ;;  %v3443_v42 = vrot.slane %v15954_v6, 2 }
 0x32e   : > { %4767 = vmatmul.mubr.bf16.gmra.mrb[96].mxu1 %v4024_v57  ;;  %v3436_v10 = vor.u32 %v3435_v2, %v3434_v50 }
 0x330   : > { %v3420_v63 = vpop.permute.xlu0 %3419  ;;  %v3437_v43 = vsel %vm15949_vm9, %v3433_v32, %v3436_v10  ;;  %v3441_v52 = vsel %vm15952_vm10, %v3436_v10, %v3440_v55  ;;  %v15964_v32 = vld [vmem:[#allocation40_spill] sm:$0xff]  ;;  %vm15976_vm9 = vmmov %vm15957_vm2  ;;  %vm15991_vm10 = vcmask 1044480  }
 0x331   : > { %v4103_v13 = vsel %vm1728_vm15, %v13326_v36, %v3420_v63  ;;  %v10763_v36 = vld [vmem:[#allocation2 + $0x90] ss:$0 sps:$4 sm:$0x11]   ;;  %v3557_v20 = vpop.permute.xlu1 %3556  ;;  %v15955_v63 = vld [vmem:[#allocation36_spill] sm:$0xff] }
 0x332   : > { %4774 = vmatprep.mubr.bf16.mxu1 %v4103_v13  ;;  %v4031_v11 = vsel %vm1728_vm15, %v10763_v36, %v3327_v61  ;;  %v4111_v38 = vsel %vm1728_vm15, %v3437_v43, %v3557_v20  ;;  %v15956_v18 = vrot.slane %v15955_v63, 2  ;;  %v15958_v61 = vld [vmem:[#allocation27_spill] sm:$0xff] }
 0x333   : > { %v15959_v58 = vshrl.u32 %v15958_v61, 16 }
 0x334   : > { %v3422_v39 = vpop.permute.xlu0 %3421  ;;  %v3693_v13 = vsel %vm1112_vm1, %v3690_v12, %v15956_v18 }
 0x335   : > { %v4107_v28 = vsel %vm1728_vm15, %v15946_v48, %v3422_v39  ;;  %v3559_v15 = vpop.permute.xlu1 %3558  ;;  %v10770_v39 = vld [vmem:[%s15671_s6 + $0x118] sm:$0xff]   ;;  %v3444_v48 = vor.u32 %v3443_v42, %v3442_v47  ;;  %v3446_v14 = vrot.slane %v15959_v58, 1  ;;  %v15972_v47 = vld [vmem:[#allocation41_spill] sm:$0xff] }
 0x336   : > { %4775 = vmatmul.mubr.bf16.gmra.mrb[100].mxu1 %v4027_v41  ;;  %v4115_v57 = vsel %vm1728_vm15, %v3441_v52, %v3559_v15  ;;  %v15971_v15 = vld [vmem:[#allocation42_spill] sm:$0xff] }
 0x337   : > { %4782 = vmatprep.mubr.bf16.mxu1 %v4107_v28  ;;  %v3445_v3 = vsel %vm15957_vm2, %v3440_v55, %v3444_v48  ;;  %vm15992_vm2 = vmmov %vm15991_vm10 }
 0x339   : > { %v3898_v7 = vpop.permute.xlu0 %3897 }
 0x33a   : > { %v4187_v35 = vsel %vm1728_vm15, %v3689_v49, %v3898_v7  ;;  %v3561_v16 = vpop.permute.xlu1 %3560  ;;  %v15960_v7 = vshll.u32 %v15958_v61, 16 }
 0x33b   : > { %v4119_v5 = vsel %vm1728_vm15, %v3445_v3, %v3561_v16 }
 0x33c   : > { %v3447_v36 = vrot.slane %v15960_v7, 2 }
 0x33d   : > { %v3900_v30 = vpop.permute.xlu0 %3899 }
 0x33e   : > { %4783 = vmatmul.mubr.bf16.gmra.mrb[104].mxu1 %v4031_v11  ;;  %v4191_v45 = vsel %vm1728_vm15, %v3691_v24, %v3900_v30  ;;  %v3448_v0 = vor.u32 %v3447_v36, %v3446_v14  ;;  %v15969_v24 = vshll.u32 %v15967_v59, 16  ;;  %v15978_v14 = vld [vmem:[#allocation48_spill] sm:$0xff]  ;;  %v15979_v36 = vld [vmem:[#allocation47_spill] sm:$0xff] }
 0x33f   : > { %4822 = vmatprep.mubr.bf16.mxu1 %v4187_v35  ;;  %v3563_v2 = vpop.permute.xlu1 %3562 }
 0x340   : > { %v3449_v49 = vsel %vm15962_vm13, %v3444_v48, %v3448_v0  ;;  %v3453_v20 = vsel %vm15965_vm14, %v3448_v0, %v15964_v32  ;;  %v15980_v0 = vld [vmem:[#allocation50_spill] sm:$0xff]  ;;  %vm15994_vm13 = vmmov %vm15992_vm2 }
 0x341   : > { %v3902_v4 = vpop.permute.xlu0 %3901  ;;  %v4123_v60 = vsel %vm1728_vm15, %v3449_v49, %v3563_v2 }
 0x342   : > { %v4195_v41 = vsel %vm1728_vm15, %v3693_v13, %v3902_v4 }
 0x343   : > { %v3565_v10 = vpop.permute.xlu1 %3564 }
 0x344   : > { %v4127_v30 = vsel %vm1728_vm15, %v3453_v20, %v3565_v10 }
 0x345   : > { %v3904_v28 = vpop.permute.xlu0 %3903 }
 0x346   : > { %4823 = vmatmul.mubr.bf16.vlgmr.msra.gmra.mrb[32].mxu1 %v4111_v38  ;;  %v4199_v50 = vsel %vm1728_vm15, %v15961_v22, %v3904_v28  ;;  %v3458_v38 = vrot.slane %v15968_v40, 1  ;;  %v15977_v28 = vld [vmem:[#allocation46_spill] sm:$0xff] }
 0x347   : > { %4830 = vmatprep.mubr.bf16.mxu1 %v4191_v45  ;;  %10011 = vmatpush3.bf16.msra.mxu1 %v10766_v34  ;;  %v15966_v34 = vld [vmem:[#allocation39_spill] sm:$0xff]  ;;  %v3567_v44 = vpop.permute.xlu1 %3566  ;;  %v3459_v45 = vrot.slane %v15969_v24, 2 }
 0x348   : > { %10012 = vmatprep.subr.bf16.mxu1 %v15917_v21 }
 0x349   : > { %v3906_v11 = vpop.permute.xlu0 %3905 }
 0x34a   : > { %v4203_v35 = vsel %vm1728_vm15, %v15963_v53, %v3906_v11  ;;  %v15981_v11 = vld [vmem:[#allocation49_spill] sm:$0xff] }
 0x34b   : > { %10013 = vmatpush3.bf16.msra.mxu1 %v10767_v62  ;;  %v15970_v62 = vld [vmem:[#allocation43_spill] sm:$0xff]  ;;  %v3569_v52 = vpop.permute.xlu1 %3568 }
 0x34c   : > { %10014 = vmatprep.subr.bf16.mxu1 %v15917_v21  ;;  %v4131_v55 = vsel %vm1728_vm15, %v15970_v62, %v3567_v44  ;;  %v15985_v44 = vld [vmem:[#allocation74_spill] sm:$0xff] }
 0x34d   : > { %v3908_v12 = vpop.permute.xlu0 %3907 }
 0x34e   : > { %4831 = vmatmul.mubr.bf16.gmra.mrb[36].mxu1 %v4115_v57  ;;  %v4207_v43 = vsel %vm1728_vm15, %v15966_v34, %v3908_v12  ;;  %v15974_v57 = vld [vmem:[#allocation44_spill] sm:$0xff]  ;;  %v15983_v12 = vld [vmem:[#allocation73_spill] sm:$0xff] }
 0x34f   : > { %4838 = vmatprep.mubr.bf16.mxu1 %v4195_v41  ;;  %10015 = vmatpush3.bf16.msra.mxu1 %v10768_v25  ;;  %v3460_v25 = vor.u32 %v3459_v45, %v3458_v38  ;;  %v3571_v13 = vpop.permute.xlu1 %3570  ;;  %v15984_v34 = vld [vmem:[#allocation52_spill] sm:$0xff]  ;;  %v15987_v45 = vld [vmem:[#allocation75_spill] sm:$0xff] }
 0x350   : > { %10016 = vmatprep.subr.bf16.mxu1 %v15917_v21  ;;  %v15986_v38 = vld [vmem:[#allocation76_spill] sm:$0xff] }
 0x351   : > { %v3910_v54 = vpop.permute.xlu0 %3909  ;;  %v3461_v6 = vsel %vm15973_vm6, %v15972_v47, %v3460_v25 }
 0x352   : > { %v4211_v4 = vsel %vm1728_vm15, %v15971_v15, %v3910_v54  ;;  %v4135_v42 = vsel %vm1728_vm15, %v3461_v6, %v3569_v52 }
 0x353   : > { %10017 = vmatpush3.bf16.msra.mxu1 %v10770_v39  ;;  %v15975_v39 = vld [vmem:[#allocation45_spill] sm:$0xff]  ;;  %v3573_v61 = vpop.permute.xlu1 %3572 }
 0x354   : > { %v3465_v48 = vsel %vm15976_vm9, %v3460_v25, %v15975_v39  ;;  %v4143_v7 = vsel %vm1728_vm15, %v15978_v14, %v3573_v61 }
 0x355   : > { %v3912_v51 = vpop.permute.xlu0 %3911  ;;  %v4139_v16 = vsel %vm1728_vm15, %v3465_v48, %v3571_v13  ;;  %v10769_v13 = vld [vmem:[#allocation2 + $0xa0] ss:$0 sps:$4 sm:$0x77]  }
 0x356   : > { %4839 = vmatmul.mubr.bf16.gmra.mrb[40].mxu1 %v4119_v5  ;;  %v4215_v18 = vsel %vm1728_vm15, %v15974_v57, %v3912_v51  ;;  %v3722_v39 = vrot.slane %v10769_v13, 2  ;;  %v15997_v13 = vld [vmem:[#allocation55_spill] sm:$0xff] }
 0x357   : > { %4846 = vmatprep.mubr.bf16.mxu1 %v4199_v50  ;;  %v3575_v22 = vpop.permute.xlu1 %3574 }
 0x358   : > { %v4147_v2 = vsel %vm1728_vm15, %v15980_v0, %v3575_v22  ;;  %v11069_v22 = vld [vmem:[#allocation2 + $0x14] sm:$0xf]  ;;  %v11070_v0 = vld [vmem:[#allocation2 + $0x18] sm:$0xff]  }
 0x359   : > { %v3914_v41 = vpop.permute.xlu0 %3913 }
 0x35a   : > { %v4219_v3 = vsel %vm1728_vm15, %v15977_v28, %v3914_v41  ;;  %v15989_v41 = vld [vmem:[#allocation77_spill] sm:$0xff] }
 0x35d   : > { %v3916_v58 = vpop.permute.xlu0 %3915 }
 0x35e   : > { %4847 = vmatmul.mubr.bf16.gmra.mrb[44].mxu1 %v4123_v60  ;;  %v4223_v5 = vsel %vm1728_vm15, %v15979_v36, %v3916_v58  ;;  %v3577_v60 = vpop.permute.xlu1 %3576 }
 0x35f   : > { %4854 = vmatprep.mubr.bf16.mxu1 %v4203_v35  ;;  %v15982_v35 = vld [vmem:[#allocation51_spill] sm:$0xff] }
 0x360   : > { %v4151_v10 = vsel %vm1728_vm15, %v15982_v35, %v3577_v60 }
 0x361   : > { %v3918_v50 = vpop.permute.xlu0 %3917 }
 0x362   : > { %v4227_v49 = vsel %vm1728_vm15, %v15981_v11, %v3918_v50  ;;  %v3579_v20 = vpop.permute.xlu1 %3578 }
 0x365   : > { %v3920_v53 = vpop.permute.xlu0 %3919 }
 0x366   : > { %4855 = vmatmul.mubr.bf16.gmra.mrb[48].mxu1 %v4127_v30  ;;  %v4231_v32 = vsel %vm1728_vm15, %v15983_v12, %v3920_v53  ;;  %v3581_v59 = vpop.permute.xlu1 %3580  ;;  %v15993_v53 = vrot.slane %v15955_v63, 3  ;;  %v10774_v12 = vld [vmem:[%s15674_s9 + $0x4] ss:$8 sps:$4 sm:$0xff]  }
 0x367   : > { %4862 = vmatprep.mubr.bf16.mxu1 %v4207_v43  ;;  %v4155_v43 = vsel %vm1728_vm15, %v15984_v34, %v3579_v20  ;;  %v4159_v24 = vsel %vm1728_vm15, %v15986_v38, %v3581_v59  ;;  %v10777_v63 = vld [vmem:[%s15674_s9 + $0x104] ss:$8 sps:$4 sm:$0xff]   ;;  %v10780_v20 = vld [vmem:[%s15674_s9 + $0x14] ss:$8 sps:$4 sm:$0xff]   ;;  %7772 = vmatprep.subr.bf16.mxu1 %v10774_v12  ;;  %v10778_v34 = vld [vmem:[%s15674_s9 + $0x10] ss:$8 sps:$4 sm:$0xff]  }
 0x368   : > { %7993 = vmatprep.subr.bf16.mxu0 %v10777_v63  ;;  %v10784_v59 = vld [vmem:[%s15674_s9 + $0x20] ss:$8 sps:$4 sm:$0xff]   ;;  %v10789_v38 = vld [vmem:[%s15674_s9 + $0x34] ss:$8 sps:$4 sm:$0xff]   ;;  %v10844_v12 = vld [vmem:[%s15674_s9 + $0x1b0] ss:$8 sps:$4 sm:$0xff]  }
 0x369   : > { %v3922_v30 = vpop.permute.xlu0 %3921  ;;  %v10849_v63 = vld [vmem:[%s15674_s9 + $0xd4] ss:$8 sps:$4 sm:$0xff]  }
 0x36a   : > { %v4235_v54 = vsel %vm1728_vm15, %v15985_v44, %v3922_v30  ;;  %v10783_v30 = vld [vmem:[%s15674_s9 + $0x114] ss:$8 sps:$4 sm:$0xff]   ;;  %v10781_v44 = vld [vmem:[%s15674_s9 + $0x110] ss:$8 sps:$4 sm:$0xff]  }
 0x36d   : > { %v3924_v40 = vpop.permute.xlu0 %3923 }
 0x36e   : > { %4863 = vmatmul.mubr.bf16.gmra.mrb[52].mxu1 %v4131_v55  ;;  %v4239_v62 = vsel %vm1728_vm15, %v15987_v45, %v3924_v40  ;;  %v3583_v55 = vpop.permute.xlu1 %3582  ;;  %v15995_v40 = vld [vmem:[#allocation53_spill] sm:$0xff]  ;;  %v10798_v45 = vld [vmem:[%s15674_s9 + $0x134] ss:$8 sps:$4 sm:$0xff]  }
 0x36f   : > { %4870 = vmatprep.mubr.bf16.mxu1 %v4211_v4  ;;  %v4163_v4 = vsel %vm1728_vm15, %v13445_v46, %v3583_v55  ;;  %v10795_v55 = vld [vmem:[%s15674_s9 + $0x44] ss:$8 sps:$4 sm:$0xff]  }
 0x371   : > { %v3926_v15 = vpop.permute.xlu0 %3925 }
 0x372   : > { %v4243_v25 = vsel %vm1728_vm15, %v13439_v56, %v3926_v15  ;;  %v3585_v52 = vpop.permute.xlu1 %3584  ;;  %v10796_v15 = vld [vmem:[%s15674_s9 + $0x130] ss:$8 sps:$4 sm:$0xff]  }
 0x373   : > { %v4167_v47 = vsel %vm1728_vm15, %v13461_v27, %v3585_v52  ;;  %v15996_v52 = vld [vmem:[#allocation54_spill] sm:$0xff] }
 0x375   : > { %v3928_v51 = vpop.permute.xlu0 %3927 }
 0x376   : > { %4871 = vmatmul.mubr.bf16.gmra.mrb[56].mxu1 %v4135_v42  ;;  %v4247_v6 = vsel %vm1728_vm15, %v13448_v33, %v3928_v51  ;;  %v3587_v42 = vpop.permute.xlu1 %3586  ;;  %v15990_v33 = vrot.slane %v13407_v9, 2  ;;  %v10801_v51 = vld [vmem:[%s15674_s9 + $0x54] ss:$8 sps:$4 sm:$0xff]  }
 0x377   : > { %4878 = vmatprep.mubr.bf16.mxu1 %v4215_v18  ;;  %v15988_v18 = vld [vmem:[#allocation78_spill] sm:$0xff] }
 0x378   : > { %v4171_v46 = vsel %vm1728_vm15, %v15988_v18, %v3587_v42  ;;  %v3723_v28 = vsel %vm1112_vm1, %v15990_v33, %v3722_v39  ;;  %v10799_v42 = vld [vmem:[%s15674_s9 + $0x50] ss:$8 sps:$4 sm:$0xff]  }
 0x379   : > { %v3930_v57 = vpop.permute.xlu0 %3929  ;;  %v10808_v18 = vld [vmem:[%s15674_s9 + $0x150] ss:$8 sps:$4 sm:$0xff]  }
 0x37a   : > { %v4251_v56 = vsel %vm1728_vm15, %v15989_v41, %v3930_v57  ;;  %v3589_v48 = vpop.permute.xlu1 %3588  ;;  %v10807_v57 = vld [vmem:[%s15674_s9 + $0x64] ss:$8 sps:$4 sm:$0xff]  }
 0x37b   : > { %v4175_v27 = vsel %vm1728_vm15, %v13493_v31, %v3589_v48  ;;  %v15998_v41 = vld [vmem:[#allocation56_spill] sm:$0xff]  ;;  %v16001_v48 = vld [vmem:[#allocation59_spill] sm:$0xff] }
 0x37e   : > { %4879 = vmatmul.mubr.bf16.gmra.mrb[60].mxu1 %v4139_v16  ;;  %v3932_v16 = vpop.permute.xlu0 %3931  ;;  %v3591_v58 = vpop.permute.xlu1 %3590 }
 0x37f   : > { %4886 = vmatprep.mubr.bf16.mxu1 %v4219_v3  ;;  %v4255_v3 = vsel %vm1728_vm15, %v3723_v28, %v3932_v16  ;;  %v16002_v16 = vld [vmem:[#allocation60_spill] sm:$0xff] }
 0x382   : > { %v3934_v61 = vpop.permute.xlu0 %3933  ;;  %v3593_v36 = vpop.permute.xlu1 %3592 }
 0x383   : > { %v4259_v14 = vsel %vm1728_vm15, %v3722_v39, %v3934_v61  ;;  %v4183_v31 = vsel %vm1728_vm15, %v13481_v23, %v3593_v36  ;;  %v16000_v39 = vld [vmem:[#allocation58_spill] sm:$0xff]  ;;  %v10814_v61 = vld [vmem:[%s15674_s9 + $0x160] ss:$8 sps:$4 sm:$0xff]  }
 0x384   : > { %v10823_v36 = vld [vmem:[%s15674_s9 + $0x90] ss:$8 sps:$4 sm:$0xff]  }
 0x386   : > { %4887 = vmatmul.mubr.bf16.gmra.mrb[64].mxu1 %v4143_v7  ;;  %v4179_v7 = vsel %vm1728_vm15, %v13512_v17, %v3591_v58  ;;  %v11071_v17 = vld [vmem:[#allocation2 + $0x20] sm:$0xff]  }
 0x387   : > { %4894 = vmatprep.mubr.bf16.mxu1 %v4223_v5  ;;  %v3042_v5 = vld [vmem:[#allocation2 + $0x10] sm:$0x8]  ;;  %v3941_v60 = vrot.slane %v11071_v17, 3  ;;  %v10819_v58 = vld [vmem:[%s15674_s9 + $0x84] ss:$8 sps:$4 sm:$0xff]  }
 0x388   : > { %v9512_v50 = vcombine.low %v3042_v5, %v11069_v22  ;;  %v10826_v5 = vld [vmem:[%s15674_s9 + $0x180] ss:$8 sps:$4 sm:$0xff]   ;;  %v10828_v22 = vld [vmem:[%s15674_s9 + $0x184] ss:$8 sps:$4 sm:$0xff]  }
 0x389   : > { %v3944_v35 = vsel %vm15994_vm13, %v3941_v60, %v15993_v53  ;;  %v10838_v17 = vld [vmem:[%s15674_s9 + $0x1a0] ss:$8 sps:$4 sm:$0xff]   ;;  %v10843_v53 = vld [vmem:[%s15674_s9 + $0xc4] ss:$8 sps:$4 sm:$0xff]  }
 0x38a   : > { %v3938_v11 = vrot.slane %v9512_v50, 3  ;;  %v10829_v50 = vld [vmem:[%s15674_s9 + $0xa0] ss:$8 sps:$4 sm:$0xff]  }
 0x38e   : > { %4895 = vmatmul.mubr.bf16.gmra.mrb[68].mxu1 %v4147_v2  ;;  %v3939_v2 = vrot.slane %v11070_v0, 3  ;;  %v10834_v0 = vld [vmem:[%s15674_s9 + $0x194] ss:$8 sps:$4 sm:$0xff]  }
 0x38f   : > { %4902 = vmatprep.mubr.bf16.mxu1 %v4227_v49 }
 0x390   : > { %v3940_v49 = vsel %vm15991_vm10, %v3938_v11, %v3939_v2  ;;  %v3942_v23 = vsel %vm15992_vm2, %v3939_v2, %v3941_v60  ;;  %v10832_v2 = vld [vmem:[%s15674_s9 + $0x190] ss:$8 sps:$4 sm:$0xff]   ;;  %v10840_v60 = vld [vmem:[%s15674_s9 + $0x1a4] ss:$8 sps:$4 sm:$0xff]  }
 0x391   : > { %v10835_v11 = vld [vmem:[%s15674_s9 + $0xb0] ss:$8 sps:$4 sm:$0xff]  }
 0x396   : > { %4903 = vmatmul.mubr.bf16.gmra.mrb[72].mxu1 %v4151_v10  ;;  %v10772_v10 = vld [vmem:[%s15674_s9] ss:$8 sps:$4 sm:$0xff]  }
 0x397   : > { %4910 = vmatprep.mubr.bf16.mxu1 %v4231_v32  ;;  %v10775_v32 = vld [vmem:[%s15674_s9 + $0x100] ss:$8 sps:$4 sm:$0xff]  }
 0x398   : > { %7994 = vmatpush1.bf16.msra.mxu0 %v10775_v32  ;;  %v10847_v32 = vld [vmem:[%s15674_s9 + $0xd0] ss:$8 sps:$4 sm:$0xff]  }
 0x399   : > { %7995 = vmatprep.subr.bf16.mxu0 %v10783_v30  ;;  %v10852_v30 = vld [vmem:[%s15674_s9 + $0x1c4] ss:$8 sps:$4 sm:$0xff]  }
 0x39c   : > { %7996 = vmatpush1.bf16.msra.mxu0 %v10781_v44  ;;  %v3973_v44 = vrot.slane %v13607_v1, 3 }
 0x39e   : > { %4911 = vmatmul.mubr.bf16.gmra.mrb[76].mxu1 %v4155_v43  ;;  %v10786_v43 = vld [vmem:[%s15674_s9 + $0x24] ss:$8 sps:$4 sm:$0xff]  }
 0x39f   : > { %4918 = vmatprep.mubr.bf16.mxu1 %v4235_v54  ;;  %v10792_v54 = vld [vmem:[%s15674_s9 + $0x124] ss:$8 sps:$4 sm:$0xff]  }
 0x3a0   : > { %7997 = vmatprep.subr.bf16.mxu0 %v10792_v54  ;;  %v10856_v54 = vld [vmem:[%s15674_s9 + $0x1d0] ss:$8 sps:$4 sm:$0xff]  }
 0x3a6   : > { %4919 = vmatmul.mubr.bf16.gmra.mrb[80].mxu1 %v4159_v24  ;;  %v10790_v24 = vld [vmem:[%s15674_s9 + $0x120] ss:$8 sps:$4 sm:$0xff]  }
 0x3a7   : > { %4926 = vmatprep.mubr.bf16.mxu1 %v4239_v62  ;;  %v10787_v62 = vld [vmem:[%s15674_s9 + $0x30] ss:$8 sps:$4 sm:$0xff]   ;;  %7998 = vmatpush1.bf16.msra.mxu0 %v10790_v24  ;;  %v10862_v24 = vld [vmem:[%s15674_s9 + $0x1e0] ss:$8 sps:$4 sm:$0xff]  }
 0x3a8   : > { %7999 = vmatprep.subr.bf16.mxu0 %v10798_v45  ;;  %v10864_v45 = vld [vmem:[%s15674_s9 + $0x1e4] ss:$8 sps:$4 sm:$0xff]  }
 0x3ab   : > { %8000 = vmatpush1.bf16.msra.mxu0 %v10796_v15  ;;  %v14062_v15 = vld [vmem:[%s15672_s7] ss:$0 sm:$0xff] }
 0x3ae   : > { %4927 = vmatmul.mubr.bf16.gmra.mrb[84].mxu1 %v4163_v4  ;;  %v10804_v4 = vld [vmem:[%s15674_s9 + $0x144] ss:$8 sps:$4 sm:$0xff]  }
 0x3af   : > { %4934 = vmatprep.mubr.bf16.mxu1 %v4243_v25  ;;  %v10793_v25 = vld [vmem:[%s15674_s9 + $0x40] ss:$8 sps:$4 sm:$0xff]   ;;  %8001 = vmatprep.subr.bf16.mxu0 %v10804_v4 }
 0x3b6   : > { %4935 = vmatmul.mubr.bf16.gmra.mrb[88].mxu1 %v4167_v47  ;;  %v10802_v47 = vld [vmem:[%s15674_s9 + $0x140] ss:$8 sps:$4 sm:$0xff]  }
 0x3b7   : > { %4942 = vmatprep.mubr.bf16.mxu1 %v4247_v6  ;;  %v10810_v6 = vld [vmem:[%s15674_s9 + $0x154] ss:$8 sps:$4 sm:$0xff]   ;;  %8002 = vmatpush1.bf16.msra.mxu0 %v10802_v47 }
 0x3b8   : > { %8003 = vmatprep.subr.bf16.mxu0 %v10810_v6 }
 0x3bb   : > { %8004 = vmatpush1.bf16.msra.mxu0 %v10808_v18 }
 0x3be   : > { %4943 = vmatmul.mubr.bf16.gmra.mrb[92].mxu1 %v4171_v46  ;;  %v10805_v46 = vld [vmem:[%s15674_s9 + $0x60] ss:$8 sps:$4 sm:$0xff]  }
 0x3bf   : > { %4950 = vmatprep.mubr.bf16.mxu1 %v4251_v56  ;;  %v15999_v56 = vld [vmem:[#allocation57_spill] sm:$0xff] }
 0x3c6   : > { %4951 = vmatmul.mubr.bf16.gmra.mrb[96].mxu1 %v4175_v27  ;;  %v5322_v27 = vld [vmem:[#allocation3 + $0x8] sm:$0x3] }
 0x3c7   : > { %4958 = vmatprep.mubr.bf16.mxu1 %v4255_v3  ;;  %v5323_v28 = vsel %vm12109_vm5, 0, %v5322_v27  ;;  %v10811_v3 = vld [vmem:[%s15674_s9 + $0x70] ss:$8 sps:$4 sm:$0xff]   ;;  %vm16006_vm5 = vmmov %vm15992_vm2 }
 0x3c8   : > { %5324 = vst [vmem:[#allocation3 + $0x8] sm:$0x3] %v5323_v28 }
 0x3ce   : > { %4959 = vmatmul.mubr.bf16.gmra.mrb[100].mxu1 %v4179_v7  ;;  %v10817_v7 = vld [vmem:[%s15674_s9 + $0x80] ss:$8 sps:$4 sm:$0xff]  }
 0x3cf   : > { %4966 = vmatprep.mubr.bf16.mxu1 %v4259_v14  ;;  %v10822_v14 = vld [vmem:[%s15674_s9 + $0x174] ss:$8 sps:$4 sm:$0xff]  }
 0x3d6   : > { %4967 = vmatmul.mubr.bf16.gmra.mrb[104].mxu1 %v4183_v31  ;;  %v10825_v31 = vld [vmem:[%s15674_s9 + $0x94] ss:$8 sps:$4 sm:$0xff]  }
 0x3d7   : > { %10018 = vmatprep.mubr.msk.bf16.mxu1 %vm11099_vm7, %v15917_v21 }
 0x3de   : > { %10019 = vmatmul.mubr.msk.bf16.vlgmr.msra.gmra.mrb[32].mxu1 %vm1728_vm15, %v3940_v49  ;;  %v10837_v49 = vld [vmem:[%s15674_s9 + $0xb4] ss:$8 sps:$4 sm:$0xff]  }
 0x3df   : > { %10022 = vmatprep.mubr.msk.bf16.mxu1 %vm11099_vm7, %v15917_v21  ;;  %7773 = vmatpush1.bf16.msra.mxu1 %v10772_v10  ;;  %v10841_v10 = vld [vmem:[%s15674_s9 + $0xc0] ss:$8 sps:$4 sm:$0xff]  }
 0x3e0   : > { %7774 = vmatprep.subr.bf16.mxu1 %v10780_v20  ;;  %v10850_v20 = vld [vmem:[%s15674_s9 + $0x1c0] ss:$8 sps:$4 sm:$0xff]  }
 0x3e3   : > { %7775 = vmatpush1.bf16.msra.mxu1 %v10778_v34  ;;  %v10853_v34 = vld [vmem:[%s15674_s9 + $0xe0] ss:$8 sps:$4 sm:$0xff]  }
 0x3e4   : > { %7776 = vmatprep.subr.bf16.mxu1 %v10786_v43  ;;  %v10858_v43 = vld [vmem:[%s15674_s9 + $0x1d4] ss:$8 sps:$4 sm:$0xff]  }
 0x3e6   : > { %10023 = vmatmul.mubr.msk.bf16.gmra.mrb[36].mxu1 %vm1728_vm15, %v3942_v23  ;;  %v16004_v23 = vld [vmem:[#allocation79_spill] sm:$0xff] }
 0x3e7   : > { %10026 = vmatprep.mubr.msk.bf16.mxu1 %vm11099_vm7, %v15917_v21  ;;  %7777 = vmatpush1.bf16.msra.mxu1 %v10784_v59  ;;  %v10859_v59 = vld [vmem:[%s15674_s9 + $0xf0] ss:$8 sps:$4 sm:$0xff]  }
 0x3e8   : > { %7778 = vmatprep.subr.bf16.mxu1 %v10789_v38  ;;  %v16005_v38 = vrot.slane %v13407_v9, 3  ;;  %v10867_v9 = vld [vmem:[%s15674_s9 + $0x1f0] ss:$8 sps:$4 sm:$0xff]  }
 0x3ea   : > { %v3974_v1 = vsel %vm16006_vm5, %v16005_v38, %v3973_v44 }
 0x3eb   : > { %7779 = vmatpush1.bf16.msra.mxu1 %v10787_v62  ;;  %v10869_v62 = vld [vmem:[%s15674_s9 + $0x1f4] ss:$8 sps:$4 sm:$0xff]  }
 0x3ec   : > { %7780 = vmatprep.subr.bf16.mxu1 %v10795_v55  ;;  %v10877_v55 = vld [vmem:[%s15674_s9 + $0x204] ss:$8 sps:$4 sm:$0xff]  }
 0x3ee   : > { %10027 = vmatmul.mubr.msk.bf16.gmra.mrb[40].mxu1 %vm1728_vm15, %v3944_v35  ;;  %v10846_v35 = vld [vmem:[%s15674_s9 + $0x1b4] ss:$8 sps:$4 sm:$0xff]  }
 0x3ef   : > { %10030 = vmatprep.mubr.msk.bf16.mxu1 %vm11099_vm7, %v15917_v21  ;;  %7781 = vmatpush1.bf16.msra.mxu1 %v10793_v25  ;;  %v14067_v25 = vld [vmem:[%s15673_s8] ss:$0 sm:$0xff] }
 0x3f0   : > { %7782 = vmatprep.subr.bf16.mxu1 %v10801_v51 }
 0x3f3   : > { %7783 = vmatpush1.bf16.msra.mxu1 %v10799_v42 }
 0x3f4   : > { %7784 = vmatprep.subr.bf16.mxu1 %v10807_v57 }
 0x3f6   : > { %10031 = vmatmul.mubr.msk.bf16.gmra.mrb[44].mxu1 %vm1728_vm15, %v15995_v40  ;;  %v10861_v40 = vld [vmem:[%s15674_s9 + $0xf4] ss:$8 sps:$4 sm:$0xff]  }
 0x3f7   : > { %10034 = vmatprep.mubr.msk.bf16.mxu1 %vm11099_vm7, %v15917_v21  ;;  %7785 = vmatpush1.bf16.msra.mxu1 %v10805_v46 }
 0x3fe   : > { %10035 = vmatmul.mubr.msk.bf16.gmra.mrb[48].mxu1 %vm1728_vm15, %v15996_v52 }
 0x3ff   : > { %10038 = vmatprep.mubr.msk.bf16.mxu1 %vm11099_vm7, %v15917_v21 }
 0x406   : > { %10039 = vmatmul.mubr.msk.bf16.gmra.mrb[52].mxu1 %vm1728_vm15, %v15997_v13  ;;  %v16007_v13 = vld [vmem:[#allocation7_spill] sm:$0xff] }
 0x407   : > { %10042 = vmatprep.mubr.msk.bf16.mxu1 %vm11099_vm7, %v15917_v21 }
 0x40e   : > { %10043 = vmatmul.mubr.msk.bf16.gmra.mrb[56].mxu1 %vm1728_vm15, %v15998_v41 }
 0x40f   : > { %10046 = vmatprep.mubr.msk.bf16.mxu1 %vm11099_vm7, %v15917_v21 }
 0x416   : > { %10047 = vmatmul.mubr.msk.bf16.gmra.mrb[60].mxu1 %vm1728_vm15, %v15999_v56 }
 0x417   : > { %10050 = vmatprep.mubr.msk.bf16.mxu1 %vm11099_vm7, %v15917_v21 }
 0x41e   : > { %10051 = vmatmul.mubr.msk.bf16.gmra.mrb[64].mxu1 %vm1728_vm15, %v16000_v39 }
 0x41f   : > { %10054 = vmatprep.mubr.msk.bf16.mxu1 %vm11099_vm7, %v15917_v21 }
 0x426   : > { %10055 = vmatmul.mubr.msk.bf16.gmra.mrb[68].mxu1 %vm1728_vm15, %v16001_v48 }
 0x427   : > { %10058 = vmatprep.mubr.msk.bf16.mxu1 %vm11099_vm7, %v15917_v21 }
 0x42e   : > { %10059 = vmatmul.mubr.msk.bf16.gmra.mrb[72].mxu1 %vm1728_vm15, %v16002_v16  ;;  %v16008_v16 = vld [vmem:[#allocation6_spill] sm:$0xff] }
 0x42f   : > { %10062 = vmatprep.mubr.msk.bf16.mxu1 %vm11099_vm7, %v15917_v21 }
 0x436   : > { %10063 = vmatmul.mubr.msk.bf16.gmra.mrb[76].mxu1 %vm1728_vm15, %v13486_v19  ;;  %v10813_v19 = vld [vmem:[%s15674_s9 + $0x74] ss:$8 sps:$4 sm:$0xff]  }
 0x437   : > { %10066 = vmatprep.mubr.msk.bf16.mxu1 %vm11099_vm7, %v15917_v21  ;;  %7786 = vmatprep.subr.bf16.mxu1 %v10813_v19  ;;  %v14076_v19 = vld [vmem:[#allocation3 + $0x4] sm:$0xf] }
 0x438   : > { %7787 = vmatpush1.bf16.msra.mxu1 %v10811_v3  ;;  %v5888_v3 = vld [vmem:[#allocation3] sm:$0xf] }
 0x439   : > { %7788 = vmatprep.subr.bf16.mxu1 %v10819_v58 }
 0x43c   : > { %7789 = vmatpush1.bf16.msra.mxu1 %v10817_v7 }
 0x43d   : > { %7790 = vmatprep.subr.bf16.mxu1 %v10825_v31  ;;  %v14081_v31 = vcombine.low %v5888_v3, %v14076_v19 }
 0x43e   : > { %10067 = vmatmul.mubr.msk.bf16.gmra.mrb[80].mxu1 %vm1728_vm15, %v13489_v26  ;;  %v10816_v26 = vld [vmem:[%s15674_s9 + $0x164] ss:$8 sps:$4 sm:$0xff]  }
 0x43f   : > { %10070 = vmatprep.mubr.msk.bf16.mxu1 %vm11099_vm7, %v15917_v21  ;;  %8005 = vmatprep.subr.bf16.mxu0 %v10816_v26 }
 0x440   : > { %8006 = vmatpush1.bf16.msra.mxu0 %v10814_v61  ;;  %7791 = vmatpush1.bf16.msra.mxu1 %v10823_v36 }
 0x441   : > { %8007 = vmatprep.subr.bf16.mxu0 %v10822_v14 }
 0x446   : > { %10071 = vmatmul.mubr.msk.bf16.gmra.mrb[84].mxu1 %vm1728_vm15, %v13496_v8  ;;  %v10820_v8 = vld [vmem:[%s15674_s9 + $0x170] ss:$8 sps:$4 sm:$0xff]  }
 0x447   : > { %10074 = vmatprep.mubr.msk.bf16.mxu1 %vm11099_vm7, %v15917_v21  ;;  %8008 = vmatpush1.bf16.msra.mxu0 %v10820_v8 }
 0x448   : > { %8009 = vmatprep.subr.bf16.mxu0 %v10828_v22 }
 0x44b   : > { %8010 = vmatpush1.bf16.msra.mxu0 %v10826_v5 }
 0x44c   : > { %8011 = vmatprep.subr.bf16.mxu0 %v10834_v0  ;;  %v5847_v0 = vld [vmem:[#allocation3 + $0x8] sm:$0xe] }
 0x44e   : > { %10075 = vmatmul.mubr.msk.bf16.gmra.mrb[88].mxu1 %vm1728_vm15, %v13499_v37  ;;  %v10831_v37 = vld [vmem:[%s15674_s9 + $0xa4] ss:$8 sps:$4 sm:$0xff]  }
 0x44f   : > { %10078 = vmatprep.mubr.msk.bf16.mxu1 %vm11099_vm7, %v15917_v21  ;;  %7792 = vmatprep.subr.bf16.mxu1 %v10831_v37 }
 0x450   : > { %7793 = vmatpush1.bf16.msra.mxu1 %v10829_v50  ;;  %8012 = vmatpush1.bf16.msra.mxu0 %v10832_v2 }
 0x451   : > { %7794 = vmatprep.subr.bf16.mxu1 %v10837_v49  ;;  %8013 = vmatprep.subr.bf16.mxu0 %v10840_v60 }
 0x454   : > { %7795 = vmatpush1.bf16.msra.mxu1 %v10835_v11  ;;  %8014 = vmatpush1.bf16.msra.mxu0 %v10838_v17 }
 0x455   : > { %7796 = vmatprep.subr.bf16.mxu1 %v10843_v53  ;;  %8015 = vmatprep.subr.bf16.mxu0 %v10846_v35 }
 0x456   : > { %10079 = vmatmul.mubr.msk.bf16.gmra.mrb[92].mxu1 %vm1728_vm15, %v16004_v23  ;;  %v16009_v23 = vld [vmem:[#allocation8_spill] sm:$0xff] }
 0x457   : > { %10082 = vmatprep.mubr.msk.bf16.mxu1 %vm11099_vm7, %v15917_v21 }
 0x458   : > { %7797 = vmatpush1.bf16.msra.mxu1 %v10841_v10  ;;  %8016 = vmatpush1.bf16.msra.mxu0 %v10844_v12  ;;  %v6090_v12 = vshll.u32 %v14081_v31, 16 }
 0x459   : > { %7798 = vmatprep.subr.bf16.mxu1 %v10849_v63  ;;  %8017 = vmatprep.subr.bf16.mxu0 %v10852_v30 }
 0x45c   : > { %7799 = vmatpush1.bf16.msra.mxu1 %v10847_v32  ;;  %8018 = vmatpush1.bf16.msra.mxu0 %v10850_v20 }
 0x45d   : > { %8019 = vmatprep.subr.bf16.mxu0 %v10858_v43 }
 0x45e   : > { %10083 = vmatmul.mubr.msk.bf16.gmra.mrb[96].mxu1 %vm1728_vm15, %v13525_v29  ;;  %v10855_v29 = vld [vmem:[%s15674_s9 + $0xe4] ss:$8 sps:$4 sm:$0xff]  }
 0x45f   : > { %10086 = vmatprep.mubr.msk.bf16.mxu1 %vm11099_vm7, %v15917_v21  ;;  %7800 = vmatprep.subr.bf16.mxu1 %v10855_v29 }
 0x460   : > { %7801 = vmatpush1.bf16.msra.mxu1 %v10853_v34  ;;  %8020 = vmatpush1.bf16.msra.mxu0 %v10856_v54 }
 0x461   : > { %7802 = vmatprep.subr.bf16.mxu1 %v10861_v40  ;;  %8021 = vmatprep.subr.bf16.mxu0 %v10864_v45 }
 0x464   : > { %7803 = vmatpush1.bf16.msra.mxu1 %v10859_v59  ;;  %8022 = vmatpush1.bf16.msra.mxu0 %v10862_v24 }
 0x465   : > { %8023 = vmatprep.subr.bf16.mxu0 %v10869_v62 }
 0x466   : > { %10087 = vmatmul.mubr.msk.bf16.gmra.mrb[100].mxu1 %vm1728_vm15, %v3974_v1 }
 0x467   : > { %10090 = vmatprep.mubr.msk.bf16.mxu1 %vm11099_vm7, %v15917_v21 }
 0x468   : > { %8024 = vmatpush1.bf16.msra.mxu0 %v10867_v9 }
 0x469   : > { %8214 = vmatprep.subr.bf16.mxu0 %v10877_v55 }
 0x46e   : > { %10091 = vmatmul.mubr.msk.bf16.gmra.mrb[104].mxu1 %vm1728_vm15, %v3973_v44  ;;  %v16011_v44 = vld [vmem:[#allocation9_spill] sm:$0xff] }
 0x4b1   : > { %v5008_v4 = vpop.f32.mrb[32].mxu1 }
 0x4b2   : > { %v5165_v52 = vmul.f32 %v14062_v15, %v5008_v4  ;;  %v10020_v51 = vpop.f32.mrb[33].mxu1  ;;  %v5926_v4 = vld [vmem:[#allocation3] sm:$0xe] }
 0x4b3   : > { %v5011_v47 = vpop.f32.mrb[34].mxu1 }
 0x4b4   : > { %v5209_v6 = vadd.f32 %v14067_v25, %v5165_v52  ;;  %v5166_v42 = vmul.f32 %v14062_v15, %v5011_v47  ;;  %v10021_v57 = vpop.f32.mrb[35].mxu1  ;;  %v6088_v47 = vshrl.u32 %v14081_v31, 16 }
 0x4b6   : > { %v5246_v18 = vmax.f32 %v5209_v6, 0.0  ;;  %v5210_v46 = vadd.f32 %v14067_v25, %v5166_v42  ;;  %v6092_v6 = vrot.slane %v6090_v12, 1 }
 0x4b8   : > { %v5283_v41 = vmul.f32 %v5246_v18, %v16007_v13  ;;  %v5247_v56 = vmax.f32 %v5210_v46, 0.0  ;;  %v16013_v13 = vld [vmem:[#allocation10_spill] sm:$0xff] }
 0x4b9   : > { %v5016_v39 = vpop.f32.mrb[36].mxu1 }
 0x4ba   : > { %v9840_v48 = vpack.c.bf16 %v5283_v41, %v5283_v41  ;;  %v5284_v27 = vmul.f32 %v5247_v56, %v16008_v16  ;;  %v5167_v33 = vmul.f32 %v14062_v15, %v5016_v39  ;;  %v10024_v28 = vpop.f32.mrb[37].mxu1  ;;  %v9627_v39 = vcombine.low %v5926_v4, %v14076_v19 }
 0x4bb   : > { %v5019_v61 = vpop.f32.mrb[38].mxu1 }
 0x4bc   : > { %v5443_v26 = vshrl.u32 %v9840_v48, 16  ;;  %v5446_v58 = vshll.u32 %v9840_v48, 16  ;;  %v9841_v14 = vpack.c.bf16 %v5284_v27, %v5284_v27  ;;  %v5211_v7 = vadd.f32 %v14067_v25, %v5167_v33  ;;  %v10025_v8 = vpop.f32.mrb[39].mxu1 }
 0x4bd   : > { %v5168_v36 = vmul.f32 %v14062_v15, %v5019_v61  ;;  %v16014_v61 = vld [vmem:[#allocation12_spill] sm:$0xff] }
 0x4be   : > { %v5445_v5 = vrot.slane %v5443_v26, 6  ;;  %v5448_v22 = vrot.slane %v5446_v58, 7  ;;  %v5452_v50 = vshrl.u32 %v9841_v14, 16  ;;  %v5455_v37 = vshll.u32 %v9841_v14, 16 }
 0x4bf   : > { %v5248_v2 = vmax.f32 %v5211_v7, 0.0  ;;  %v5212_v11 = vadd.f32 %v14067_v25, %v5168_v36 }
 0x4c0   : > { %v5449_v49 = vor.u32 %v5448_v22, %v5445_v5  ;;  %v5454_v17 = vrot.slane %v5452_v50, 6  ;;  %v5457_v60 = vrot.slane %v5455_v37, 7  ;;  %v6093_v50 = vor.u32 %v6092_v6, %v6088_v47 }
 0x4c1   : > { %v5285_v53 = vmul.f32 %v5248_v2, %v16009_v23  ;;  %v5249_v35 = vmax.f32 %v5212_v11, 0.0  ;;  %v5024_v10 = vpop.f32.mrb[40].mxu1 }
 0x4c2   : > { %v5450_v32 = vrot.slane %v5449_v49, 4  ;;  %v5848_v20 = vsel %vm12412_vm11, %v5449_v49, %v5847_v0  ;;  %v5458_v30 = vor.u32 %v5457_v60, %v5454_v17  ;;  %v5169_v34 = vmul.f32 %v14062_v15, %v5024_v10  ;;  %v10028_v29 = vpop.f32.mrb[41].mxu1 }
 0x4c3   : > { %5849 = vst [vmem:[#allocation3 + $0x8] sm:$0xe] %v5848_v20  ;;  %v9842_v43 = vpack.c.bf16 %v5285_v53, %v5285_v53  ;;  %v5286_v54 = vmul.f32 %v5249_v35, %v16011_v44  ;;  %v5027_v59 = vpop.f32.mrb[42].mxu1  ;;  %v6260_v53 = vrot.slane %v9627_v39, 1 }
 0x4c4   : > { %v5459_v38 = vsel %vm12425_vm12, %v5450_v32, %v5458_v30  ;;  %v5213_v1 = vadd.f32 %v14067_v25, %v5169_v34  ;;  %v5170_v24 = vmul.f32 %v14062_v15, %v5027_v59  ;;  %v10029_v45 = vpop.f32.mrb[43].mxu1  ;;  %v5460_v48 = vrot.slane %v5458_v30, 4 }
 0x4c5   : > { %5850 = vst [vmem:[#allocation3 + $0xc] sm:$0xf] %v5459_v38  ;;  %v5462_v62 = vshrl.u32 %v9842_v43, 16  ;;  %v5465_v9 = vshll.u32 %v9842_v43, 16  ;;  %v9843_v55 = vpack.c.bf16 %v5286_v54, %v5286_v54  ;;  %v16015_v38 = vld [vmem:[#allocation14_spill] sm:$0xff] }
 0x4c6   : > { %v5250_v52 = vmax.f32 %v5213_v1, 0.0  ;;  %v5214_v51 = vadd.f32 %v14067_v25, %v5170_v24 }
 0x4c7   : > { %v5464_v42 = vrot.slane %v5462_v62, 6  ;;  %v5467_v57 = vrot.slane %v5465_v9, 7  ;;  %v5472_v18 = vshrl.u32 %v9843_v55, 16  ;;  %v5475_v46 = vshll.u32 %v9843_v55, 16 }
 0x4c8   : > { %v5287_v41 = vmul.f32 %v5250_v52, %v16013_v13  ;;  %v5251_v56 = vmax.f32 %v5214_v51, 0.0 }
 0x4c9   : > { %v5468_v16 = vor.u32 %v5467_v57, %v5464_v42  ;;  %v5474_v27 = vrot.slane %v5472_v18, 6  ;;  %v5477_v33 = vrot.slane %v5475_v46, 7  ;;  %v5032_v28 = vpop.f32.mrb[44].mxu1  ;;  %v16016_v42 = vld [vmem:[#allocation15_spill] sm:$0xff] }
 0x4ca   : > { %v9844_v3 = vpack.c.bf16 %v5287_v41, %v5287_v41  ;;  %v5288_v26 = vmul.f32 %v5251_v56, %v16014_v61  ;;  %v5171_v58 = vmul.f32 %v14062_v15, %v5032_v28  ;;  %v10032_v14 = vpop.f32.mrb[45].mxu1  ;;  %v5890_v22 = vld [vmem:[#allocation3 + $0x8] sm:$0xf] }
 0x4cb   : > { %v5469_v7 = vsel %vm12425_vm12, %v5460_v48, %v5468_v16  ;;  %v5470_v8 = vrot.slane %v5468_v16, 4  ;;  %v5478_v36 = vor.u32 %v5477_v33, %v5474_v27  ;;  %v5035_v5 = vpop.f32.mrb[46].mxu1  ;;  %v5927_v29 = vld [vmem:[#allocation3 + $0x8] sm:$0xe] }
 0x4cc   : > { %5851 = vst [vmem:[#allocation3 + $0x10] sm:$0xf] %v5469_v7  ;;  %v5482_v19 = vshrl.u32 %v9844_v3, 16  ;;  %v5485_v37 = vshll.u32 %v9844_v3, 16  ;;  %v9845_v0 = vpack.c.bf16 %v5288_v26, %v5288_v26  ;;  %v5215_v2 = vadd.f32 %v14067_v25, %v5171_v58  ;;  %v10033_v11 = vpop.f32.mrb[47].mxu1 }
 0x4cd   : > { %v14103_v49 = vld [vmem:[#allocation3 + $0xc] sm:$0xf]  ;;  %v5479_v17 = vsel %vm12425_vm12, %v5470_v8, %v5478_v36  ;;  %v5172_v60 = vmul.f32 %v14062_v15, %v5035_v5  ;;  %v5480_v63 = vrot.slane %v5478_v36, 4 }
 0x4ce   : > { %v14109_v23 = vcombine.low %v5890_v22, %v14103_v49  ;;  %5852 = vst [vmem:[#allocation3 + $0x14] sm:$0xf] %v5479_v17  ;;  %v5484_v35 = vrot.slane %v5482_v19, 6  ;;  %v5487_v10 = vrot.slane %v5485_v37, 7  ;;  %v5492_v12 = vshrl.u32 %v9845_v0, 16  ;;  %v16017_v22 = vld [vmem:[#allocation16_spill] sm:$0xff] }
 0x4cf   : > { %v5495_v32 = vshll.u32 %v9845_v0, 16  ;;  %v5252_v20 = vmax.f32 %v5215_v2, 0.0  ;;  %v5216_v30 = vadd.f32 %v14067_v25, %v5172_v60  ;;  %v14114_v59 = vcombine.low %v5927_v29, %v14103_v49 }
 0x4d0   : > { %v6095_v34 = vshll.u32 %v14109_v23, 16  ;;  %v5488_v43 = vor.u32 %v5487_v10, %v5484_v35  ;;  %v5494_v44 = vrot.slane %v5492_v12, 6  ;;  %v6261_v9 = vrot.slane %v14109_v23, 1  ;;  %v16018_v10 = vld [vmem:[#allocation17_spill] sm:$0xff] }
 0x4d1   : > { %v5497_v54 = vrot.slane %v5495_v32, 7  ;;  %v5289_v1 = vmul.f32 %v5252_v20, %v16015_v38  ;;  %v5253_v24 = vmax.f32 %v5216_v30, 0.0  ;;  %v5040_v45 = vpop.f32.mrb[48].mxu1  ;;  %v6327_v48 = vrot.slane %v14114_v59, 1  ;;  %v10881_v30 = vld [vmem:[%s15674_s9 + $0x214] ss:$8 sps:$4 sm:$0xff]  }
 0x4d2   : > { %v6097_v62 = vrot.slane %v6095_v34, 1  ;;  %v5489_v55 = vsel %vm12425_vm12, %v5480_v63, %v5488_v43  ;;  %v5490_v4 = vrot.slane %v5488_v43, 4  ;;  %v5173_v51 = vmul.f32 %v14062_v15, %v5040_v45  ;;  %v10036_v47 = vpop.f32.mrb[49].mxu1 }
 0x4d3   : > { %v5498_v52 = vor.u32 %v5497_v54, %v5494_v44  ;;  %5853 = vst [vmem:[#allocation3 + $0x18] sm:$0xf] %v5489_v55  ;;  %v9846_v6 = vpack.c.bf16 %v5289_v1, %v5289_v1  ;;  %v5290_v57 = vmul.f32 %v5253_v24, %v16016_v42  ;;  %v5043_v18 = vpop.f32.mrb[50].mxu1  ;;  %v6262_v3 = vsel %vm846_vm0, %v6260_v53, %v6261_v9  ;;  %v10875_v53 = vld [vmem:[%s15674_s9 + $0x200] ss:$8 sps:$4 sm:$0xff]  }
 0x4d4   : > { %v6098_v46 = vsel %vm653_vm3, %v6093_v50, %v6097_v62  ;;  %v5217_v41 = vadd.f32 %v14067_v25, %v5173_v51  ;;  %v5174_v56 = vmul.f32 %v14062_v15, %v5043_v18  ;;  %v10037_v39 = vpop.f32.mrb[51].mxu1  ;;  %v6099_v14 = vshrl.u32 %v14109_v23, 16  ;;  %v10879_v47 = vld [vmem:[%s15674_s9 + $0x210] ss:$8 sps:$4 sm:$0xff]  }
 0x4d5   : > { %v5499_v13 = vsel %vm12425_vm12, %v5490_v4, %v5498_v52  ;;  %7804 = vmatprep.mubr.bf16.mxu1 %v6098_v46  ;;  %v5502_v16 = vshrl.u32 %v9846_v6, 16  ;;  %v5505_v27 = vshll.u32 %v9846_v6, 16  ;;  %v9847_v33 = vpack.c.bf16 %v5290_v57, %v5290_v57  ;;  %v14129_v28 = vld [vmem:[#allocation3 + $0x10] sm:$0xff]   ;;  %v10885_v46 = vld [vmem:[%s15674_s9 + $0x224] ss:$8 sps:$4 sm:$0xff]  }
 0x4d6   : > { %5854 = vst [vmem:[#allocation3 + $0x1c] sm:$0xf] %v5499_v13  ;;  %7805 = vmatmul.mubr.bf16.vlgmr.msra.gmra.mrb[108].mxu1 %v14081_v31  ;;  %v5500_v61 = vrot.slane %v5498_v52, 4  ;;  %v5254_v26 = vmax.f32 %v5217_v41, 0.0  ;;  %v5218_v58 = vadd.f32 %v14067_v25, %v5174_v56  ;;  %v14138_v31 = vrot.slane %v14129_v28, 1 }
 0x4d7   : > { %v5504_v7 = vrot.slane %v5502_v16, 6  ;;  %v5507_v8 = vrot.slane %v5505_v27, 7  ;;  %v5512_v36 = vshrl.u32 %v9847_v33, 16  ;;  %v5515_v5 = vshll.u32 %v9847_v33, 16  ;;  %v16019_v33 = vld [vmem:[#allocation18_spill] sm:$0xff] }
 0x4d8   : > { %v5291_v50 = vmul.f32 %v5254_v26, %v16017_v22  ;;  %v5255_v19 = vmax.f32 %v5218_v58, 0.0  ;;  %v6101_v37 = vor.u32 %v6099_v14, %v6097_v62  ;;  %v6103_v60 = vshll.u32 %v14129_v28, 16 }
 0x4d9   : > { %v5508_v0 = vor.u32 %v5507_v8, %v5504_v7  ;;  %v5514_v2 = vrot.slane %v5512_v36, 6  ;;  %v5517_v11 = vrot.slane %v5515_v5, 7  ;;  %v5048_v17 = vpop.f32.mrb[52].mxu1  ;;  %v6328_v20 = vsel %vm846_vm0, %v6327_v48, %v14138_v31  ;;  %v10883_v7 = vld [vmem:[%s15674_s9 + $0x220] ss:$8 sps:$4 sm:$0xff]  }
 0x4da   : > { %v9848_v35 = vpack.c.bf16 %v5291_v50, %v5291_v50  ;;  %v5292_v12 = vmul.f32 %v5255_v19, %v16018_v10  ;;  %v5175_v32 = vmul.f32 %v14062_v15, %v5048_v17  ;;  %v10040_v63 = vpop.f32.mrb[53].mxu1  ;;  %8025 = vmatprep.mubr.bf16.mxu0 %v6328_v20  ;;  %v6105_v54 = vrot.slane %v6103_v60, 1  ;;  %v10890_v19 = vld [vmem:[%s15674_s9 + $0x234] ss:$8 sps:$4 sm:$0xff]  }
 0x4db   : > { %v5509_v34 = vsel %vm12425_vm12, %v5500_v61, %v5508_v0  ;;  %v5510_v29 = vrot.slane %v5508_v0, 4  ;;  %v5518_v43 = vor.u32 %v5517_v11, %v5514_v2  ;;  %v5051_v44 = vpop.f32.mrb[54].mxu1  ;;  %8026 = vmatmul.mubr.bf16.vlgmr.msra.gmra.mrb[44].mxu0 %v6262_v3  ;;  %v6107_v14 = vshrl.u32 %v14129_v28, 16  ;;  %v16020_v0 = vld [vmem:[#allocation19_spill] sm:$0xff] }
 0x4dc   : > { %5855 = vst [vmem:[#allocation3 + $0x20] sm:$0xf] %v5509_v34  ;;  %v5522_v38 = vshrl.u32 %v9848_v35, 16  ;;  %v5525_v1 = vshll.u32 %v9848_v35, 16  ;;  %v9849_v24 = vpack.c.bf16 %v5292_v12, %v5292_v12  ;;  %v5219_v45 = vadd.f32 %v14067_v25, %v5175_v32  ;;  %v10041_v62 = vpop.f32.mrb[55].mxu1  ;;  %8215 = vmatpush1.bf16.msra.mxu0 %v10875_v53 }
 0x4dd   : > { %v14156_v55 = vld [vmem:[#allocation3 + $0x18] sm:$0xff]   ;;  %v5519_v4 = vsel %vm12425_vm12, %v5510_v29, %v5518_v43  ;;  %v5176_v52 = vmul.f32 %v14062_v15, %v5051_v44  ;;  %v6106_v51 = vsel %vm653_vm3, %v6101_v37, %v6105_v54  ;;  %8216 = vmatprep.subr.bf16.mxu0 %v10881_v30  ;;  %v5520_v39 = vrot.slane %v5518_v43, 4  ;;  %v10894_v62 = vld [vmem:[%s15674_s9 + $0x244] ss:$8 sps:$4 sm:$0xff]  }
 0x4de   : > { %5856 = vst [vmem:[#allocation3 + $0x24] sm:$0xf] %v5519_v4  ;;  %v5524_v6 = vrot.slane %v5522_v38, 6  ;;  %v5527_v42 = vrot.slane %v5525_v1, 7  ;;  %v5532_v57 = vshrl.u32 %v9849_v24, 16  ;;  %v5535_v18 = vshll.u32 %v9849_v24, 16  ;;  %7814 = vmatprep.mubr.bf16.mxu1 %v6106_v51 }
 0x4df   : > { %v5256_v13 = vmax.f32 %v5219_v45, 0.0  ;;  %v5220_v41 = vadd.f32 %v14067_v25, %v5176_v52  ;;  %7815 = vmatmul.mubr.bf16.gmra.mrb[112].mxu1 %v14109_v23  ;;  %v6265_v56 = vrot.slane %v14156_v55, 1  ;;  %v6264_v17 = vsel %vm846_vm0, %v6261_v9, %v14138_v31  ;;  %v10888_v23 = vld [vmem:[%s15674_s9 + $0x230] ss:$8 sps:$4 sm:$0xff]   ;;  %v16021_v4 = vld [vmem:[#allocation20_spill] sm:$0xff] }
 0x4e0   : > { %v5528_v48 = vor.u32 %v5527_v42, %v5524_v6  ;;  %v5534_v16 = vrot.slane %v5532_v57, 6  ;;  %v5537_v27 = vrot.slane %v5535_v18, 7  ;;  %8217 = vmatpush1.bf16.msra.mxu0 %v10879_v47  ;;  %v6111_v53 = vshll.u32 %v14156_v55, 16 }
 0x4e1   : > { %v5293_v3 = vmul.f32 %v5256_v13, %v16019_v33  ;;  %v5257_v61 = vmax.f32 %v5220_v41, 0.0  ;;  %v5056_v26 = vpop.f32.mrb[56].mxu1  ;;  %v14176_v58 = vsel %vm846_vm0, %v14138_v31, %v6265_v56  ;;  %8218 = vmatprep.subr.bf16.mxu0 %v10885_v46  ;;  %v6109_v63 = vor.u32 %v6107_v14, %v6105_v54  ;;  %v10892_v41 = vld [vmem:[%s15674_s9 + $0x240] ss:$8 sps:$4 sm:$0xff]  }
 0x4e2   : > { %v5529_v8 = vsel %vm12425_vm12, %v5520_v39, %v5528_v48  ;;  %v5530_v36 = vrot.slane %v5528_v48, 4  ;;  %v5538_v5 = vor.u32 %v5537_v27, %v5534_v16  ;;  %v5177_v22 = vmul.f32 %v14062_v15, %v5056_v26  ;;  %v10044_v50 = vpop.f32.mrb[57].mxu1  ;;  %8035 = vmatprep.mubr.bf16.mxu0 %v14176_v58  ;;  %v16022_v48 = vld [vmem:[#allocation21_spill] sm:$0xff] }
 0x4e3   : > { %5857 = vst [vmem:[#allocation3 + $0x28] sm:$0xf] %v5529_v8  ;;  %v9850_v37 = vpack.c.bf16 %v5293_v3, %v5293_v3  ;;  %v5294_v2 = vmul.f32 %v5257_v61, %v16020_v0  ;;  %v5059_v11 = vpop.f32.mrb[58].mxu1  ;;  %8036 = vmatmul.mubr.bf16.gmra.mrb[48].mxu0 %v6264_v17  ;;  %v6113_v30 = vrot.slane %v6111_v53, 1  ;;  %v6115_v54 = vshrl.u32 %v14156_v55, 16 }
 0x4e4   : > { %v5539_v35 = vsel %vm12425_vm12, %v5530_v36, %v5538_v5  ;;  %v5221_v10 = vadd.f32 %v14067_v25, %v5177_v22  ;;  %v5178_v12 = vmul.f32 %v14062_v15, %v5059_v11  ;;  %v10045_v32 = vpop.f32.mrb[59].mxu1  ;;  %8219 = vmatpush1.bf16.msra.mxu0 %v10883_v7  ;;  %v5540_v29 = vrot.slane %v5538_v5, 4  ;;  %v10898_v61 = vld [vmem:[%s15674_s9 + $0x254] ss:$8 sps:$4 sm:$0xff]  }
 0x4e5   : > { %5858 = vst [vmem:[#allocation3 + $0x2c] sm:$0xf] %v5539_v35  ;;  %v5542_v9 = vshrl.u32 %v9850_v37, 16  ;;  %v5545_v31 = vshll.u32 %v9850_v37, 16  ;;  %v9851_v20 = vpack.c.bf16 %v5294_v2, %v5294_v2  ;;  %v14206_v34 = vld [vmem:[#allocation3 + $0x20] sm:$0xff]   ;;  %8220 = vmatprep.subr.bf16.mxu0 %v10890_v19  ;;  %v6114_v47 = vsel %vm653_vm3, %v6109_v63, %v6113_v30 }
 0x4e6   : > { %v5258_v43 = vmax.f32 %v5221_v10, 0.0  ;;  %v5222_v44 = vadd.f32 %v14067_v25, %v5178_v12  ;;  %v6267_v6 = vrot.slane %v14206_v34, 1  ;;  %7824 = vmatprep.mubr.bf16.mxu1 %v6114_v47  ;;  %v6117_v13 = vor.u32 %v6115_v54, %v6113_v30  ;;  %v10896_v10 = vld [vmem:[%s15674_s9 + $0x250] ss:$8 sps:$4 sm:$0xff]   ;;  %v10902_v30 = vld [vmem:[%s15674_s9 + $0x264] ss:$8 sps:$4 sm:$0xff]  }
 0x4e7   : > { %v5544_v38 = vrot.slane %v5542_v9, 6  ;;  %v5547_v1 = vrot.slane %v5545_v31, 7  ;;  %v5552_v24 = vshrl.u32 %v9851_v20, 16  ;;  %v5555_v45 = vshll.u32 %v9851_v20, 16  ;;  %7825 = vmatmul.mubr.bf16.gmra.mrb[116].mxu1 %v14129_v28 }
 0x4e8   : > { %v5295_v52 = vmul.f32 %v5258_v43, %v16021_v4  ;;  %v5259_v51 = vmax.f32 %v5222_v44, 0.0  ;;  %8221 = vmatpush1.bf16.msra.mxu0 %v10888_v23  ;;  %v14227_v3 = vsel %vm846_vm0, %v6265_v56, %v6267_v6  ;;  %v6119_v5 = vshll.u32 %v14206_v34, 16 }
 0x4e9   : > { %v5548_v42 = vor.u32 %v5547_v1, %v5544_v38  ;;  %v5554_v57 = vrot.slane %v5552_v24, 6  ;;  %v5557_v18 = vrot.slane %v5555_v45, 7  ;;  %v5064_v46 = vpop.f32.mrb[60].mxu1  ;;  %8045 = vmatprep.mubr.bf16.mxu0 %v14227_v3  ;;  %8222 = vmatprep.subr.bf16.mxu0 %v10894_v62  ;;  %v6123_v38 = vshrl.u32 %v14206_v34, 16  ;;  %v16023_v1 = vld [vmem:[#allocation22_spill] sm:$0xff] }
 0x4ea   : > { %v9852_v39 = vpack.c.bf16 %v5295_v52, %v5295_v52  ;;  %v5296_v16 = vmul.f32 %v5259_v51, %v16022_v48  ;;  %v5179_v27 = vmul.f32 %v14062_v15, %v5064_v46  ;;  %v10048_v33 = vpop.f32.mrb[61].mxu1  ;;  %v6121_v35 = vrot.slane %v6119_v5, 1  ;;  %v10900_v51 = vld [vmem:[%s15674_s9 + $0x260] ss:$8 sps:$4 sm:$0xff]  }
 0x4eb   : > { %v5549_v26 = vsel %vm12425_vm12, %v5540_v29, %v5548_v42  ;;  %v5550_v7 = vrot.slane %v5548_v42, 4  ;;  %v5558_v8 = vor.u32 %v5557_v18, %v5554_v57  ;;  %v5067_v36 = vpop.f32.mrb[62].mxu1  ;;  %8046 = vmatmul.mubr.bf16.gmra.mrb[52].mxu0 %v14176_v58 }
 0x4ec   : > { %5859 = vst [vmem:[#allocation3 + $0x30] sm:$0xf] %v5549_v26  ;;  %v5562_v22 = vshrl.u32 %v9852_v39, 16  ;;  %v5565_v50 = vshll.u32 %v9852_v39, 16  ;;  %v9853_v56 = vpack.c.bf16 %v5296_v16, %v5296_v16  ;;  %v5223_v19 = vadd.f32 %v14067_v25, %v5179_v27  ;;  %v10049_v37 = vpop.f32.mrb[63].mxu1  ;;  %v14238_v0 = vld [vmem:[#allocation3 + $0x28] sm:$0xff]   ;;  %8223 = vmatpush1.bf16.msra.mxu0 %v10892_v41 }
 0x4ed   : > { %v5559_v2 = vsel %vm12425_vm12, %v5550_v7, %v5558_v8  ;;  %v5560_v11 = vrot.slane %v5558_v8, 4  ;;  %v5180_v17 = vmul.f32 %v14062_v15, %v5067_v36  ;;  %8224 = vmatprep.subr.bf16.mxu0 %v10898_v61  ;;  %v6122_v31 = vsel %vm653_vm3, %v6117_v13, %v6121_v35  ;;  %v14273_v13 = vld [vmem:[#allocation3 + $0x8] sm:$0xc]  ;;  %v16024_v39 = vld [vmem:[#allocation23_spill] sm:$0xff] }
 0x4ee   : > { %5860 = vst [vmem:[#allocation3 + $0x34] sm:$0xf] %v5559_v2  ;;  %v5564_v12 = vrot.slane %v5562_v22, 6  ;;  %v5567_v58 = vrot.slane %v5565_v50, 7  ;;  %v5572_v32 = vshrl.u32 %v9853_v56, 16  ;;  %v5575_v63 = vshll.u32 %v9853_v56, 16  ;;  %7834 = vmatprep.mubr.bf16.mxu1 %v6122_v31 }
 0x4ef   : > { %v5260_v23 = vmax.f32 %v5223_v19, 0.0  ;;  %v5224_v9 = vadd.f32 %v14067_v25, %v5180_v17  ;;  %v6269_v20 = vrot.slane %v14238_v0, 1  ;;  %v6127_v52 = vshll.u32 %v14238_v0, 16  ;;  %7835 = vmatmul.mubr.bf16.gmra.mrb[120].mxu1 %v14156_v55  ;;  %v10904_v36 = vld [vmem:[%s15674_s9 + $0x270] ss:$8 sps:$4 sm:$0xff]  }
 0x4f0   : > { %v5568_v29 = vor.u32 %v5567_v58, %v5564_v12  ;;  %v5574_v43 = vrot.slane %v5572_v32, 6  ;;  %v5577_v44 = vrot.slane %v5575_v63, 7  ;;  %8225 = vmatpush1.bf16.msra.mxu0 %v10896_v10  ;;  %v6125_v27 = vor.u32 %v6123_v38, %v6121_v35  ;;  %v10911_v32 = vld [vmem:[%s15674_s9 + $0x284] ss:$8 sps:$4 sm:$0xff]  }
 0x4f1   : > { %v5297_v24 = vmul.f32 %v5260_v23, %v16023_v1  ;;  %v5261_v45 = vmax.f32 %v5224_v9, 0.0  ;;  %v5072_v62 = vpop.f32.mrb[64].mxu1  ;;  %v14259_v4 = vsel %vm846_vm0, %v6267_v6, %v6269_v20  ;;  %v10906_v6 = vld [vmem:[%s15674_s9 + $0x274] ss:$8 sps:$4 sm:$0xff]   ;;  %v6129_v33 = vrot.slane %v6127_v52, 1  ;;  %8226 = vmatprep.subr.bf16.mxu0 %v10902_v30  ;;  %v16025_v63 = vld [vmem:[#allocation24_spill] sm:$0xff] }
 0x4f2   : > { %v5569_v47 = vsel %vm12425_vm12, %v5560_v11, %v5568_v29  ;;  %v5570_v42 = vrot.slane %v5568_v29, 4  ;;  %v5578_v57 = vor.u32 %v5577_v44, %v5574_v43  ;;  %v5181_v18 = vmul.f32 %v14062_v15, %v5072_v62  ;;  %v10052_v46 = vpop.f32.mrb[65].mxu1  ;;  %8055 = vmatprep.mubr.bf16.mxu0 %v14259_v4  ;;  %v10909_v29 = vld [vmem:[%s15674_s9 + $0x280] ss:$8 sps:$4 sm:$0xff]   ;;  %v10915_v62 = vld [vmem:[%s15674_s9 + $0x294] ss:$8 sps:$4 sm:$0xff]  }
 0x4f3   : > { %5861 = vst [vmem:[#allocation3 + $0x38] sm:$0xf] %v5569_v47  ;;  %v9854_v41 = vpack.c.bf16 %v5297_v24, %v5297_v24  ;;  %v5298_v48 = vmul.f32 %v5261_v45, %v16024_v39  ;;  %v5075_v16 = vpop.f32.mrb[66].mxu1  ;;  %8056 = vmatmul.mubr.bf16.gmra.mrb[56].mxu0 %v14227_v3  ;;  %v9632_v22 = vcombine.low %v14273_v13, %v14103_v49  ;;  %v6131_v35 = vshrl.u32 %v14238_v0, 16  ;;  %v16026_v47 = vld [vmem:[#allocation25_spill] sm:$0xff] }
 0x4f4   : > { %v5579_v61 = vsel %vm12425_vm12, %v5570_v42, %v5578_v57  ;;  %v5225_v26 = vadd.f32 %v14067_v25, %v5181_v18  ;;  %v5182_v7 = vmul.f32 %v14062_v15, %v5075_v16  ;;  %v10053_v8 = vpop.f32.mrb[67].mxu1  ;;  %v6130_v37 = vsel %vm653_vm3, %v6125_v27, %v6129_v33  ;;  %8227 = vmatpush1.bf16.msra.mxu0 %v10900_v51 }
 0x4f5   : > { %5862 = vst [vmem:[#allocation3 + $0x3c] sm:$0xf] %v5579_v61  ;;  %v5582_v50 = vshrl.u32 %v9854_v41, 16  ;;  %v5585_v56 = vshll.u32 %v9854_v41, 16  ;;  %v9855_v19 = vpack.c.bf16 %v5298_v48, %v5298_v48  ;;  %v14291_v2 = vld [vmem:[#allocation3 + $0x30] sm:$0xff]   ;;  %v5580_v11 = vrot.slane %v5578_v57, 4  ;;  %7844 = vmatprep.mubr.bf16.mxu1 %v6130_v37  ;;  %8228 = vmatprep.subr.bf16.mxu0 %v10906_v6 }
 0x4f6   : > { %v5262_v17 = vmax.f32 %v5225_v26, 0.0  ;;  %v5226_v3 = vadd.f32 %v14067_v25, %v5182_v7  ;;  %v6271_v31 = vrot.slane %v14291_v2, 1  ;;  %v6133_v30 = vor.u32 %v6131_v35, %v6129_v33 }
 0x4f7   : > { %v5584_v10 = vrot.slane %v5582_v50, 6  ;;  %v5587_v12 = vrot.slane %v5585_v56, 7  ;;  %v5592_v49 = vshrl.u32 %v9855_v19, 16  ;;  %v5595_v58 = vshll.u32 %v9855_v19, 16  ;;  %7845 = vmatmul.mubr.bf16.gmra.mrb[124].mxu1 %v14206_v34  ;;  %v10913_v50 = vld [vmem:[%s15674_s9 + $0x290] ss:$8 sps:$4 sm:$0xff]  }
 0x4f8   : > { %v5299_v23 = vmul.f32 %v5262_v17, %v16025_v63  ;;  %v5263_v9 = vmax.f32 %v5226_v3, 0.0  ;;  %v15776_v45 = vshll.u32 %v14291_v2, 16  ;;  %8229 = vmatpush1.bf16.msra.mxu0 %v10904_v36  ;;  %v14315_v46 = vsel %vm846_vm0, %v6269_v20, %v6271_v31  ;;  %v10953_v34 = vld [vmem:[%s15674_s9 + $0x340] ss:$8 sps:$4 sm:$0xff]  }
 0x4f9   : > { %v5588_v43 = vor.u32 %v5587_v12, %v5584_v10  ;;  %v5594_v44 = vrot.slane %v5592_v49, 6  ;;  %v5597_v1 = vrot.slane %v5595_v58, 7  ;;  %v5080_v24 = vpop.f32.mrb[68].mxu1  ;;  %8065 = vmatprep.mubr.bf16.mxu0 %v14315_v46  ;;  %8230 = vmatprep.subr.bf16.mxu0 %v10911_v32  ;;  %v14333_v56 = vrot.slane %v9632_v22, 2  ;;  %v10919_v49 = vld [vmem:[%s15674_s9 + $0x2a4] ss:$8 sps:$4 sm:$0xff]  }
 0x4fa   : > { %v9856_v51 = vpack.c.bf16 %v5299_v23, %v5299_v23  ;;  %v5300_v42 = vmul.f32 %v5263_v9, %v16026_v47  ;;  %v5183_v57 = vmul.f32 %v14062_v15, %v5080_v24  ;;  %v10056_v18 = vpop.f32.mrb[69].mxu1  ;;  %v6137_v48 = vrot.slane %v15776_v45, 1  ;;  %v16027_v23 = vld [vmem:[#allocation26_spill] sm:$0xff] }
 0x4fb   : > { %v5589_v6 = vsel %vm12425_vm12, %v5580_v11, %v5588_v43  ;;  %v5590_v13 = vrot.slane %v5588_v43, 4  ;;  %v5598_v41 = vor.u32 %v5597_v1, %v5594_v44  ;;  %v5083_v39 = vpop.f32.mrb[70].mxu1  ;;  %8066 = vmatmul.mubr.bf16.gmra.mrb[60].mxu0 %v14259_v4  ;;  %v6139_v44 = vshrl.u32 %v14291_v2, 16  ;;  %v10917_v1 = vld [vmem:[%s15674_s9 + $0x2a0] ss:$8 sps:$4 sm:$0xff]  }
 0x4fc   : > { %5863 = vst [vmem:[#allocation3 + $0x40] sm:$0xf] %v5589_v6  ;;  %v5602_v16 = vshrl.u32 %v9856_v51, 16  ;;  %v5605_v27 = vshll.u32 %v9856_v51, 16  ;;  %v9857_v33 = vpack.c.bf16 %v5300_v42, %v5300_v42  ;;  %v5227_v61 = vadd.f32 %v14067_v25, %v5183_v57  ;;  %v10057_v20 = vpop.f32.mrb[71].mxu1  ;;  %v14324_v26 = vld [vmem:[#allocation3 + $0x38] sm:$0xff]   ;;  %8231 = vmatpush1.bf16.msra.mxu0 %v10909_v29 }
 0x4fd   : > { %v5599_v7 = vsel %vm12425_vm12, %v5590_v13, %v5598_v41  ;;  %v5184_v8 = vmul.f32 %v14062_v15, %v5083_v39  ;;  %v6138_v36 = vsel %vm653_vm3, %v6133_v30, %v6137_v48  ;;  %8232 = vmatprep.subr.bf16.mxu0 %v10915_v62  ;;  %v5600_v17 = vrot.slane %v5598_v41, 4  ;;  %v16028_v18 = vld [vmem:[#allocation28_spill] sm:$0xff] }
 0x4fe   : > { %5864 = vst [vmem:[#allocation3 + $0x44] sm:$0xf] %v5599_v7  ;;  %v5604_v19 = vrot.slane %v5602_v16, 6  ;;  %v5607_v4 = vrot.slane %v5605_v27, 7  ;;  %v5612_v37 = vshrl.u32 %v9857_v33, 16  ;;  %v5615_v11 = vshll.u32 %v9857_v33, 16  ;;  %7854 = vmatprep.mubr.bf16.mxu1 %v6138_v36 }
 0x4ff   : > { %v5264_v3 = vmax.f32 %v5227_v61, 0.0  ;;  %v5228_v10 = vadd.f32 %v14067_v25, %v5184_v8  ;;  %v6273_v12 = vrot.slane %v14324_v26, 1  ;;  %v15774_v63 = vshll.u32 %v14324_v26, 16  ;;  %7855 = vmatmul.mubr.bf16.gmra.mrb[128].mxu1 %v14238_v0  ;;  %v10959_v0 = vld [vmem:[%s15674_s9 + $0x360] ss:$8 sps:$4 sm:$0xff]  }
 0x500   : > { %v5608_v58 = vor.u32 %v5607_v4, %v5604_v19  ;;  %v5614_v22 = vrot.slane %v5612_v37, 6  ;;  %v5617_v32 = vrot.slane %v5615_v11, 7  ;;  %8233 = vmatpush1.bf16.msra.mxu0 %v10913_v50  ;;  %v6141_v41 = vor.u32 %v6139_v44, %v6137_v48  ;;  %v10921_v48 = vld [vmem:[%s15674_s9 + $0x2b0] ss:$8 sps:$4 sm:$0xff]  }
 0x501   : > { %v5301_v9 = vmul.f32 %v5264_v3, %v16027_v23  ;;  %v5265_v30 = vmax.f32 %v5228_v10, 0.0  ;;  %v5088_v29 = vpop.f32.mrb[72].mxu1  ;;  %v14345_v43 = vsel %vm846_vm0, %v6271_v31, %v6273_v12  ;;  %v10923_v31 = vld [vmem:[%s15674_s9 + $0x2b4] ss:$8 sps:$4 sm:$0xff]   ;;  %v6145_v39 = vrot.slane %v15774_v63, 1  ;;  %8234 = vmatprep.subr.bf16.mxu0 %v10919_v49 }
 0x502   : > { %v5609_v24 = vsel %vm12425_vm12, %v5600_v17, %v5608_v58  ;;  %v5610_v62 = vrot.slane %v5608_v58, 4  ;;  %v5618_v51 = vor.u32 %v5617_v32, %v5614_v22  ;;  %v5185_v47 = vmul.f32 %v14062_v15, %v5088_v29  ;;  %v10060_v42 = vpop.f32.mrb[73].mxu1  ;;  %8075 = vmatprep.mubr.bf16.mxu0 %v14345_v43  ;;  %v10928_v17 = vld [vmem:[%s15674_s9 + $0x2c4] ss:$8 sps:$4 sm:$0xff]   ;;  %v10926_v29 = vld [vmem:[%s15674_s9 + $0x2c0] ss:$8 sps:$4 sm:$0xff]  }
 0x503   : > { %5865 = vst [vmem:[#allocation3 + $0x48] sm:$0xf] %v5609_v24  ;;  %v9858_v57 = vpack.c.bf16 %v5301_v9, %v5301_v9  ;;  %v5302_v6 = vmul.f32 %v5265_v30, %v16028_v18  ;;  %v5091_v13 = vpop.f32.mrb[74].mxu1  ;;  %8076 = vmatmul.mubr.bf16.gmra.mrb[64].mxu0 %v14315_v46  ;;  %v15775_v20 = vshrl.u32 %v14324_v26, 16  ;;  %v6146_v50 = vsel %vm653_vm3, %v6141_v41, %v6145_v39  ;;  %v16029_v22 = vld [vmem:[#allocation29_spill] sm:$0xff] }
 0x504   : > { %v5619_v16 = vsel %vm12425_vm12, %v5610_v62, %v5618_v51  ;;  %v5229_v27 = vadd.f32 %v14067_v25, %v5185_v47  ;;  %v5186_v33 = vmul.f32 %v14062_v15, %v5091_v13  ;;  %v10061_v61 = vpop.f32.mrb[75].mxu1  ;;  %8235 = vmatpush1.bf16.msra.mxu0 %v10917_v1  ;;  %v5620_v4 = vrot.slane %v5618_v51, 4  ;;  %7864 = vmatprep.mubr.bf16.mxu1 %v6146_v50  ;;  %v10933_v47 = vld [vmem:[%s15674_s9 + $0x2d4] ss:$8 sps:$4 sm:$0xff]  }
 0x505   : > { %5866 = vst [vmem:[#allocation3 + $0x4c] sm:$0xf] %v5619_v16  ;;  %v5622_v7 = vshrl.u32 %v9858_v57, 16  ;;  %v5625_v8 = vshll.u32 %v9858_v57, 16  ;;  %v9859_v36 = vpack.c.bf16 %v5302_v6, %v5302_v6  ;;  %v14374_v19 = vld [vmem:[#allocation3 + $0x40] sm:$0xff]   ;;  %v6149_v11 = vor.u32 %v15775_v20, %v6145_v39  ;;  %8236 = vmatprep.subr.bf16.mxu0 %v10923_v31  ;;  %v16030_v57 = vld [vmem:[#allocation30_spill] sm:$0xff] }
 0x506   : > { %v5266_v37 = vmax.f32 %v5229_v27, 0.0  ;;  %v5230_v46 = vadd.f32 %v14067_v25, %v5186_v33  ;;  %v6275_v9 = vrot.slane %v14374_v19, 1  ;;  %v15772_v30 = vshll.u32 %v14374_v19, 16 }
 0x507   : > { %v5624_v3 = vrot.slane %v5622_v7, 6  ;;  %v5627_v10 = vrot.slane %v5625_v8, 7  ;;  %v5632_v49 = vshrl.u32 %v9859_v36, 16  ;;  %v5635_v58 = vshll.u32 %v9859_v36, 16  ;;  %7865 = vmatmul.mubr.bf16.gmra.mrb[132].mxu1 %v14291_v2 }
 0x508   : > { %v5303_v32 = vmul.f32 %v5266_v37, %v16029_v22  ;;  %v5267_v23 = vmax.f32 %v5230_v46, 0.0  ;;  %8237 = vmatpush1.bf16.msra.mxu0 %v10921_v48  ;;  %v6453_v42 = vrot.slane %v14129_v28, 2  ;;  %v14398_v41 = vsel %vm846_vm0, %v6273_v12, %v6275_v9  ;;  %v10947_v28 = vld [vmem:[%s15674_s9 + $0x320] ss:$8 sps:$4 sm:$0xff]  }
 0x509   : > { %v5628_v1 = vor.u32 %v5627_v10, %v5624_v3  ;;  %v5634_v24 = vrot.slane %v5632_v49, 6  ;;  %v5637_v62 = vrot.slane %v5635_v58, 7  ;;  %v5096_v51 = vpop.f32.mrb[76].mxu1  ;;  %8085 = vmatprep.mubr.bf16.mxu0 %v14398_v41  ;;  %v6153_v61 = vrot.slane %v15772_v30, 1  ;;  %8238 = vmatprep.subr.bf16.mxu0 %v10928_v17 }
 0x50a   : > { %v9860_v31 = vpack.c.bf16 %v5303_v32, %v5303_v32  ;;  %v5304_v18 = vmul.f32 %v5267_v23, %v16030_v57  ;;  %v5187_v6 = vmul.f32 %v14062_v15, %v5096_v51  ;;  %v10064_v13 = vpop.f32.mrb[77].mxu1  ;;  %v15773_v17 = vshrl.u32 %v14374_v19, 16 }
 0x50b   : > { %v5629_v39 = vsel %vm12425_vm12, %v5620_v4, %v5628_v1  ;;  %v5630_v16 = vrot.slane %v5628_v1, 4  ;;  %v5638_v27 = vor.u32 %v5637_v62, %v5634_v24  ;;  %v5099_v33 = vpop.f32.mrb[78].mxu1  ;;  %8086 = vmatmul.mubr.bf16.gmra.mrb[68].mxu0 %v14345_v43  ;;  %v14414_v4 = vld [vmem:[%s15672_s7] ss:$0 sm:$0xff]  ;;  %v6154_v46 = vsel %vm653_vm3, %v6149_v11, %v6153_v61 }
 0x50c   : > { %5867 = vst [vmem:[#allocation3 + $0x50] sm:$0xf] %v5629_v39  ;;  %v5642_v15 = vshrl.u32 %v9860_v31, 16  ;;  %v5645_v48 = vshll.u32 %v9860_v31, 16  ;;  %v9861_v7 = vpack.c.bf16 %v5304_v18, %v5304_v18  ;;  %v5231_v8 = vadd.f32 %v14067_v25, %v5187_v6  ;;  %v10065_v12 = vpop.f32.mrb[79].mxu1  ;;  %v14407_v36 = vld [vmem:[#allocation3 + $0x48] sm:$0xff]   ;;  %8239 = vmatpush1.bf16.msra.mxu0 %v10926_v29  ;;  %7874 = vmatprep.mubr.bf16.mxu1 %v6154_v46 }
 0x50d   : > { %v5639_v50 = vsel %vm12425_vm12, %v5630_v16, %v5638_v27  ;;  %v5188_v37 = vmul.f32 %v14414_v4, %v5099_v33  ;;  %v10931_v25 = vld [vmem:[%s15674_s9 + $0x2d0] ss:$8 sps:$4 sm:$0xff]   ;;  %8240 = vmatprep.subr.bf16.mxu0 %v10933_v47  ;;  %v5640_v58 = vrot.slane %v5638_v27, 4  ;;  %v14425_v11 = vld [vmem:[%s15673_s8] ss:$0 sm:$0xff]  ;;  %v6277_v23 = vrot.slane %v14407_v36, 1 }
 0x50e   : > { %5868 = vst [vmem:[#allocation3 + $0x54] sm:$0xf] %v5639_v50  ;;  %v5644_v43 = vrot.slane %v5642_v15, 6  ;;  %v5647_v3 = vrot.slane %v5645_v48, 7  ;;  %v5652_v10 = vshrl.u32 %v9861_v7, 16  ;;  %v5655_v49 = vshll.u32 %v9861_v7, 16 }
 0x50f   : > { %v5268_v22 = vmax.f32 %v5231_v8, 0.0  ;;  %v5232_v32 = vadd.f32 %v14425_v11, %v5188_v37  ;;  %v10936_v29 = vld [vmem:[%s15674_s9 + $0x2e4] ss:$8 sps:$4 sm:$0xff]   ;;  %v15770_v51 = vshll.u32 %v14407_v36, 16  ;;  %v14437_v6 = vsel %vm846_vm0, %v6275_v9, %v6277_v23  ;;  %v10934_v39 = vld [vmem:[%s15674_s9 + $0x2e0] ss:$8 sps:$4 sm:$0xff]   ;;  %7875 = vmatmul.mubr.bf16.gmra.mrb[136].mxu1 %v14324_v26 }
 0x510   : > { %v5648_v1 = vor.u32 %v5647_v3, %v5644_v43  ;;  %v5654_v24 = vrot.slane %v5652_v10, 6  ;;  %v5657_v62 = vrot.slane %v5655_v49, 7  ;;  %v16031_v47 = vld [vmem:[#allocation32_spill] sm:$0xff]  ;;  %v6157_v13 = vor.u32 %v15773_v17, %v6153_v61  ;;  %8241 = vmatpush1.bf16.msra.mxu0 %v10931_v25  ;;  %8095 = vmatprep.mubr.bf16.mxu0 %v14437_v6  ;;  %v10940_v9 = vld [vmem:[%s15674_s9 + $0x2f4] ss:$8 sps:$4 sm:$0xff]   ;;  %v16032_v7 = vld [vmem:[#allocation33_spill] sm:$0xff] }
 0x511   : > { %v5305_v31 = vmul.f32 %v5268_v22, %v16031_v47  ;;  %v5269_v57 = vmax.f32 %v5232_v32, 0.0  ;;  %v5104_v18 = vpop.f32.mrb[80].mxu1  ;;  %v6161_v50 = vrot.slane %v15770_v51, 1  ;;  %8242 = vmatprep.subr.bf16.mxu0 %v10936_v29  ;;  %v14459_v37 = vsel %vm1112_vm1, %v14333_v56, %v6453_v42  ;;  %v10938_v10 = vld [vmem:[%s15674_s9 + $0x2f0] ss:$8 sps:$4 sm:$0xff]  }
 0x512   : > { %v5649_v16 = vsel %vm12425_vm12, %v5640_v58, %v5648_v1  ;;  %v5650_v27 = vrot.slane %v5648_v1, 4  ;;  %v5658_v33 = vor.u32 %v5657_v62, %v5654_v24  ;;  %v5189_v15 = vmul.f32 %v14414_v4, %v5104_v18  ;;  %v10068_v48 = vpop.f32.mrb[81].mxu1  ;;  %v10943_v62 = vld [vmem:[%s15674_s9 + $0x304] ss:$8 sps:$4 sm:$0xff]  }
 0x513   : > { %5869 = vst [vmem:[#allocation3 + $0x58] sm:$0xf] %v5649_v16  ;;  %v9862_v61 = vpack.c.bf16 %v5305_v31, %v5305_v31  ;;  %v5306_v8 = vmul.f32 %v5269_v57, %v16032_v7  ;;  %v5107_v12 = vpop.f32.mrb[82].mxu1  ;;  %8096 = vmatmul.mubr.bf16.gmra.mrb[72].mxu0 %v14398_v41  ;;  %v6162_v56 = vsel %vm653_vm3, %v6157_v13, %v6161_v50  ;;  %v15771_v41 = vshrl.u32 %v14407_v36, 16  ;;  %v16033_v13 = vld [vmem:[#allocation34_spill] sm:$0xff] }
 0x514   : > { %v5659_v46 = vsel %vm12425_vm12, %v5650_v27, %v5658_v33  ;;  %v5233_v25 = vadd.f32 %v14425_v11, %v5189_v15  ;;  %v5190_v43 = vmul.f32 %v14414_v4, %v5107_v12  ;;  %v10069_v3 = vpop.f32.mrb[83].mxu1  ;;  %8243 = vmatpush1.bf16.msra.mxu0 %v10934_v39  ;;  %v5660_v29 = vrot.slane %v5658_v33, 4  ;;  %7884 = vmatprep.mubr.bf16.mxu1 %v6162_v56  ;;  %v16034_v12 = vld [vmem:[#allocation35_spill] sm:$0xff] }
 0x515   : > { %5870 = vst [vmem:[#allocation3 + $0x5c] sm:$0xf] %v5659_v46  ;;  %v5662_v49 = vshrl.u32 %v9862_v61, 16  ;;  %v5665_v58 = vshll.u32 %v9862_v61, 16  ;;  %v9863_v22 = vpack.c.bf16 %v5306_v8, %v5306_v8  ;;  %v14470_v32 = vld [vmem:[#allocation3 + $0x50] sm:$0xff]   ;;  %8244 = vmatprep.subr.bf16.mxu0 %v10940_v9  ;;  %v6165_v9 = vor.u32 %v15771_v41, %v6161_v50 }
 0x516   : > { %v5270_v1 = vmax.f32 %v5233_v25, 0.0  ;;  %v5234_v24 = vadd.f32 %v14425_v11, %v5190_v43  ;;  %v6279_v39 = vrot.slane %v14470_v32, 1  ;;  %v6167_v33 = vshll.u32 %v14470_v32, 16 }
 0x517   : > { %v5664_v47 = vrot.slane %v5662_v49, 6  ;;  %v5667_v31 = vrot.slane %v5665_v58, 7  ;;  %v5672_v57 = vshrl.u32 %v9863_v22, 16  ;;  %v5675_v18 = vshll.u32 %v9863_v22, 16  ;;  %7885 = vmatmul.mubr.bf16.gmra.mrb[140].mxu1 %v14374_v19 }
 0x518   : > { %v5307_v16 = vmul.f32 %v5270_v1, %v16033_v13  ;;  %v5271_v27 = vmax.f32 %v5234_v24, 0.0  ;;  %8245 = vmatpush1.bf16.msra.mxu0 %v10938_v10  ;;  %v6280_v3 = vsel %vm846_vm0, %v6277_v23, %v6279_v39  ;;  %v6169_v10 = vrot.slane %v6167_v33, 1 }
 0x519   : > { %v5668_v15 = vor.u32 %v5667_v31, %v5664_v47  ;;  %v5674_v48 = vrot.slane %v5672_v57, 6  ;;  %v5677_v61 = vrot.slane %v5675_v18, 7  ;;  %v5112_v7 = vpop.f32.mrb[84].mxu1  ;;  %8105 = vmatprep.mubr.bf16.mxu0 %v6280_v3  ;;  %8435 = vmatprep.subr.bf16.mxu0 %v10943_v62 }
 0x51a   : > { %v9864_v8 = vpack.c.bf16 %v5307_v16, %v5307_v16  ;;  %v5308_v46 = vmul.f32 %v5271_v27, %v16034_v12  ;;  %v5191_v25 = vmul.f32 %v14414_v4, %v5112_v7  ;;  %v10072_v43 = vpop.f32.mrb[85].mxu1  ;;  %v6170_v18 = vsel %vm653_vm3, %v6165_v9, %v6169_v10 }
 0x51b   : > { %v5669_v49 = vsel %vm12425_vm12, %v5660_v29, %v5668_v15  ;;  %v5670_v58 = vrot.slane %v5668_v15, 4  ;;  %v5678_v22 = vor.u32 %v5677_v61, %v5674_v48  ;;  %v5115_v50 = vpop.f32.mrb[86].mxu1  ;;  %8106 = vmatmul.mubr.bf16.gmra.mrb[76].mxu0 %v14437_v6  ;;  %v14498_v29 = vrot.slane %v6103_v60, 2  ;;  %7894 = vmatprep.mubr.bf16.mxu1 %v6170_v18 }
 0x51c   : > { %5871 = vst [vmem:[#allocation3 + $0x60] sm:$0xf] %v5669_v49  ;;  %v5682_v56 = vshrl.u32 %v9864_v8, 16  ;;  %v5685_v1 = vshll.u32 %v9864_v8, 16  ;;  %v9865_v24 = vpack.c.bf16 %v5308_v46, %v5308_v46  ;;  %v5235_v47 = vadd.f32 %v14425_v11, %v5191_v25  ;;  %v10073_v23 = vpop.f32.mrb[87].mxu1  ;;  %v14494_v31 = vld [vmem:[#allocation3 + $0x58] sm:$0xff]  }
 0x51d   : > { %v5679_v57 = vsel %vm12425_vm12, %v5670_v58, %v5678_v22  ;;  %v5192_v62 = vmul.f32 %v14414_v4, %v5115_v50  ;;  %v5680_v6 = vrot.slane %v5678_v22, 4  ;;  %v6281_v60 = vrot.slane %v14494_v31, 1  ;;  %v16035_v25 = vld [vmem:[#allocation62_spill] sm:$0xff] }
 0x51e   : > { %5872 = vst [vmem:[#allocation3 + $0x64] sm:$0xf] %v5679_v57  ;;  %v5684_v13 = vrot.slane %v5682_v56, 6  ;;  %v5687_v16 = vrot.slane %v5685_v1, 7  ;;  %v5692_v27 = vshrl.u32 %v9865_v24, 16  ;;  %v5695_v15 = vshll.u32 %v9865_v24, 16 }
 0x51f   : > { %v5272_v48 = vmax.f32 %v5235_v47, 0.0  ;;  %v5236_v61 = vadd.f32 %v14425_v11, %v5192_v62  ;;  %v6175_v46 = vshll.u32 %v14494_v31, 16  ;;  %v6282_v58 = vsel %vm846_vm0, %v6279_v39, %v6281_v60  ;;  %7895 = vmatmul.mubr.bf16.gmra.mrb[144].mxu1 %v14407_v36  ;;  %v16036_v57 = vld [vmem:[#allocation61_spill] sm:$0xff] }
 0x520   : > { %v5688_v7 = vor.u32 %v5687_v16, %v5684_v13  ;;  %v5694_v8 = vrot.slane %v5692_v27, 6  ;;  %v5697_v12 = vrot.slane %v5695_v15, 7  ;;  %v6171_v50 = vshrl.u32 %v14470_v32, 16  ;;  %8115 = vmatprep.mubr.bf16.mxu0 %v6282_v58 }
 0x521   : > { %v5309_v43 = vmul.f32 %v5272_v48, %v16035_v25  ;;  %v5273_v9 = vmax.f32 %v5236_v61, 0.0  ;;  %v5120_v49 = vpop.f32.mrb[88].mxu1  ;;  %v6177_v13 = vrot.slane %v6175_v46, 1  ;;  %v6179_v48 = vshrl.u32 %v14494_v31, 16 }
 0x522   : > { %v5689_v22 = vsel %vm12425_vm12, %v5680_v6, %v5688_v7  ;;  %v5690_v56 = vrot.slane %v5688_v7, 4  ;;  %v5698_v1 = vor.u32 %v5697_v12, %v5694_v8  ;;  %v5193_v24 = vmul.f32 %v14414_v4, %v5120_v49  ;;  %v10076_v47 = vpop.f32.mrb[89].mxu1 }
 0x523   : > { %5873 = vst [vmem:[#allocation3 + $0x68] sm:$0xf] %v5689_v22  ;;  %v9866_v23 = vpack.c.bf16 %v5309_v43, %v5309_v43  ;;  %v5310_v62 = vmul.f32 %v5273_v9, %v16036_v57  ;;  %v5123_v18 = vpop.f32.mrb[90].mxu1  ;;  %v6173_v39 = vor.u32 %v6171_v50, %v6169_v10  ;;  %8116 = vmatmul.mubr.bf16.gmra.mrb[80].mxu0 %v6280_v3 }
 0x524   : > { %v5699_v16 = vsel %vm12425_vm12, %v5690_v56, %v5698_v1  ;;  %v5237_v27 = vadd.f32 %v14425_v11, %v5193_v24  ;;  %v5194_v15 = vmul.f32 %v14414_v4, %v5123_v18  ;;  %v10077_v6 = vpop.f32.mrb[91].mxu1  ;;  %v5700_v25 = vrot.slane %v5698_v1, 4  ;;  %v16037_v24 = vld [vmem:[#allocation64_spill] sm:$0xff] }
 0x525   : > { %5874 = vst [vmem:[#allocation3 + $0x6c] sm:$0xf] %v5699_v16  ;;  %v5702_v61 = vshrl.u32 %v9866_v23, 16  ;;  %v5705_v7 = vshll.u32 %v9866_v23, 16  ;;  %v9867_v8 = vpack.c.bf16 %v5310_v62, %v5310_v62  ;;  %v6178_v10 = vsel %vm653_vm3, %v6173_v39, %v6177_v13  ;;  %v14525_v12 = vld [vmem:[#allocation3 + $0x60] sm:$0xff]  }
 0x526   : > { %v5274_v43 = vmax.f32 %v5237_v27, 0.0  ;;  %v5238_v9 = vadd.f32 %v14425_v11, %v5194_v15  ;;  %7904 = vmatprep.mubr.bf16.mxu1 %v6178_v10  ;;  %v6283_v18 = vrot.slane %v14525_v12, 1  ;;  %v6183_v23 = vshll.u32 %v14525_v12, 16  ;;  %v16038_v15 = vld [vmem:[#allocation63_spill] sm:$0xff] }
 0x527   : > { %v5704_v49 = vrot.slane %v5702_v61, 6  ;;  %v5707_v22 = vrot.slane %v5705_v7, 7  ;;  %v5712_v56 = vshrl.u32 %v9867_v8, 16  ;;  %v5715_v3 = vshll.u32 %v9867_v8, 16  ;;  %7905 = vmatmul.mubr.bf16.gmra.mrb[148].mxu1 %v14470_v32 }
 0x528   : > { %v5311_v47 = vmul.f32 %v5274_v43, %v16037_v24  ;;  %v5275_v57 = vmax.f32 %v5238_v9, 0.0  ;;  %v6181_v1 = vor.u32 %v6179_v48, %v6177_v13  ;;  %v6284_v10 = vsel %vm846_vm0, %v6281_v60, %v6283_v18 }
 0x529   : > { %v5708_v62 = vor.u32 %v5707_v22, %v5704_v49  ;;  %v5714_v39 = vrot.slane %v5712_v56, 6  ;;  %v5717_v16 = vrot.slane %v5715_v3, 7  ;;  %v5128_v6 = vpop.f32.mrb[92].mxu1  ;;  %8125 = vmatprep.mubr.bf16.mxu0 %v6284_v10  ;;  %v6185_v13 = vrot.slane %v6183_v23, 1 }
 0x52a   : > { %v9868_v27 = vpack.c.bf16 %v5311_v47, %v5311_v47  ;;  %v5312_v61 = vmul.f32 %v5275_v57, %v16038_v15  ;;  %v5195_v7 = vmul.f32 %v14414_v4, %v5128_v6  ;;  %v10080_v8 = vpop.f32.mrb[93].mxu1  ;;  %v6348_v60 = vrot.slane %v6107_v14, 1 }
 0x52b   : > { %v5709_v43 = vsel %vm12425_vm12, %v5700_v25, %v5708_v62  ;;  %v5710_v9 = vrot.slane %v5708_v62, 4  ;;  %v5718_v49 = vor.u32 %v5717_v16, %v5714_v39  ;;  %v5131_v22 = vpop.f32.mrb[94].mxu1  ;;  %8126 = vmatmul.mubr.bf16.gmra.mrb[84].mxu0 %v6282_v58  ;;  %v6186_v39 = vsel %vm653_vm3, %v6181_v1, %v6185_v13 }
 0x52c   : > { %5875 = vst [vmem:[#allocation3 + $0x70] sm:$0xf] %v5709_v43  ;;  %v5722_v56 = vshrl.u32 %v9868_v27, 16  ;;  %v5725_v3 = vshll.u32 %v9868_v27, 16  ;;  %v9869_v24 = vpack.c.bf16 %v5312_v61, %v5312_v61  ;;  %v5239_v47 = vadd.f32 %v14425_v11, %v5195_v7  ;;  %v10081_v57 = vpop.f32.mrb[95].mxu1  ;;  %v14542_v6 = vld [vmem:[#allocation3 + $0x68] sm:$0xff]   ;;  %7914 = vmatprep.mubr.bf16.mxu1 %v6186_v39 }
 0x52d   : > { %v5719_v25 = vsel %vm12425_vm12, %v5710_v9, %v5718_v49  ;;  %v5196_v62 = vmul.f32 %v14414_v4, %v5131_v22  ;;  %v5720_v58 = vrot.slane %v5718_v49, 4  ;;  %v6285_v43 = vrot.slane %v14542_v6, 1  ;;  %v16039_v22 = vld [vmem:[#allocation66_spill] sm:$0xff] }
 0x52e   : > { %5876 = vst [vmem:[#allocation3 + $0x74] sm:$0xf] %v5719_v25  ;;  %v5724_v16 = vrot.slane %v5722_v56, 6  ;;  %v5727_v27 = vrot.slane %v5725_v3, 7  ;;  %v5732_v15 = vshrl.u32 %v9869_v24, 16  ;;  %v5735_v61 = vshll.u32 %v9869_v24, 16 }
 0x52f   : > { %v5276_v7 = vmax.f32 %v5239_v47, 0.0  ;;  %v5240_v8 = vadd.f32 %v14425_v11, %v5196_v62  ;;  %v6191_v9 = vshll.u32 %v14542_v6, 16  ;;  %v6286_v56 = vsel %vm846_vm0, %v6283_v18, %v6285_v43  ;;  %7915 = vmatmul.mubr.bf16.gmra.mrb[152].mxu1 %v14494_v31 }
 0x530   : > { %v5728_v14 = vor.u32 %v5727_v27, %v5724_v16  ;;  %v5734_v57 = vrot.slane %v5732_v15, 6  ;;  %v5737_v51 = vrot.slane %v5735_v61, 7  ;;  %v6187_v3 = vshrl.u32 %v14525_v12, 16  ;;  %8135 = vmatprep.mubr.bf16.mxu0 %v6286_v56  ;;  %v16040_v27 = vld [vmem:[#allocation65_spill] sm:$0xff] }
 0x531   : > { %v5313_v41 = vmul.f32 %v5276_v7, %v16039_v22  ;;  %v5277_v1 = vmax.f32 %v5240_v8, 0.0  ;;  %v5136_v25 = vpop.f32.mrb[96].mxu1  ;;  %v6193_v7 = vrot.slane %v6191_v9, 1 }
 0x532   : > { %v5729_v49 = vsel %vm12425_vm12, %v5720_v58, %v5728_v14  ;;  %v5730_v24 = vrot.slane %v5728_v14, 4  ;;  %v5738_v47 = vor.u32 %v5737_v51, %v5734_v57  ;;  %v5197_v62 = vmul.f32 %v14414_v4, %v5136_v25  ;;  %v10084_v39 = vpop.f32.mrb[97].mxu1 }
 0x533   : > { %5877 = vst [vmem:[#allocation3 + $0x78] sm:$0xf] %v5729_v49  ;;  %v9870_v16 = vpack.c.bf16 %v5313_v41, %v5313_v41  ;;  %v5314_v15 = vmul.f32 %v5277_v1, %v16040_v27  ;;  %v5139_v61 = vpop.f32.mrb[98].mxu1  ;;  %v6189_v18 = vor.u32 %v6187_v3, %v6185_v13  ;;  %8136 = vmatmul.mubr.bf16.gmra.mrb[88].mxu0 %v6284_v10  ;;  %v6195_v41 = vshrl.u32 %v14542_v6, 16 }
 0x534   : > { %v5739_v51 = vsel %vm12425_vm12, %v5730_v24, %v5738_v47  ;;  %v5241_v58 = vadd.f32 %v14425_v11, %v5197_v62  ;;  %v5198_v8 = vmul.f32 %v14414_v4, %v5139_v61  ;;  %v10085_v14 = vpop.f32.mrb[99].mxu1  ;;  %v5740_v49 = vrot.slane %v5738_v47, 4 }
 0x535   : > { %5878 = vst [vmem:[#allocation3 + $0x7c] sm:$0xf] %v5739_v51  ;;  %v5742_v57 = vshrl.u32 %v9870_v16, 16  ;;  %v5745_v22 = vshll.u32 %v9870_v16, 16  ;;  %v9871_v1 = vpack.c.bf16 %v5314_v15, %v5314_v15  ;;  %v6194_v13 = vsel %vm653_vm3, %v6189_v18, %v6193_v7  ;;  %v14571_v25 = vld [vmem:[#allocation3 + $0x70] sm:$0xff]   ;;  %v16041_v51 = vld [vmem:[#allocation68_spill] sm:$0xff] }
 0x536   : > { %v5278_v39 = vmax.f32 %v5241_v58, 0.0  ;;  %v5242_v24 = vadd.f32 %v14425_v11, %v5198_v8  ;;  %7924 = vmatprep.mubr.bf16.mxu1 %v6194_v13  ;;  %v14575_v62 = vor.u32 %v14498_v29, %v6348_v60  ;;  %v6287_v15 = vrot.slane %v14571_v25, 1  ;;  %v16042_v60 = vld [vmem:[#allocation67_spill] sm:$0xff] }
 0x537   : > { %v5744_v10 = vrot.slane %v5742_v57, 6  ;;  %v5747_v27 = vrot.slane %v5745_v22, 7  ;;  %v5752_v61 = vshrl.u32 %v9871_v1, 16  ;;  %v5755_v14 = vshll.u32 %v9871_v1, 16  ;;  %7925 = vmatmul.mubr.bf16.gmra.mrb[156].mxu1 %v14525_v12 }
 0x538   : > { %v5315_v30 = vmul.f32 %v5278_v39, %v16041_v51  ;;  %v5279_v16 = vmax.f32 %v5242_v24, 0.0  ;;  %v6199_v18 = vshll.u32 %v14571_v25, 16  ;;  %v6197_v8 = vor.u32 %v6195_v41, %v6193_v7 }
 0x539   : > { %v5748_v17 = vor.u32 %v5747_v27, %v5744_v10  ;;  %v5754_v47 = vrot.slane %v5752_v61, 6  ;;  %v5757_v58 = vrot.slane %v5755_v14, 7  ;;  %v5144_v63 = vpop.f32.mrb[100].mxu1  ;;  %v6288_v13 = vsel %vm846_vm0, %v6285_v43, %v6287_v15 }
 0x53a   : > { %v9872_v29 = vpack.c.bf16 %v5315_v30, %v5315_v30  ;;  %v5316_v57 = vmul.f32 %v5279_v16, %v16042_v60  ;;  %v5199_v22 = vmul.f32 %v14414_v4, %v5144_v63  ;;  %v10088_v1 = vpop.f32.mrb[101].mxu1  ;;  %8145 = vmatprep.mubr.bf16.mxu0 %v6288_v13  ;;  %v6201_v7 = vrot.slane %v6199_v18, 1 }
 0x53b   : > { %v5749_v39 = vsel %vm12425_vm12, %v5740_v49, %v5748_v17  ;;  %v5750_v24 = vrot.slane %v5748_v17, 4  ;;  %v5758_v10 = vor.u32 %v5757_v58, %v5754_v47  ;;  %v5147_v27 = vpop.f32.mrb[102].mxu1  ;;  %8146 = vmatmul.mubr.bf16.gmra.mrb[92].mxu0 %v6286_v56 }
 0x53c   : > { %5879 = vst [vmem:[#allocation3 + $0x80] sm:$0xf] %v5749_v39  ;;  %v5762_v30 = vshrl.u32 %v9872_v29, 16  ;;  %v5765_v61 = vshll.u32 %v9872_v29, 16  ;;  %v9873_v14 = vpack.c.bf16 %v5316_v57, %v5316_v57  ;;  %v5243_v51 = vadd.f32 %v14425_v11, %v5199_v22  ;;  %v10089_v63 = vpop.f32.mrb[103].mxu1  ;;  %v14591_v16 = vld [vmem:[#allocation3 + $0x78] sm:$0xff]  }
 0x53d   : > { %v5759_v43 = vsel %vm12425_vm12, %v5750_v24, %v5758_v10  ;;  %v5200_v17 = vmul.f32 %v14414_v4, %v5147_v27  ;;  %v6202_v49 = vsel %vm653_vm3, %v6197_v8, %v6201_v7  ;;  %v5760_v29 = vrot.slane %v5758_v10, 4  ;;  %v16043_v27 = vld [vmem:[#allocation70_spill] sm:$0xff] }
 0x53e   : > { %5880 = vst [vmem:[#allocation3 + $0x84] sm:$0xf] %v5759_v43  ;;  %v5764_v47 = vrot.slane %v5762_v30, 6  ;;  %v5767_v58 = vrot.slane %v5765_v61, 7  ;;  %v5772_v60 = vshrl.u32 %v9873_v14, 16  ;;  %v5775_v1 = vshll.u32 %v9873_v14, 16  ;;  %7934 = vmatprep.mubr.bf16.mxu1 %v6202_v49 }
 0x53f   : > { %v5280_v57 = vmax.f32 %v5243_v51, 0.0  ;;  %v5244_v56 = vadd.f32 %v14425_v11, %v5200_v17  ;;  %v6289_v22 = vrot.slane %v14591_v16, 1  ;;  %v6207_v24 = vshll.u32 %v14591_v16, 16  ;;  %7935 = vmatmul.mubr.bf16.gmra.mrb[160].mxu1 %v14542_v6 }
 0x540   : > { %v5768_v39 = vor.u32 %v5767_v58, %v5764_v47  ;;  %v5774_v63 = vrot.slane %v5772_v60, 6  ;;  %v5777_v20 = vrot.slane %v5775_v1, 7  ;;  %v6203_v61 = vshrl.u32 %v14571_v25, 16  ;;  %v16044_v58 = vld [vmem:[#allocation69_spill] sm:$0xff] }
 0x541   : > { %v5317_v45 = vmul.f32 %v5280_v57, %v16043_v27  ;;  %v5281_v8 = vmax.f32 %v5244_v56, 0.0  ;;  %v5152_v43 = vpop.f32.mrb[104].mxu1  ;;  %v6290_v30 = vsel %vm846_vm0, %v6287_v15, %v6289_v22  ;;  %v6209_v57 = vrot.slane %v6207_v24, 1 }
 0x542   : > { %v5769_v10 = vsel %vm12425_vm12, %v5760_v29, %v5768_v39  ;;  %v5770_v14 = vrot.slane %v5768_v39, 4  ;;  %v5778_v51 = vor.u32 %v5777_v20, %v5774_v63  ;;  %v5201_v17 = vmul.f32 %v14414_v4, %v5152_v43  ;;  %v10092_v49 = vpop.f32.mrb[105].mxu1  ;;  %8155 = vmatprep.mubr.bf16.mxu0 %v6290_v30 }
 0x543   : > { %5881 = vst [vmem:[#allocation3 + $0x88] sm:$0xf] %v5769_v10  ;;  %v9874_v47 = vpack.c.bf16 %v5317_v45, %v5317_v45  ;;  %v5318_v60 = vmul.f32 %v5281_v8, %v16044_v58  ;;  %v5155_v1 = vpop.f32.mrb[106].mxu1  ;;  %v6205_v15 = vor.u32 %v6203_v61, %v6201_v7  ;;  %8156 = vmatmul.mubr.bf16.gmra.mrb[96].mxu0 %v6288_v13  ;;  %v16045_v58 = vld [vmem:[#allocation71_spill] sm:$0xff]  ;;  %v6211_v13 = vshrl.u32 %v14591_v16, 16 }
 0x544   : > { %v5779_v20 = vsel %vm12425_vm12, %v5770_v14, %v5778_v51  ;;  %v5245_v29 = vadd.f32 %v14425_v11, %v5201_v17  ;;  %v10093_v4 = vpop.f32.mrb[107].mxu1 }
 0x545   : > { %5882 = vst [vmem:[#allocation3 + $0x8c] sm:$0xf] %v5779_v20  ;;  %v5782_v56 = vshrl.u32 %v9874_v47, 16  ;;  %v5785_v39 = vshll.u32 %v9874_v47, 16  ;;  %v9875_v45 = vpack.c.bf16 %v5318_v60, %v5318_v60  ;;  %v6210_v63 = vsel %vm653_vm3, %v6205_v15, %v6209_v57  ;;  %v14616_v27 = vld [vmem:[#allocation3 + $0x80] sm:$0xff]  }
 0x546   : > { %v5282_v8 = vmax.f32 %v5245_v29, 0.0  ;;  %7944 = vmatprep.mubr.bf16.mxu1 %v6210_v63  ;;  %v6291_v11 = vrot.slane %v14616_v27, 1  ;;  %v6215_v17 = vshll.u32 %v14616_v27, 16  ;;  %v5780_v47 = vrot.slane %v5778_v51, 4 }
 0x547   : > { %v5784_v7 = vrot.slane %v5782_v56, 6  ;;  %v5787_v43 = vrot.slane %v5785_v39, 7  ;;  %v5792_v10 = vshrl.u32 %v9875_v45, 16  ;;  %v5795_v49 = vshll.u32 %v9875_v45, 16  ;;  %7945 = vmatmul.mubr.bf16.gmra.mrb[164].mxu1 %v14571_v25 }
 0x548   : > { %v5319_v14 = vmul.f32 %v5282_v8, %v16045_v58  ;;  %v6292_v29 = vsel %vm846_vm0, %v6289_v22, %v6291_v11  ;;  %v6213_v4 = vor.u32 %v6211_v13, %v6209_v57  ;;  %v6217_v56 = vrot.slane %v6215_v17, 1 }
 0x549   : > { %v5788_v60 = vor.u32 %v5787_v43, %v5784_v7  ;;  %v5794_v1 = vrot.slane %v5792_v10, 6  ;;  %v5797_v15 = vrot.slane %v5795_v49, 7  ;;  %8165 = vmatprep.mubr.bf16.mxu0 %v6292_v29  ;;  %v6219_v57 = vshrl.u32 %v14616_v27, 16 }
 0x54a   : > { %v9876_v20 = vpack.c.bf16 %v5319_v14, %v5319_v14  ;;  %v6218_v7 = vsel %vm653_vm3, %v6213_v4, %v6217_v56 }
 0x54b   : > { %v5789_v39 = vsel %vm12425_vm12, %v5780_v47, %v5788_v60  ;;  %v5790_v45 = vrot.slane %v5788_v60, 4  ;;  %v5798_v63 = vor.u32 %v5797_v15, %v5794_v1  ;;  %8166 = vmatmul.mubr.bf16.gmra.mrb[100].mxu0 %v6290_v30  ;;  %7954 = vmatprep.mubr.bf16.mxu1 %v6218_v7  ;;  %v6221_v30 = vor.u32 %v6219_v57, %v6217_v56  ;;  %v5885_v1 = vld [vmem:[#allocation3 + $0x98] sm:$0x7] }
 0x54c   : > { %5883 = vst [vmem:[#allocation3 + $0x90] sm:$0xf] %v5789_v39  ;;  %v5802_v51 = vshrl.u32 %v9876_v20, 16  ;;  %v5805_v8 = vshll.u32 %v9876_v20, 16  ;;  %v14631_v43 = vld [vmem:[#allocation3 + $0x88] sm:$0xff]  }
 0x54d   : > { %v5799_v22 = vsel %vm12425_vm12, %v5790_v45, %v5798_v63  ;;  %v6293_v58 = vrot.slane %v14631_v43, 1  ;;  %v6223_v14 = vshll.u32 %v14631_v43, 16  ;;  %v5800_v47 = vrot.slane %v5798_v63, 4 }
 0x54e   : > { %5884 = vst [vmem:[#allocation3 + $0x94] sm:$0xf] %v5799_v22  ;;  %v5804_v10 = vrot.slane %v5802_v51, 6  ;;  %v5807_v49 = vrot.slane %v5805_v8, 7  ;;  %v6385_v45 = vrot.slane %v6175_v46, 2  ;;  %v6388_v46 = vrot.slane %v6187_v3, 1 }
 0x54f   : > { %v6294_v15 = vsel %vm846_vm0, %v6291_v11, %v6293_v58  ;;  %v6225_v20 = vrot.slane %v6223_v14, 1  ;;  %7955 = vmatmul.mubr.bf16.gmra.mrb[168].mxu1 %v14591_v16  ;;  %v6227_v11 = vshrl.u32 %v14631_v43, 16  ;;  %v6477_v3 = vrot.slane %v14571_v25, 2 }
 0x550   : > { %v5808_v60 = vor.u32 %v5807_v49, %v5804_v10  ;;  %8175 = vmatprep.mubr.bf16.mxu0 %v6294_v15 }
 0x551   : > { %v6226_v39 = vsel %vm653_vm3, %v6221_v30, %v6225_v20  ;;  %v6229_v40 = vor.u32 %v6227_v11, %v6225_v20  ;;  %v6381_v20 = vrot.slane %v6167_v33, 2 }
 0x552   : > { %v5809_v4 = vsel %vm12425_vm12, %v5800_v47, %v5808_v60  ;;  %7964 = vmatprep.mubr.bf16.mxu1 %v6226_v39  ;;  %v6380_v47 = vrot.slane %v6171_v50, 1  ;;  %v6384_v39 = vrot.slane %v6179_v48, 1 }
 0x553   : > { %v5886_v51 = vsel %vm13277_vm8, %v5809_v4, %v5885_v1  ;;  %v14649_v56 = vld [vmem:[#allocation3 + $0x90] ss:$0 sps:$4 sm:$0x33]   ;;  %8176 = vmatmul.mubr.bf16.gmra.mrb[104].mxu0 %v6292_v29  ;;  %v6341_v1 = vshrl.u32 %v14114_v59, 16  ;;  %v15778_v4 = vrot.slane %v14494_v31, 2 }
 0x554   : > { %5887 = vst [vmem:[#allocation3 + $0x98] sm:$0x7] %v5886_v51  ;;  %v6231_v63 = vshll.u32 %v14649_v56, 16  ;;  %v6295_v29 = vrot.slane %v14649_v56, 1  ;;  %v6473_v51 = vrot.slane %v14525_v12, 2  ;;  %v14676_v32 = vor.u32 %v6381_v20, %v6380_v47 }
 0x555   : > { %v14653_v8 = vld [vmem:[#allocation3 + $0x90] sm:$0xff]   ;;  %v6386_v33 = vor.u32 %v6385_v45, %v6384_v39  ;;  %v6396_v12 = vrot.slane %v6203_v61, 1  ;;  %v6400_v61 = vrot.slane %v6211_v13, 1  ;;  %v6401_v39 = vrot.slane %v6207_v24, 2 }
 0x556   : > { %v6233_v7 = vrot.slane %v6231_v63, 1  ;;  %v6329_v22 = vrot.slane %v14653_v8, 1  ;;  %v6296_v63 = vsel %vm846_vm0, %v6293_v58, %v6295_v29  ;;  %v14681_v48 = vsel %vm1112_vm1, %v15778_v4, %v6473_v51 }
 0x557   : > { %7965 = vmatmul.mubr.bf16.gmra.mrb[172].mxu1 %v14616_v27  ;;  %v6405_v13 = vrot.slane %v6215_v17, 2  ;;  %v15777_v17 = vrot.slane %v14653_v8, 2 }
 0x558   : > { %v6234_v10 = vsel %vm653_vm3, %v6229_v40, %v6233_v7  ;;  %v6330_v49 = vsel %vm846_vm0, %v6293_v58, %v6329_v22  ;;  %v6389_v40 = vrot.slane %v6183_v23, 2  ;;  %v6392_v58 = vrot.slane %v6195_v41, 1 }
 0x559   : > { %8185 = vmatprep.mubr.bf16.mxu0 %v6330_v49  ;;  %7974 = vmatprep.mubr.bf16.mxu1 %v6234_v10  ;;  %v6475_v10 = vrot.slane %v14542_v6, 2  ;;  %v6393_v49 = vrot.slane %v6191_v9, 2  ;;  %v6397_v6 = vrot.slane %v6199_v18, 2  ;;  %v6479_v9 = vrot.slane %v14591_v16, 2 }
 0x55a   : > { %v6390_v47 = vor.u32 %v6389_v40, %v6388_v46  ;;  %v6483_v16 = vrot.slane %v14631_v43, 2  ;;  %v10930_v46 = vld [vmem:[#allocation3 + $0x90] ss:$0 sps:$4 sm:$0x11]  }
 0x55b   : > { %v10929_v30 = vld [vmem:[#allocation3 + $0x98] ss:$0 sps:$4 sm:$0x33]   ;;  %8186 = vmatmul.mubr.bf16.gmra.mrb[108].mxu0 %v6294_v15  ;;  %v6235_v15 = vshrl.u32 %v14649_v56, 16  ;;  %v14701_v23 = vsel %vm1112_vm1, %v6473_v51, %v6475_v10  ;;  %v6394_v41 = vor.u32 %v6393_v49, %v6392_v58  ;;  %v14710_v20 = vsel %vm1112_vm1, %v6475_v10, %v6477_v3  ;;  %v10941_v56 = vld [vmem:[%s15674_s9 + $0x300] ss:$8 sps:$4 sm:$0xff]  }
 0x55c   : > { %v6331_v60 = vrot.slane %v10929_v30, 1  ;;  %v6398_v25 = vor.u32 %v6397_v6, %v6396_v12  ;;  %v14720_v18 = vsel %vm1112_vm1, %v6477_v3, %v6479_v9  ;;  %v6481_v51 = vrot.slane %v14616_v27, 2 }
 0x55d   : > { %v6413_v58 = vshrl.u32 %v14653_v8, 16  ;;  %v6343_v12 = vrot.slane %v6341_v1, 1  ;;  %v6353_v1 = vrot.slane %v6111_v53, 2  ;;  %v10952_v53 = vld [vmem:[%s15674_s9 + $0x334] ss:$8 sps:$4 sm:$0xff]  }
 0x55e   : > { %v6332_v50 = vsel %vm846_vm0, %v6329_v22, %v6331_v60  ;;  %v6237_v22 = vor.u32 %v6235_v15, %v6233_v7  ;;  %vm16047_vm0 = vmmov %vm15973_vm6  ;;  %v6402_v15 = vor.u32 %v6401_v39, %v6400_v61  ;;  %v14740_v27 = vsel %vm1112_vm1, %v6481_v51, %v6483_v16  ;;  %v11074_v61 = vld [vmem:[#allocation3 + $0x18] sm:$0xff]  }
 0x55f   : > { %8195 = vmatprep.mubr.bf16.mxu0 %v6332_v50  ;;  %7975 = vmatmul.mubr.bf16.gmra.mrb[176].mxu1 %v14631_v43  ;;  %v14695_v30 = vsel %vm16047_vm0, %v14676_v32, %v6386_v33  ;;  %vm16048_vm3 = vmmov %vm16047_vm0  ;;  %v6404_v50 = vrot.slane %v6219_v57, 1  ;;  %v6455_v39 = vrot.slane %v11074_v61, 2  ;;  %v11077_v61 = vld [vmem:[#allocation3 + $0x30] sm:$0xff]  }
 0x560   : > { %7984 = vmatprep.mubr.bf16.mxu1 %v6237_v22  ;;  %v14707_v7 = vsel %vm16048_vm3, %v6386_v33, %v6390_v47  ;;  %vm16049_vm7 = vmmov %vm16047_vm0  ;;  %v6409_v33 = vrot.slane %v6223_v14, 2  ;;  %v6344_v22 = vshll.u32 %v14114_v59, 16  ;;  %v14752_v14 = vsel %vm1112_vm1, %v6483_v16, %v15777_v17 }
 0x561   : > { %v14717_v45 = vsel %vm16049_vm7, %v6390_v47, %v6394_v41  ;;  %vm16050_vm15 = vmmov %vm16047_vm0  ;;  %v6406_v57 = vor.u32 %v6405_v13, %v6404_v50  ;;  %v6415_v47 = vrot.slane %v6413_v58, 1  ;;  %v10949_v50 = vld [vmem:[%s15674_s9 + $0x324] ss:$8 sps:$4 sm:$0xff]   ;;  %v6356_v16 = vrot.slane %v6123_v38, 1 }
 0x562   : > { %v14729_v24 = vsel %vm16050_vm15, %v6394_v41, %v6398_v25  ;;  %vm16051_vm11 = vmmov %vm16047_vm0  ;;  %v6346_v41 = vrot.slane %v6344_v22, 2  ;;  %v11075_v13 = vld [vmem:[#allocation3 + $0x20] sm:$0xff]   ;;  %v11076_v22 = vld [vmem:[#allocation3 + $0x28] sm:$0xff]   ;;  %v6360_v58 = vrot.slane %v6131_v35, 1  ;;  %v6461_v35 = vrot.slane %v11077_v61, 2 }
 0x563   : > { %8196 = vmatmul.mubr.bf16.gmra.mrb[112].mxu0 %v6296_v63  ;;  %v6408_v63 = vrot.slane %v6227_v11, 1  ;;  %v14737_v40 = vsel %vm16051_vm11, %v6398_v25, %v6402_v15  ;;  %v6416_v11 = vshll.u32 %v14653_v8, 16  ;;  %vm16052_vm12 = vmmov %vm16047_vm0  ;;  %v6457_v55 = vrot.slane %v11075_v13, 2  ;;  %v14851_v13 = vld [vmem:[#allocation3 + $0x20] sm:$0xff]  }
 0x564   : > { %8205 = vmatprep.mubr.bf16.mxu0 %v6331_v60  ;;  %v14732_v60 = vsel %vm1112_vm1, %v6479_v9, %v6481_v51  ;;  %v14747_v43 = vsel %vm16052_vm12, %v6402_v15, %v6406_v57  ;;  %vm16053_vm8 = vmmov %vm16047_vm0  ;;  %v6347_v25 = vor.u32 %v6346_v41, %v6343_v12  ;;  %v6456_v51 = vsel %vm1112_vm1, %v6453_v42, %v6455_v39  ;;  %v10944_v15 = vld [vmem:[%s15674_s9 + $0x310] ss:$8 sps:$4 sm:$0xff]   ;;  %v10961_v12 = vld [vmem:[%s15674_s9 + $0x364] ss:$8 sps:$4 sm:$0xff]  }
 0x565   : > { %v6410_v10 = vor.u32 %v6409_v33, %v6408_v63  ;;  %v6418_v3 = vrot.slane %v6416_v11, 2  ;;  %vm16054_vm14 = vmmov %vm16047_vm0  ;;  %v6357_v63 = vrot.slane %v6119_v5, 2  ;;  %v6458_v33 = vsel %vm1112_vm1, %v6455_v39, %v6457_v55  ;;  %v10958_v5 = vld [vmem:[%s15674_s9 + $0x354] ss:$8 sps:$4 sm:$0xff]  }
 0x566   : > { %vm16055_vm6 = vmmov %vm16047_vm0  ;;  %v6459_v38 = vrot.slane %v11076_v22, 2  ;;  %v6361_v11 = vrot.slane %v6127_v52, 2  ;;  %v6364_v52 = vrot.slane %v6139_v44, 1  ;;  %v16058_v39 = vshll.u32 %v14291_v2, 16  ;;  %v10962_v44 = vld [vmem:[%s15674_s9 + $0x370] ss:$8 sps:$4 sm:$0xff]  }
 0x567   : > { %7985 = vmatmul.mubr.bf16.gmra.mrb[180].mxu1 %v10930_v46  ;;  %v14755_v49 = vsel %vm16053_vm8, %v6406_v57, %v6410_v10  ;;  %v14762_v6 = vor.u32 %v6418_v3, %v6415_v47  ;;  %v6351_v59 = vsel %vm16055_vm6, %v6347_v25, %v14575_v62  ;;  %vm16056_vm9 = vmmov %vm16047_vm0  ;;  %v10950_v46 = vld [vmem:[%s15674_s9 + $0x330] ss:$8 sps:$4 sm:$0xff]   ;;  %v6358_v57 = vor.u32 %v6357_v63, %v6356_v16 }
 0x568   : > { %vm16057_vm10 = vmmov %vm16047_vm0  ;;  %v6460_v47 = vsel %vm1112_vm1, %v6457_v55, %v6459_v38  ;;  %v10956_v3 = vld [vmem:[%s15674_s9 + $0x350] ss:$8 sps:$4 sm:$0xff]   ;;  %v6362_v41 = vor.u32 %v6361_v11, %v6360_v58  ;;  %v6365_v25 = vrot.slane %v16058_v39, 2  ;;  %v16061_v16 = vshll.u32 %v14324_v26, 16 }
 0x569   : > { %v14766_v9 = vsel %vm16054_vm14, %v6410_v10, %v14762_v6  ;;  %vm16059_vm2 = vmmov %vm16047_vm0  ;;  %v14853_v55 = vld [vmem:[#allocation3 + $0x28] sm:$0xff]  }
 0x56a   : > { %v6366_v2 = vor.u32 %v6365_v25, %v6364_v52  ;;  %v6369_v63 = vrot.slane %v16061_v16, 2  ;;  %vm16062_vm13 = vmmov %vm16047_vm0  ;;  %v14894_v52 = vld [vmem:[#allocation3 + $0x70] sm:$0xff]   ;;  %v10973_v16 = vld [vmem:[%s15674_s9 + $0x3a4] ss:$8 sps:$4 sm:$0xff]  }
 0x56b   : > { %8206 = vmatmul.mubr.bf16.gmra.mrb[116].mxu0 %v6295_v29  ;;  %v6352_v29 = vrot.slane %v6115_v54, 1  ;;  %vm16064_vm0 = vmmov %vm16006_vm5 }
 0x56c   : > { %8246 = vmatprep.mubr.bf16.mxu0 %v14459_v37  ;;  %v10946_v37 = vld [vmem:[%s15674_s9 + $0x314] ss:$8 sps:$4 sm:$0xff]   ;;  %v6367_v22 = vsel %vm16062_vm13, %v6362_v41, %v6366_v2  ;;  %vm16066_vm3 = vmmov %vm16064_vm0 }
 0x56d   : > { %v6354_v54 = vor.u32 %v6353_v1, %v6352_v29  ;;  %v14838_v29 = vld [vmem:[#allocation3 + $0x14] sm:$0xf]  ;;  %v14843_v1 = vld [vmem:[#allocation3 + $0x38] sm:$0xff]   ;;  %vm16067_vm7 = vmmov %vm16064_vm0 }
 0x56e   : > { %vm16069_vm15 = vmmov %vm16064_vm0 }
 0x56f   : > { %v6355_v42 = vsel %vm16056_vm9, %v14575_v62, %v6354_v54  ;;  %v10955_v62 = vld [vmem:[%s15674_s9 + $0x344] ss:$8 sps:$4 sm:$0xff]   ;;  %v6359_v10 = vsel %vm16057_vm10, %v6354_v54, %v6358_v57  ;;  %v14849_v54 = vld [vmem:[#allocation3 + $0x18] sm:$0xff]   ;;  %vm16071_vm11 = vmmov %vm16064_vm0 }
 0x570   : > { %v6853_v11 = vrot.slane %v14849_v54, 3  ;;  %vm16073_vm12 = vmmov %vm16059_vm2 }
 0x571   : > { %vm16074_vm8 = vmmov %vm16064_vm0 }
 0x572   : > { %vm16075_vm14 = vmmov %vm16064_vm0 }
 0x573   : > { %8247 = vmatmul.mubr.bf16.vlgmr.msra.gmra.mrb[44].mxu0 %v6351_v59  ;;  %v6462_v59 = vsel %vm1112_vm1, %v6459_v38, %v6461_v35  ;;  %vm16077_vm6 = vmmov %vm16064_vm0 }
 0x574   : > { %8256 = vmatprep.mubr.bf16.mxu0 %v6456_v51  ;;  %8436 = vmatpush1.bf16.msra.mxu0 %v10941_v56  ;;  %v10964_v56 = vld [vmem:[%s15674_s9 + $0x374] ss:$8 sps:$4 sm:$0xff]   ;;  %v15779_v51 = vrot.slane %v14843_v1, 2  ;;  %vm16079_vm9 = vmmov %vm16064_vm0 }
 0x575   : > { %8437 = vmatprep.subr.bf16.mxu0 %v10946_v37  ;;  %v6363_v37 = vsel %vm16059_vm2, %v6358_v57, %v6362_v41  ;;  %v14867_v57 = vld [vmem:[#allocation3 + $0x40] sm:$0xff]   ;;  %vm16080_vm10 = vmmov %vm16064_vm0 }
 0x576   : > { %v6464_v38 = vsel %vm1112_vm1, %v6461_v35, %v15779_v51  ;;  %v14887_v41 = vld [vmem:[#allocation3 + $0x40] sm:$0xff]   ;;  %v6875_v51 = vrot.slane %v14894_v52, 3  ;;  %vm16082_vm2 = vmmov %vm16064_vm0 }
 0x577   : > { %v14890_v35 = vld [vmem:[#allocation3 + $0x60] sm:$0xff]   ;;  %vm16084_vm13 = vmmov %vm16064_vm0 }
 0x578   : > { %8438 = vmatpush1.bf16.msra.mxu0 %v10944_v15  ;;  %v10967_v15 = vld [vmem:[%s15674_s9 + $0x384] ss:$8 sps:$4 sm:$0xff]   ;;  %v6871_v17 = vrot.slane %v14890_v35, 3 }
 0x579   : > { %8439 = vmatprep.subr.bf16.mxu0 %v10949_v50  ;;  %v5971_v50 = vld [vmem:[#allocation3 + $0x10] sm:$0x8] }
 0x57b   : > { %8257 = vmatmul.mubr.bf16.gmra.mrb[48].mxu0 %v6355_v42 }
 0x57c   : > { %8266 = vmatprep.mubr.bf16.mxu0 %v6458_v33  ;;  %8440 = vmatpush1.bf16.msra.mxu0 %v10947_v28  ;;  %v9653_v28 = vcombine.low %v5971_v50, %v14838_v29  ;;  %v14860_v33 = vld [vmem:[#allocation3 + $0x30] sm:$0xff]  }
 0x57d   : > { %8441 = vmatprep.subr.bf16.mxu0 %v10952_v53  ;;  %v16060_v53 = vshrl.u32 %v14324_v26, 16  ;;  %v10970_v26 = vld [vmem:[%s15674_s9 + $0x394] ss:$8 sps:$4 sm:$0xff]   ;;  %v6859_v39 = vrot.slane %v14860_v33, 3 }
 0x57e   : > { %v6852_v58 = vrot.slane %v9653_v28, 3  ;;  %v6863_v28 = vrot.slane %v14867_v57, 3 }
 0x57f   : > { %v6368_v42 = vrot.slane %v16060_v53, 1  ;;  %v16065_v53 = vshll.u32 %v14374_v19, 16 }
 0x580   : > { %8442 = vmatpush1.bf16.msra.mxu0 %v10950_v46  ;;  %v14862_v46 = vld [vmem:[#allocation3 + $0x38] sm:$0xff]  }
 0x581   : > { %8443 = vmatprep.subr.bf16.mxu0 %v10955_v62  ;;  %v10965_v62 = vld [vmem:[%s15674_s9 + $0x380] ss:$8 sps:$4 sm:$0xff]   ;;  %v6861_v25 = vrot.slane %v14862_v46, 3 }
 0x583   : > { %8267 = vmatmul.mubr.bf16.gmra.mrb[52].mxu0 %v6359_v10  ;;  %v14880_v10 = vld [vmem:[#allocation3 + $0x58] sm:$0xff]  }
 0x584   : > { %8276 = vmatprep.mubr.bf16.mxu0 %v6460_v47  ;;  %8444 = vmatpush1.bf16.msra.mxu0 %v10953_v34  ;;  %v14876_v34 = vld [vmem:[#allocation3 + $0x48] sm:$0xff]   ;;  %v6855_v47 = vrot.slane %v14851_v13, 3 }
 0x585   : > { %8445 = vmatprep.subr.bf16.mxu0 %v10958_v5  ;;  %v14878_v5 = vld [vmem:[#allocation3 + $0x50] sm:$0xff]  }
 0x586   : > { %v14909_v50 = vsel %vm16064_vm0, %v6853_v11, %v6855_v47 }
 0x588   : > { %8446 = vmatpush1.bf16.msra.mxu0 %v10956_v3  ;;  %v6857_v3 = vrot.slane %v14853_v55, 3 }
 0x589   : > { %8447 = vmatprep.subr.bf16.mxu0 %v10961_v12  ;;  %v14885_v12 = vor.u32 %v6369_v63, %v6368_v42  ;;  %v6373_v42 = vrot.slane %v16065_v53, 2  ;;  %v14917_v63 = vld [vmem:[#allocation3 + $0x80] sm:$0xff]   ;;  %v6869_v53 = vrot.slane %v14880_v10, 3 }
 0x58b   : > { %8277 = vmatmul.mubr.bf16.gmra.mrb[56].mxu0 %v6363_v37 }
 0x58c   : > { %8286 = vmatprep.mubr.bf16.mxu0 %v6462_v59  ;;  %8448 = vmatpush1.bf16.msra.mxu0 %v10959_v0  ;;  %v14892_v0 = vld [vmem:[#allocation3 + $0x68] sm:$0xff]  }
 0x58d   : > { %8449 = vmatprep.subr.bf16.mxu0 %v10964_v56  ;;  %v16063_v56 = vshrl.u32 %v14374_v19, 16  ;;  %v10968_v59 = vld [vmem:[%s15674_s9 + $0x390] ss:$8 sps:$4 sm:$0xff]   ;;  %v6873_v4 = vrot.slane %v14892_v0, 3 }
 0x58e   : > { %v14930_v19 = vld [vmem:[#allocation3 + $0x90] sm:$0xff]  }
 0x58f   : > { %v6372_v37 = vrot.slane %v16063_v56, 1  ;;  %v6865_v56 = vrot.slane %v14876_v34, 3 }
 0x590   : > { %8450 = vmatpush1.bf16.msra.mxu0 %v10962_v44  ;;  %v14903_v44 = vld [vmem:[#allocation3 + $0x78] sm:$0xff]  }
 0x591   : > { %8451 = vmatprep.subr.bf16.mxu0 %v10967_v15  ;;  %v14906_v15 = vsel %vm16006_vm5, %v6852_v58, %v6853_v11  ;;  %v14928_v58 = vld [vmem:[#allocation3 + $0x88] sm:$0xff]   ;;  %v14935_v11 = vsel %vm16071_vm11, %v6861_v25, %v6863_v28  ;;  %v14951_v61 = vsel %vm16074_vm8, %v6863_v28, %v6865_v56  ;;  %v14970_v28 = vsel %vm16082_vm2, %v6873_v4, %v6875_v51  ;;  %vm16088_vm5 = vmmov %vm16064_vm0 }
 0x592   : > { %16072 = vst [vmem:[#allocation37_spill] sm:$0xff] %v14935_v11  ;;  %v6877_v11 = vrot.slane %v14903_v44, 3  ;;  %16083 = vst [vmem:[#allocation31_spill] sm:$0xff] %v14970_v28 }
 0x593   : > { %8287 = vmatmul.mubr.bf16.gmra.mrb[60].mxu0 %v6367_v22  ;;  %v14923_v22 = vsel %vm16067_vm7, %v6857_v3, %v6859_v39  ;;  %vm16090_vm7 = vmmov %vm16064_vm0 }
 0x594   : > { %8296 = vmatprep.mubr.bf16.mxu0 %v6464_v38  ;;  %8452 = vmatpush1.bf16.msra.mxu0 %v10965_v62  ;;  %v14920_v62 = vsel %vm16066_vm3, %v6855_v47, %v6857_v3  ;;  %16068 = vst [vmem:[#allocation36_spill] sm:$0xff] %v14923_v22  ;;  %v14926_v38 = vsel %vm16069_vm15, %v6859_v39, %v6861_v25  ;;  %v6867_v47 = vrot.slane %v14878_v5, 3  ;;  %v14942_v39 = vld [vmem:[#allocation3 + $0xa0] ss:$0 sps:$4 sm:$0xff]   ;;  %v10971_v25 = vld [vmem:[%s15674_s9 + $0x3a0] ss:$8 sps:$4 sm:$0xff]   ;;  %vm16089_vm3 = vmmov %vm16064_vm0 }
 0x595   : > { %8453 = vmatprep.subr.bf16.mxu0 %v10970_v26  ;;  %16070 = vst [vmem:[#allocation27_spill] sm:$0xff] %v14926_v38  ;;  %v14932_v26 = vld [vmem:[#allocation3 + $0x98] sm:$0xff]   ;;  %v6371_v3 = vsel %vm16073_vm12, %v6366_v2, %v14885_v12  ;;  %v14964_v38 = vsel %vm16079_vm9, %v6869_v53, %v6871_v17  ;;  %v14967_v22 = vsel %vm16080_vm10, %v6871_v17, %v6873_v4  ;;  %v16087_v17 = vrot.slane %v14843_v1, 2  ;;  %vm16091_vm15 = vmmov %vm16064_vm0 }
 0x596   : > { %v14954_v21 = vsel %vm16075_vm14, %v6865_v56, %v6867_v47  ;;  %v14957_v2 = vsel %vm16077_vm6, %v6867_v47, %v6869_v53  ;;  %16081 = vst [vmem:[#allocation39_spill] sm:$0xff] %v14967_v22  ;;  %v6879_v56 = vrot.slane %v14917_v63, 3  ;;  %v14974_v47 = vsel %vm16084_vm13, %v6875_v51, %v6877_v11  ;;  %v10974_v51 = vld [vmem:[%s15674_s9 + $0x3b0] ss:$8 sps:$4 sm:$0xff]   ;;  %vm16092_vm11 = vmmov %vm16073_vm12 }
 0x597   : > { %16076 = vst [vmem:[#allocation38_spill] sm:$0xff] %v14954_v21  ;;  %16078 = vst [vmem:[#allocation40_spill] sm:$0xff] %v14957_v2  ;;  %v6883_v2 = vrot.slane %v14930_v19, 3  ;;  %v6885_v21 = vrot.slane %v14932_v26, 3  ;;  %v16086_v53 = vrot.slane %v14887_v41, 2  ;;  %v15781_v28 = vrot.slane %v14942_v39, 3 }
 0x598   : > { %8454 = vmatpush1.bf16.msra.mxu0 %v10968_v59  ;;  %v10976_v59 = vld [vmem:[%s15674_s9 + $0x3b4] ss:$8 sps:$4 sm:$0xff]   ;;  %16085 = vst [vmem:[#allocation43_spill] sm:$0xff] %v14974_v47  ;;  %v14985_v4 = vsel %vm16088_vm5, %v6877_v11, %v6879_v56  ;;  %v10980_v11 = vld [vmem:[%s15674_s9 + $0x3c4] ss:$8 sps:$4 sm:$0xff]   ;;  %vm16096_vm12 = vmmov %vm16092_vm11 }
 0x599   : > { %8455 = vmatprep.subr.bf16.mxu0 %v10973_v16  ;;  %v6881_v16 = vrot.slane %v14928_v58, 3  ;;  %v6466_v22 = vsel %vm1112_vm1, %v16087_v17, %v16086_v53  ;;  %v14998_v1 = vsel %vm16090_vm7, %v6883_v2, %v6885_v21  ;;  %v11080_v53 = vld [vmem:[#allocation3 + $0x48] sm:$0xff]   ;;  %v16093_v17 = vshrl.u32 %v14407_v36, 16  ;;  %vm16097_vm8 = vmmov %vm16092_vm11 }
 0x59a   : > { %vm16124_vm14 = vmmov %vm16097_vm8  ;;  %vm16127_vm6 = vsmask.f32 5376 }
 0x59b   : > { %8297 = vmatmul.mubr.bf16.gmra.mrb[64].mxu0 %v6371_v3  ;;  %v14992_v47 = vsel %vm16064_vm0, %v6879_v56, %v6881_v16  ;;  %v14995_v3 = vsel %vm16089_vm3, %v6881_v16, %v6883_v2  ;;  %v6467_v56 = vrot.slane %v11080_v53, 2  ;;  %v10978_v16 = vld [vmem:[%s15674_s9 + $0x3c0] ss:$8 sps:$4 sm:$0xff]   ;;  %v10983_v2 = vld [vmem:[%s15674_s9 + $0x3d4] ss:$8 sps:$4 sm:$0xff]   ;;  %vm16128_vm9 = vmmov %vm16127_vm6 }
 0x59c   : > { %8306 = vmatprep.mubr.bf16.mxu0 %v6466_v22  ;;  %8456 = vmatpush1.bf16.msra.mxu0 %v10971_v25  ;;  %v15006_v22 = vsel %vm16091_vm15, %v6885_v21, %v15781_v28  ;;  %v6374_v25 = vor.u32 %v6373_v42, %v6372_v37  ;;  %v6376_v21 = vrot.slane %v16093_v17, 1  ;;  %v16094_v37 = vshll.u32 %v14407_v36, 16  ;;  %v11081_v36 = vld [vmem:[#allocation3 + $0x50] sm:$0xff]   ;;  %vm16132_vm10 = vmmov %vm16127_vm6 }
 0x59d   : > { %8457 = vmatprep.subr.bf16.mxu0 %v10976_v59  ;;  %vm16136_vm2 = vmmov %vm16127_vm6 }
 0x59e   : > { %v6375_v59 = vsel %vm16092_vm11, %v14885_v12, %v6374_v25  ;;  %v6377_v42 = vrot.slane %v16094_v37, 2  ;;  %v10986_v12 = vld [vmem:[%s15674_s9 + $0x3e4] ss:$8 sps:$4 sm:$0xff]   ;;  %vm16141_vm13 = vmmov %vm16136_vm2 }
 0x59f   : > { %vm16146_vm5 = vmmov %vm16136_vm2 }
 0x5a0   : > { %8458 = vmatpush1.bf16.msra.mxu0 %v10974_v51  ;;  %v16095_v51 = vrot.slane %v14887_v41, 2  ;;  %v6378_v17 = vor.u32 %v6377_v42, %v6376_v21  ;;  %v10984_v41 = vld [vmem:[%s15674_s9 + $0x3e0] ss:$8 sps:$4 sm:$0xff]   ;;  %vm16150_vm0 = vmmov %vm16136_vm2 }
 0x5a1   : > { %8459 = vmatprep.subr.bf16.mxu0 %v10980_v11  ;;  %v10981_v11 = vld [vmem:[%s15674_s9 + $0x3d0] ss:$8 sps:$4 sm:$0xff]   ;;  %vm16155_vm3 = vmmov %vm16150_vm0 }
 0x5a2   : > { %v6468_v53 = vsel %vm1112_vm1, %v16095_v51, %v6467_v56  ;;  %v6379_v21 = vsel %vm16096_vm12, %v6374_v25, %v6378_v17  ;;  %vm16156_vm7 = vmmov %vm16150_vm0 }
 0x5a3   : > { %8307 = vmatmul.mubr.bf16.gmra.mrb[68].mxu0 %v6375_v59  ;;  %v6469_v59 = vrot.slane %v11081_v36, 2  ;;  %vm16157_vm15 = vmmov %vm16150_vm0 }
 0x5a4   : > { %8316 = vmatprep.mubr.bf16.mxu0 %v6468_v53  ;;  %8460 = vmatpush1.bf16.msra.mxu0 %v10978_v16  ;;  %v10989_v53 = vld [vmem:[%s15674_s9 + $0x3f0] ss:$8 sps:$4 sm:$0xff]   ;;  %vm16158_vm11 = vmmov %vm16150_vm0 }
 0x5a5   : > { %8461 = vmatprep.subr.bf16.mxu0 %v10983_v2  ;;  %v10991_v2 = vld [vmem:[%s15674_s9 + $0x3f4] ss:$8 sps:$4 sm:$0xff]   ;;  %v6470_v51 = vsel %vm1112_vm1, %v6467_v56, %v6469_v59  ;;  %v6383_v56 = vsel %vm16097_vm8, %v6378_v17, %v14676_v32  ;;  %vm16159_vm12 = vmmov %vm16150_vm0 }
 0x5a6   : > { %vm16160_vm8 = vmmov %vm16150_vm0 }
 0x5a8   : > { %8462 = vmatpush1.bf16.msra.mxu0 %v10981_v11  ;;  %v10997_v11 = vld [vmem:[%s15674_s9 + $0x404] ss:$8 sps:$4 sm:$0xff]  }
 0x5a9   : > { %v15029_v28 = vpop.f32.mrb[108].mxu1  ;;  %8463 = vmatprep.subr.bf16.mxu0 %v10986_v12 }
 0x5aa   : > { %v15031_v37 = vpop.f32.mrb[109].mxu1 }
 0x5ab   : > { %v15036_v16 = vpop.f32.mrb[110].mxu1  ;;  %8317 = vmatmul.mubr.bf16.gmra.mrb[72].mxu0 %v6379_v21 }
 0x5ac   : > { %v15042_v42 = vpop.f32.mrb[111].mxu1  ;;  %8326 = vmatprep.mubr.bf16.mxu0 %v6470_v51  ;;  %8464 = vmatpush1.bf16.msra.mxu0 %v10984_v41  ;;  %v16098_v41 = vrot.slane %v14494_v31, 2 }
 0x5ad   : > { %8465 = vmatprep.subr.bf16.mxu0 %v10991_v2 }
 0x5ae   : > { %v6472_v2 = vsel %vm1112_vm1, %v6469_v59, %v16098_v41 }
 0x5b0   : > { %8466 = vmatpush1.bf16.msra.mxu0 %v10989_v53 }
 0x5b1   : > { %8656 = vmatprep.subr.bf16.mxu0 %v10997_v11 }
 0x5b2   : > { %v15051_v12 = vpop.f32.mrb[112].mxu1 }
 0x5b3   : > { %v15053_v25 = vpop.f32.mrb[113].mxu1  ;;  %8327 = vmatmul.mubr.bf16.gmra.mrb[76].mxu0 %v6383_v56 }
 0x5b4   : > { %v15057_v36 = vpop.f32.mrb[114].mxu1  ;;  %8336 = vmatprep.mubr.bf16.mxu0 %v6472_v2 }
 0x5b5   : > { %v15062_v21 = vpop.f32.mrb[115].mxu1 }
 0x5ba   : > { %v15065_v51 = vpop.f32.mrb[116].mxu1 }
 0x5bb   : > { %8337 = vmatmul.mubr.bf16.gmra.mrb[80].mxu0 %v14695_v30  ;;  %v15068_v53 = vpop.f32.mrb[117].mxu1 }
 0x5bc   : > { %8346 = vmatprep.mubr.bf16.mxu0 %v14681_v48  ;;  %v15070_v11 = vpop.f32.mrb[118].mxu1 }
 0x5bd   : > { %v15072_v32 = vpop.f32.mrb[119].mxu1 }
 0x5c2   : > { %v15075_v31 = vpop.f32.mrb[120].mxu1 }
 0x5c3   : > { %8347 = vmatmul.mubr.bf16.gmra.mrb[84].mxu0 %v14707_v7  ;;  %v15078_v17 = vpop.f32.mrb[121].mxu1 }
 0x5c4   : > { %8356 = vmatprep.mubr.bf16.mxu0 %v14701_v23  ;;  %v15080_v59 = vpop.f32.mrb[122].mxu1 }
 0x5c5   : > { %v15082_v30 = vpop.f32.mrb[123].mxu1 }
 0x5c6   : > { %16099 = vst [vmem:[#allocation42_spill] sm:$0xff] %v15082_v30 }
 0x5ca   : > { %v15085_v48 = vpop.f32.mrb[124].mxu1 }
 0x5cb   : > { %8357 = vmatmul.mubr.bf16.gmra.mrb[88].mxu0 %v14717_v45  ;;  %v15088_v56 = vpop.f32.mrb[125].mxu1 }
 0x5cc   : > { %8366 = vmatprep.mubr.bf16.mxu0 %v14710_v20  ;;  %16100 = vst [vmem:[#allocation41_spill] sm:$0xff] %v15088_v56  ;;  %v15090_v41 = vpop.f32.mrb[126].mxu1  ;;  %v6681_v56 = vshll.u32 %v14851_v13, 16 }
 0x5cd   : > { %16101 = vst [vmem:[#allocation44_spill] sm:$0xff] %v15090_v41  ;;  %v15092_v7 = vpop.f32.mrb[127].mxu1 }
 0x5ce   : > { %16102 = vst [vmem:[#allocation45_spill] sm:$0xff] %v15092_v7 }
 0x5d2   : > { %v15095_v23 = vpop.f32.mrb[128].mxu1 }
 0x5d3   : > { %8367 = vmatmul.mubr.bf16.gmra.mrb[92].mxu0 %v14729_v24  ;;  %16103 = vst [vmem:[#allocation46_spill] sm:$0xff] %v15095_v23  ;;  %v15098_v2 = vpop.f32.mrb[129].mxu1  ;;  %v6678_v23 = vshrl.u32 %v14851_v13, 16 }
 0x5d4   : > { %8376 = vmatprep.mubr.bf16.mxu0 %v14720_v18  ;;  %16104 = vst [vmem:[#allocation48_spill] sm:$0xff] %v15098_v2  ;;  %v15100_v30 = vpop.f32.mrb[130].mxu1 }
 0x5d5   : > { %16105 = vst [vmem:[#allocation47_spill] sm:$0xff] %v15100_v30  ;;  %v15102_v45 = vpop.f32.mrb[131].mxu1 }
 0x5d6   : > { %16106 = vst [vmem:[#allocation50_spill] sm:$0xff] %v15102_v45 }
 0x5da   : > { %v15105_v20 = vpop.f32.mrb[132].mxu1 }
 0x5db   : > { %8377 = vmatmul.mubr.bf16.gmra.mrb[96].mxu0 %v14737_v40  ;;  %16107 = vst [vmem:[#allocation49_spill] sm:$0xff] %v15105_v20  ;;  %v15108_v41 = vpop.f32.mrb[133].mxu1  ;;  %v10977_v20 = vld [vmem:[#allocation3 + $0x98] ss:$0 sps:$4 sm:$0x77]  }
 0x5dc   : > { %8386 = vmatprep.mubr.bf16.mxu0 %v14732_v60  ;;  %16108 = vst [vmem:[#allocation51_spill] sm:$0xff] %v15108_v41  ;;  %v15110_v7 = vpop.f32.mrb[134].mxu1 }
 0x5dd   : > { %16109 = vst [vmem:[#allocation73_spill] sm:$0xff] %v15110_v7  ;;  %v15112_v24 = vpop.f32.mrb[135].mxu1  ;;  %v6425_v7 = vshll.u32 %v10977_v20, 16 }
 0x5de   : > { %16110 = vst [vmem:[#allocation52_spill] sm:$0xff] %v15112_v24 }
 0x5e2   : > { %v15115_v18 = vpop.f32.mrb[136].mxu1 }
 0x5e3   : > { %8387 = vmatmul.mubr.bf16.gmra.mrb[100].mxu0 %v14747_v43  ;;  %16111 = vst [vmem:[#allocation74_spill] sm:$0xff] %v15115_v18  ;;  %v15118_v30 = vpop.f32.mrb[137].mxu1  ;;  %v6422_v18 = vshrl.u32 %v10977_v20, 16 }
 0x5e4   : > { %8396 = vmatprep.mubr.bf16.mxu0 %v14740_v27  ;;  %16112 = vst [vmem:[#allocation76_spill] sm:$0xff] %v15118_v30  ;;  %v15120_v45 = vpop.f32.mrb[138].mxu1  ;;  %v6487_v30 = vrot.slane %v10977_v20, 2 }
 0x5e5   : > { %16113 = vst [vmem:[#allocation75_spill] sm:$0xff] %v15120_v45  ;;  %v15122_v40 = vpop.f32.mrb[139].mxu1  ;;  %v6424_v41 = vrot.slane %v6422_v18, 1  ;;  %v6427_v45 = vrot.slane %v6425_v7, 2  ;;  %v6669_v7 = vshrl.u32 %v14849_v54, 16 }
 0x5e6   : > { %16114 = vst [vmem:[#allocation78_spill] sm:$0xff] %v15122_v40  ;;  %v16119_v40 = vrot.slane %v14653_v8, 2 }
 0x5ea   : > { %v15125_v60 = vpop.f32.mrb[140].mxu1 }
 0x5eb   : > { %8397 = vmatmul.mubr.bf16.gmra.mrb[104].mxu0 %v14755_v49  ;;  %16115 = vst [vmem:[#allocation77_spill] sm:$0xff] %v15125_v60  ;;  %v15128_v24 = vpop.f32.mrb[141].mxu1  ;;  %v6488_v49 = vsel %vm1112_vm1, %v16119_v40, %v6487_v30 }
 0x5ec   : > { %8406 = vmatprep.mubr.bf16.mxu0 %v14752_v14  ;;  %16116 = vst [vmem:[#allocation53_spill] sm:$0xff] %v15128_v24  ;;  %v15130_v43 = vpop.f32.mrb[142].mxu1  ;;  %v5933_v14 = vld [vmem:[#allocation3 + $0x10] sm:$0xc] }
 0x5ed   : > { %16117 = vst [vmem:[#allocation54_spill] sm:$0xff] %v15130_v43  ;;  %v15132_v27 = vpop.f32.mrb[143].mxu1  ;;  %v9633_v43 = vcombine.low %v5933_v14, %v14838_v29 }
 0x5ee   : > { %16118 = vst [vmem:[#allocation55_spill] sm:$0xff] %v15132_v27  ;;  %v6428_v27 = vor.u32 %v6427_v45, %v6424_v41 }
 0x5ef   : > { %v6661_v8 = vshrl.u32 %v9633_v43, 16  ;;  %v6664_v18 = vshll.u32 %v9633_v43, 16 }
 0x5f0   : > { %v6429_v40 = vsel %vm16124_vm14, %v14762_v6, %v6428_v27  ;;  %vm16161_vm14 = vmmov %vm16150_vm0 }
 0x5f1   : > { %v6663_v41 = vrot.slane %v6661_v8, 2  ;;  %v6666_v45 = vrot.slane %v6664_v18, 3 }
 0x5f2   : > { %v15138_v60 = vpop.f32.mrb[144].mxu1 }
 0x5f3   : > { %8407 = vmatmul.mubr.bf16.gmra.mrb[108].mxu0 %v14766_v9  ;;  %16120 = vst [vmem:[#allocation56_spill] sm:$0xff] %v15138_v60  ;;  %v15140_v24 = vpop.f32.mrb[145].mxu1  ;;  %v6672_v9 = vshll.u32 %v14849_v54, 16  ;;  %v6667_v6 = vor.u32 %v6666_v45, %v6663_v41  ;;  %v6601_v41 = vrot.slane %v9633_v43, 2  ;;  %v11000_v43 = vld [vmem:[%s15674_s9 + $0x410] ss:$8 sps:$4 sm:$0xff]  }
 0x5f4   : > { %8416 = vmatprep.mubr.bf16.mxu0 %v6488_v49  ;;  %16121 = vst [vmem:[#allocation57_spill] sm:$0xff] %v15140_v24  ;;  %v15143_v2 = vpop.f32.mrb[146].mxu1  ;;  %v6671_v49 = vrot.slane %v6669_v7, 2 }
 0x5f5   : > { %16122 = vst [vmem:[#allocation58_spill] sm:$0xff] %v15143_v2  ;;  %v15145_v20 = vpop.f32.mrb[147].mxu1  ;;  %v6674_v60 = vrot.slane %v6672_v9, 3  ;;  %v6680_v9 = vrot.slane %v6678_v23, 2  ;;  %v11002_v23 = vld [vmem:[%s15674_s9 + $0x414] ss:$8 sps:$4 sm:$0xff]  }
 0x5f6   : > { %16123 = vst [vmem:[#allocation59_spill] sm:$0xff] %v15145_v20 }
 0x5f7   : > { %v6675_v2 = vor.u32 %v6674_v60, %v6671_v49 }
 0x5f9   : > { %v6676_v7 = vsel %vm16127_vm6, %v6667_v6, %v6675_v2  ;;  %vm16162_vm6 = vmmov %vm16150_vm0 }
 0x5fa   : > { %v15151_v24 = vpop.f32.mrb[148].mxu1 }
 0x5fb   : > { %8417 = vmatmul.mubr.bf16.gmra.mrb[112].mxu0 %v6429_v40  ;;  %v15153_v29 = vpop.f32.mrb[149].mxu1  ;;  %v6683_v40 = vrot.slane %v6681_v56, 3  ;;  %v10995_v56 = vld [vmem:[%s15674_s9 + $0x400] ss:$8 sps:$4 sm:$0xff]  }
 0x5fc   : > { %8426 = vmatprep.mubr.bf16.mxu0 %v6487_v30  ;;  %v15155_v14 = vpop.f32.mrb[150].mxu1 }
 0x5fd   : > { %16125 = vst [vmem:[#allocation60_spill] sm:$0xff] %v15155_v14  ;;  %v15157_v20 = vpop.f32.mrb[151].mxu1  ;;  %v6684_v49 = vor.u32 %v6683_v40, %v6680_v9  ;;  %v6687_v14 = vshrl.u32 %v14853_v55, 16 }
 0x5fe   : > { %16126 = vst [vmem:[#allocation5_spill] sm:$0xff] %v15157_v20  ;;  %v6602_v20 = vrot.slane %v14849_v54, 2 }
 0x5ff   : > { %v6685_v54 = vsel %vm16128_vm9, %v6675_v2, %v6684_v49  ;;  %v6689_v6 = vrot.slane %v6687_v14, 2  ;;  %v6604_v2 = vrot.slane %v14851_v13, 2  ;;  %vm16163_vm9 = vmmov %vm16150_vm0 }
 0x600   : > { %v6603_v45 = vsel %vm1112_vm1, %v6601_v41, %v6602_v20  ;;  %v11008_v41 = vld [vmem:[%s15674_s9 + $0x424] ss:$8 sps:$4 sm:$0xff]  }
 0x602   : > { %v15162_v30 = vpop.f32.mrb[152].mxu1 }
 0x603   : > { %8427 = vmatmul.mubr.bf16.gmra.mrb[116].mxu0 %v6428_v27  ;;  %v15164_v8 = vpop.f32.mrb[153].mxu1  ;;  %v6690_v27 = vshll.u32 %v14853_v55, 16 }
 0x604   : > { %8467 = vmatprep.mubr.bf16.mxu0 %v6676_v7  ;;  %v15166_v18 = vpop.f32.mrb[154].mxu1 }
 0x605   : > { %v15169_v60 = vpop.f32.mrb[155].mxu1  ;;  %v6692_v7 = vrot.slane %v6690_v27, 3 }
 0x607   : > { %v6693_v27 = vor.u32 %v6692_v7, %v6689_v6 }
 0x609   : > { %v6694_v13 = vsel %vm16132_vm10, %v6684_v49, %v6693_v27  ;;  %v6606_v49 = vrot.slane %v14853_v55, 2  ;;  %vm16164_vm10 = vmmov %vm16150_vm0 }
 0x60a   : > { %v15181_v9 = vpop.f32.mrb[156].mxu1 }
 0x60b   : > { %8468 = vmatmul.mubr.bf16.vlgmr.msra.gmra.mrb[44].mxu0 %v6603_v45  ;;  %v15186_v40 = vpop.f32.mrb[157].mxu1 }
 0x60c   : > { %8477 = vmatprep.mubr.bf16.mxu0 %v6685_v54  ;;  %8657 = vmatpush1.bf16.msra.mxu0 %v10995_v56  ;;  %16129 = vst [vmem:[#allocation79_spill] sm:$0xff] %v15186_v40  ;;  %v15191_v45 = vpop.f32.mrb[158].mxu1  ;;  %v6696_v56 = vshrl.u32 %v14860_v33, 16  ;;  %v6699_v54 = vshll.u32 %v14860_v33, 16  ;;  %v11013_v40 = vld [vmem:[%s15674_s9 + $0x434] ss:$8 sps:$4 sm:$0xff]  }
 0x60d   : > { %8658 = vmatprep.subr.bf16.mxu0 %v11002_v23  ;;  %16130 = vst [vmem:[#allocation7_spill] sm:$0xff] %v15191_v45  ;;  %v15194_v14 = vpop.f32.mrb[159].mxu1  ;;  %v11006_v23 = vld [vmem:[%s15674_s9 + $0x420] ss:$8 sps:$4 sm:$0xff]   ;;  %v6605_v45 = vsel %vm1112_vm1, %v6602_v20, %v6604_v2  ;;  %v11018_v20 = vld [vmem:[%s15674_s9 + $0x444] ss:$8 sps:$4 sm:$0xff]  }
 0x60e   : > { %16131 = vst [vmem:[#allocation6_spill] sm:$0xff] %v15194_v14  ;;  %v6698_v6 = vrot.slane %v6696_v56, 2  ;;  %v6701_v7 = vrot.slane %v6699_v54, 3 }
 0x610   : > { %8659 = vmatpush1.bf16.msra.mxu0 %v11000_v43  ;;  %v11011_v43 = vld [vmem:[%s15674_s9 + $0x430] ss:$8 sps:$4 sm:$0xff]   ;;  %v6702_v54 = vor.u32 %v6701_v7, %v6698_v6 }
 0x611   : > { %8660 = vmatprep.subr.bf16.mxu0 %v11008_v41 }
 0x612   : > { %v15206_v14 = vpop.f32.mrb[160].mxu1  ;;  %v6703_v55 = vsel %vm16136_vm2, %v6693_v27, %v6702_v54  ;;  %v6608_v27 = vrot.slane %v14860_v33, 2  ;;  %vm16165_vm2 = vmmov %vm16150_vm0 }
 0x613   : > { %8478 = vmatmul.mubr.bf16.gmra.mrb[48].mxu0 %v6605_v45  ;;  %v15211_v41 = vpop.f32.mrb[161].mxu1 }
 0x614   : > { %8487 = vmatprep.mubr.bf16.mxu0 %v6694_v13  ;;  %8661 = vmatpush1.bf16.msra.mxu0 %v11006_v23  ;;  %16133 = vst [vmem:[#allocation8_spill] sm:$0xff] %v15211_v41  ;;  %v15216_v45 = vpop.f32.mrb[162].mxu1  ;;  %v6705_v23 = vshrl.u32 %v14862_v46, 16  ;;  %v6708_v13 = vshll.u32 %v14862_v46, 16  ;;  %v11024_v41 = vld [vmem:[%s15674_s9 + $0x454] ss:$8 sps:$4 sm:$0xff]  }
 0x615   : > { %8662 = vmatprep.subr.bf16.mxu0 %v11013_v40  ;;  %16134 = vst [vmem:[#allocation11_spill] sm:$0xff] %v15216_v45  ;;  %v15219_v56 = vpop.f32.mrb[163].mxu1  ;;  %v11016_v40 = vld [vmem:[%s15674_s9 + $0x440] ss:$8 sps:$4 sm:$0xff]   ;;  %v6607_v45 = vsel %vm1112_vm1, %v6604_v2, %v6606_v49  ;;  %v11029_v2 = vld [vmem:[%s15674_s9 + $0x464] ss:$8 sps:$4 sm:$0xff]  }
 0x616   : > { %16135 = vst [vmem:[#allocation9_spill] sm:$0xff] %v15219_v56  ;;  %v6707_v6 = vrot.slane %v6705_v23, 2  ;;  %v6710_v7 = vrot.slane %v6708_v13, 3 }
 0x618   : > { %8663 = vmatpush1.bf16.msra.mxu0 %v11011_v43  ;;  %v11022_v43 = vld [vmem:[%s15674_s9 + $0x450] ss:$8 sps:$4 sm:$0xff]   ;;  %v6711_v13 = vor.u32 %v6710_v7, %v6707_v6 }
 0x619   : > { %8664 = vmatprep.subr.bf16.mxu0 %v11018_v20 }
 0x61a   : > { %v15231_v56 = vpop.f32.mrb[164].mxu1  ;;  %v6712_v33 = vsel %vm16141_vm13, %v6702_v54, %v6711_v13  ;;  %vm9305_vm13 = vcmask 1040384  }
 0x61b   : > { %8488 = vmatmul.mubr.bf16.gmra.mrb[52].mxu0 %v6607_v45  ;;  %16137 = vst [vmem:[#allocation13_spill] sm:$0xff] %v15231_v56  ;;  %v15236_v20 = vpop.f32.mrb[165].mxu1 }
 0x61c   : > { %8497 = vmatprep.mubr.bf16.mxu0 %v6703_v55  ;;  %8665 = vmatpush1.bf16.msra.mxu0 %v11016_v40  ;;  %16138 = vst [vmem:[#allocation10_spill] sm:$0xff] %v15236_v20  ;;  %v15241_v45 = vpop.f32.mrb[166].mxu1  ;;  %v6714_v40 = vshrl.u32 %v14867_v57, 16  ;;  %v6717_v55 = vshll.u32 %v14867_v57, 16  ;;  %v11033_v20 = vld [vmem:[%s15674_s9 + $0x474] ss:$8 sps:$4 sm:$0xff]  }
 0x61d   : > { %8666 = vmatprep.subr.bf16.mxu0 %v11024_v41  ;;  %16139 = vst [vmem:[#allocation12_spill] sm:$0xff] %v15241_v45  ;;  %v15244_v23 = vpop.f32.mrb[167].mxu1  ;;  %v11027_v41 = vld [vmem:[%s15674_s9 + $0x460] ss:$8 sps:$4 sm:$0xff]   ;;  %v6609_v45 = vsel %vm1112_vm1, %v6606_v49, %v6608_v27  ;;  %v6610_v49 = vrot.slane %v14862_v46, 2 }
 0x61e   : > { %16140 = vst [vmem:[#allocation14_spill] sm:$0xff] %v15244_v23  ;;  %v6716_v6 = vrot.slane %v6714_v40, 2  ;;  %v6719_v7 = vrot.slane %v6717_v55, 3  ;;  %v6723_v40 = vshrl.u32 %v14876_v34, 16  ;;  %v6726_v55 = vshll.u32 %v14876_v34, 16 }
 0x620   : > { %8667 = vmatpush1.bf16.msra.mxu0 %v11022_v43  ;;  %v11031_v43 = vld [vmem:[%s15674_s9 + $0x470] ss:$8 sps:$4 sm:$0xff]   ;;  %v6720_v54 = vor.u32 %v6719_v7, %v6716_v6  ;;  %v6612_v6 = vrot.slane %v14867_v57, 2 }
 0x621   : > { %8668 = vmatprep.subr.bf16.mxu0 %v11029_v2 }
 0x622   : > { %v15256_v23 = vpop.f32.mrb[168].mxu1 }
 0x623   : > { %8498 = vmatmul.mubr.bf16.gmra.mrb[56].mxu0 %v6609_v45  ;;  %16142 = vst [vmem:[#allocation15_spill] sm:$0xff] %v15256_v23  ;;  %v15261_v2 = vpop.f32.mrb[169].mxu1  ;;  %v6725_v23 = vrot.slane %v6723_v40, 2 }
 0x624   : > { %8507 = vmatprep.mubr.bf16.mxu0 %v6712_v33  ;;  %8669 = vmatpush1.bf16.msra.mxu0 %v11027_v41  ;;  %16143 = vst [vmem:[#allocation16_spill] sm:$0xff] %v15261_v2  ;;  %v15263_v56 = vpop.f32.mrb[170].mxu1  ;;  %v6611_v41 = vsel %vm1112_vm1, %v6608_v27, %v6610_v49  ;;  %v6721_v33 = vsel %vm16146_vm5, %v6711_v13, %v6720_v54  ;;  %v6728_v2 = vrot.slane %v6726_v55, 3  ;;  %v6735_v27 = vshll.u32 %v14878_v5, 16 }
 0x625   : > { %8670 = vmatprep.subr.bf16.mxu0 %v11033_v20  ;;  %16144 = vst [vmem:[#allocation17_spill] sm:$0xff] %v15263_v56  ;;  %v15266_v45 = vpop.f32.mrb[171].mxu1  ;;  %v6613_v13 = vsel %vm1112_vm1, %v6610_v49, %v6612_v6  ;;  %v6744_v49 = vshll.u32 %v14880_v10, 16 }
 0x626   : > { %16145 = vst [vmem:[#allocation18_spill] sm:$0xff] %v15266_v45  ;;  %v6729_v45 = vor.u32 %v6728_v2, %v6725_v23  ;;  %v6614_v23 = vrot.slane %v14876_v34, 2 }
 0x628   : > { %8671 = vmatpush1.bf16.msra.mxu0 %v11031_v43  ;;  %v6732_v43 = vshrl.u32 %v14878_v5, 16  ;;  %v6730_v40 = vsel %vm16150_vm0, %v6720_v54, %v6729_v45  ;;  %v6615_v54 = vsel %vm1112_vm1, %v6612_v6, %v6614_v23 }
 0x62a   : > { %v15272_v20 = vpop.f32.mrb[172].mxu1  ;;  %v6734_v55 = vrot.slane %v6732_v43, 2 }
 0x62b   : > { %8508 = vmatmul.mubr.bf16.gmra.mrb[60].mxu0 %v6611_v41  ;;  %v15274_v56 = vpop.f32.mrb[173].mxu1  ;;  %v6737_v41 = vrot.slane %v6735_v27, 3 }
 0x62c   : > { %8517 = vmatprep.mubr.bf16.mxu0 %v6721_v33  ;;  %16147 = vst [vmem:[#allocation19_spill] sm:$0xff] %v15274_v56  ;;  %v15276_v46 = vpop.f32.mrb[174].mxu1  ;;  %v6741_v56 = vshrl.u32 %v14880_v10, 16 }
 0x62d   : > { %16148 = vst [vmem:[#allocation20_spill] sm:$0xff] %v15276_v46  ;;  %v15279_v7 = vpop.f32.mrb[175].mxu1 }
 0x62e   : > { %16149 = vst [vmem:[#allocation21_spill] sm:$0xff] %v15279_v7  ;;  %v6738_v7 = vor.u32 %v6737_v41, %v6734_v55  ;;  %v6743_v27 = vrot.slane %v6741_v56, 2 }
 0x630   : > { %v6739_v43 = vsel %vm16155_vm3, %v6729_v45, %v6738_v7 }
 0x632   : > { %v15285_v33 = vpop.f32.mrb[176].mxu1 }
 0x633   : > { %8518 = vmatmul.mubr.bf16.gmra.mrb[64].mxu0 %v6613_v13  ;;  %16151 = vst [vmem:[#allocation22_spill] sm:$0xff] %v15285_v33  ;;  %v15287_v46 = vpop.f32.mrb[177].mxu1  ;;  %v6746_v13 = vrot.slane %v6744_v49, 3  ;;  %v6753_v33 = vshll.u32 %v14890_v35, 16 }
 0x634   : > { %8527 = vmatprep.mubr.bf16.mxu0 %v6730_v40  ;;  %16152 = vst [vmem:[#allocation23_spill] sm:$0xff] %v15287_v46  ;;  %v15289_v57 = vpop.f32.mrb[178].mxu1  ;;  %v6750_v46 = vshrl.u32 %v14890_v35, 16 }
 0x635   : > { %16153 = vst [vmem:[#allocation24_spill] sm:$0xff] %v15289_v57  ;;  %v15292_v2 = vpop.f32.mrb[179].mxu1  ;;  %v6747_v41 = vor.u32 %v6746_v13, %v6743_v27  ;;  %v6755_v49 = vrot.slane %v6753_v33, 3  ;;  %v6768_v33 = vshrl.u32 %v14894_v52, 16 }
 0x636   : > { %16154 = vst [vmem:[#allocation25_spill] sm:$0xff] %v15292_v2  ;;  %v6616_v2 = vrot.slane %v14878_v5, 2  ;;  %v6752_v45 = vrot.slane %v6750_v46, 2  ;;  %v6762_v5 = vshll.u32 %v14892_v0, 16 }
 0x637   : > { %v6748_v56 = vsel %vm16156_vm7, %v6738_v7, %v6747_v41  ;;  %v6620_v7 = vrot.slane %v14890_v35, 2  ;;  %v6780_v35 = vshll.u32 %v14903_v44, 16 }
 0x638   : > { %v6617_v6 = vsel %vm1112_vm1, %v6614_v23, %v6616_v2  ;;  %v6764_v23 = vrot.slane %v6762_v5, 3 }
 0x63a   : > { %v15298_v40 = vpop.f32.mrb[180].mxu1 }
 0x63b   : > { %8528 = vmatmul.mubr.bf16.gmra.mrb[68].mxu0 %v6615_v54  ;;  %v15300_v57 = vpop.f32.mrb[181].mxu1  ;;  %v6618_v54 = vrot.slane %v14880_v10, 2  ;;  %v6771_v10 = vshll.u32 %v14894_v52, 16 }
 0x63c   : > { %8537 = vmatprep.mubr.bf16.mxu0 %v6739_v43  ;;  %v7990_v34 = vpop.f32.mrb[182].mxu1  ;;  %v6756_v43 = vor.u32 %v6755_v49, %v6752_v45  ;;  %v6770_v45 = vrot.slane %v6768_v33, 2 }
 0x63d   : > { %v7991_v55 = vpop.f32.mrb[183].mxu1  ;;  %v6759_v34 = vshrl.u32 %v14892_v0, 16  ;;  %v6619_v27 = vsel %vm1112_vm1, %v6616_v2, %v6618_v54  ;;  %v6773_v2 = vrot.slane %v6771_v10, 3 }
 0x63e   : > { %v6757_v13 = vsel %vm16157_vm15, %v6747_v41, %v6756_v43  ;;  %v6622_v41 = vrot.slane %v14892_v0, 2  ;;  %v6789_v0 = vshll.u32 %v14917_v63, 16 }
 0x63f   : > { %v6761_v55 = vrot.slane %v6759_v34, 2  ;;  %v6774_v49 = vor.u32 %v6773_v2, %v6770_v45  ;;  %v6777_v34 = vshrl.u32 %v14903_v44, 16  ;;  %v6795_v45 = vshrl.u32 %v14928_v58, 16 }
 0x640   : > { %v6623_v5 = vsel %vm1112_vm1, %v6620_v7, %v6622_v41 }
 0x641   : > { %v6765_v46 = vor.u32 %v6764_v23, %v6761_v55  ;;  %v6786_v23 = vshrl.u32 %v14917_v63, 16 }
 0x643   : > { %8538 = vmatmul.mubr.bf16.gmra.mrb[72].mxu0 %v6617_v6  ;;  %v6621_v6 = vsel %vm1112_vm1, %v6618_v54, %v6620_v7  ;;  %v6782_v54 = vrot.slane %v6780_v35, 3  ;;  %v6791_v7 = vrot.slane %v6789_v0, 3  ;;  %v6797_v35 = vrot.slane %v6795_v45, 2 }
 0x644   : > { %8547 = vmatprep.mubr.bf16.mxu0 %v6748_v56  ;;  %v6766_v56 = vsel %vm16158_vm11, %v6756_v43, %v6765_v46  ;;  %v6624_v43 = vrot.slane %v14894_v52, 2  ;;  %v6798_v52 = vshll.u32 %v14928_v58, 16 }
 0x646   : > { %v6625_v33 = vsel %vm1112_vm1, %v6622_v41, %v6624_v43  ;;  %v6800_v41 = vrot.slane %v6798_v52, 3  ;;  %v6822_v52 = vshrl.u32 %v14942_v39, 16 }
 0x64b   : > { %8548 = vmatmul.mubr.bf16.gmra.mrb[76].mxu0 %v6619_v27  ;;  %v6775_v27 = vsel %vm16159_vm12, %v6765_v46, %v6774_v49  ;;  %v6626_v46 = vrot.slane %v14903_v44, 2  ;;  %v6807_v44 = vshll.u32 %v14930_v19, 16 }
 0x64c   : > { %8557 = vmatprep.mubr.bf16.mxu0 %v6757_v13  ;;  %v6779_v13 = vrot.slane %v6777_v34, 2 }
 0x64d   : > { %v6627_v2 = vsel %vm1112_vm1, %v6624_v43, %v6626_v46  ;;  %v6809_v43 = vrot.slane %v6807_v44, 3  ;;  %v11030_v44 = vld [vmem:[#allocation3 + $0xa0] ss:$0 sps:$4 sm:$0x77]  }
 0x64e   : > { %v6783_v55 = vor.u32 %v6782_v54, %v6779_v13 }
 0x650   : > { %v6784_v10 = vsel %vm16160_vm8, %v6774_v49, %v6783_v55  ;;  %v6628_v49 = vrot.slane %v14917_v63, 2  ;;  %v6816_v63 = vshll.u32 %v14932_v26, 16 }
 0x652   : > { %v6629_v13 = vsel %vm1112_vm1, %v6626_v46, %v6628_v49  ;;  %v6818_v46 = vrot.slane %v6816_v63, 3 }
 0x653   : > { %8558 = vmatmul.mubr.bf16.gmra.mrb[80].mxu0 %v6621_v6  ;;  %v6788_v6 = vrot.slane %v6786_v23, 2 }
 0x654   : > { %8567 = vmatprep.mubr.bf16.mxu0 %v6766_v56 }
 0x655   : > { %v6792_v56 = vor.u32 %v6791_v7, %v6788_v6 }
 0x657   : > { %v6793_v34 = vsel %vm16161_vm14, %v6783_v55, %v6792_v56  ;;  %v6630_v55 = vrot.slane %v14928_v58, 2  ;;  %v6825_v58 = vshll.u32 %v14942_v39, 16 }
 0x65b   : > { %8568 = vmatmul.mubr.bf16.gmra.mrb[84].mxu0 %v6623_v5  ;;  %v6801_v5 = vor.u32 %v6800_v41, %v6797_v35  ;;  %v6824_v35 = vrot.slane %v6822_v52, 2  ;;  %v6827_v41 = vrot.slane %v6825_v58, 3 }
 0x65c   : > { %8577 = vmatprep.mubr.bf16.mxu0 %v6775_v27  ;;  %v6804_v27 = vshrl.u32 %v14930_v19, 16 }
 0x65d   : > { %v6802_v54 = vsel %vm16162_vm6, %v6792_v56, %v6801_v5  ;;  %v6632_v56 = vrot.slane %v14930_v19, 2 }
 0x65e   : > { %v6806_v23 = vrot.slane %v6804_v27, 2 }
 0x660   : > { %v6810_v0 = vor.u32 %v6809_v43, %v6806_v23  ;;  %v16166_v23 = vmov 0   ;;  %v16168_v43 = vld [vmem:[#allocation27_spill] sm:$0xff] }
 0x662   : > { %v6811_v6 = vsel %vm16163_vm9, %v6801_v5, %v6810_v0  ;;  %v6828_v5 = vor.u32 %v6827_v41, %v6824_v35 }
 0x663   : > { %8578 = vmatmul.mubr.bf16.gmra.mrb[88].mxu0 %v6625_v33  ;;  %v6813_v33 = vshrl.u32 %v14932_v26, 16 }
 0x664   : > { %8587 = vmatprep.mubr.bf16.mxu0 %v6784_v10  ;;  %v6631_v10 = vsel %vm1112_vm1, %v6628_v49, %v6630_v55  ;;  %v6634_v49 = vrot.slane %v14932_v26, 2  ;;  %v16167_v26 = vld [vmem:[#allocation36_spill] sm:$0xff] }
 0x665   : > { %v6815_v7 = vrot.slane %v6813_v33, 2 }
 0x666   : > { %v6635_v27 = vsel %vm1112_vm1, %v6632_v56, %v6634_v49 }
 0x667   : > { %v6819_v45 = vor.u32 %v6818_v46, %v6815_v7 }
 0x669   : > { %v6829_v19 = vsel %vm16165_vm2, %v6819_v45, %v6828_v5 }
 0x66b   : > { %8588 = vmatmul.mubr.bf16.gmra.mrb[92].mxu0 %v6627_v2  ;;  %v6633_v2 = vsel %vm1112_vm1, %v6630_v55, %v6632_v56  ;;  %v16169_v55 = vld [vmem:[#allocation37_spill] sm:$0xff] }
 0x66c   : > { %8597 = vmatprep.mubr.bf16.mxu0 %v6793_v34  ;;  %v6820_v34 = vsel %vm16164_vm10, %v6810_v0, %v6819_v45  ;;  %v16173_v0 = vld [vmem:[#allocation31_spill] sm:$0xff] }
 0x673   : > { %8598 = vmatmul.mubr.bf16.gmra.mrb[96].mxu0 %v6629_v13  ;;  %v6636_v13 = vrot.slane %v11030_v44, 2 }
 0x674   : > { %8607 = vmatprep.mubr.bf16.mxu0 %v6802_v54 }
 0x675   : > { %v6637_v54 = vsel %vm1112_vm1, %v6634_v49, %v6636_v13  ;;  %vm9139_vm1 = vcmask 277504  }
 0x67b   : > { %8608 = vmatmul.mubr.bf16.gmra.mrb[100].mxu0 %v6631_v10 }
 0x67c   : > { %8617 = vmatprep.mubr.bf16.mxu0 %v6811_v6 }
 0x683   : > { %8618 = vmatmul.mubr.bf16.gmra.mrb[104].mxu0 %v6633_v2 }
 0x684   : > { %8627 = vmatprep.mubr.bf16.mxu0 %v6820_v34 }
 0x68b   : > { %8628 = vmatmul.mubr.bf16.gmra.mrb[108].mxu0 %v6635_v27 }
 0x68c   : > { %8637 = vmatprep.mubr.bf16.mxu0 %v6829_v19 }
 0x693   : > { %8638 = vmatmul.mubr.bf16.gmra.mrb[112].mxu0 %v6637_v54 }
 0x694   : > { %8647 = vmatprep.mubr.bf16.mxu0 %v6828_v5 }
 0x69b   : > { %8648 = vmatmul.mubr.bf16.gmra.mrb[116].mxu0 %v6636_v13 }
 0x69c   : > { %8688 = vmatprep.mubr.bf16.mxu0 %v16166_v23 }
 0x6a3   : > { %8689 = vmatmul.mubr.bf16.vlgmr.msra.gmra.mrb[44].mxu0 %v14906_v15  ;;  %v16170_v15 = vld [vmem:[#allocation38_spill] sm:$0xff] }
 0x6a4   : > { %8698 = vmatprep.mubr.bf16.mxu0 %v16166_v23 }
 0x6ab   : > { %8699 = vmatmul.mubr.bf16.gmra.mrb[48].mxu0 %v14909_v50  ;;  %v16171_v50 = vld [vmem:[#allocation40_spill] sm:$0xff] }
 0x6ac   : > { %8708 = vmatprep.mubr.bf16.mxu0 %v16166_v23 }
 0x6b3   : > { %8709 = vmatmul.mubr.bf16.gmra.mrb[52].mxu0 %v14920_v62  ;;  %v16172_v62 = vld [vmem:[#allocation39_spill] sm:$0xff] }
 0x6b4   : > { %8718 = vmatprep.mubr.bf16.mxu0 %v16166_v23 }
 0x6bb   : > { %8719 = vmatmul.mubr.bf16.gmra.mrb[56].mxu0 %v16167_v26 }
 0x6bc   : > { %8728 = vmatprep.mubr.bf16.mxu0 %v16166_v23 }
 0x6c3   : > { %8729 = vmatmul.mubr.bf16.gmra.mrb[60].mxu0 %v16168_v43 }
 0x6c4   : > { %8738 = vmatprep.mubr.bf16.mxu0 %v16166_v23 }
 0x6cb   : > { %8739 = vmatmul.mubr.bf16.gmra.mrb[64].mxu0 %v16169_v55 }
 0x6cc   : > { %8748 = vmatprep.mubr.bf16.mxu0 %v16166_v23 }
 0x6d3   : > { %8749 = vmatmul.mubr.bf16.gmra.mrb[68].mxu0 %v14951_v61  ;;  %v16174_v61 = vld [vmem:[#allocation43_spill] sm:$0xff] }
 0x6d4   : > { %8758 = vmatprep.mubr.bf16.mxu0 %v16166_v23 }
 0x6db   : > { %8759 = vmatmul.mubr.bf16.gmra.mrb[72].mxu0 %v16170_v15 }
 0x6dc   : > { %8768 = vmatprep.mubr.bf16.mxu0 %v16166_v23 }
 0x6e3   : > { %8769 = vmatmul.mubr.bf16.gmra.mrb[76].mxu0 %v16171_v50 }
 0x6e4   : > { %8778 = vmatprep.mubr.bf16.mxu0 %v16166_v23 }
 0x6eb   : > { %8779 = vmatmul.mubr.bf16.gmra.mrb[80].mxu0 %v14964_v38  ;;  %v16175_v38 = vrot.slane %v14942_v39, 3 }
 0x6ec   : > { %8788 = vmatprep.mubr.bf16.mxu0 %v16166_v23 }
 0x6f3   : > { %8789 = vmatmul.mubr.bf16.gmra.mrb[84].mxu0 %v16172_v62 }
 0x6f4   : > { %8798 = vmatprep.mubr.bf16.mxu0 %v16166_v23 }
 0x6fb   : > { %8799 = vmatmul.mubr.bf16.gmra.mrb[88].mxu0 %v16173_v0 }
 0x6fc   : > { %8808 = vmatprep.mubr.bf16.mxu0 %v16166_v23 }
 0x703   : > { %8809 = vmatmul.mubr.bf16.gmra.mrb[92].mxu0 %v16174_v61 }
 0x704   : > { %8818 = vmatprep.mubr.bf16.mxu0 %v16166_v23 }
 0x70b   : > { %8819 = vmatmul.mubr.bf16.gmra.mrb[96].mxu0 %v14985_v4  ;;  %v8879_v4 = vlaneseq }
 0x70c   : > { %8828 = vmatprep.mubr.bf16.mxu0 %v16166_v23 }
 0x70d   : > { %v15390_v33 = vshrl.u32 %v8879_v4, 7 }
 0x713   : > { %8829 = vmatmul.mubr.bf16.gmra.mrb[100].mxu0 %v14992_v47  ;;  %v15393_v47 = vsub.s32 0, %v15390_v33 }
 0x714   : > { %8838 = vmatprep.mubr.bf16.mxu0 %v16166_v23 }
 0x71b   : > { %8839 = vmatmul.mubr.bf16.gmra.mrb[104].mxu0 %v14995_v3  ;;  %v8877_v3 = vld [vmem:[%s15675_s10] sm:$0x3] }
 0x71c   : > { %8848 = vmatprep.mubr.bf16.mxu0 %v16166_v23  ;;  %v15405_v39 = vrot.slane %v8877_v3, %v15393_v47 }
 0x723   : > { %8849 = vmatmul.mubr.bf16.gmra.mrb[108].mxu0 %v14998_v1  ;;  %v15399_v1 = vsub.s32 1, %v15390_v33 }
 0x724   : > { %8858 = vmatprep.mubr.bf16.mxu0 %v16166_v23 }
 0x725   : > { %v15408_v10 = vrot.slane %v8877_v3, %v15399_v1 }
 0x72b   : > { %8859 = vmatmul.mubr.bf16.gmra.mrb[112].mxu0 %v15006_v22  ;;  %v8963_v22 = vld [vmem:[%s15676_s11] sm:$0x3] }
 0x72c   : > { %8868 = vmatprep.mubr.bf16.mxu0 %v16166_v23  ;;  %v15412_v7 = vrot.slane %v8963_v22, %v15393_v47  ;;  %v15416_v45 = vrot.slane %v8963_v22, %v15399_v1 }
 0x733   : > { %8869 = vmatmul.mubr.bf16.gmra.mrb[116].mxu0 %v16175_v38 }
 0x776   : > { %v8690_v63 = vpop.f32.mrb[44].mxu0 }
 0x777   : > { %v10176_v6 = vadd.f32 %v8690_v63, %v15029_v28  ;;  %v8692_v46 = vpop.f32.mrb[45].mxu0 }
 0x778   : > { %v10177_v56 = vadd.f32 %v8692_v46, %v15031_v37  ;;  %v8694_v52 = vpop.f32.mrb[46].mxu0 }
 0x779   : > { %v8889_v58 = vmul.f32 %v10176_v6, %v15405_v39  ;;  %v10178_v2 = vadd.f32 %v8694_v52, %v15036_v16  ;;  %v8696_v34 = vpop.f32.mrb[47].mxu0 }
 0x77a   : > { %v8890_v35 = vmul.f32 %v10177_v56, %v15408_v10  ;;  %v10179_v41 = vadd.f32 %v8696_v34, %v15042_v42 }
 0x77b   : > { %v8975_v28 = vadd.f32 %v15412_v7, %v8889_v58  ;;  %v8891_v49 = vmul.f32 %v10178_v2, %v15405_v39 }
 0x77c   : > { %v8976_v5 = vadd.f32 %v15416_v45, %v8890_v35  ;;  %v8892_v37 = vmul.f32 %v10179_v41, %v15408_v10 }
 0x77d   : > { %v8977_v27 = vadd.f32 %v15412_v7, %v8891_v49  ;;  %v9049_v13 = vmax.f32 %v8975_v28, 0.0 }
 0x77e   : > { %v8978_v44 = vadd.f32 %v15416_v45, %v8892_v37  ;;  %v8700_v19 = vpop.f32.mrb[48].mxu0  ;;  %v9050_v26 = vmax.f32 %v8976_v5, 0.0  ;;  %v15447_v37 = vld [vmem:[%s15667_s2] sm:$0x7] }
 0x77f   : > { %v9051_v16 = vmax.f32 %v8977_v27, 0.0  ;;  %v10180_v54 = vadd.f32 %v8700_v19, %v15051_v12  ;;  %v8702_v23 = vpop.f32.mrb[49].mxu0 }
 0x780   : > { %v9052_v42 = vmax.f32 %v8978_v44, 0.0  ;;  %v10181_v43 = vadd.f32 %v8702_v23, %v15053_v25  ;;  %v8704_v55 = vpop.f32.mrb[50].mxu0 }
 0x781   : > { %v10096_v15 = vpack.c.bf16 %v9051_v16, %v9049_v13  ;;  %v8893_v50 = vmul.f32 %v10180_v54, %v15405_v39  ;;  %v10182_v62 = vadd.f32 %v8704_v55, %v15057_v36  ;;  %v8706_v0 = vpop.f32.mrb[51].mxu0  ;;  %v9132_v13 = vrot.slane %v15447_v37, %v15399_v1 }
 0x782   : > { %v8894_v61 = vmul.f32 %v10181_v43, %v15408_v10  ;;  %v10183_v38 = vadd.f32 %v8706_v0, %v15062_v21  ;;  %v10094_v4 = vpack.c.bf16 %v9052_v42, %v9050_v26 }
 0x783   : > { %v8979_v3 = vadd.f32 %v15412_v7, %v8893_v50  ;;  %v8895_v12 = vmul.f32 %v10182_v62, %v15405_v39  ;;  %9213 = vmatprep.mubr.f32.mxu1 %v9132_v13  ;;  %v16179_v13 = vld [vmem:[#allocation45_spill] sm:$0xff] }
 0x784   : > { %v8980_v22 = vadd.f32 %v15416_v45, %v8894_v61  ;;  %v8896_v25 = vmul.f32 %v10183_v38, %v15408_v10  ;;  %10095 = vmatprep.subr.bf16.mxu1 %v10094_v4 }
 0x785   : > { %v8981_v63 = vadd.f32 %v15412_v7, %v8895_v12  ;;  %10097 = vmatpush1.bf16.msra.mxu1 %v10096_v15  ;;  %v9053_v46 = vmax.f32 %v8979_v3, 0.0 }
 0x786   : > { %v8982_v36 = vadd.f32 %v15416_v45, %v8896_v25  ;;  %v8710_v6 = vpop.f32.mrb[52].mxu0  ;;  %v9054_v58 = vmax.f32 %v8980_v22, 0.0  ;;  %v16176_v22 = vld [vmem:[#allocation42_spill] sm:$0xff] }
 0x787   : > { %v9055_v56 = vmax.f32 %v8981_v63, 0.0  ;;  %v10184_v21 = vadd.f32 %v8710_v6, %v15065_v51  ;;  %v8712_v52 = vpop.f32.mrb[53].mxu0 }
 0x788   : > { %v9056_v2 = vmax.f32 %v8982_v36, 0.0  ;;  %v10185_v34 = vadd.f32 %v8712_v52, %v15068_v53  ;;  %v8714_v35 = vpop.f32.mrb[54].mxu0 }
 0x789   : > { %v10100_v41 = vpack.c.bf16 %v9055_v56, %v9053_v46  ;;  %v8897_v28 = vmul.f32 %v10184_v21, %v15405_v39  ;;  %v10186_v49 = vadd.f32 %v8714_v35, %v15070_v11  ;;  %v8716_v5 = vpop.f32.mrb[55].mxu0 }
 0x78a   : > { %v8898_v27 = vmul.f32 %v10185_v34, %v15408_v10  ;;  %v10187_v51 = vadd.f32 %v8716_v5, %v15072_v32  ;;  %v10098_v44 = vpack.c.bf16 %v9056_v2, %v9054_v58 }
 0x78b   : > { %v8983_v19 = vadd.f32 %v15412_v7, %v8897_v28  ;;  %v8899_v53 = vmul.f32 %v10186_v49, %v15405_v39 }
 0x78c   : > { %v8984_v11 = vadd.f32 %v15416_v45, %v8898_v27  ;;  %v8900_v16 = vmul.f32 %v10187_v51, %v15408_v10  ;;  %10099 = vmatprep.subr.bf16.mxu1 %v10098_v44  ;;  %v16178_v51 = vld [vmem:[#allocation44_spill] sm:$0xff] }
 0x78d   : > { %v8985_v54 = vadd.f32 %v15412_v7, %v8899_v53  ;;  %10101 = vmatpush1.bf16.msra.mxu1 %v10100_v41  ;;  %v9057_v26 = vmax.f32 %v8983_v19, 0.0  ;;  %v16177_v41 = vld [vmem:[#allocation41_spill] sm:$0xff] }
 0x78e   : > { %v8986_v23 = vadd.f32 %v15416_v45, %v8900_v16  ;;  %v8720_v32 = vpop.f32.mrb[56].mxu0  ;;  %v9058_v15 = vmax.f32 %v8984_v11, 0.0 }
 0x78f   : > { %v9059_v42 = vmax.f32 %v8985_v54, 0.0  ;;  %v10188_v43 = vadd.f32 %v8720_v32, %v15075_v31  ;;  %v8722_v55 = vpop.f32.mrb[57].mxu0 }
 0x790   : > { %v9060_v50 = vmax.f32 %v8986_v23, 0.0  ;;  %v10189_v62 = vadd.f32 %v8722_v55, %v15078_v17  ;;  %v8724_v0 = vpop.f32.mrb[58].mxu0 }
 0x791   : > { %v10104_v61 = vpack.c.bf16 %v9059_v42, %v9057_v26  ;;  %v8901_v38 = vmul.f32 %v10188_v43, %v15405_v39  ;;  %v10190_v4 = vadd.f32 %v8724_v0, %v15080_v59  ;;  %v8726_v3 = vpop.f32.mrb[59].mxu0 }
 0x792   : > { %v8902_v12 = vmul.f32 %v10189_v62, %v15408_v10  ;;  %v10191_v25 = vadd.f32 %v8726_v3, %v16176_v22  ;;  %v10102_v63 = vpack.c.bf16 %v9060_v50, %v9058_v15  ;;  %v16180_v50 = vld [vmem:[#allocation46_spill] sm:$0xff] }
 0x793   : > { %v8987_v36 = vadd.f32 %v15412_v7, %v8901_v38  ;;  %v8903_v31 = vmul.f32 %v10190_v4, %v15405_v39  ;;  %v16181_v4 = vld [vmem:[#allocation48_spill] sm:$0xff] }
 0x794   : > { %v8988_v6 = vadd.f32 %v15416_v45, %v8902_v12  ;;  %v8904_v17 = vmul.f32 %v10191_v25, %v15408_v10  ;;  %10103 = vmatprep.subr.bf16.mxu1 %v10102_v63  ;;  %v16182_v63 = vld [vmem:[#allocation47_spill] sm:$0xff] }
 0x795   : > { %v8989_v46 = vadd.f32 %v15412_v7, %v8903_v31  ;;  %10105 = vmatpush1.bf16.msra.mxu1 %v10104_v61  ;;  %v9061_v21 = vmax.f32 %v8987_v36, 0.0 }
 0x796   : > { %v8990_v59 = vadd.f32 %v15416_v45, %v8904_v17  ;;  %v8730_v56 = vpop.f32.mrb[60].mxu0  ;;  %v9062_v34 = vmax.f32 %v8988_v6, 0.0  ;;  %v16183_v17 = vld [vmem:[#allocation50_spill] sm:$0xff] }
 0x797   : > { %v9063_v52 = vmax.f32 %v8989_v46, 0.0  ;;  %v10192_v58 = vadd.f32 %v8730_v56, %v15085_v48  ;;  %v8732_v2 = vpop.f32.mrb[61].mxu0 }
 0x798   : > { %v9064_v35 = vmax.f32 %v8990_v59, 0.0  ;;  %v10193_v28 = vadd.f32 %v8732_v2, %v16177_v41  ;;  %v8734_v49 = vpop.f32.mrb[62].mxu0 }
 0x799   : > { %v10108_v5 = vpack.c.bf16 %v9063_v52, %v9061_v21  ;;  %v8905_v27 = vmul.f32 %v10192_v58, %v15405_v39  ;;  %v10194_v44 = vadd.f32 %v8734_v49, %v16178_v51  ;;  %v8736_v19 = vpop.f32.mrb[63].mxu0  ;;  %v16184_v49 = vld [vmem:[#allocation49_spill] sm:$0xff] }
 0x79a   : > { %v8906_v53 = vmul.f32 %v10193_v28, %v15408_v10  ;;  %v10195_v11 = vadd.f32 %v8736_v19, %v16179_v13  ;;  %v10106_v16 = vpack.c.bf16 %v9064_v35, %v9062_v34  ;;  %v16185_v19 = vld [vmem:[#allocation51_spill] sm:$0xff] }
 0x79b   : > { %v8991_v54 = vadd.f32 %v15412_v7, %v8905_v27  ;;  %v8907_v48 = vmul.f32 %v10194_v44, %v15405_v39 }
 0x79c   : > { %v8992_v23 = vadd.f32 %v15416_v45, %v8906_v53  ;;  %v8908_v32 = vmul.f32 %v10195_v11, %v15408_v10  ;;  %10107 = vmatprep.subr.bf16.mxu1 %v10106_v16 }
 0x79d   : > { %v8993_v26 = vadd.f32 %v15412_v7, %v8907_v48  ;;  %10109 = vmatpush1.bf16.msra.mxu1 %v10108_v5  ;;  %v9065_v55 = vmax.f32 %v8991_v54, 0.0  ;;  %v16186_v54 = vld [vmem:[#allocation73_spill] sm:$0xff] }
 0x79e   : > { %v8994_v42 = vadd.f32 %v15416_v45, %v8908_v32  ;;  %v8740_v43 = vpop.f32.mrb[64].mxu0  ;;  %v9066_v61 = vmax.f32 %v8992_v23, 0.0 }
 0x79f   : > { %v9067_v15 = vmax.f32 %v8993_v26, 0.0  ;;  %v10196_v62 = vadd.f32 %v8740_v43, %v16180_v50  ;;  %v8742_v0 = vpop.f32.mrb[65].mxu0  ;;  %v16187_v26 = vld [vmem:[#allocation52_spill] sm:$0xff] }
 0x7a0   : > { %v9068_v38 = vmax.f32 %v8994_v42, 0.0  ;;  %v10197_v3 = vadd.f32 %v8742_v0, %v16181_v4  ;;  %v8744_v12 = vpop.f32.mrb[66].mxu0 }
 0x7a1   : > { %v10112_v22 = vpack.c.bf16 %v9067_v15, %v9065_v55  ;;  %v8909_v25 = vmul.f32 %v10196_v62, %v15405_v39  ;;  %v10198_v36 = vadd.f32 %v8744_v12, %v16182_v63  ;;  %v8746_v31 = vpop.f32.mrb[67].mxu0  ;;  %v16188_v12 = vld [vmem:[#allocation74_spill] sm:$0xff] }
 0x7a2   : > { %v8910_v6 = vmul.f32 %v10197_v3, %v15408_v10  ;;  %v10199_v46 = vadd.f32 %v8746_v31, %v16183_v17  ;;  %v10110_v59 = vpack.c.bf16 %v9068_v38, %v9066_v61  ;;  %v16189_v31 = vld [vmem:[#allocation76_spill] sm:$0xff] }
 0x7a3   : > { %v8995_v56 = vadd.f32 %v15412_v7, %v8909_v25  ;;  %v8911_v21 = vmul.f32 %v10198_v36, %v15405_v39 }
 0x7a4   : > { %v8996_v52 = vadd.f32 %v15416_v45, %v8910_v6  ;;  %v8912_v58 = vmul.f32 %v10199_v46, %v15408_v10  ;;  %10111 = vmatprep.subr.bf16.mxu1 %v10110_v59 }
 0x7a5   : > { %v8997_v2 = vadd.f32 %v15412_v7, %v8911_v21  ;;  %10113 = vmatpush1.bf16.msra.mxu1 %v10112_v22  ;;  %v9069_v41 = vmax.f32 %v8995_v56, 0.0  ;;  %v16190_v56 = vld [vmem:[#allocation75_spill] sm:$0xff] }
 0x7a6   : > { %v8998_v34 = vadd.f32 %v15416_v45, %v8912_v58  ;;  %v8750_v35 = vpop.f32.mrb[68].mxu0  ;;  %v9070_v51 = vmax.f32 %v8996_v52, 0.0 }
 0x7a7   : > { %v9071_v28 = vmax.f32 %v8997_v2, 0.0  ;;  %v10200_v5 = vadd.f32 %v8750_v35, %v16184_v49  ;;  %v8752_v27 = vpop.f32.mrb[69].mxu0  ;;  %v16191_v2 = vld [vmem:[#allocation78_spill] sm:$0xff] }
 0x7a8   : > { %v9072_v44 = vmax.f32 %v8998_v34, 0.0  ;;  %v10201_v53 = vadd.f32 %v8752_v27, %v16185_v19  ;;  %v8754_v13 = vpop.f32.mrb[70].mxu0 }
 0x7a9   : > { %v10116_v11 = vpack.c.bf16 %v9071_v28, %v9069_v41  ;;  %v8913_v16 = vmul.f32 %v10200_v5, %v15405_v39  ;;  %v10202_v48 = vadd.f32 %v8754_v13, %v16186_v54  ;;  %v8756_v23 = vpop.f32.mrb[71].mxu0  ;;  %v16192_v13 = vld [vmem:[#allocation77_spill] sm:$0xff] }
 0x7aa   : > { %v8914_v32 = vmul.f32 %v10201_v53, %v15408_v10  ;;  %v10203_v42 = vadd.f32 %v8756_v23, %v16187_v26  ;;  %v10114_v43 = vpack.c.bf16 %v9072_v44, %v9070_v51  ;;  %v16193_v23 = vld [vmem:[#allocation53_spill] sm:$0xff] }
 0x7ab   : > { %v8999_v55 = vadd.f32 %v15412_v7, %v8913_v16  ;;  %v8915_v15 = vmul.f32 %v10202_v48, %v15405_v39 }
 0x7ac   : > { %v9000_v50 = vadd.f32 %v15416_v45, %v8914_v32  ;;  %v8916_v62 = vmul.f32 %v10203_v42, %v15408_v10  ;;  %10115 = vmatprep.subr.bf16.mxu1 %v10114_v43 }
 0x7ad   : > { %v9001_v0 = vadd.f32 %v15412_v7, %v8915_v15  ;;  %10117 = vmatpush1.bf16.msra.mxu1 %v10116_v11  ;;  %v9073_v4 = vmax.f32 %v8999_v55, 0.0  ;;  %v16194_v55 = vld [vmem:[#allocation54_spill] sm:$0xff] }
 0x7ae   : > { %v9002_v61 = vadd.f32 %v15416_v45, %v8916_v62  ;;  %v8760_v38 = vpop.f32.mrb[72].mxu0  ;;  %v9074_v63 = vmax.f32 %v9000_v50, 0.0 }
 0x7af   : > { %v9075_v3 = vmax.f32 %v9001_v0, 0.0  ;;  %v10204_v22 = vadd.f32 %v8760_v38, %v16188_v12  ;;  %v8762_v25 = vpop.f32.mrb[73].mxu0  ;;  %v16195_v0 = vld [vmem:[#allocation55_spill] sm:$0xff] }
 0x7b0   : > { %v9076_v36 = vmax.f32 %v9002_v61, 0.0  ;;  %v10205_v6 = vadd.f32 %v8762_v25, %v16189_v31  ;;  %v8764_v17 = vpop.f32.mrb[74].mxu0 }
 0x7b1   : > { %v10120_v46 = vpack.c.bf16 %v9075_v3, %v9073_v4  ;;  %v8917_v59 = vmul.f32 %v10204_v22, %v15405_v39  ;;  %v10206_v21 = vadd.f32 %v8764_v17, %v16190_v56  ;;  %v8766_v52 = vpop.f32.mrb[75].mxu0  ;;  %v16196_v17 = vld [vmem:[#allocation56_spill] sm:$0xff] }
 0x7b2   : > { %v8918_v58 = vmul.f32 %v10205_v6, %v15408_v10  ;;  %v10207_v34 = vadd.f32 %v8766_v52, %v16191_v2  ;;  %v10118_v35 = vpack.c.bf16 %v9076_v36, %v9074_v63  ;;  %v16197_v52 = vld [vmem:[#allocation57_spill] sm:$0xff] }
 0x7b3   : > { %v9003_v41 = vadd.f32 %v15412_v7, %v8917_v59  ;;  %v8919_v28 = vmul.f32 %v10206_v21, %v15405_v39 }
 0x7b4   : > { %v9004_v49 = vadd.f32 %v15416_v45, %v8918_v58  ;;  %v8920_v5 = vmul.f32 %v10207_v34, %v15408_v10  ;;  %10119 = vmatprep.subr.bf16.mxu1 %v10118_v35 }
 0x7b5   : > { %v9005_v27 = vadd.f32 %v15412_v7, %v8919_v28  ;;  %10121 = vmatpush1.bf16.msra.mxu1 %v10120_v46  ;;  %v9077_v19 = vmax.f32 %v9003_v41, 0.0  ;;  %v16198_v41 = vld [vmem:[#allocation58_spill] sm:$0xff] }
 0x7b6   : > { %v9006_v51 = vadd.f32 %v15416_v45, %v8920_v5  ;;  %v8770_v44 = vpop.f32.mrb[76].mxu0  ;;  %v9078_v54 = vmax.f32 %v9004_v49, 0.0 }
 0x7b7   : > { %v9079_v53 = vmax.f32 %v9005_v27, 0.0  ;;  %v10208_v11 = vadd.f32 %v8770_v44, %v16192_v13  ;;  %v8772_v16 = vpop.f32.mrb[77].mxu0  ;;  %v16199_v27 = vld [vmem:[#allocation59_spill] sm:$0xff] }
 0x7b8   : > { %v9080_v48 = vmax.f32 %v9006_v51, 0.0  ;;  %v10209_v32 = vadd.f32 %v8772_v16, %v16193_v23  ;;  %v8774_v26 = vpop.f32.mrb[78].mxu0 }
 0x7b9   : > { %v10124_v42 = vpack.c.bf16 %v9079_v53, %v9077_v19  ;;  %v8921_v43 = vmul.f32 %v10208_v11, %v15405_v39  ;;  %v10210_v15 = vadd.f32 %v8774_v26, %v16194_v55  ;;  %v8776_v50 = vpop.f32.mrb[79].mxu0 }
 0x7ba   : > { %v8922_v62 = vmul.f32 %v10209_v32, %v15408_v10  ;;  %v10211_v61 = vadd.f32 %v8776_v50, %v16195_v0  ;;  %v10122_v38 = vpack.c.bf16 %v9080_v48, %v9078_v54 }
 0x7bb   : > { %v9007_v4 = vadd.f32 %v15412_v7, %v8921_v43  ;;  %v8923_v3 = vmul.f32 %v10210_v15, %v15405_v39 }
 0x7bc   : > { %v9008_v12 = vadd.f32 %v15416_v45, %v8922_v62  ;;  %v8924_v22 = vmul.f32 %v10211_v61, %v15408_v10  ;;  %10123 = vmatprep.subr.bf16.mxu1 %v10122_v38  ;;  %v16200_v61 = vld [vmem:[#allocation60_spill] sm:$0xff] }
 0x7bd   : > { %v9009_v25 = vadd.f32 %v15412_v7, %v8923_v3  ;;  %10125 = vmatpush1.bf16.msra.mxu1 %v10124_v42  ;;  %v9081_v31 = vmax.f32 %v9007_v4, 0.0 }
 0x7be   : > { %v9010_v63 = vadd.f32 %v15416_v45, %v8924_v22  ;;  %v8780_v36 = vpop.f32.mrb[80].mxu0  ;;  %v9082_v56 = vmax.f32 %v9008_v12, 0.0  ;;  %v16201_v12 = vld [vmem:[#allocation5_spill] sm:$0xff] }
 0x7bf   : > { %v9083_v6 = vmax.f32 %v9009_v25, 0.0  ;;  %v10212_v46 = vadd.f32 %v8780_v36, %v16196_v17  ;;  %v8782_v59 = vpop.f32.mrb[81].mxu0 }
 0x7c0   : > { %v9084_v21 = vmax.f32 %v9010_v63, 0.0  ;;  %v10213_v58 = vadd.f32 %v8782_v59, %v16197_v52  ;;  %v8784_v2 = vpop.f32.mrb[82].mxu0 }
 0x7c1   : > { %v10128_v34 = vpack.c.bf16 %v9083_v6, %v9081_v31  ;;  %v8925_v35 = vmul.f32 %v10212_v46, %v15405_v39  ;;  %v10214_v28 = vadd.f32 %v8784_v2, %v16198_v41  ;;  %v8786_v49 = vpop.f32.mrb[83].mxu0 }
 0x7c2   : > { %v8926_v5 = vmul.f32 %v10213_v58, %v15408_v10  ;;  %v10215_v51 = vadd.f32 %v8786_v49, %v16199_v27  ;;  %v10126_v44 = vpack.c.bf16 %v9084_v21, %v9082_v56 }
 0x7c3   : > { %v9011_v19 = vadd.f32 %v15412_v7, %v8925_v35  ;;  %v8927_v53 = vmul.f32 %v10214_v28, %v15405_v39 }
 0x7c4   : > { %v9012_v13 = vadd.f32 %v15416_v45, %v8926_v5  ;;  %v8928_v11 = vmul.f32 %v10215_v51, %v15408_v10  ;;  %10127 = vmatprep.subr.bf16.mxu1 %v10126_v44 }
 0x7c5   : > { %v9013_v16 = vadd.f32 %v15412_v7, %v8927_v53  ;;  %10129 = vmatpush1.bf16.msra.mxu1 %v10128_v34  ;;  %v9085_v23 = vmax.f32 %v9011_v19, 0.0 }
 0x7c6   : > { %v9014_v54 = vadd.f32 %v15416_v45, %v8928_v11  ;;  %v8790_v48 = vpop.f32.mrb[84].mxu0  ;;  %v9086_v43 = vmax.f32 %v9012_v13, 0.0 }
 0x7c7   : > { %v9087_v32 = vmax.f32 %v9013_v16, 0.0  ;;  %v10216_v26 = vadd.f32 %v8790_v48, %v15151_v24  ;;  %v8792_v42 = vpop.f32.mrb[85].mxu0 }
 0x7c8   : > { %v9088_v55 = vmax.f32 %v9014_v54, 0.0  ;;  %v10217_v15 = vadd.f32 %v8792_v42, %v15153_v29  ;;  %v8794_v50 = vpop.f32.mrb[86].mxu0 }
 0x7c9   : > { %v10132_v62 = vpack.c.bf16 %v9087_v32, %v9085_v23  ;;  %v8929_v0 = vmul.f32 %v10216_v26, %v15405_v39  ;;  %v10218_v38 = vadd.f32 %v8794_v50, %v16200_v61  ;;  %v8796_v4 = vpop.f32.mrb[87].mxu0  ;;  %v16202_v32 = vld [vmem:[#allocation79_spill] sm:$0xff]  ;;  %v16204_v61 = vld [vmem:[#allocation6_spill] sm:$0xff] }
 0x7ca   : > { %v8930_v3 = vmul.f32 %v10217_v15, %v15408_v10  ;;  %v10219_v22 = vadd.f32 %v8796_v4, %v16201_v12  ;;  %v10130_v25 = vpack.c.bf16 %v9088_v55, %v9086_v43  ;;  %v16203_v15 = vld [vmem:[#allocation7_spill] sm:$0xff] }
 0x7cb   : > { %v9015_v63 = vadd.f32 %v15412_v7, %v8929_v0  ;;  %v8931_v24 = vmul.f32 %v10218_v38, %v15405_v39 }
 0x7cc   : > { %v9016_v36 = vadd.f32 %v15416_v45, %v8930_v3  ;;  %v8932_v29 = vmul.f32 %v10219_v22, %v15408_v10  ;;  %10131 = vmatprep.subr.bf16.mxu1 %v10130_v25 }
 0x7cd   : > { %v9017_v31 = vadd.f32 %v15412_v7, %v8931_v24  ;;  %10133 = vmatpush1.bf16.msra.mxu1 %v10132_v62  ;;  %v9089_v46 = vmax.f32 %v9015_v63, 0.0 }
 0x7ce   : > { %v9018_v6 = vadd.f32 %v15416_v45, %v8932_v29  ;;  %v8800_v17 = vpop.f32.mrb[88].mxu0  ;;  %v9090_v52 = vmax.f32 %v9016_v36, 0.0 }
 0x7cf   : > { %v9091_v59 = vmax.f32 %v9017_v31, 0.0  ;;  %v10220_v56 = vadd.f32 %v8800_v17, %v15162_v30  ;;  %v8802_v21 = vpop.f32.mrb[89].mxu0 }
 0x7d0   : > { %v9092_v58 = vmax.f32 %v9018_v6, 0.0  ;;  %v10221_v2 = vadd.f32 %v8802_v21, %v15164_v8  ;;  %v8804_v34 = vpop.f32.mrb[90].mxu0 }
 0x7d1   : > { %v10136_v35 = vpack.c.bf16 %v9091_v59, %v9089_v46  ;;  %v8933_v41 = vmul.f32 %v10220_v56, %v15405_v39  ;;  %v10222_v28 = vadd.f32 %v8804_v34, %v15166_v18  ;;  %v8806_v49 = vpop.f32.mrb[91].mxu0  ;;  %v16205_v59 = vld [vmem:[#allocation8_spill] sm:$0xff] }
 0x7d2   : > { %v8934_v5 = vmul.f32 %v10221_v2, %v15408_v10  ;;  %v10223_v27 = vadd.f32 %v8806_v49, %v15169_v60  ;;  %v10134_v51 = vpack.c.bf16 %v9092_v58, %v9090_v52  ;;  %v16206_v2 = vld [vmem:[#allocation11_spill] sm:$0xff] }
 0x7d3   : > { %v9019_v44 = vadd.f32 %v15412_v7, %v8933_v41  ;;  %v8935_v30 = vmul.f32 %v10222_v28, %v15405_v39  ;;  %v16207_v28 = vld [vmem:[#allocation9_spill] sm:$0xff] }
 0x7d4   : > { %v9020_v19 = vadd.f32 %v15416_v45, %v8934_v5  ;;  %v8936_v8 = vmul.f32 %v10223_v27, %v15408_v10  ;;  %10135 = vmatprep.subr.bf16.mxu1 %v10134_v51 }
 0x7d5   : > { %v9021_v53 = vadd.f32 %v15412_v7, %v8935_v30  ;;  %10137 = vmatpush1.bf16.msra.mxu1 %v10136_v35  ;;  %v9093_v11 = vmax.f32 %v9019_v44, 0.0 }
 0x7d6   : > { %v9022_v18 = vadd.f32 %v15416_v45, %v8936_v8  ;;  %v8810_v13 = vpop.f32.mrb[92].mxu0  ;;  %v9094_v48 = vmax.f32 %v9020_v19, 0.0 }
 0x7d7   : > { %v9095_v16 = vmax.f32 %v9021_v53, 0.0  ;;  %v10224_v60 = vadd.f32 %v8810_v13, %v15181_v9  ;;  %v8812_v54 = vpop.f32.mrb[93].mxu0  ;;  %v16208_v13 = vld [vmem:[#allocation13_spill] sm:$0xff] }
 0x7d8   : > { %v9096_v23 = vmax.f32 %v9022_v18, 0.0  ;;  %v10225_v26 = vadd.f32 %v8812_v54, %v16202_v32  ;;  %v8814_v42 = vpop.f32.mrb[94].mxu0 }
 0x7d9   : > { %v10140_v43 = vpack.c.bf16 %v9095_v16, %v9093_v11  ;;  %v8937_v55 = vmul.f32 %v10224_v60, %v15405_v39  ;;  %v10226_v50 = vadd.f32 %v8814_v42, %v16203_v15  ;;  %v8816_v62 = vpop.f32.mrb[95].mxu0 }
 0x7da   : > { %v8938_v0 = vmul.f32 %v10225_v26, %v15408_v10  ;;  %v10227_v38 = vadd.f32 %v8816_v62, %v16204_v61  ;;  %v10138_v4 = vpack.c.bf16 %v9096_v23, %v9094_v48  ;;  %v16209_v48 = vld [vmem:[#allocation10_spill] sm:$0xff] }
 0x7db   : > { %v9023_v3 = vadd.f32 %v15412_v7, %v8937_v55  ;;  %v8939_v9 = vmul.f32 %v10226_v50, %v15405_v39  ;;  %v16211_v62 = vld [vmem:[#allocation14_spill] sm:$0xff] }
 0x7dc   : > { %v9024_v12 = vadd.f32 %v15416_v45, %v8938_v0  ;;  %v8940_v22 = vmul.f32 %v10227_v38, %v15408_v10  ;;  %10139 = vmatprep.subr.bf16.mxu1 %v10138_v4 }
 0x7dd   : > { %v9025_v25 = vadd.f32 %v15412_v7, %v8939_v9  ;;  %10141 = vmatpush1.bf16.msra.mxu1 %v10140_v43  ;;  %v9097_v36 = vmax.f32 %v9023_v3, 0.0  ;;  %v16210_v43 = vld [vmem:[#allocation12_spill] sm:$0xff] }
 0x7de   : > { %v9026_v63 = vadd.f32 %v15416_v45, %v8940_v22  ;;  %v8820_v24 = vpop.f32.mrb[96].mxu0  ;;  %v9098_v17 = vmax.f32 %v9024_v12, 0.0 }
 0x7df   : > { %v9099_v29 = vmax.f32 %v9025_v25, 0.0  ;;  %v10228_v31 = vadd.f32 %v8820_v24, %v15206_v14  ;;  %v8822_v6 = vpop.f32.mrb[97].mxu0 }
 0x7e0   : > { %v9100_v46 = vmax.f32 %v9026_v63, 0.0  ;;  %v10229_v56 = vadd.f32 %v8822_v6, %v16205_v59  ;;  %v8824_v21 = vpop.f32.mrb[98].mxu0 }
 0x7e1   : > { %v10144_v52 = vpack.c.bf16 %v9099_v29, %v9097_v36  ;;  %v8941_v58 = vmul.f32 %v10228_v31, %v15405_v39  ;;  %v10230_v34 = vadd.f32 %v8824_v21, %v16206_v2  ;;  %v8826_v35 = vpop.f32.mrb[99].mxu0  ;;  %v16212_v36 = vld [vmem:[#allocation15_spill] sm:$0xff] }
 0x7e2   : > { %v8942_v41 = vmul.f32 %v10229_v56, %v15408_v10  ;;  %v10231_v49 = vadd.f32 %v8826_v35, %v16207_v28  ;;  %v10142_v5 = vpack.c.bf16 %v9100_v46, %v9098_v17  ;;  %v16213_v46 = vld [vmem:[#allocation16_spill] sm:$0xff] }
 0x7e3   : > { %v9027_v27 = vadd.f32 %v15412_v7, %v8941_v58  ;;  %v8943_v14 = vmul.f32 %v10230_v34, %v15405_v39  ;;  %v16214_v58 = vld [vmem:[#allocation17_spill] sm:$0xff] }
 0x7e4   : > { %v9028_v51 = vadd.f32 %v15416_v45, %v8942_v41  ;;  %v8944_v44 = vmul.f32 %v10231_v49, %v15408_v10  ;;  %10143 = vmatprep.subr.bf16.mxu1 %v10142_v5  ;;  %v16215_v41 = vld [vmem:[#allocation18_spill] sm:$0xff] }
 0x7e5   : > { %v9029_v30 = vadd.f32 %v15412_v7, %v8943_v14  ;;  %10145 = vmatpush1.bf16.msra.mxu1 %v10144_v52  ;;  %v9101_v53 = vmax.f32 %v9027_v27, 0.0 }
 0x7e6   : > { %v9030_v19 = vadd.f32 %v15416_v45, %v8944_v44  ;;  %v8830_v8 = vpop.f32.mrb[100].mxu0  ;;  %v9102_v60 = vmax.f32 %v9028_v51, 0.0 }
 0x7e7   : > { %v9103_v18 = vmax.f32 %v9029_v30, 0.0  ;;  %v10232_v11 = vadd.f32 %v8830_v8, %v16208_v13  ;;  %v8832_v16 = vpop.f32.mrb[101].mxu0 }
 0x7e8   : > { %v9104_v54 = vmax.f32 %v9030_v19, 0.0  ;;  %v10233_v23 = vadd.f32 %v8832_v16, %v16209_v48  ;;  %v8834_v32 = vpop.f32.mrb[102].mxu0 }
 0x7e9   : > { %v10148_v26 = vpack.c.bf16 %v9103_v18, %v9101_v53  ;;  %v8945_v42 = vmul.f32 %v10232_v11, %v15405_v39  ;;  %v10234_v55 = vadd.f32 %v8834_v32, %v16210_v43  ;;  %v8836_v15 = vpop.f32.mrb[103].mxu0 }
 0x7ea   : > { %v8946_v50 = vmul.f32 %v10233_v23, %v15408_v10  ;;  %v10235_v0 = vadd.f32 %v8836_v15, %v16211_v62  ;;  %v10146_v61 = vpack.c.bf16 %v9104_v54, %v9102_v60  ;;  %v16216_v60 = vld [vmem:[#allocation19_spill] sm:$0xff]  ;;  %v16218_v15 = vld [vmem:[#allocation21_spill] sm:$0xff] }
 0x7eb   : > { %v9031_v38 = vadd.f32 %v15412_v7, %v8945_v42  ;;  %v8947_v4 = vmul.f32 %v10234_v55, %v15405_v39 }
 0x7ec   : > { %v9032_v3 = vadd.f32 %v15416_v45, %v8946_v50  ;;  %v8948_v9 = vmul.f32 %v10235_v0, %v15408_v10  ;;  %10147 = vmatprep.subr.bf16.mxu1 %v10146_v61 }
 0x7ed   : > { %v9033_v12 = vadd.f32 %v15412_v7, %v8947_v4  ;;  %10149 = vmatpush1.bf16.msra.mxu1 %v10148_v26  ;;  %v9105_v63 = vmax.f32 %v9031_v38, 0.0  ;;  %v16217_v26 = vld [vmem:[#allocation20_spill] sm:$0xff]  ;;  %v9128_v4 = vrot.slane %v15447_v37, %v15393_v47 }
 0x7ee   : > { %v9034_v22 = vadd.f32 %v15416_v45, %v8948_v9  ;;  %v8840_v25 = vpop.f32.mrb[104].mxu0  ;;  %v9106_v6 = vmax.f32 %v9032_v3, 0.0 }
 0x7ef   : > { %v9107_v24 = vmax.f32 %v9033_v12, 0.0  ;;  %v10236_v29 = vadd.f32 %v8840_v25, %v16212_v36  ;;  %v8842_v31 = vpop.f32.mrb[105].mxu0 }
 0x7f0   : > { %v9108_v17 = vmax.f32 %v9034_v22, 0.0  ;;  %v10237_v59 = vadd.f32 %v8842_v31, %v16213_v46  ;;  %v8844_v56 = vpop.f32.mrb[106].mxu0 }
 0x7f1   : > { %v10152_v21 = vpack.c.bf16 %v9107_v24, %v9105_v63  ;;  %v8949_v52 = vmul.f32 %v10236_v29, %v15405_v39  ;;  %v10238_v2 = vadd.f32 %v8844_v56, %v16214_v58  ;;  %v8846_v34 = vpop.f32.mrb[107].mxu0  ;;  %v16219_v63 = vld [vmem:[#allocation22_spill] sm:$0xff] }
 0x7f2   : > { %v8950_v35 = vmul.f32 %v10237_v59, %v15408_v10  ;;  %v10239_v28 = vadd.f32 %v8846_v34, %v16215_v41  ;;  %v10150_v49 = vpack.c.bf16 %v9108_v17, %v9106_v6  ;;  %v16220_v6 = vld [vmem:[#allocation23_spill] sm:$0xff] }
 0x7f3   : > { %v9035_v5 = vadd.f32 %v15412_v7, %v8949_v52  ;;  %v8951_v27 = vmul.f32 %v10238_v2, %v15405_v39  ;;  %v16222_v2 = vmov 0.0  }
 0x7f4   : > { %v9036_v14 = vadd.f32 %v15416_v45, %v8950_v35  ;;  %v8952_v51 = vmul.f32 %v10239_v28, %v15408_v10  ;;  %10151 = vmatprep.subr.bf16.mxu1 %v10150_v49  ;;  %v16223_v35 = vld [vmem:[#allocation25_spill] sm:$0xff] }
 0x7f5   : > { %v9037_v44 = vadd.f32 %v15412_v7, %v8951_v27  ;;  %10153 = vmatpush1.bf16.msra.mxu1 %v10152_v21  ;;  %v9109_v8 = vmax.f32 %v9035_v5, 0.0  ;;  %v16221_v21 = vld [vmem:[#allocation24_spill] sm:$0xff] }
 0x7f6   : > { %v9038_v30 = vadd.f32 %v15416_v45, %v8952_v51  ;;  %v8850_v19 = vpop.f32.mrb[108].mxu0  ;;  %v9110_v11 = vmax.f32 %v9036_v14, 0.0 }
 0x7f7   : > { %v9111_v53 = vmax.f32 %v9037_v44, 0.0  ;;  %v10240_v18 = vadd.f32 %v8850_v19, %v15272_v20  ;;  %v8852_v13 = vpop.f32.mrb[109].mxu0 }
 0x7f8   : > { %v9112_v16 = vmax.f32 %v9038_v30, 0.0  ;;  %v10241_v54 = vadd.f32 %v8852_v13, %v16216_v60  ;;  %v8854_v48 = vpop.f32.mrb[110].mxu0 }
 0x7f9   : > { %v10156_v23 = vpack.c.bf16 %v9111_v53, %v9109_v8  ;;  %v8953_v32 = vmul.f32 %v10240_v18, %v15405_v39  ;;  %v10242_v42 = vadd.f32 %v8854_v48, %v16217_v26  ;;  %v8856_v43 = vpop.f32.mrb[111].mxu0 }
 0x7fa   : > { %v8954_v55 = vmul.f32 %v10241_v54, %v15408_v10  ;;  %v10243_v50 = vadd.f32 %v8856_v43, %v16218_v15  ;;  %v10154_v62 = vpack.c.bf16 %v9112_v16, %v9110_v11 }
 0x7fb   : > { %v9039_v0 = vadd.f32 %v15412_v7, %v8953_v32  ;;  %v8955_v20 = vmul.f32 %v10242_v42, %v15405_v39  ;;  %v9135_v32 = vsub.s32 2, %v15390_v33  ;;  %v9291_v33 = vld [vmem:[%s15677_s12] sm:$0x3] }
 0x7fc   : > { %v9040_v61 = vadd.f32 %v15416_v45, %v8954_v55  ;;  %v8956_v38 = vmul.f32 %v10243_v50, %v15408_v10  ;;  %10155 = vmatprep.subr.bf16.mxu1 %v10154_v62 }
 0x7fd   : > { %v9041_v3 = vadd.f32 %v15412_v7, %v8955_v20  ;;  %10157 = vmatpush1.bf16.msra.mxu1 %v10156_v23  ;;  %v9113_v22 = vmax.f32 %v9039_v0, 0.0 }
 0x7fe   : > { %v9042_v9 = vadd.f32 %v15416_v45, %v8956_v38  ;;  %v8860_v12 = vpop.f32.mrb[112].mxu0  ;;  %v9114_v29 = vmax.f32 %v9040_v61, 0.0  ;;  %v9311_v61 = vld [vmem:[#allocation4] sm:$0x1] }
 0x7ff   : > { %v9115_v25 = vmax.f32 %v9041_v3, 0.0  ;;  %v10244_v24 = vadd.f32 %v8860_v12, %v16219_v63  ;;  %v8862_v36 = vpop.f32.mrb[113].mxu0 }
 0x800   : > { %v9116_v31 = vmax.f32 %v9042_v9, 0.0  ;;  %v10245_v17 = vadd.f32 %v8862_v36, %v16220_v6  ;;  %v8864_v46 = vpop.f32.mrb[114].mxu0  ;;  %9214 = vmatmul.mubr.f32.vlgmr.msra.gmra.mrb[184].mxu1 %v9128_v4 }
 0x801   : > { %v10160_v59 = vpack.c.bf16 %v9115_v25, %v9113_v22  ;;  %v8957_v56 = vmul.f32 %v10244_v24, %v15405_v39  ;;  %v10246_v52 = vadd.f32 %v8864_v46, %v16221_v21  ;;  %v8866_v58 = vpop.f32.mrb[115].mxu0  ;;  %9284 = vmatprep.mubr.f32.mxu1 %v16222_v2 }
 0x802   : > { %v8958_v34 = vmul.f32 %v10245_v17, %v15408_v10  ;;  %v10247_v41 = vadd.f32 %v8866_v58, %v16223_v35  ;;  %v10158_v28 = vpack.c.bf16 %v9116_v31, %v9114_v29 }
 0x803   : > { %v9043_v49 = vadd.f32 %v15412_v7, %v8957_v56  ;;  %v8959_v5 = vmul.f32 %v10246_v52, %v15405_v39 }
 0x804   : > { %v9044_v27 = vadd.f32 %v15416_v45, %v8958_v34  ;;  %v8960_v14 = vmul.f32 %v10247_v41, %v15408_v10  ;;  %10159 = vmatprep.subr.bf16.mxu1 %v10158_v28 }
 0x805   : > { %v9045_v51 = vadd.f32 %v15412_v7, %v8959_v5  ;;  %10161 = vmatpush1.bf16.msra.mxu1 %v10160_v59  ;;  %v9117_v19 = vmax.f32 %v9043_v49, 0.0 }
 0x806   : > { %v9046_v44 = vadd.f32 %v15416_v45, %v8960_v14  ;;  %v8870_v30 = vpop.f32.mrb[116].mxu0  ;;  %v9118_v13 = vmax.f32 %v9044_v27, 0.0 }
 0x807   : > { %v9119_v8 = vmax.f32 %v9045_v51, 0.0  ;;  %v10248_v53 = vadd.f32 %v8870_v30, %v15298_v40  ;;  %v8872_v18 = vpop.f32.mrb[117].mxu0  ;;  %v9136_v40 = vrot.slane %v15447_v37, %v9135_v32 }
 0x808   : > { %v9120_v11 = vmax.f32 %v9046_v44, 0.0  ;;  %v10249_v16 = vadd.f32 %v8872_v18, %v15300_v57  ;;  %v8874_v60 = vpop.f32.mrb[118].mxu0 }
 0x809   : > { %v10164_v54 = vpack.c.bf16 %v9119_v8, %v9117_v19  ;;  %v8961_v48 = vmul.f32 %v10248_v53, %v15405_v39  ;;  %v8875_v23 = vpop.f32.mrb[119].mxu0  ;;  %v9296_v39 = vrot.slane %v9291_v33, %v15393_v47 }
 0x80a   : > { %v8962_v26 = vmul.f32 %v10249_v16, %v15408_v10  ;;  %v10162_v42 = vpack.c.bf16 %v9120_v11, %v9118_v13  ;;  %v9300_v10 = vrot.slane %v9291_v33, %v15399_v1 }
 0x80b   : > { %v9047_v43 = vadd.f32 %v15412_v7, %v8961_v48 }
 0x80c   : > { %v9048_v55 = vadd.f32 %v15416_v45, %v8962_v26  ;;  %10163 = vmatprep.subr.bf16.mxu1 %v10162_v42 }
 0x80d   : > { %10165 = vmatpush1.bf16.msra.mxu1 %v10164_v54  ;;  %v9121_v57 = vmax.f32 %v9047_v43, 0.0 }
 0x80e   : > { %v9122_v15 = vmax.f32 %v9048_v55, 0.0 }
 0x810   : > { %9798 = vmatprep.subr.msk.mxu1 %vm2379_vm4, %v9122_v15 }
 0x811   : > { %9799 = vmatpush1.msk.msra.mxu1 %vm2379_vm4, %v9121_v57  ;;  %vm9317_vm4 = vcmask 0  }
 0x812   : > { %9800 = vmatmul.mubr.msk.f32.vlgmr.msra.gmra.mrb[184].mxu1 %vm9139_vm1, %v9136_v40 }
 0x8e5   : > { %v9286_v7 = vpop.f32.mrb[184].mxu1 }
 0x8e6   : > { %v9303_v45 = vmul.f32 %v9296_v39, %v9286_v7  ;;  %v9288_v37 = vpop.f32.mrb[185].mxu1 }
 0x8e7   : > { %v9304_v50 = vmul.f32 %v9300_v10, %v9288_v37 }
 0x8e8   : > { %v9306_v62 = vsel %vm9305_vm13, %v9303_v45, 0.0 }
 0x8e9   : > { %v9307_v0 = vsel %vm9305_vm13, %v9304_v50, 0.0 }
 0x8ea   : > { %v9308_v20 = vadd.f32 %v9307_v0, %v9306_v62 }
 0x8ec   : > { %9309 = vadd.xlane.f32.xlu0 %v9308_v20 }
 0x979   : > { %v9310_v38 = vpop.xlane.xlu0 %9309 }
 0x97a   : > { %v9312_v4 = vadd.f32 %v9311_v61, %v9310_v38 }
 0x97c   : > { %v9313_v3 = vmul.f32 0.5, %v9312_v4 }
 0x97e   : > { %11035 = vtanh.f32 %v9313_v3 }
 0x988   : > { %v11036_v47 = vpop.eup %11035 }
 0x989   : > { %v9315_v9 = vadd.f32 1.0, %v11036_v47 }
 0x98b   : > { %v9316_v1 = vmul.f32 0.5, %v9315_v9 }
 0x98d   : > { %9318 = vst.msk [vmem:[%s467_s19] sm:$0x1] %vm9317_vm4, %v9316_v1 }
 0x98e PF: > { %s26_s15 = sadd.s32 1, %s11088_s15  }
 0x98f   : > { %p23_p5 = scmp.ge.s32.totalorder %s26_s15, 4  }
 0x991   :  { %25 = sbr.rel (!%p23_p5) target bundleno = 3 (0x3), region = 106 }

</bundles_post_ra>
